<compile_context>
chip_gen: v5e
topology: v5e:2x2
jax: 0.10.0
libtpu: 0.0.40
codegen_flags: <defaults>
</compile_context>

<pallas_src>
import jax
import jax.numpy as jnp
import numpy as np
from jax.experimental import pallas as pl
from jax.experimental.pallas import tpu as pltpu

BN_EPS = 1e-5
NUM_CLASSES = 10
FC_PAD = 128            # FC output lanes (10 classes zero-padded to a full vreg width)

# Network dimensions (fixed by the PyTorch module: fc expects 8*8*32 -> 32x32 input).
H1, W1, C0, C1 = 32, 32, 3, 16     # conv1: 3 -> 16 channels on 32x32
H2, W2, C2 = 16, 16, 32            # conv2: 16 -> 32 channels on 16x16
K = 5                              # 5x5 kernels, padding=2

WC_IN1, WC_OUT1 = W1 * C0, W1 * C1       # 96, 512
WC_IN2, WC_OUT2 = W2 * C1, W2 * C2       # 256, 512
FC_IN = (H2 // 2) * (W2 // 2) * C2       # 2048


# ----------------------------------------------------------------------------------
# Fused kernel: conv1 -> BN -> ReLU -> pool -> conv2 -> BN -> ReLU -> pool -> fc
# ----------------------------------------------------------------------------------
def _cnn_kernel(x_ref, w1_ref, s1_ref, b1_ref, w2_ref, s2_ref, b2_ref,
                wfc_ref, bfc_ref, out_ref, pad1_ref, pad2_ref):
    """One image per grid step.

    x_ref   : (1, 32, 96)      image as (H, W*Cin), lane-dense
    w1_ref  : (5, 96, 512)     conv1 block-Toeplitz weights, one per kernel row dy
    s1_ref  : (1, 512)         folded BN1 scale, tiled over W (col = perm(x)*16 + c)
    b1_ref  : (1, 512)         folded BN1 bias, same tiling
    w2_ref  : (5, 256, 512)    conv2 block-Toeplitz weights
    s2_ref  : (1, 512)         folded BN2 scale
    b2_ref  : (1, 512)         folded BN2 bias
    wfc_ref : (2048, 128)      fc weight, rows in (H, W, C) order, cols padded 10->128
    bfc_ref : (1, 128)         fc bias, padded 10->128
    out_ref : (1, 1, 128)      padded logits
    pad1_ref: VMEM (36, 96)    H-padded conv1 input scratch
    pad2_ref: VMEM (20, 256)   H-padded conv2 input scratch
    """
    # ---------------- conv1 (5x5, pad=2) + BN + ReLU + 2x2 max-pool ----------------
    # H-pad only; the "same" W padding is folded into the Toeplitz weights as zero rows.
    pad1_ref[...] = jnp.zeros_like(pad1_ref)
    pad1_ref[pl.ds(2, H1), :] = x_ref[0]

    acc1 = jnp.zeros((H1, WC_OUT1), jnp.float32)
    for dy in range(K):                              # 5 lane-dense MXU matmuls, K-depth 96
        acc1 = acc1 + jnp.dot(pad1_ref[pl.ds(dy, H1), :], w1_ref[dy],
                              preferred_element_type=jnp.float32)
    y1 = jnp.maximum(acc1 * s1_ref[...] + b1_ref[...], 0.0)        # (32, 512)

    # 2x2 max-pool: H via sublane-pair reduction, W via the half-split column permutation.
    y1 = jnp.max(y1.reshape(H1 // 2, 2, WC_OUT1), axis=1)          # (16, 512)
    half1 = WC_OUT1 // 2
    p1 = jnp.maximum(y1[:, :half1], y1[:, half1:])                 # (16, 256) = (H/2, (W/2)*C1)

    # ---------------- conv2 (5x5, pad=2) + BN + ReLU + 2x2 max-pool ----------------
    pad2_ref[...] = jnp.zeros_like(pad2_ref)
    pad2_ref[pl.ds(2, H2), :] = p1

    acc2 = jnp.zeros((H2, WC_OUT2), jnp.float32)
    for dy in range(K):                              # 5 matmuls, K-depth 256
        acc2 = acc2 + jnp.dot(pad2_ref[pl.ds(dy, H2), :], w2_ref[dy],
                              preferred_element_type=jnp.float32)
    y2 = jnp.maximum(acc2 * s2_ref[...] + b2_ref[...], 0.0)        # (16, 512)

    y2 = jnp.max(y2.reshape(H2 // 2, 2, WC_OUT2), axis=1)          # (8, 512)
    half2 = WC_OUT2 // 2
    p2 = jnp.maximum(y2[:, :half2], y2[:, half2:])                 # (8, 256) = (H/4, (W/4)*C2)

    # ---------------- fc (output padded to 128 lanes) ----------------
    feat = p2.reshape(1, FC_IN)                                    # flatten in (y, x, c) order
    logits = jnp.dot(feat, wfc_ref[...],
                     preferred_element_type=jnp.float32) + bfc_ref[...]
    out_ref[0] = logits.astype(out_ref.dtype)


def cnn_forward_pallas(x_rows, kp):
    """x_rows: (N, 32, 96) lane-dense images.  Returns padded logits (N, 1, 128)."""
    N = x_rows.shape[0]
    return pl.pallas_call(
        _cnn_kernel,
        out_shape=jax.ShapeDtypeStruct((N, 1, FC_PAD), jnp.float32),
        grid=(N,),
        in_specs=[
            pl.BlockSpec((1, H1, WC_IN1), lambda n: (n, 0, 0)),
            pl.BlockSpec((K, WC_IN1, WC_OUT1), lambda n: (0, 0, 0)),
            pl.BlockSpec((1, WC_OUT1), lambda n: (0, 0)),
            pl.BlockSpec((1, WC_OUT1), lambda n: (0, 0)),
            pl.BlockSpec((K, WC_IN2, WC_OUT2), lambda n: (0, 0, 0)),
            pl.BlockSpec((1, WC_OUT2), lambda n: (0, 0)),
            pl.BlockSpec((1, WC_OUT2), lambda n: (0, 0)),
            pl.BlockSpec((FC_IN, FC_PAD), lambda n: (0, 0)),
            pl.BlockSpec((1, FC_PAD), lambda n: (0, 0)),
        ],
        out_specs=pl.BlockSpec((1, 1, FC_PAD), lambda n: (n, 0, 0)),
        scratch_shapes=[
            pltpu.VMEM((H1 + K - 1, WC_IN1), jnp.float32),   # (36, 96)
            pltpu.VMEM((H2 + K - 1, WC_IN2), jnp.float32),   # (20, 256)
        ],
        compiler_params=pltpu.CompilerParams(
            dimension_semantics=("parallel",),               # batch across v7x cores
            vmem_limit_bytes=32 * 1024 * 1024,
        ),
    )(x_rows, kp["w1"], kp["s1"], kp["b1"], kp["w2"], kp["s2"], kp["b2"],
      kp["wfc"], kp["bfc"])


# ----------------------------------------------------------------------------------
# Parameter setup (deterministic, PyTorch layouts) + kernel-side preparation (glue)
# ----------------------------------------------------------------------------------
def make_params(key):
    ks = jax.random.split(key, 14)

    def uni(k, shape, bound):
        return jax.random.uniform(k, shape, jnp.float32, -bound, bound)

    p = {}
    bd = 1.0 / float(np.sqrt(C0 * K * K))
    p["w1"] = uni(ks[0], (C1, C0, K, K), bd)          # Conv2d weight (Cout, Cin, kH, kW)
    p["b1"] = uni(ks[1], (C1,), bd)
    p["g1"] = 1.0 + 0.1 * jax.random.normal(ks[2], (C1,), jnp.float32)
    p["beta1"] = 0.1 * jax.random.normal(ks[3], (C1,), jnp.float32)
    p["m1"] = 0.1 * jax.random.normal(ks[4], (C1,), jnp.float32)
    p["v1"] = jax.random.uniform(ks[5], (C1,), jnp.float32, 0.5, 1.5)

    bd = 1.0 / float(np.sqrt(C1 * K * K))
    p["w2"] = uni(ks[6], (C2, C1, K, K), bd)
    p["b2"] = uni(ks[7], (C2,), bd)
    p["g2"] = 1.0 + 0.1 * jax.random.normal(ks[8], (C2,), jnp.float32)
    p["beta2"] = 0.1 * jax.random.normal(ks[9], (C2,), jnp.float32)
    p["m2"] = 0.1 * jax.random.normal(ks[10], (C2,), jnp.float32)
    p["v2"] = jax.random.uniform(ks[11], (C2,), jnp.float32, 0.5, 1.5)

    bd = 1.0 / float(np.sqrt(FC_IN))
    p["wfc"] = uni(ks[12], (NUM_CLASSES, FC_IN), bd)   # Linear weight (out, in)
    p["bfc"] = uni(ks[13], (NUM_CLASSES,), bd)
    return p


def _make_toeplitz(w_oihw, w_in):
    """OIHW conv weight -> (kH, W_in*Cin, W_out*Cout) block-Toeplitz matrices (one per
    kernel row dy).  The 'same' W padding (pad=2) is folded in as zero blocks.  Output
    columns are permuted so the two members of each 2x1 max-pool pair land in opposite
    halves of the lane dim:  col(xo, co) = (xo % 2)*(W/2*Cout) + (xo // 2)*Cout + co,
    turning the W-direction max-pool into jnp.maximum(left_half, right_half)."""
    w = np.asarray(w_oihw, dtype=np.float32)
    cout, cin, kh, kw = w.shape
    pad = kw // 2
    w_out = w_in
    half_cols = (w_out // 2) * cout
    t = np.zeros((kh, w_in * cin, w_out * cout), np.float32)
    for dy in range(kh):
        for xo in range(w_out):
            col0 = (xo % 2) * half_cols + (xo // 2) * cout
            for dx in range(kw):
                xi = xo + dx - pad
                if 0 <= xi < w_in:
                    t[dy, xi * cin:(xi + 1) * cin, col0:col0 + cout] = w[:, :, dy, dx].T
    return jnp.asarray(t)


def prepare_kernel_params(p):
    def fold_bn(conv_bias, gamma, beta, mean, var):
        scale = gamma / jnp.sqrt(var + BN_EPS)
        bias = beta + (conv_bias - mean) * scale
        return scale, bias

    kp = {}
    kp["w1"] = _make_toeplitz(p["w1"], W1)                         # (5, 96, 512)
    s1, b1 = fold_bn(p["b1"], p["g1"], p["beta1"], p["m1"], p["v1"])
    kp["s1"] = jnp.tile(s1, W1).reshape(1, WC_OUT1)                # col % 16 == channel
    kp["b1"] = jnp.tile(b1, W1).reshape(1, WC_OUT1)

    kp["w2"] = _make_toeplitz(p["w2"], W2)                         # (5, 256, 512)
    s2, b2 = fold_bn(p["b2"], p["g2"], p["beta2"], p["m2"], p["v2"])
    kp["s2"] = jnp.tile(s2, W2).reshape(1, WC_OUT2)                # col % 32 == channel
    kp["b2"] = jnp.tile(b2, W2).reshape(1, WC_OUT2)

    # PyTorch flattens NCHW -> feature order (C, H, W); the kernel flattens its
    # (H/4, (W/4)*C2) activation in (H, W, C) order.  Permute the fc weight rows once
    # and zero-pad the 10 output classes to 128 lanes.
    wfc_t = p["wfc"].T.reshape(C2, H2 // 2, W2 // 2, NUM_CLASSES) \
                      .transpose(1, 2, 0, 3).reshape(FC_IN, NUM_CLASSES)
    kp["wfc"] = jnp.zeros((FC_IN, FC_PAD), jnp.float32).at[:, :NUM_CLASSES].set(wfc_t)
    kp["bfc"] = jnp.zeros((1, FC_PAD), jnp.float32).at[0, :NUM_CLASSES].set(p["bfc"])
    return kp


# ----------------------------------------------------------------------------------
# Full forward pass (Pallas kernel + thin glue)
# ----------------------------------------------------------------------------------
@jax.jit
def cnn_forward(x_nchw, kp):
    N = x_nchw.shape[0]
    # NCHW -> (N, H, W*Cin): lane-dense rows for the first Toeplitz matmul (glue only).
    x_rows = jnp.transpose(x_nchw, (0, 2, 3, 1)).reshape(N, H1, WC_IN1)
    out = cnn_forward_pallas(x_rows, kp)               # (N, 1, 128)
    return out[:, 0, :NUM_CLASSES]                     # (N, 10)


# ----------------------------------------------------------------------------------
# Pure-JAX reference (NCHW, mirrors the PyTorch module in eval mode)
# ----------------------------------------------------------------------------------
def reference_forward(x_nchw, p):
    def block(x, w, b, gamma, beta, mean, var):
        y = jax.lax.conv_general_dilated(
            x, w, window_strides=(1, 1), padding=((2, 2), (2, 2)),
            dimension_numbers=("NCHW", "OIHW", "NCHW"))
        y = y + b[None, :, None, None]
        y = (y - mean[None, :, None, None]) * (
            gamma[None, :, None, None] / jnp.sqrt(var[None, :, None, None] + BN_EPS)
        ) + beta[None, :, None, None]
        y = jnp.maximum(y, 0.0)
        n, c, h, w_ = y.shape
        return y.reshape(n, c, h // 2, 2, w_ // 2, 2).max(axis=(3, 5))

    y = block(x_nchw, p["w1"], p["b1"], p["g1"], p["beta1"], p["m1"], p["v1"])
    y = block(y, p["w2"], p["b2"], p["g2"], p["beta2"], p["m2"], p["v2"])
    y = y.reshape(y.shape[0], -1)
    return y @ p["wfc"].T + p["bfc"]


if __name__ == "__main__":
    key = jax.random.PRNGKey(0)
    k_x, k_p = jax.random.split(key)

    # CIFAR-10 sized input, small batch (the fc layer requires 32x32 spatial input).
    x = jax.random.normal(k_x, (2, 3, 32, 32), jnp.float32)   # NCHW like PyTorch

    params = make_params(k_p)
    kparams = prepare_kernel_params(params)

    out = cnn_forward(x, kparams)
    out = jax.block_until_ready(out)
    assert out.shape == (2, NUM_CLASSES) and out.dtype == jnp.float32

    ref = reference_forward(x, params)
    np.testing.assert_allclose(np.asarray(out), np.asarray(ref), rtol=2e-3, atol=2e-3)

    print("KERNEL_OK")
</pallas_src>

<mosaic_0001>
module attributes {stable_mosaic.version = 11 : i64} {
  func.func @_cnn_kernel(%arg0: i32, %arg1: memref<1x32x96xf32, #tpu.memory_space<vmem>>, %arg2: memref<5x96x512xf32, #tpu.memory_space<vmem>>, %arg3: memref<1x512xf32, #tpu.memory_space<vmem>>, %arg4: memref<1x512xf32, #tpu.memory_space<vmem>>, %arg5: memref<5x256x512xf32, #tpu.memory_space<vmem>>, %arg6: memref<1x512xf32, #tpu.memory_space<vmem>>, %arg7: memref<1x512xf32, #tpu.memory_space<vmem>>, %arg8: memref<2048x128xf32, #tpu.memory_space<vmem>>, %arg9: memref<1x128xf32, #tpu.memory_space<vmem>>, %arg10: memref<1x1x128xf32, #tpu.memory_space<vmem>>, %arg11: memref<36x96xf32, #tpu.memory_space<vmem>>, %arg12: memref<20x256xf32, #tpu.memory_space<vmem>>) attributes {dimension_semantics = [#tpu.dimension_semantics<parallel>], iteration_bounds = array<i64: 2>, scalar_prefetch = 0 : i64, scratch_operands = 2 : i64, tpu.core_type = #tpu.core_type<tc>, window_params = [{transform_indices = @transform_0, window_bounds = array<i64: 1, 32, 96>}, {pipeline_mode = #tpu.pipeline_mode<synchronous>, transform_indices = @transform_1, window_bounds = array<i64: 5, 96, 512>}, {pipeline_mode = #tpu.pipeline_mode<synchronous>, transform_indices = @transform_2, window_bounds = array<i64: 1, 512>}, {pipeline_mode = #tpu.pipeline_mode<synchronous>, transform_indices = @transform_3, window_bounds = array<i64: 1, 512>}, {pipeline_mode = #tpu.pipeline_mode<synchronous>, transform_indices = @transform_4, window_bounds = array<i64: 5, 256, 512>}, {pipeline_mode = #tpu.pipeline_mode<synchronous>, transform_indices = @transform_5, window_bounds = array<i64: 1, 512>}, {pipeline_mode = #tpu.pipeline_mode<synchronous>, transform_indices = @transform_6, window_bounds = array<i64: 1, 512>}, {pipeline_mode = #tpu.pipeline_mode<synchronous>, transform_indices = @transform_7, window_bounds = array<i64: 2048, 128>}, {pipeline_mode = #tpu.pipeline_mode<synchronous>, transform_indices = @transform_8, window_bounds = array<i64: 1, 128>}, {transform_indices = @transform_9, window_bounds = array<i64: 1, 1, 128>}]} {
    %cst = arith.constant 0.000000e+00 : f32
    %0 = vector.broadcast %cst : f32 to vector<36x96xf32>
    %c0 = arith.constant 0 : index
    %c0_0 = arith.constant 0 : index
    %1 = vector.load %arg11[%c0, %c0_0] : memref<36x96xf32, #tpu.memory_space<vmem>>, vector<36x96xf32>
    tpu.vector_store %arg11[%c0, %c0_0], %0 {strides = array<i32>} : memref<36x96xf32, #tpu.memory_space<vmem>>, vector<36x96xf32>,
    %c0_1 = arith.constant 0 : index
    %c0_2 = arith.constant 0 : index
    %c0_3 = arith.constant 0 : index
    %2 = vector.load %arg1[%c0_1, %c0_2, %c0_3] : memref<1x32x96xf32, #tpu.memory_space<vmem>>, vector<1x32x96xf32>
    %3 = vector.shape_cast %2 : vector<1x32x96xf32> to vector<32x96xf32>
    %c2 = arith.constant 2 : index
    %c0_4 = arith.constant 0 : index
    %4 = vector.load %arg11[%c2, %c0_4] : memref<36x96xf32, #tpu.memory_space<vmem>>, vector<32x96xf32>
    tpu.vector_store %arg11[%c2, %c0_4], %3 {strides = array<i32>} : memref<36x96xf32, #tpu.memory_space<vmem>>, vector<32x96xf32>,
    %cst_5 = arith.constant 0.000000e+00 : f32
    %5 = vector.broadcast %cst_5 : f32 to vector<32x512xf32>
    %c0_6 = arith.constant 0 : index
    %c0_7 = arith.constant 0 : index
    %6 = vector.load %arg11[%c0_6, %c0_7] : memref<36x96xf32, #tpu.memory_space<vmem>>, vector<32x96xf32>
    %c0_8 = arith.constant 0 : index
    %c0_9 = arith.constant 0 : index
    %c0_10 = arith.constant 0 : index
    %7 = vector.load %arg2[%c0_8, %c0_9, %c0_10] : memref<5x96x512xf32, #tpu.memory_space<vmem>>, vector<1x96x512xf32>
    %8 = vector.shape_cast %7 : vector<1x96x512xf32> to vector<96x512xf32>
    %cst_11 = arith.constant dense<0.000000e+00> : vector<32x512xf32>
    %9 = tpu.matmul %6, %8, %cst_11 {dimension_numbers = #tpu.dot_dimension_numbers<[1], [0], [0], [1], [0, 0, 1, 1], [], []>} : vector<32x96xf32>, vector<96x512xf32>, vector<32x512xf32> -> vector<32x512xf32>
    %10 = arith.addf %5, %9 : vector<32x512xf32>
    %c1 = arith.constant 1 : index
    %c0_12 = arith.constant 0 : index
    %11 = vector.load %arg11[%c1, %c0_12] : memref<36x96xf32, #tpu.memory_space<vmem>>, vector<32x96xf32>
    %c1_13 = arith.constant 1 : index
    %c0_14 = arith.constant 0 : index
    %c0_15 = arith.constant 0 : index
    %12 = vector.load %arg2[%c1_13, %c0_14, %c0_15] : memref<5x96x512xf32, #tpu.memory_space<vmem>>, vector<1x96x512xf32>
    %13 = vector.shape_cast %12 : vector<1x96x512xf32> to vector<96x512xf32>
    %cst_16 = arith.constant dense<0.000000e+00> : vector<32x512xf32>
    %14 = tpu.matmul %11, %13, %cst_16 {dimension_numbers = #tpu.dot_dimension_numbers<[1], [0], [0], [1], [0, 0, 1, 1], [], []>} : vector<32x96xf32>, vector<96x512xf32>, vector<32x512xf32> -> vector<32x512xf32>
    %15 = arith.addf %10, %14 : vector<32x512xf32>
    %c2_17 = arith.constant 2 : index
    %c0_18 = arith.constant 0 : index
    %16 = vector.load %arg11[%c2_17, %c0_18] : memref<36x96xf32, #tpu.memory_space<vmem>>, vector<32x96xf32>
    %c2_19 = arith.constant 2 : index
    %c0_20 = arith.constant 0 : index
    %c0_21 = arith.constant 0 : index
    %17 = vector.load %arg2[%c2_19, %c0_20, %c0_21] : memref<5x96x512xf32, #tpu.memory_space<vmem>>, vector<1x96x512xf32>
    %18 = vector.shape_cast %17 : vector<1x96x512xf32> to vector<96x512xf32>
    %cst_22 = arith.constant dense<0.000000e+00> : vector<32x512xf32>
    %19 = tpu.matmul %16, %18, %cst_22 {dimension_numbers = #tpu.dot_dimension_numbers<[1], [0], [0], [1], [0, 0, 1, 1], [], []>} : vector<32x96xf32>, vector<96x512xf32>, vector<32x512xf32> -> vector<32x512xf32>
    %20 = arith.addf %15, %19 : vector<32x512xf32>
    %c3 = arith.constant 3 : index
    %c0_23 = arith.constant 0 : index
    %21 = vector.load %arg11[%c3, %c0_23] : memref<36x96xf32, #tpu.memory_space<vmem>>, vector<32x96xf32>
    %c3_24 = arith.constant 3 : index
    %c0_25 = arith.constant 0 : index
    %c0_26 = arith.constant 0 : index
    %22 = vector.load %arg2[%c3_24, %c0_25, %c0_26] : memref<5x96x512xf32, #tpu.memory_space<vmem>>, vector<1x96x512xf32>
    %23 = vector.shape_cast %22 : vector<1x96x512xf32> to vector<96x512xf32>
    %cst_27 = arith.constant dense<0.000000e+00> : vector<32x512xf32>
    %24 = tpu.matmul %21, %23, %cst_27 {dimension_numbers = #tpu.dot_dimension_numbers<[1], [0], [0], [1], [0, 0, 1, 1], [], []>} : vector<32x96xf32>, vector<96x512xf32>, vector<32x512xf32> -> vector<32x512xf32>
    %25 = arith.addf %20, %24 : vector<32x512xf32>
    %c4 = arith.constant 4 : index
    %c0_28 = arith.constant 0 : index
    %26 = vector.load %arg11[%c4, %c0_28] : memref<36x96xf32, #tpu.memory_space<vmem>>, vector<32x96xf32>
    %c4_29 = arith.constant 4 : index
    %c0_30 = arith.constant 0 : index
    %c0_31 = arith.constant 0 : index
    %27 = vector.load %arg2[%c4_29, %c0_30, %c0_31] : memref<5x96x512xf32, #tpu.memory_space<vmem>>, vector<1x96x512xf32>
    %28 = vector.shape_cast %27 : vector<1x96x512xf32> to vector<96x512xf32>
    %cst_32 = arith.constant dense<0.000000e+00> : vector<32x512xf32>
    %29 = tpu.matmul %26, %28, %cst_32 {dimension_numbers = #tpu.dot_dimension_numbers<[1], [0], [0], [1], [0, 0, 1, 1], [], []>} : vector<32x96xf32>, vector<96x512xf32>, vector<32x512xf32> -> vector<32x512xf32>
    %30 = arith.addf %25, %29 : vector<32x512xf32>
    %c0_33 = arith.constant 0 : index
    %c0_34 = arith.constant 0 : index
    %31 = vector.load %arg3[%c0_33, %c0_34] : memref<1x512xf32, #tpu.memory_space<vmem>>, vector<1x512xf32>
    %32 = vector.broadcast %31 : vector<1x512xf32> to vector<32x512xf32>
    %33 = arith.mulf %30, %32 : vector<32x512xf32>
    %c0_35 = arith.constant 0 : index
    %c0_36 = arith.constant 0 : index
    %34 = vector.load %arg4[%c0_35, %c0_36] : memref<1x512xf32, #tpu.memory_space<vmem>>, vector<1x512xf32>
    %35 = vector.broadcast %34 : vector<1x512xf32> to vector<32x512xf32>
    %36 = arith.addf %33, %35 : vector<32x512xf32>
    %cst_37 = arith.constant 0.000000e+00 : f32
    %37 = vector.broadcast %cst_37 : f32 to vector<32x512xf32>
    %38 = arith.maximumf %36, %37 : vector<32x512xf32>
    %39 = vector.shape_cast %38 : vector<32x512xf32> to vector<16x2x512xf32>
    %cst_38 = arith.constant dense<0xFF800000> : vector<16x512xf32>
    %40 = vector.multi_reduction <maximumf>, %39, %cst_38 [1] : vector<16x2x512xf32> to vector<16x512xf32>
    %41 = vector.extract_strided_slice %40 {offsets = [0, 0], sizes = [16, 256], strides = [1, 1]} : vector<16x512xf32> to vector<16x256xf32>
    %42 = vector.extract_strided_slice %40 {offsets = [0, 256], sizes = [16, 256], strides = [1, 1]} : vector<16x512xf32> to vector<16x256xf32>
    %43 = arith.maximumf %41, %42 : vector<16x256xf32>
    %cst_39 = arith.constant 0.000000e+00 : f32
    %44 = vector.broadcast %cst_39 : f32 to vector<20x256xf32>
    %c0_40 = arith.constant 0 : index
    %c0_41 = arith.constant 0 : index
    %45 = vector.load %arg12[%c0_40, %c0_41] : memref<20x256xf32, #tpu.memory_space<vmem>>, vector<20x256xf32>
    tpu.vector_store %arg12[%c0_40, %c0_41], %44 {strides = array<i32>} : memref<20x256xf32, #tpu.memory_space<vmem>>, vector<20x256xf32>,
    %c2_42 = arith.constant 2 : index
    %c0_43 = arith.constant 0 : index
    %46 = vector.load %arg12[%c2_42, %c0_43] : memref<20x256xf32, #tpu.memory_space<vmem>>, vector<16x256xf32>
    tpu.vector_store %arg12[%c2_42, %c0_43], %43 {strides = array<i32>} : memref<20x256xf32, #tpu.memory_space<vmem>>, vector<16x256xf32>,
    %cst_44 = arith.constant 0.000000e+00 : f32
    %47 = vector.broadcast %cst_44 : f32 to vector<16x512xf32>
    %c0_45 = arith.constant 0 : index
    %c0_46 = arith.constant 0 : index
    %48 = vector.load %arg12[%c0_45, %c0_46] : memref<20x256xf32, #tpu.memory_space<vmem>>, vector<16x256xf32>
    %c0_47 = arith.constant 0 : index
    %c0_48 = arith.constant 0 : index
    %c0_49 = arith.constant 0 : index
    %49 = vector.load %arg5[%c0_47, %c0_48, %c0_49] : memref<5x256x512xf32, #tpu.memory_space<vmem>>, vector<1x256x512xf32>
    %50 = vector.shape_cast %49 : vector<1x256x512xf32> to vector<256x512xf32>
    %cst_50 = arith.constant dense<0.000000e+00> : vector<16x512xf32>
    %51 = tpu.matmul %48, %50, %cst_50 {dimension_numbers = #tpu.dot_dimension_numbers<[1], [0], [0], [1], [0, 0, 1, 1], [], []>} : vector<16x256xf32>, vector<256x512xf32>, vector<16x512xf32> -> vector<16x512xf32>
    %52 = arith.addf %47, %51 : vector<16x512xf32>
    %c1_51 = arith.constant 1 : index
    %c0_52 = arith.constant 0 : index
    %53 = vector.load %arg12[%c1_51, %c0_52] : memref<20x256xf32, #tpu.memory_space<vmem>>, vector<16x256xf32>
    %c1_53 = arith.constant 1 : index
    %c0_54 = arith.constant 0 : index
    %c0_55 = arith.constant 0 : index
    %54 = vector.load %arg5[%c1_53, %c0_54, %c0_55] : memref<5x256x512xf32, #tpu.memory_space<vmem>>, vector<1x256x512xf32>
    %55 = vector.shape_cast %54 : vector<1x256x512xf32> to vector<256x512xf32>
    %cst_56 = arith.constant dense<0.000000e+00> : vector<16x512xf32>
    %56 = tpu.matmul %53, %55, %cst_56 {dimension_numbers = #tpu.dot_dimension_numbers<[1], [0], [0], [1], [0, 0, 1, 1], [], []>} : vector<16x256xf32>, vector<256x512xf32>, vector<16x512xf32> -> vector<16x512xf32>
    %57 = arith.addf %52, %56 : vector<16x512xf32>
    %c2_57 = arith.constant 2 : index
    %c0_58 = arith.constant 0 : index
    %58 = vector.load %arg12[%c2_57, %c0_58] : memref<20x256xf32, #tpu.memory_space<vmem>>, vector<16x256xf32>
    %c2_59 = arith.constant 2 : index
    %c0_60 = arith.constant 0 : index
    %c0_61 = arith.constant 0 : index
    %59 = vector.load %arg5[%c2_59, %c0_60, %c0_61] : memref<5x256x512xf32, #tpu.memory_space<vmem>>, vector<1x256x512xf32>
    %60 = vector.shape_cast %59 : vector<1x256x512xf32> to vector<256x512xf32>
    %cst_62 = arith.constant dense<0.000000e+00> : vector<16x512xf32>
    %61 = tpu.matmul %58, %60, %cst_62 {dimension_numbers = #tpu.dot_dimension_numbers<[1], [0], [0], [1], [0, 0, 1, 1], [], []>} : vector<16x256xf32>, vector<256x512xf32>, vector<16x512xf32> -> vector<16x512xf32>
    %62 = arith.addf %57, %61 : vector<16x512xf32>
    %c3_63 = arith.constant 3 : index
    %c0_64 = arith.constant 0 : index
    %63 = vector.load %arg12[%c3_63, %c0_64] : memref<20x256xf32, #tpu.memory_space<vmem>>, vector<16x256xf32>
    %c3_65 = arith.constant 3 : index
    %c0_66 = arith.constant 0 : index
    %c0_67 = arith.constant 0 : index
    %64 = vector.load %arg5[%c3_65, %c0_66, %c0_67] : memref<5x256x512xf32, #tpu.memory_space<vmem>>, vector<1x256x512xf32>
    %65 = vector.shape_cast %64 : vector<1x256x512xf32> to vector<256x512xf32>
    %cst_68 = arith.constant dense<0.000000e+00> : vector<16x512xf32>
    %66 = tpu.matmul %63, %65, %cst_68 {dimension_numbers = #tpu.dot_dimension_numbers<[1], [0], [0], [1], [0, 0, 1, 1], [], []>} : vector<16x256xf32>, vector<256x512xf32>, vector<16x512xf32> -> vector<16x512xf32>
    %67 = arith.addf %62, %66 : vector<16x512xf32>
    %c4_69 = arith.constant 4 : index
    %c0_70 = arith.constant 0 : index
    %68 = vector.load %arg12[%c4_69, %c0_70] : memref<20x256xf32, #tpu.memory_space<vmem>>, vector<16x256xf32>
    %c4_71 = arith.constant 4 : index
    %c0_72 = arith.constant 0 : index
    %c0_73 = arith.constant 0 : index
    %69 = vector.load %arg5[%c4_71, %c0_72, %c0_73] : memref<5x256x512xf32, #tpu.memory_space<vmem>>, vector<1x256x512xf32>
    %70 = vector.shape_cast %69 : vector<1x256x512xf32> to vector<256x512xf32>
    %cst_74 = arith.constant dense<0.000000e+00> : vector<16x512xf32>
    %71 = tpu.matmul %68, %70, %cst_74 {dimension_numbers = #tpu.dot_dimension_numbers<[1], [0], [0], [1], [0, 0, 1, 1], [], []>} : vector<16x256xf32>, vector<256x512xf32>, vector<16x512xf32> -> vector<16x512xf32>
    %72 = arith.addf %67, %71 : vector<16x512xf32>
    %c0_75 = arith.constant 0 : index
    %c0_76 = arith.constant 0 : index
    %73 = vector.load %arg6[%c0_75, %c0_76] : memref<1x512xf32, #tpu.memory_space<vmem>>, vector<1x512xf32>
    %74 = vector.broadcast %73 : vector<1x512xf32> to vector<16x512xf32>
    %75 = arith.mulf %72, %74 : vector<16x512xf32>
    %c0_77 = arith.constant 0 : index
    %c0_78 = arith.constant 0 : index
    %76 = vector.load %arg7[%c0_77, %c0_78] : memref<1x512xf32, #tpu.memory_space<vmem>>, vector<1x512xf32>
    %77 = vector.broadcast %76 : vector<1x512xf32> to vector<16x512xf32>
    %78 = arith.addf %75, %77 : vector<16x512xf32>
    %cst_79 = arith.constant 0.000000e+00 : f32
    %79 = vector.broadcast %cst_79 : f32 to vector<16x512xf32>
    %80 = arith.maximumf %78, %79 : vector<16x512xf32>
    %81 = vector.shape_cast %80 : vector<16x512xf32> to vector<8x2x512xf32>
    %cst_80 = arith.constant dense<0xFF800000> : vector<8x512xf32>
    %82 = vector.multi_reduction <maximumf>, %81, %cst_80 [1] : vector<8x2x512xf32> to vector<8x512xf32>
    %83 = vector.extract_strided_slice %82 {offsets = [0, 0], sizes = [8, 256], strides = [1, 1]} : vector<8x512xf32> to vector<8x256xf32>
    %84 = vector.extract_strided_slice %82 {offsets = [0, 256], sizes = [8, 256], strides = [1, 1]} : vector<8x512xf32> to vector<8x256xf32>
    %85 = arith.maximumf %83, %84 : vector<8x256xf32>
    %86 = vector.shape_cast %85 : vector<8x256xf32> to vector<1x2048xf32>
    %c0_81 = arith.constant 0 : index
    %c0_82 = arith.constant 0 : index
    %87 = vector.load %arg8[%c0_81, %c0_82] : memref<2048x128xf32, #tpu.memory_space<vmem>>, vector<2048x128xf32>
    %cst_83 = arith.constant dense<0.000000e+00> : vector<1x128xf32>
    %88 = tpu.matmul %86, %87, %cst_83 {dimension_numbers = #tpu.dot_dimension_numbers<[1], [0], [0], [1], [0, 0, 1, 1], [], []>} : vector<1x2048xf32>, vector<2048x128xf32>, vector<1x128xf32> -> vector<1x128xf32>
    %c0_84 = arith.constant 0 : index
    %c0_85 = arith.constant 0 : index
    %89 = vector.load %arg9[%c0_84, %c0_85] : memref<1x128xf32, #tpu.memory_space<vmem>>, vector<1x128xf32>
    %90 = arith.addf %88, %89 : vector<1x128xf32>
    %c0_86 = arith.constant 0 : index
    %c0_87 = arith.constant 0 : index
    %c0_88 = arith.constant 0 : index
    %91 = vector.load %arg10[%c0_86, %c0_87, %c0_88] : memref<1x1x128xf32, #tpu.memory_space<vmem>>, vector<1x1x128xf32>
    %92 = vector.shape_cast %91 : vector<1x1x128xf32> to vector<1x128xf32>
    %93 = vector.shape_cast %90 : vector<1x128xf32> to vector<1x1x128xf32>
    tpu.vector_store %arg10[%c0_86, %c0_87, %c0_88], %93 {strides = array<i32>} : memref<1x1x128xf32, #tpu.memory_space<vmem>>, vector<1x1x128xf32>,
    return
  }
  func.func @transform_0(%arg0: i32) -> (i32, i32, i32) {
    %c0_i32 = arith.constant 0 : i32
    %c0_i32_0 = arith.constant 0 : i32
    %c0_i32_1 = arith.constant 0 : i32
    return %arg0, %c0_i32, %c0_i32_0 : i32, i32, i32
  }
  func.func @transform_1(%arg0: i32) -> (i32, i32, i32) {
    %c0_i32 = arith.constant 0 : i32
    %c0_i32_0 = arith.constant 0 : i32
    %c0_i32_1 = arith.constant 0 : i32
    %c0_i32_2 = arith.constant 0 : i32
    return %c0_i32, %c0_i32_0, %c0_i32_1 : i32, i32, i32
  }
  func.func @transform_2(%arg0: i32) -> (i32, i32) {
    %c0_i32 = arith.constant 0 : i32
    %c0_i32_0 = arith.constant 0 : i32
    %c0_i32_1 = arith.constant 0 : i32
    return %c0_i32, %c0_i32_0 : i32, i32
  }
  func.func @transform_3(%arg0: i32) -> (i32, i32) {
    %c0_i32 = arith.constant 0 : i32
    %c0_i32_0 = arith.constant 0 : i32
    %c0_i32_1 = arith.constant 0 : i32
    return %c0_i32, %c0_i32_0 : i32, i32
  }
  func.func @transform_4(%arg0: i32) -> (i32, i32, i32) {
    %c0_i32 = arith.constant 0 : i32
    %c0_i32_0 = arith.constant 0 : i32
    %c0_i32_1 = arith.constant 0 : i32
    %c0_i32_2 = arith.constant 0 : i32
    return %c0_i32, %c0_i32_0, %c0_i32_1 : i32, i32, i32
  }
  func.func @transform_5(%arg0: i32) -> (i32, i32) {
    %c0_i32 = arith.constant 0 : i32
    %c0_i32_0 = arith.constant 0 : i32
    %c0_i32_1 = arith.constant 0 : i32
    return %c0_i32, %c0_i32_0 : i32, i32
  }
  func.func @transform_6(%arg0: i32) -> (i32, i32) {
    %c0_i32 = arith.constant 0 : i32
    %c0_i32_0 = arith.constant 0 : i32
    %c0_i32_1 = arith.constant 0 : i32
    return %c0_i32, %c0_i32_0 : i32, i32
  }
  func.func @transform_7(%arg0: i32) -> (i32, i32) {
    %c0_i32 = arith.constant 0 : i32
    %c0_i32_0 = arith.constant 0 : i32
    %c0_i32_1 = arith.constant 0 : i32
    return %c0_i32, %c0_i32_0 : i32, i32
  }
  func.func @transform_8(%arg0: i32) -> (i32, i32) {
    %c0_i32 = arith.constant 0 : i32
    %c0_i32_0 = arith.constant 0 : i32
    %c0_i32_1 = arith.constant 0 : i32
    return %c0_i32, %c0_i32_0 : i32, i32
  }
  func.func @transform_9(%arg0: i32) -> (i32, i32, i32) {
    %c0_i32 = arith.constant 0 : i32
    %c0_i32_0 = arith.constant 0 : i32
    %c0_i32_1 = arith.constant 0 : i32
    return %arg0, %c0_i32, %c0_i32_0 : i32, i32, i32
  }
}

</mosaic_0001>

<bundles_post_ra>
// kernel: cnn_forward.1
= control target key start
LH: loop header
LB: loop body
LE: loop exit
PB: predicated region body
PF: predicated region fallthrough
CT: control target
= control target key end

     0   :  { %s7423_s0 = inlined_call_operand.vmem [shape: f32[2,32,96], index: 0, kind: input, shape index: {}]   ;;  %s7424_s1 = inlined_call_operand.hbm [shape: f32[5,96,512], index: 1, kind: input, shape index: {}]   ;;  %s7425_s2 = inlined_call_operand.hbm [shape: f32[1,512], index: 2, kind: input, shape index: {}]   ;;  %s7426_s3 = inlined_call_operand.hbm [shape: f32[1,512], index: 3, kind: input, shape index: {}]   ;;  %s7427_s4 = inlined_call_operand.hbm [shape: f32[5,256,512], index: 4, kind: input, shape index: {}]   ;;  %s7428_s5 = inlined_call_operand.hbm [shape: f32[1,512], index: 5, kind: input, shape index: {}]   ;;  %s7429_s6 = inlined_call_operand.hbm [shape: f32[1,512], index: 6, kind: input, shape index: {}]   ;;  %s7430_s7 = inlined_call_operand.hbm [shape: f32[2048,128], index: 7, kind: input, shape index: {}]   ;;  %s7431_s8 = inlined_call_operand.hbm [shape: f32[1,128], index: 8, kind: input, shape index: {}]   ;;  %s7432_s9 = inlined_call_operand.hbm [shape: f32[2,1,128], index: 9, kind: output, shape index: {}]  }
   0x1   :  { %7434 = sst [smem:[#allocation41_spill]] %s7425_s2 }
   0x2   :  { %7435 = sst [smem:[#allocation42_spill]] %s7427_s4 }
   0x3   :  { %7436 = sst [smem:[#allocation43_spill]] %s7429_s6 }
   0x4   :  { %14 = vsyncpa [#allocation5], 0 }
   0x5   :  { %15 = vsyncpa [#allocation8], 0 }
   0x6   :  { %16 = vsyncpa [#allocation11], 0 }
   0x7   :  { %17 = vsyncpa [#allocation14], 0 }
   0x8   :  { %18 = vsyncpa [#allocation17], 0 }
   0x9   :  { %19 = vsyncpa [#allocation6], 0 }
   0xa   :  { %21 = vsyncpa [#allocation6 + $0x1], 0  ;;  %s5816_s30 = smov 0   ;;  %s5818_s10 = smov 0  }
   0xb   :  { %s5820_s11 = smov 0   ;;  %s5822_s12 = smov 0  }
   0xc LB: > { %7437 = sst [smem:[#allocation25_spill]] %s5746_s11  ;;  %s5837_s13 = sadd.s32 4294967295, %s5750_s12   ;;  %s5750_s12 = sphi %s5822_s12, %s7513_s12   ;;  %s5746_s11 = sphi %s5820_s11, %s7510_s11   ;;  %s5742_s10 = sphi %s5818_s10, %s7512_s10   ;;  %s5738_s30 = sphi %s5816_s30, %s7511_s30  }
   0xd   : > { %s5194_s14 = sadd.s32 4294967294, %s5750_s12   ;;  %s5841_s15 = sadd.s32 1, %s5750_s12  }
   0xe   : > { %s228_s16 = sadd.s32 1, %s5746_s11  ;;  %s225_s17 = ssub.s32 %s5750_s12, %s5841_s15 }
   0xf   : > { %p238_p0 = scmp.ne.s32.totalorder %s5746_s11, %s5742_s10  ;;  %p226_p1 = scmp.eq.s32.totalorder %s225_s17, 0 }
  0x10   : > { %p239_p2 = scmp.eq.s32.totalorder %s5837_s13, 1  ;;  %p244_p3 = scmp.ne.s32.totalorder %s5742_s10, %s5738_s30 }
  0x11   : > { %p245_p4 = scmp.eq.s32.totalorder %s5194_s14, 1  ;;  %p5195_p7 = scmp.ge.s32.totalorder %s5750_s12, 1 }
  0x12   : > { %s5852_s18 = scalar_select %p226_p1, %s5746_s11, %s228_s16  }
  0x13   : > { %p5854_p5 = por %p239_p2, %p238_p0  ;;  %p5858_p6 = por %p245_p4, %p244_p3 }
  0x14   : > { %7438 = sst [smem:[#allocation26_spill]] %s5852_s18  ;;  %p252_p8 = scmp.lt.s32.totalorder %s5750_s12, 3 }
  0x15   : > { %p5362_p9 = scmp.eq.s32.totalorder %s5837_s13, 0  ;;  %s7442_s2 = sld [smem:[#allocation41_spill]] }
  0x16   : > { %p5865_p10 = pnand %p5195_p7, %p252_p8  ;;  %s5752_s25 = smov [#allocation7]  }
  0x17   : > { %s280_s26 = sshll.u32 %s5752_s25, 4  ;;  %s7444_s4 = sld [smem:[#allocation42_spill]]  ;;  %s281_s26 = int_to_ptr.vmem [resolvable:$true] %s280_s26 }
  0x18   : > { %p5333_p11 = pneg %p5865_p10  ;;  %s5753_s16 = smov [#allocation10]  }
  0x19   : > { %s303_s17 = sshll.u32 %s5753_s16, 4  ;;  %s7445_s6 = sld [smem:[#allocation43_spill]]  ;;  %s304_s17 = int_to_ptr.vmem [resolvable:$true] %s303_s17 }
  0x1a   : > { %p5876_p12 = pnand %p5362_p9, %p5333_p11  ;;  %s5755_s18 = smov 32  }
  0x1b   : > { %s278_s24 = sshll.u32 %s7442_s2, 4  ;;  %s5754_s2 = smov 512   ;;  %s279_s24 = int_to_ptr.hbm [resolvable:$true] %s278_s24 }
  0x1c   : > { %5339 = dma.hbm_to_vmem [thread:$0]  (!%p5876_p12), %s279_s24, 64, %s281_s26, [#allocation8]  }
  0x1d   : > { %s301_s14 = sshll.u32 %s7444_s4, 4  ;;  %s263_s4 = sshll.u32 %s7424_s1, 4  ;;  %s302_s14 = int_to_ptr.hbm [resolvable:$true] %s301_s14  ;;  %s264_s4 = int_to_ptr.hbm [resolvable:$true] %s263_s4 }
  0x1e   : > { %5345 = dma.hbm_to_vmem [thread:$0]  (!%p5876_p12), %s302_s14, 81920, %s304_s17, [#allocation11], %s5754_s2, %s5754_s2, %s5755_s18  }
  0x1f   : > { %s328_s25 = sshll.u32 %s7445_s6, 4  ;;  %s5756_s11 = smov [#allocation13]   ;;  %s329_s25 = int_to_ptr.hbm [resolvable:$true] %s328_s25 }
  0x20   : > { %s330_s24 = sshll.u32 %s5756_s11, 4  ;;  %s5757_s26 = smov [#allocation4]   ;;  %s331_s24 = int_to_ptr.vmem [resolvable:$true] %s330_s24 }
  0x21   : > { %5351 = dma.hbm_to_vmem [thread:$0]  (!%p5876_p12), %s329_s25, 64, %s331_s24, [#allocation14]  }
  0x22   : > { %s265_s16 = sshll.u32 %s5757_s26, 4  ;;  %s290_s6 = sshll.u32 %s7426_s3, 4  ;;  %s266_s16 = int_to_ptr.vmem [resolvable:$true] %s265_s16  ;;  %s291_s6 = int_to_ptr.hbm [resolvable:$true] %s290_s6 }
  0x23   : > { %5336 = dma.hbm_to_vmem [thread:$0]  (!%p5876_p12), %s264_s4, 30720, %s266_s16, [#allocation5], %s5754_s2, %s5754_s2, %s5755_s18  }
  0x24   : > { %s316_s28 = sshll.u32 %s7428_s5, 4  ;;  %s5758_s11 = smov [#allocation9]   ;;  %s317_s28 = int_to_ptr.hbm [resolvable:$true] %s316_s28 }
  0x25   : > { %s292_s29 = sshll.u32 %s5758_s11, 4  ;;  %s5759_s25 = smov [#allocation12]   ;;  %s293_s29 = int_to_ptr.vmem [resolvable:$true] %s292_s29 }
  0x26   : > { %5342 = dma.hbm_to_vmem [thread:$0]  (!%p5876_p12), %s291_s6, 64, %s293_s29, [#allocation8]  }
  0x27   : > { %s318_s24 = sshll.u32 %s5759_s25, 4  ;;  %s339_s23 = sshll.u32 %s7430_s7, 4  ;;  %s319_s24 = int_to_ptr.vmem [resolvable:$true] %s318_s24  ;;  %s340_s23 = int_to_ptr.hbm [resolvable:$true] %s339_s23 }
  0x28   : > { %5348 = dma.hbm_to_vmem [thread:$0]  (!%p5876_p12), %s317_s28, 64, %s319_s24, [#allocation11]  }
  0x29   : > { %s5760_s2 = smov [#allocation15]   ;;  %s354_s14 = sshll.u32 %s7431_s8, 4  ;;  %s355_s14 = int_to_ptr.hbm [resolvable:$true] %s354_s14 }
  0x2a   : > { %s341_s4 = sshll.u32 %s5760_s2, 4  ;;  %s5761_s17 = smov 128   ;;  %s342_s4 = int_to_ptr.vmem [resolvable:$true] %s341_s4 }
  0x2b   : > { %s5762_s6 = smov 8   ;;  %s5763_s11 = smov [#allocation16]  }
  0x2c   : > { %5354 = dma.hbm_to_vmem [thread:$0]  (!%p5876_p12), %s340_s23, 32768, %s342_s4, [#allocation14], %s5761_s17, %s5761_s17, %s5762_s6  }
  0x2d   : > { %s356_s29 = sshll.u32 %s5763_s11, 4  ;;  %377 = sbr.rel (%p5865_p10) target bundleno = 1235 (0x4d3), region = 56  ;;  %s357_s29 = int_to_ptr.vmem [resolvable:$true] %s356_s29 }
  0x2e   : > { %5357 = dma.hbm_to_vmem [thread:$0]  (!%p5876_p12), %s355_s14, 16, %s357_s29, [#allocation17]  }
  0x32   : > { %5713 = dma.done.wait (%p5362_p9), [#allocation5], 30720  }
  0x33   : > { %5715 = vsyncadd (%p5362_p9), [#allocation5], 4294936576 }
  0x34   : > { %5717 = dma.done.wait (%p5362_p9), [#allocation8], 128  }
  0x35   : > { %5719 = vsyncadd (%p5362_p9), [#allocation8], 4294967168 }
  0x36   : > { %5721 = dma.done.wait (%p5362_p9), [#allocation11], 81984  }
  0x37   : > { %5723 = vsyncadd (%p5362_p9), [#allocation11], 4294885312 }
  0x38   : > { %5725 = dma.done.wait (%p5362_p9), [#allocation14], 32832  }
  0x39   : > { %5727 = vsyncadd (%p5362_p9), [#allocation14], 4294934464 }
  0x3a   : > { %5729 = dma.done.wait (%p5362_p9), [#allocation17], 16  }
  0x3b   : > { %5731 = vsyncadd (%p5362_p9), [#allocation17], 4294967280  ;;  %vm453_vm0 = vcmask 785408   ;;  %v5764_v0 = vmov 0.0   ;;  %v569_v1 = vld [vmem:[#allocation4 + $0x2e0] sm:$0xff]  ;;  %v570_v2 = vld [vmem:[#allocation4 + $0x2e8] sm:$0xff]  ;;  %s5056_s2 = scalar_lea.hbm %s7432_s9, %s5837_s13 }
  0x3c   : > { %454 = vst.msk [vmem:[#allocation2] sm:$0xff] %vm453_vm0, %v5764_v0  ;;  %v571_v3 = vld [vmem:[#allocation4 + $0x2f0] sm:$0xff]  ;;  %589 = vmatpush.msra.mxu0 %v569_v1  ;;  %618 = vmatpush.msra.mxu1 %v570_v2  ;;  %v572_v4 = vld [vmem:[#allocation4 + $0x2f8] sm:$0xff]  ;;  %v565_v5 = vld [vmem:[#allocation4 + $0x2c0] sm:$0xff]  ;;  %p448_p13 = scmp.lt.s32.totalorder %s5837_s13, 1  ;;  %vm458_vm1 = vcmask 781312  }
  0x3d   : > { %455 = vst.msk [vmem:[#allocation2 + $0x8] sm:$0xff] %vm453_vm0, %v5764_v0  ;;  %v566_v6 = vld [vmem:[#allocation4 + $0x2c8] sm:$0xff]  ;;  %647 = vmatpush.msra.mxu2 %v571_v3  ;;  %676 = vmatpush.msra.mxu3 %v572_v4  ;;  %v567_v7 = vld [vmem:[#allocation4 + $0x2d0] sm:$0xff]  ;;  %v568_v8 = vld [vmem:[#allocation4 + $0x2d8] sm:$0xff]  ;;  %vm1516_vm2 = vcmask 1041408   ;;  %vm1518_vm3 = vcmask 1045508  }
  0x3e   : > { %456 = vst.msk [vmem:[#allocation2 + $0x10] sm:$0xff] %vm453_vm0, %v5764_v0  ;;  %v561_v9 = vld [vmem:[#allocation4 + $0x2a0] sm:$0xff]  ;;  %590 = vmatpush.msra.mxu0 %v565_v5  ;;  %619 = vmatpush.msra.mxu1 %v566_v6  ;;  %v562_v10 = vld [vmem:[#allocation4 + $0x2a8] sm:$0xff]  ;;  %v563_v11 = vld [vmem:[#allocation4 + $0x2b0] sm:$0xff]  ;;  %s5947_s21 = scalar_select %p448_p13, %s5837_s13, 1  ;;  %vm1522_vm4 = vcmask 1043458  }
  0x3f   : > { %457 = vst.msk [vmem:[#allocation2 + $0x18] sm:$0xff] %vm453_vm0, %v5764_v0  ;;  %v564_v12 = vld [vmem:[#allocation4 + $0x2b8] sm:$0xff]  ;;  %648 = vmatpush.msra.mxu2 %v567_v7  ;;  %677 = vmatpush.msra.mxu3 %v568_v8  ;;  %v557_v13 = vld [vmem:[#allocation4 + $0x280] sm:$0xff]  ;;  %v558_v14 = vld [vmem:[#allocation4 + $0x288] sm:$0xff]  ;;  %vm1524_vm5 = vcmask 1045504   ;;  %vm1520_vm6 = vcmask 1043456  }
  0x40   : > { %2207 = vst [vmem:[#allocation3 + $0x28] sm:$0xff] %v5764_v0  ;;  %591 = vmatpush.msra.mxu0 %v561_v9  ;;  %620 = vmatpush.msra.mxu1 %v562_v10  ;;  %v559_v15 = vld [vmem:[#allocation4 + $0x290] sm:$0xff]  ;;  %v560_v16 = vld [vmem:[#allocation4 + $0x298] sm:$0xff]  ;;  %v553_v17 = vld [vmem:[#allocation4 + $0x260] sm:$0xff]  ;;  %s5298_s27 = sshll.u32 %s5947_s21, 5  ;;  %vm1526_vm7 = vcmask 1045506  }
  0x41   : > { %2208 = vst [vmem:[#allocation3 + $0x10] sm:$0xff] %v5764_v0  ;;  %649 = vmatpush.msra.mxu2 %v563_v11  ;;  %678 = vmatpush.msra.mxu3 %v564_v12  ;;  %v554_v18 = vld [vmem:[#allocation4 + $0x268] sm:$0xff]  ;;  %v555_v19 = vld [vmem:[#allocation4 + $0x270] sm:$0xff]  ;;  %v556_v20 = vld [vmem:[#allocation4 + $0x278] sm:$0xff]  ;;  %s5953_s24 = scalar_lea.vmem %s7423_s0, %s5298_s27  ;;  %vm2245_vm8 = vcmask 1043459   ;;  %vm2247_vm9 = vcmask 1044484  }
  0x42   : > { %2211 = vst [vmem:[#allocation3 + $0x18] sm:$0xf] %v5764_v0  ;;  %592 = vmatpush.msra.mxu0 %v557_v13  ;;  %621 = vmatpush.msra.mxu1 %v558_v14  ;;  %v549_v21 = vld [vmem:[#allocation4 + $0x240] sm:$0xff]  ;;  %v550_v22 = vld [vmem:[#allocation4 + $0x248] sm:$0xff]  ;;  %v551_v23 = vld [vmem:[#allocation4 + $0x250] sm:$0xff]  ;;  %vm2249_vm10 = vcmask 1045509  }
  0x43   : > { %2212 = vst [vmem:[#allocation3 + $0x20] sm:$0xf] %v5764_v0  ;;  %650 = vmatpush.msra.mxu2 %v559_v15  ;;  %679 = vmatpush.msra.mxu3 %v560_v16  ;;  %v552_v24 = vld [vmem:[#allocation4 + $0x258] sm:$0xff]  ;;  %v545_v25 = vld [vmem:[#allocation4 + $0x220] sm:$0xff]  ;;  %v546_v26 = vld [vmem:[#allocation4 + $0x228] sm:$0xff]  ;;  %vm2251_vm11 = vcmask 1046534  }
  0x44   : > { %593 = vmatpush.msra.mxu0 %v553_v17  ;;  %622 = vmatpush.msra.mxu1 %v554_v18  ;;  %459 = vst.msk [vmem:[#allocation2 + $0x20] sm:$0xf] %vm458_vm1, %v5764_v0  ;;  %v547_v27 = vld [vmem:[#allocation4 + $0x230] sm:$0xff]  ;;  %v548_v28 = vld [vmem:[#allocation4 + $0x238] sm:$0xff]  ;;  %v541_v29 = vld [vmem:[#allocation4 + $0x200] sm:$0xff]  ;;  %vm2253_vm12 = vcmask 1047559  }
  0x45   : > { %651 = vmatpush.msra.mxu2 %v555_v19  ;;  %680 = vmatpush.msra.mxu3 %v556_v20  ;;  %v542_v30 = vld [vmem:[#allocation4 + $0x208] sm:$0xff]  ;;  %v543_v31 = vld [vmem:[#allocation4 + $0x210] sm:$0xff]  ;;  %v544_v32 = vld [vmem:[#allocation4 + $0x218] sm:$0xff]  ;;  %vm2260_vm13 = vcmask 1041409   ;;  %vm2262_vm14 = vcmask 1042434   ;;  %vm2561_vm15 = vcmask 1046528  }
  0x46   : > { %594 = vmatpush.msra.mxu0 %v549_v21  ;;  %623 = vmatpush.msra.mxu1 %v550_v22  ;;  %v537_v33 = vld [vmem:[#allocation4 + $0x1e0] sm:$0xff]  ;;  %v538_v34 = vld [vmem:[#allocation4 + $0x1e8] sm:$0xff]  ;;  %v539_v35 = vld [vmem:[#allocation4 + $0x1f0] sm:$0xff]  ;;  %s446_s26 = sand.u32 1, %s5742_s10   ;;  %s5060_s16 = sshll.u32 %s5056_s2, 4  ;;  %s5061_s16 = int_to_ptr.hbm [resolvable:$true] %s5060_s16 }
  0x47   : > { %652 = vmatpush.msra.mxu2 %v551_v23  ;;  %681 = vmatpush.msra.mxu3 %v552_v24  ;;  %v540_v36 = vld [vmem:[#allocation4 + $0x1f8] sm:$0xff]  ;;  %v533_v37 = vld [vmem:[#allocation4 + $0x1c0] sm:$0xff]  ;;  %v534_v38 = vld [vmem:[#allocation4 + $0x1c8] sm:$0xff]  ;;  %s447_s4 = scalar_lea.vmem [#allocation18], %s446_s26  ;;  %s5048_s14 = scalar_lea.sflag [#allocation6], %s446_s26 }
  0x48   : > { %595 = vmatpush.msra.mxu0 %v545_v25  ;;  %624 = vmatpush.msra.mxu1 %v546_v26  ;;  %v460_v39 = vld [vmem:[%s5953_s24] sm:$0xff]  ;;  %v461_v40 = vld [vmem:[%s5953_s24 + $0x8] sm:$0xff]  ;;  %v535_v41 = vld [vmem:[#allocation4 + $0x1d0] sm:$0xff]  ;;  %s5058_s18 = sshll.u32 %s447_s4, 4  ;;  %s5682_s17 = sshra.s32 %s5061_s16, 4  ;;  %s5059_s18 = int_to_ptr.vmem [resolvable:$true] %s5058_s18  ;;  %s5683_s17 = int_to_ptr.hbm [resolvable:$true] %s5682_s17 }
  0x49   : > { %653 = vmatpush.msra.mxu2 %v547_v27  ;;  %682 = vmatpush.msra.mxu3 %v548_v28  ;;  %v536_v42 = vld [vmem:[#allocation4 + $0x1d8] sm:$0xff]  ;;  %464 = vst.msk [vmem:[#allocation2 + $0x2] sm:$0xff] %vm453_vm0, %v460_v39  ;;  %v529_v43 = vld [vmem:[#allocation4 + $0x1a0] sm:$0xff]  ;;  %v530_v44 = vld [vmem:[#allocation4 + $0x1a8] sm:$0xff]  ;;  %s5684_s6 = scalar_lea.hbm %s5683_s17, 1  ;;  %s5688_s29 = scalar_lea.hbm %s7432_s9, 2 }
  0x4a   : > { %596 = vmatpush.msra.mxu0 %v541_v29  ;;  %625 = vmatpush.msra.mxu1 %v542_v30  ;;  %465 = vst.msk [vmem:[#allocation2 + $0xa] sm:$0xff] %vm453_vm0, %v461_v40  ;;  %v531_v45 = vld [vmem:[#allocation4 + $0x1b0] sm:$0xff]  ;;  %v532_v46 = vld [vmem:[#allocation4 + $0x1b8] sm:$0xff]  ;;  %v525_v47 = vld [vmem:[#allocation4 + $0x180] sm:$0xff]  ;;  %p5685_p0 = scmp.ne.s32.totalorder %s5683_s17, %s5684_s6  ;;  %p5689_p3 = scmp.lt.s32.totalorder %s5683_s17, %s7432_s9 }
  0x4b   : > { %654 = vmatpush.msra.mxu2 %v543_v31  ;;  %683 = vmatpush.msra.mxu3 %v544_v32  ;;  %v526_v48 = vld [vmem:[#allocation4 + $0x188] sm:$0xff]  ;;  %v527_v49 = vld [vmem:[#allocation4 + $0x190] sm:$0xff]  ;;  %v528_v50 = vld [vmem:[#allocation4 + $0x198] sm:$0xff]  ;;  %p5690_p4 = scmp.lt.s32.totalorder %s5688_s29, %s5684_s6 }
  0x4c   : > { %597 = vmatpush.msra.mxu0 %v537_v33  ;;  %626 = vmatpush.msra.mxu1 %v538_v34  ;;  %v462_v51 = vld [vmem:[%s5953_s24 + $0x10] sm:$0xff]  ;;  %v516_v53 = vld [vmem:[#allocation4 + $0x160] sm:$0xff]  ;;  %v517_v54 = vld [vmem:[#allocation4 + $0x168] sm:$0xff]  ;;  %p5686_p1 = pnand %p5685_p0, %p5854_p5 }
  0x4d   : > { %655 = vmatpush.msra.mxu2 %v539_v35  ;;  %684 = vmatpush.msra.mxu3 %v540_v36  ;;  %466 = vst.msk [vmem:[#allocation2 + $0x12] sm:$0xff] %vm453_vm0, %v462_v51  ;;  %v518_v55 = vld [vmem:[#allocation4 + $0x170] sm:$0xff]  ;;  %v519_v56 = vld [vmem:[#allocation4 + $0x178] sm:$0xff]  ;;  %v512_v57 = vld [vmem:[#allocation4 + $0x140] sm:$0xff]  ;;  %p5691_p7 = por %p5690_p4, %p5689_p3 }
  0x4e   : > { %598 = vmatpush.msra.mxu0 %v533_v37  ;;  %627 = vmatpush.msra.mxu1 %v534_v38  ;;  %v513_v58 = vld [vmem:[#allocation4 + $0x148] sm:$0xff]  ;;  %v514_v59 = vld [vmem:[#allocation4 + $0x150] sm:$0xff]  ;;  %v515_v60 = vld [vmem:[#allocation4 + $0x158] sm:$0xff]  ;;  %p5687_p2 = pneg %p5686_p1 }
  0x4f   : > { %656 = vmatpush.msra.mxu2 %v535_v41  ;;  %685 = vmatpush.msra.mxu3 %v536_v42  ;;  %v508_v61 = vld [vmem:[#allocation4 + $0x120] sm:$0xff]  ;;  %v509_v62 = vld [vmem:[#allocation4 + $0x128] sm:$0xff]  ;;  %v463_v63 = vld [vmem:[%s5953_s24 + $0x18] sm:$0xff] }
  0x50   : > { %599 = vmatpush.msra.mxu0 %v529_v43  ;;  %628 = vmatpush.msra.mxu1 %v530_v44  ;;  %v520_v52 = vld [vmem:[#allocation2 + $0x1] sm:$0xff]  ;;  %v511_v1 = vld [vmem:[#allocation4 + $0x138] sm:$0xff]  ;;  %467 = vst.msk [vmem:[#allocation2 + $0x1a] sm:$0xff] %vm453_vm0, %v463_v63  ;;  %v504_v3 = vld [vmem:[#allocation4 + $0x100] sm:$0xff]  ;;  %p5692_p8 = pnand %p5691_p7, %p5687_p2 }
  0x51   : > { %657 = vmatpush.msra.mxu2 %v531_v45  ;;  %686 = vmatpush.msra.mxu3 %v532_v46  ;;  %v510_v0 = vld [vmem:[#allocation4 + $0x130] sm:$0xff]  ;;  %v505_v4 = vld [vmem:[#allocation4 + $0x108] sm:$0xff]  ;;  %v507_v6 = vld [vmem:[#allocation4 + $0x118] sm:$0xff] }
  0x52   : > { %600 = vmatpush.msra.mxu0 %v525_v47  ;;  %629 = vmatpush.msra.mxu1 %v526_v48  ;;  %v521_v2 = vld [vmem:[#allocation2 + $0x9] sm:$0xff]  ;;  %v500_v7 = vld [vmem:[#allocation4 + $0xe0] sm:$0xff]  ;;  %v501_v8 = vld [vmem:[#allocation4 + $0xe8] sm:$0xff] }
  0x53   : > { %658 = vmatpush.msra.mxu2 %v527_v49  ;;  %687 = vmatpush.msra.mxu3 %v528_v50  ;;  %v506_v5 = vld [vmem:[#allocation4 + $0x110] sm:$0xff]  ;;  %v503_v10 = vld [vmem:[#allocation4 + $0xf8] sm:$0xff]  ;;  %v496_v11 = vld [vmem:[#allocation4 + $0xc0] sm:$0xff] }
  0x54   : > { %5216 = vmatmul.msk.f32.vlgmr.msra.gmra.mxu0 %vm453_vm0, %v520_v52  ;;  %5220 = vmatmul.msk.f32.vlgmr.msra.gmra.mxu1 %vm453_vm0, %v520_v52  ;;  %v502_v9 = vld [vmem:[#allocation4 + $0xf0] sm:$0xff]  ;;  %v497_v12 = vld [vmem:[#allocation4 + $0xc8] sm:$0xff]  ;;  %v499_v14 = vld [vmem:[#allocation4 + $0xd8] sm:$0xff] }
  0x55   : > { %5224 = vmatmul.msk.f32.vlgmr.msra.gmra.mxu2 %vm453_vm0, %v520_v52  ;;  %5228 = vmatmul.msk.f32.vlgmr.msra.gmra.mxu3 %vm453_vm0, %v520_v52  ;;  %v498_v13 = vld [vmem:[#allocation4 + $0xd0] sm:$0xff]  ;;  %v522_v15 = vld [vmem:[#allocation2 + $0x11] sm:$0xff]  ;;  %v493_v17 = vld [vmem:[#allocation4 + $0xa8] sm:$0xff] }
  0x56   : > { %717 = vmatpush.msrb.mxu0 %v516_v53  ;;  %746 = vmatpush.msrb.mxu1 %v517_v54  ;;  %v492_v16 = vld [vmem:[#allocation4 + $0xa0] sm:$0xff]  ;;  %v494_v18 = vld [vmem:[#allocation4 + $0xb0] sm:$0xff]  ;;  %v495_v19 = vld [vmem:[#allocation4 + $0xb8] sm:$0xff] }
  0x57   : > { %775 = vmatpush.msrb.mxu2 %v518_v55  ;;  %804 = vmatpush.msrb.mxu3 %v519_v56  ;;  %v488_v20 = vld [vmem:[#allocation4 + $0x80] sm:$0xff]  ;;  %v489_v21 = vld [vmem:[#allocation4 + $0x88] sm:$0xff]  ;;  %v490_v22 = vld [vmem:[#allocation4 + $0x90] sm:$0xff] }
  0x58   : > { %718 = vmatpush.msrb.mxu0 %v512_v57  ;;  %747 = vmatpush.msrb.mxu1 %v513_v58  ;;  %v491_v23 = vld [vmem:[#allocation4 + $0x98] sm:$0xff]  ;;  %v484_v24 = vld [vmem:[#allocation4 + $0x60] sm:$0xff]  ;;  %v485_v25 = vld [vmem:[#allocation4 + $0x68] sm:$0xff] }
  0x59   : > { %776 = vmatpush.msrb.mxu2 %v514_v59  ;;  %805 = vmatpush.msrb.mxu3 %v515_v60  ;;  %v486_v26 = vld [vmem:[#allocation4 + $0x70] sm:$0xff]  ;;  %v487_v27 = vld [vmem:[#allocation4 + $0x78] sm:$0xff]  ;;  %v523_v28 = vld [vmem:[#allocation2 + $0x19] sm:$0xff] }
  0x5a   : > { %719 = vmatpush.msrb.mxu0 %v508_v61  ;;  %748 = vmatpush.msrb.mxu1 %v509_v62  ;;  %v480_v29 = vld [vmem:[#allocation4 + $0x40] sm:$0xff]  ;;  %v481_v30 = vld [vmem:[#allocation4 + $0x48] sm:$0xff]  ;;  %v482_v31 = vld [vmem:[#allocation4 + $0x50] sm:$0xff] }
  0x5b   : > { %777 = vmatpush.msrb.mxu2 %v510_v0  ;;  %806 = vmatpush.msrb.mxu3 %v511_v1  ;;  %v483_v32 = vld [vmem:[#allocation4 + $0x58] sm:$0xff]  ;;  %v476_v33 = vld [vmem:[#allocation4 + $0x20] sm:$0xff]  ;;  %v477_v34 = vld [vmem:[#allocation4 + $0x28] sm:$0xff] }
  0x5c   : > { %5217 = vmatmul.msk.f32.gmra.mxu0 %vm453_vm0, %v521_v2  ;;  %5221 = vmatmul.msk.f32.gmra.mxu1 %vm453_vm0, %v521_v2  ;;  %v478_v35 = vld [vmem:[#allocation4 + $0x30] sm:$0xff]  ;;  %v479_v36 = vld [vmem:[#allocation4 + $0x38] sm:$0xff]  ;;  %v472_v37 = vld [vmem:[#allocation4] sm:$0xff] }
  0x5d   : > { %5225 = vmatmul.msk.f32.gmra.mxu2 %vm453_vm0, %v521_v2  ;;  %5229 = vmatmul.msk.f32.gmra.mxu3 %vm453_vm0, %v521_v2  ;;  %v473_v38 = vld [vmem:[#allocation4 + $0x8] sm:$0xff]  ;;  %v474_v39 = vld [vmem:[#allocation4 + $0x10] sm:$0xff]  ;;  %v475_v40 = vld [vmem:[#allocation4 + $0x18] sm:$0xff] }
  0x5e   : > { %720 = vmatpush.msrb.mxu0 %v504_v3  ;;  %749 = vmatpush.msrb.mxu1 %v505_v4  ;;  %v468_v41 = vld [vmem:[#allocation2] sm:$0xff]  ;;  %v878_v42 = vld [vmem:[#allocation4 + $0x460] sm:$0xff]  ;;  %v880_v44 = vld [vmem:[#allocation4 + $0x470] sm:$0xff] }
  0x5f   : > { %778 = vmatpush.msrb.mxu2 %v506_v5  ;;  %807 = vmatpush.msrb.mxu3 %v507_v6  ;;  %v879_v43 = vld [vmem:[#allocation4 + $0x468] sm:$0xff]  ;;  %v881_v45 = vld [vmem:[#allocation4 + $0x478] sm:$0xff]  ;;  %v874_v46 = vld [vmem:[#allocation4 + $0x440] sm:$0xff] }
  0x60   : > { %721 = vmatpush.msrb.mxu0 %v500_v7  ;;  %750 = vmatpush.msrb.mxu1 %v501_v8  ;;  %v875_v47 = vld [vmem:[#allocation4 + $0x448] sm:$0xff]  ;;  %v876_v48 = vld [vmem:[#allocation4 + $0x450] sm:$0xff]  ;;  %v877_v49 = vld [vmem:[#allocation4 + $0x458] sm:$0xff] }
  0x61   : > { %779 = vmatpush.msrb.mxu2 %v502_v9  ;;  %808 = vmatpush.msrb.mxu3 %v503_v10  ;;  %v870_v50 = vld [vmem:[#allocation4 + $0x420] sm:$0xff]  ;;  %v871_v51 = vld [vmem:[#allocation4 + $0x428] sm:$0xff]  ;;  %v872_v52 = vld [vmem:[#allocation4 + $0x430] sm:$0xff] }
  0x62   : > { %722 = vmatpush.msrb.mxu0 %v496_v11  ;;  %751 = vmatpush.msrb.mxu1 %v497_v12  ;;  %v873_v53 = vld [vmem:[#allocation4 + $0x438] sm:$0xff]  ;;  %v469_v54 = vld [vmem:[#allocation2 + $0x8] sm:$0xff]  ;;  %v866_v55 = vld [vmem:[#allocation4 + $0x400] sm:$0xff] }
  0x63   : > { %780 = vmatpush.msrb.mxu2 %v498_v13  ;;  %809 = vmatpush.msrb.mxu3 %v499_v14  ;;  %v867_v56 = vld [vmem:[#allocation4 + $0x408] sm:$0xff]  ;;  %v868_v57 = vld [vmem:[#allocation4 + $0x410] sm:$0xff]  ;;  %v869_v58 = vld [vmem:[#allocation4 + $0x418] sm:$0xff] }
  0x64   : > { %5218 = vmatmul.msk.f32.gmra.mxu0 %vm453_vm0, %v522_v15  ;;  %5222 = vmatmul.msk.f32.gmra.mxu1 %vm453_vm0, %v522_v15  ;;  %v862_v59 = vld [vmem:[#allocation4 + $0x3e0] sm:$0xff]  ;;  %v863_v60 = vld [vmem:[#allocation4 + $0x3e8] sm:$0xff]  ;;  %v864_v61 = vld [vmem:[#allocation4 + $0x3f0] sm:$0xff] }
  0x65   : > { %5226 = vmatmul.msk.f32.gmra.mxu2 %vm453_vm0, %v522_v15  ;;  %5230 = vmatmul.msk.f32.gmra.mxu3 %vm453_vm0, %v522_v15  ;;  %v865_v62 = vld [vmem:[#allocation4 + $0x3f8] sm:$0xff]  ;;  %v858_v63 = vld [vmem:[#allocation4 + $0x3c0] sm:$0xff]  ;;  %v859_v0 = vld [vmem:[#allocation4 + $0x3c8] sm:$0xff] }
  0x66   : > { %723 = vmatpush.msrb.mxu0 %v492_v16  ;;  %752 = vmatpush.msrb.mxu1 %v493_v17  ;;  %v860_v1 = vld [vmem:[#allocation4 + $0x3d0] sm:$0xff]  ;;  %v861_v2 = vld [vmem:[#allocation4 + $0x3d8] sm:$0xff]  ;;  %v854_v4 = vld [vmem:[#allocation4 + $0x3a0] sm:$0xff] }
  0x67   : > { %781 = vmatpush.msrb.mxu2 %v494_v18  ;;  %810 = vmatpush.msrb.mxu3 %v495_v19  ;;  %v470_v3 = vld [vmem:[#allocation2 + $0x10] sm:$0xff]  ;;  %v855_v5 = vld [vmem:[#allocation4 + $0x3a8] sm:$0xff]  ;;  %v856_v6 = vld [vmem:[#allocation4 + $0x3b0] sm:$0xff] }
  0x68   : > { %724 = vmatpush.msrb.mxu0 %v488_v20  ;;  %753 = vmatpush.msrb.mxu1 %v489_v21  ;;  %v857_v7 = vld [vmem:[#allocation4 + $0x3b8] sm:$0xff]  ;;  %v850_v8 = vld [vmem:[#allocation4 + $0x380] sm:$0xff]  ;;  %v851_v9 = vld [vmem:[#allocation4 + $0x388] sm:$0xff] }
  0x69   : > { %782 = vmatpush.msrb.mxu2 %v490_v22  ;;  %811 = vmatpush.msrb.mxu3 %v491_v23  ;;  %v852_v10 = vld [vmem:[#allocation4 + $0x390] sm:$0xff]  ;;  %v853_v11 = vld [vmem:[#allocation4 + $0x398] sm:$0xff]  ;;  %v846_v12 = vld [vmem:[#allocation4 + $0x360] sm:$0xff] }
  0x6a   : > { %725 = vmatpush.msrb.mxu0 %v484_v24  ;;  %754 = vmatpush.msrb.mxu1 %v485_v25  ;;  %v847_v13 = vld [vmem:[#allocation4 + $0x368] sm:$0xff]  ;;  %v848_v14 = vld [vmem:[#allocation4 + $0x370] sm:$0xff]  ;;  %v849_v15 = vld [vmem:[#allocation4 + $0x378] sm:$0xff] }
  0x6b   : > { %783 = vmatpush.msrb.mxu2 %v486_v26  ;;  %812 = vmatpush.msrb.mxu3 %v487_v27  ;;  %v471_v16 = vld [vmem:[#allocation2 + $0x18] sm:$0xff]  ;;  %v843_v18 = vld [vmem:[#allocation4 + $0x348] sm:$0xff]  ;;  %v844_v19 = vld [vmem:[#allocation4 + $0x350] sm:$0xff] }
  0x6c   : > { %5219 = vmatmul.msk.f32.gmra.mxu0 %vm453_vm0, %v523_v28  ;;  %5223 = vmatmul.msk.f32.gmra.mxu1 %vm453_vm0, %v523_v28  ;;  %v842_v17 = vld [vmem:[#allocation4 + $0x340] sm:$0xff]  ;;  %v845_v20 = vld [vmem:[#allocation4 + $0x358] sm:$0xff]  ;;  %v839_v22 = vld [vmem:[#allocation4 + $0x328] sm:$0xff] }
  0x6d   : > { %5227 = vmatmul.msk.f32.gmra.mxu2 %vm453_vm0, %v523_v28  ;;  %5231 = vmatmul.msk.f32.gmra.mxu3 %vm453_vm0, %v523_v28  ;;  %v838_v21 = vld [vmem:[#allocation4 + $0x320] sm:$0xff]  ;;  %v840_v23 = vld [vmem:[#allocation4 + $0x330] sm:$0xff]  ;;  %v841_v24 = vld [vmem:[#allocation4 + $0x338] sm:$0xff] }
  0x6e   : > { %726 = vmatpush.msrb.mxu0 %v480_v29  ;;  %755 = vmatpush.msrb.mxu1 %v481_v30  ;;  %v834_v25 = vld [vmem:[#allocation4 + $0x300] sm:$0xff]  ;;  %v835_v26 = vld [vmem:[#allocation4 + $0x308] sm:$0xff]  ;;  %v836_v27 = vld [vmem:[#allocation4 + $0x310] sm:$0xff] }
  0x6f   : > { %784 = vmatpush.msrb.mxu2 %v482_v31  ;;  %813 = vmatpush.msrb.mxu3 %v483_v32  ;;  %v837_v28 = vld [vmem:[#allocation4 + $0x318] sm:$0xff]  ;;  %v829_v29 = vld [vmem:[#allocation2 + $0x2] sm:$0xff]  ;;  %v1075_v30 = vld [vmem:[#allocation4 + $0x5e0] sm:$0xff] }
  0x70   : > { %727 = vmatpush.msrb.mxu0 %v476_v33  ;;  %756 = vmatpush.msrb.mxu1 %v477_v34  ;;  %v1076_v31 = vld [vmem:[#allocation4 + $0x5e8] sm:$0xff]  ;;  %v1077_v32 = vld [vmem:[#allocation4 + $0x5f0] sm:$0xff]  ;;  %v1078_v33 = vld [vmem:[#allocation4 + $0x5f8] sm:$0xff] }
  0x71   : > { %785 = vmatpush.msrb.mxu2 %v478_v35  ;;  %814 = vmatpush.msrb.mxu3 %v479_v36  ;;  %v1071_v34 = vld [vmem:[#allocation4 + $0x5c0] sm:$0xff]  ;;  %v1072_v35 = vld [vmem:[#allocation4 + $0x5c8] sm:$0xff]  ;;  %v1073_v36 = vld [vmem:[#allocation4 + $0x5d0] sm:$0xff] }
  0x72   : > { %728 = vmatpush.msrb.mxu0 %v472_v37  ;;  %757 = vmatpush.msrb.mxu1 %v473_v38  ;;  %v1074_v37 = vld [vmem:[#allocation4 + $0x5d8] sm:$0xff]  ;;  %v1067_v38 = vld [vmem:[#allocation4 + $0x5a0] sm:$0xff] }
  0x73   : > { %786 = vmatpush.msrb.mxu2 %v474_v39  ;;  %815 = vmatpush.msrb.mxu3 %v475_v40  ;;  %v1068_v39 = vld [vmem:[#allocation4 + $0x5a8] sm:$0xff]  ;;  %v1069_v40 = vld [vmem:[#allocation4 + $0x5b0] sm:$0xff] }
  0x74   : > { %5232 = vmatmul.msk.f32.vlgmr.msrb.gmra.mxu0 %vm453_vm0, %v468_v41  ;;  %5236 = vmatmul.msk.f32.vlgmr.msrb.gmra.mxu1 %vm453_vm0, %v468_v41 }
  0x75   : > { %5240 = vmatmul.msk.f32.vlgmr.msrb.gmra.mxu2 %vm453_vm0, %v468_v41  ;;  %5244 = vmatmul.msk.f32.vlgmr.msrb.gmra.mxu3 %vm453_vm0, %v468_v41  ;;  %v1070_v41 = vld [vmem:[#allocation4 + $0x5b8] sm:$0xff] }
  0x76   : > { %898 = vmatpush.msra.mxu0 %v878_v42  ;;  %927 = vmatpush.msra.mxu1 %v879_v43  ;;  %v830_v42 = vld [vmem:[#allocation2 + $0xa] sm:$0xff]  ;;  %v1063_v43 = vld [vmem:[#allocation4 + $0x580] sm:$0xff] }
  0x77   : > { %956 = vmatpush.msra.mxu2 %v880_v44  ;;  %985 = vmatpush.msra.mxu3 %v881_v45  ;;  %v1064_v44 = vld [vmem:[#allocation4 + $0x588] sm:$0xff]  ;;  %v1065_v45 = vld [vmem:[#allocation4 + $0x590] sm:$0xff] }
  0x78   : > { %899 = vmatpush.msra.mxu0 %v874_v46  ;;  %928 = vmatpush.msra.mxu1 %v875_v47  ;;  %v1066_v46 = vld [vmem:[#allocation4 + $0x598] sm:$0xff]  ;;  %v1059_v47 = vld [vmem:[#allocation4 + $0x560] sm:$0xff] }
  0x79   : > { %957 = vmatpush.msra.mxu2 %v876_v48  ;;  %986 = vmatpush.msra.mxu3 %v877_v49  ;;  %v1060_v48 = vld [vmem:[#allocation4 + $0x568] sm:$0xff]  ;;  %v1061_v49 = vld [vmem:[#allocation4 + $0x570] sm:$0xff] }
  0x7a   : > { %900 = vmatpush.msra.mxu0 %v870_v50  ;;  %929 = vmatpush.msra.mxu1 %v871_v51  ;;  %v1062_v50 = vld [vmem:[#allocation4 + $0x578] sm:$0xff]  ;;  %v1055_v51 = vld [vmem:[#allocation4 + $0x540] sm:$0xff] }
  0x7b   : > { %958 = vmatpush.msra.mxu2 %v872_v52  ;;  %987 = vmatpush.msra.mxu3 %v873_v53  ;;  %v1056_v52 = vld [vmem:[#allocation4 + $0x548] sm:$0xff]  ;;  %v1057_v53 = vld [vmem:[#allocation4 + $0x550] sm:$0xff] }
  0x7c   : > { %5233 = vmatmul.msk.f32.gmra.mxu0 %vm453_vm0, %v469_v54  ;;  %5237 = vmatmul.msk.f32.gmra.mxu1 %vm453_vm0, %v469_v54 }
  0x7d   : > { %5241 = vmatmul.msk.f32.gmra.mxu2 %vm453_vm0, %v469_v54  ;;  %5245 = vmatmul.msk.f32.gmra.mxu3 %vm453_vm0, %v469_v54  ;;  %v1058_v54 = vld [vmem:[#allocation4 + $0x558] sm:$0xff] }
  0x7e   : > { %901 = vmatpush.msra.mxu0 %v866_v55  ;;  %930 = vmatpush.msra.mxu1 %v867_v56  ;;  %v831_v55 = vld [vmem:[#allocation2 + $0x12] sm:$0xff] }
  0x7f   : > { %959 = vmatpush.msra.mxu2 %v868_v57  ;;  %988 = vmatpush.msra.mxu3 %v869_v58  ;;  %v1051_v56 = vld [vmem:[#allocation4 + $0x520] sm:$0xff]  ;;  %v1052_v57 = vld [vmem:[#allocation4 + $0x528] sm:$0xff]  ;;  %v1053_v58 = vld [vmem:[#allocation4 + $0x530] sm:$0xff] }
  0x80   : > { %902 = vmatpush.msra.mxu0 %v862_v59  ;;  %931 = vmatpush.msra.mxu1 %v863_v60  ;;  %v1054_v59 = vld [vmem:[#allocation4 + $0x538] sm:$0xff]  ;;  %v1047_v60 = vld [vmem:[#allocation4 + $0x500] sm:$0xff] }
  0x81   : > { %960 = vmatpush.msra.mxu2 %v864_v61  ;;  %989 = vmatpush.msra.mxu3 %v865_v62  ;;  %v1048_v61 = vld [vmem:[#allocation4 + $0x508] sm:$0xff]  ;;  %v1049_v62 = vld [vmem:[#allocation4 + $0x510] sm:$0xff] }
  0x82   : > { %903 = vmatpush.msra.mxu0 %v858_v63  ;;  %932 = vmatpush.msra.mxu1 %v859_v0  ;;  %v1050_v63 = vld [vmem:[#allocation4 + $0x518] sm:$0xff]  ;;  %v1043_v0 = vld [vmem:[#allocation4 + $0x4e0] sm:$0xff] }
  0x83   : > { %961 = vmatpush.msra.mxu2 %v860_v1  ;;  %990 = vmatpush.msra.mxu3 %v861_v2  ;;  %v1044_v1 = vld [vmem:[#allocation4 + $0x4e8] sm:$0xff]  ;;  %v1045_v2 = vld [vmem:[#allocation4 + $0x4f0] sm:$0xff] }
  0x84   : > { %5234 = vmatmul.msk.f32.gmra.mxu0 %vm453_vm0, %v470_v3  ;;  %5238 = vmatmul.msk.f32.gmra.mxu1 %vm453_vm0, %v470_v3 }
  0x85   : > { %5242 = vmatmul.msk.f32.gmra.mxu2 %vm453_vm0, %v470_v3  ;;  %5246 = vmatmul.msk.f32.gmra.mxu3 %vm453_vm0, %v470_v3  ;;  %v1046_v3 = vld [vmem:[#allocation4 + $0x4f8] sm:$0xff] }
  0x86   : > { %904 = vmatpush.msra.mxu0 %v854_v4  ;;  %933 = vmatpush.msra.mxu1 %v855_v5  ;;  %v832_v4 = vld [vmem:[#allocation2 + $0x1a] sm:$0xff] }
  0x87   : > { %962 = vmatpush.msra.mxu2 %v856_v6  ;;  %991 = vmatpush.msra.mxu3 %v857_v7  ;;  %v1039_v5 = vld [vmem:[#allocation4 + $0x4c0] sm:$0xff]  ;;  %v1040_v6 = vld [vmem:[#allocation4 + $0x4c8] sm:$0xff]  ;;  %v1041_v7 = vld [vmem:[#allocation4 + $0x4d0] sm:$0xff] }
  0x88   : > { %905 = vmatpush.msra.mxu0 %v850_v8  ;;  %934 = vmatpush.msra.mxu1 %v851_v9  ;;  %v1042_v8 = vld [vmem:[#allocation4 + $0x4d8] sm:$0xff]  ;;  %v1035_v9 = vld [vmem:[#allocation4 + $0x4a0] sm:$0xff] }
  0x89   : > { %963 = vmatpush.msra.mxu2 %v852_v10  ;;  %992 = vmatpush.msra.mxu3 %v853_v11  ;;  %v1036_v10 = vld [vmem:[#allocation4 + $0x4a8] sm:$0xff]  ;;  %v1037_v11 = vld [vmem:[#allocation4 + $0x4b0] sm:$0xff] }
  0x8a   : > { %906 = vmatpush.msra.mxu0 %v846_v12  ;;  %935 = vmatpush.msra.mxu1 %v847_v13  ;;  %v1038_v12 = vld [vmem:[#allocation4 + $0x4b8] sm:$0xff]  ;;  %v1031_v13 = vld [vmem:[#allocation4 + $0x480] sm:$0xff] }
  0x8b   : > { %964 = vmatpush.msra.mxu2 %v848_v14  ;;  %993 = vmatpush.msra.mxu3 %v849_v15  ;;  %v1032_v14 = vld [vmem:[#allocation4 + $0x488] sm:$0xff]  ;;  %v1033_v15 = vld [vmem:[#allocation4 + $0x490] sm:$0xff] }
  0x8c   : > { %5235 = vmatmul.msk.f32.gmra.mxu0 %vm453_vm0, %v471_v16  ;;  %5239 = vmatmul.msk.f32.gmra.mxu1 %vm453_vm0, %v471_v16 }
  0x8d   : > { %5243 = vmatmul.msk.f32.gmra.mxu2 %vm453_vm0, %v471_v16  ;;  %5247 = vmatmul.msk.f32.gmra.mxu3 %vm453_vm0, %v471_v16  ;;  %v1034_v16 = vld [vmem:[#allocation4 + $0x498] sm:$0xff] }
  0x8e   : > { %907 = vmatpush.msra.mxu0 %v842_v17  ;;  %936 = vmatpush.msra.mxu1 %v843_v18  ;;  %v1026_v17 = vld [vmem:[#allocation2 + $0x3] sm:$0xff]  ;;  %v1272_v18 = vld [vmem:[#allocation4 + $0x760] sm:$0xff] }
  0x8f   : > { %965 = vmatpush.msra.mxu2 %v844_v19  ;;  %994 = vmatpush.msra.mxu3 %v845_v20  ;;  %v1273_v19 = vld [vmem:[#allocation4 + $0x768] sm:$0xff]  ;;  %v1274_v20 = vld [vmem:[#allocation4 + $0x770] sm:$0xff] }
  0x90   : > { %908 = vmatpush.msra.mxu0 %v838_v21  ;;  %937 = vmatpush.msra.mxu1 %v839_v22  ;;  %v1275_v21 = vld [vmem:[#allocation4 + $0x778] sm:$0xff]  ;;  %v1268_v22 = vld [vmem:[#allocation4 + $0x740] sm:$0xff] }
  0x91   : > { %966 = vmatpush.msra.mxu2 %v840_v23  ;;  %995 = vmatpush.msra.mxu3 %v841_v24  ;;  %v1269_v23 = vld [vmem:[#allocation4 + $0x748] sm:$0xff]  ;;  %v1270_v24 = vld [vmem:[#allocation4 + $0x750] sm:$0xff] }
  0x92   : > { %909 = vmatpush.msra.mxu0 %v834_v25  ;;  %938 = vmatpush.msra.mxu1 %v835_v26  ;;  %v1271_v25 = vld [vmem:[#allocation4 + $0x758] sm:$0xff]  ;;  %v1264_v26 = vld [vmem:[#allocation4 + $0x720] sm:$0xff] }
  0x93   : > { %967 = vmatpush.msra.mxu2 %v836_v27  ;;  %996 = vmatpush.msra.mxu3 %v837_v28  ;;  %v1265_v27 = vld [vmem:[#allocation4 + $0x728] sm:$0xff]  ;;  %v1266_v28 = vld [vmem:[#allocation4 + $0x730] sm:$0xff] }
  0x94   : > { %5248 = vmatmul.msk.f32.vlgmr.msra.gmra.mxu0 %vm453_vm0, %v829_v29  ;;  %5252 = vmatmul.msk.f32.vlgmr.msra.gmra.mxu1 %vm453_vm0, %v829_v29 }
  0x95   : > { %5256 = vmatmul.msk.f32.vlgmr.msra.gmra.mxu2 %vm453_vm0, %v829_v29  ;;  %5260 = vmatmul.msk.f32.vlgmr.msra.gmra.mxu3 %vm453_vm0, %v829_v29  ;;  %v1267_v29 = vld [vmem:[#allocation4 + $0x738] sm:$0xff] }
  0x96   : > { %1095 = vmatpush.msrb.mxu0 %v1075_v30  ;;  %1124 = vmatpush.msrb.mxu1 %v1076_v31  ;;  %v1027_v30 = vld [vmem:[#allocation2 + $0xb] sm:$0xff]  ;;  %v1260_v31 = vld [vmem:[#allocation4 + $0x700] sm:$0xff] }
  0x97   : > { %1153 = vmatpush.msrb.mxu2 %v1077_v32  ;;  %1182 = vmatpush.msrb.mxu3 %v1078_v33  ;;  %v1261_v32 = vld [vmem:[#allocation4 + $0x708] sm:$0xff]  ;;  %v1262_v33 = vld [vmem:[#allocation4 + $0x710] sm:$0xff] }
  0x98   : > { %1096 = vmatpush.msrb.mxu0 %v1071_v34  ;;  %1125 = vmatpush.msrb.mxu1 %v1072_v35  ;;  %v1263_v34 = vld [vmem:[#allocation4 + $0x718] sm:$0xff]  ;;  %v1256_v35 = vld [vmem:[#allocation4 + $0x6e0] sm:$0xff] }
  0x99   : > { %1154 = vmatpush.msrb.mxu2 %v1073_v36  ;;  %1183 = vmatpush.msrb.mxu3 %v1074_v37  ;;  %v1257_v36 = vld [vmem:[#allocation4 + $0x6e8] sm:$0xff]  ;;  %v1258_v37 = vld [vmem:[#allocation4 + $0x6f0] sm:$0xff] }
  0x9a   : > { %1097 = vmatpush.msrb.mxu0 %v1067_v38  ;;  %1126 = vmatpush.msrb.mxu1 %v1068_v39  ;;  %v1259_v38 = vld [vmem:[#allocation4 + $0x6f8] sm:$0xff]  ;;  %v1252_v39 = vld [vmem:[#allocation4 + $0x6c0] sm:$0xff] }
  0x9b   : > { %1155 = vmatpush.msrb.mxu2 %v1069_v40  ;;  %1184 = vmatpush.msrb.mxu3 %v1070_v41  ;;  %v1253_v40 = vld [vmem:[#allocation4 + $0x6c8] sm:$0xff]  ;;  %v1254_v41 = vld [vmem:[#allocation4 + $0x6d0] sm:$0xff] }
  0x9c   : > { %5249 = vmatmul.msk.f32.gmra.mxu0 %vm453_vm0, %v830_v42  ;;  %5253 = vmatmul.msk.f32.gmra.mxu1 %vm453_vm0, %v830_v42 }
  0x9d   : > { %5257 = vmatmul.msk.f32.gmra.mxu2 %vm453_vm0, %v830_v42  ;;  %5261 = vmatmul.msk.f32.gmra.mxu3 %vm453_vm0, %v830_v42  ;;  %v1255_v42 = vld [vmem:[#allocation4 + $0x6d8] sm:$0xff] }
  0x9e   : > { %1098 = vmatpush.msrb.mxu0 %v1063_v43  ;;  %1127 = vmatpush.msrb.mxu1 %v1064_v44  ;;  %v1028_v43 = vld [vmem:[#allocation2 + $0x13] sm:$0xff] }
  0x9f   : > { %1156 = vmatpush.msrb.mxu2 %v1065_v45  ;;  %1185 = vmatpush.msrb.mxu3 %v1066_v46  ;;  %v1248_v44 = vld [vmem:[#allocation4 + $0x6a0] sm:$0xff]  ;;  %v1249_v45 = vld [vmem:[#allocation4 + $0x6a8] sm:$0xff]  ;;  %v1250_v46 = vld [vmem:[#allocation4 + $0x6b0] sm:$0xff] }
  0xa0   : > { %1099 = vmatpush.msrb.mxu0 %v1059_v47  ;;  %1128 = vmatpush.msrb.mxu1 %v1060_v48  ;;  %v1251_v47 = vld [vmem:[#allocation4 + $0x6b8] sm:$0xff]  ;;  %v1244_v48 = vld [vmem:[#allocation4 + $0x680] sm:$0xff] }
  0xa1   : > { %1157 = vmatpush.msrb.mxu2 %v1061_v49  ;;  %1186 = vmatpush.msrb.mxu3 %v1062_v50  ;;  %v1245_v49 = vld [vmem:[#allocation4 + $0x688] sm:$0xff]  ;;  %v1246_v50 = vld [vmem:[#allocation4 + $0x690] sm:$0xff] }
  0xa2   : > { %1100 = vmatpush.msrb.mxu0 %v1055_v51  ;;  %1129 = vmatpush.msrb.mxu1 %v1056_v52  ;;  %v1247_v51 = vld [vmem:[#allocation4 + $0x698] sm:$0xff]  ;;  %v1240_v52 = vld [vmem:[#allocation4 + $0x660] sm:$0xff] }
  0xa3   : > { %1158 = vmatpush.msrb.mxu2 %v1057_v53  ;;  %1187 = vmatpush.msrb.mxu3 %v1058_v54  ;;  %v1241_v53 = vld [vmem:[#allocation4 + $0x668] sm:$0xff]  ;;  %v1242_v54 = vld [vmem:[#allocation4 + $0x670] sm:$0xff] }
  0xa4   : > { %5250 = vmatmul.msk.f32.gmra.mxu0 %vm453_vm0, %v831_v55  ;;  %5254 = vmatmul.msk.f32.gmra.mxu1 %vm453_vm0, %v831_v55 }
  0xa5   : > { %5258 = vmatmul.msk.f32.gmra.mxu2 %vm453_vm0, %v831_v55  ;;  %5262 = vmatmul.msk.f32.gmra.mxu3 %vm453_vm0, %v831_v55  ;;  %v1243_v55 = vld [vmem:[#allocation4 + $0x678] sm:$0xff] }
  0xa6   : > { %1101 = vmatpush.msrb.mxu0 %v1051_v56  ;;  %1130 = vmatpush.msrb.mxu1 %v1052_v57  ;;  %v1029_v56 = vld [vmem:[#allocation2 + $0x1b] sm:$0xff] }
  0xa7   : > { %1159 = vmatpush.msrb.mxu2 %v1053_v58  ;;  %1188 = vmatpush.msrb.mxu3 %v1054_v59  ;;  %v1236_v57 = vld [vmem:[#allocation4 + $0x640] sm:$0xff]  ;;  %v1237_v58 = vld [vmem:[#allocation4 + $0x648] sm:$0xff]  ;;  %v1238_v59 = vld [vmem:[#allocation4 + $0x650] sm:$0xff] }
  0xa8   : > { %1102 = vmatpush.msrb.mxu0 %v1047_v60  ;;  %1131 = vmatpush.msrb.mxu1 %v1048_v61  ;;  %v1239_v60 = vld [vmem:[#allocation4 + $0x658] sm:$0xff]  ;;  %v1232_v61 = vld [vmem:[#allocation4 + $0x620] sm:$0xff] }
  0xa9   : > { %1160 = vmatpush.msrb.mxu2 %v1049_v62  ;;  %1189 = vmatpush.msrb.mxu3 %v1050_v63  ;;  %v1233_v62 = vld [vmem:[#allocation4 + $0x628] sm:$0xff]  ;;  %v1234_v63 = vld [vmem:[#allocation4 + $0x630] sm:$0xff] }
  0xaa   : > { %1103 = vmatpush.msrb.mxu0 %v1043_v0  ;;  %1132 = vmatpush.msrb.mxu1 %v1044_v1  ;;  %v1235_v0 = vld [vmem:[#allocation4 + $0x638] sm:$0xff]  ;;  %v1228_v1 = vld [vmem:[#allocation4 + $0x600] sm:$0xff] }
  0xab   : > { %1161 = vmatpush.msrb.mxu2 %v1045_v2  ;;  %1190 = vmatpush.msrb.mxu3 %v1046_v3  ;;  %v1229_v2 = vld [vmem:[#allocation4 + $0x608] sm:$0xff]  ;;  %v1230_v3 = vld [vmem:[#allocation4 + $0x610] sm:$0xff] }
  0xac   : > { %5251 = vmatmul.msk.f32.gmra.mxu0 %vm453_vm0, %v832_v4  ;;  %5255 = vmatmul.msk.f32.gmra.mxu1 %vm453_vm0, %v832_v4 }
  0xad   : > { %5259 = vmatmul.msk.f32.gmra.mxu2 %vm453_vm0, %v832_v4  ;;  %5263 = vmatmul.msk.f32.gmra.mxu3 %vm453_vm0, %v832_v4  ;;  %v1231_v4 = vld [vmem:[#allocation4 + $0x618] sm:$0xff] }
  0xae   : > { %1104 = vmatpush.msrb.mxu0 %v1039_v5  ;;  %1133 = vmatpush.msrb.mxu1 %v1040_v6 }
  0xaf   : > { %1162 = vmatpush.msrb.mxu2 %v1041_v7  ;;  %1191 = vmatpush.msrb.mxu3 %v1042_v8  ;;  %v1223_v7 = vld [vmem:[#allocation2 + $0x4] sm:$0xff] }
  0xb0   : > { %1105 = vmatpush.msrb.mxu0 %v1035_v9  ;;  %1134 = vmatpush.msrb.mxu1 %v1036_v10 }
  0xb1   : > { %1163 = vmatpush.msrb.mxu2 %v1037_v11  ;;  %1192 = vmatpush.msrb.mxu3 %v1038_v12  ;;  %v1224_v12 = vld [vmem:[#allocation2 + $0xc] sm:$0xff] }
  0xb2   : > { %1106 = vmatpush.msrb.mxu0 %v1031_v13  ;;  %1135 = vmatpush.msrb.mxu1 %v1032_v14 }
  0xb3   : > { %1164 = vmatpush.msrb.mxu2 %v1033_v15  ;;  %1193 = vmatpush.msrb.mxu3 %v1034_v16 }
  0xb4   : > { %5264 = vmatmul.msk.f32.vlgmr.msrb.gmra.mxu0 %vm453_vm0, %v1026_v17  ;;  %5268 = vmatmul.msk.f32.vlgmr.msrb.gmra.mxu1 %vm453_vm0, %v1026_v17 }
  0xb5   : > { %5272 = vmatmul.msk.f32.vlgmr.msrb.gmra.mxu2 %vm453_vm0, %v1026_v17  ;;  %5276 = vmatmul.msk.f32.vlgmr.msrb.gmra.mxu3 %vm453_vm0, %v1026_v17  ;;  %v1225_v17 = vld [vmem:[#allocation2 + $0x14] sm:$0xff] }
  0xb6   : > { %1292 = vmatpush.msra.mxu0 %v1272_v18  ;;  %1321 = vmatpush.msra.mxu1 %v1273_v19 }
  0xb7   : > { %1350 = vmatpush.msra.mxu2 %v1274_v20  ;;  %1379 = vmatpush.msra.mxu3 %v1275_v21 }
  0xb8   : > { %1293 = vmatpush.msra.mxu0 %v1268_v22  ;;  %1322 = vmatpush.msra.mxu1 %v1269_v23  ;;  %v1226_v22 = vld [vmem:[#allocation2 + $0x1c] sm:$0xff] }
  0xb9   : > { %1351 = vmatpush.msra.mxu2 %v1270_v24  ;;  %1380 = vmatpush.msra.mxu3 %v1271_v25 }
  0xba   : > { %1294 = vmatpush.msra.mxu0 %v1264_v26  ;;  %1323 = vmatpush.msra.mxu1 %v1265_v27 }
  0xbb   : > { %1352 = vmatpush.msra.mxu2 %v1266_v28  ;;  %1381 = vmatpush.msra.mxu3 %v1267_v29 }
  0xbc   : > { %5265 = vmatmul.msk.f32.gmra.mxu0 %vm453_vm0, %v1027_v30  ;;  %5269 = vmatmul.msk.f32.gmra.mxu1 %vm453_vm0, %v1027_v30 }
  0xbd   : > { %5273 = vmatmul.msk.f32.gmra.mxu2 %vm453_vm0, %v1027_v30  ;;  %5277 = vmatmul.msk.f32.gmra.mxu3 %vm453_vm0, %v1027_v30 }
  0xbe   : > { %1295 = vmatpush.msra.mxu0 %v1260_v31  ;;  %1324 = vmatpush.msra.mxu1 %v1261_v32 }
  0xbf   : > { %1353 = vmatpush.msra.mxu2 %v1262_v33  ;;  %1382 = vmatpush.msra.mxu3 %v1263_v34 }
  0xc0   : > { %1296 = vmatpush.msra.mxu0 %v1256_v35  ;;  %1325 = vmatpush.msra.mxu1 %v1257_v36 }
  0xc1   : > { %1354 = vmatpush.msra.mxu2 %v1258_v37  ;;  %1383 = vmatpush.msra.mxu3 %v1259_v38 }
  0xc2   : > { %1297 = vmatpush.msra.mxu0 %v1252_v39  ;;  %1326 = vmatpush.msra.mxu1 %v1253_v40 }
  0xc3   : > { %1355 = vmatpush.msra.mxu2 %v1254_v41  ;;  %1384 = vmatpush.msra.mxu3 %v1255_v42 }
  0xc4   : > { %5266 = vmatmul.msk.f32.gmra.mxu0 %vm453_vm0, %v1028_v43  ;;  %5270 = vmatmul.msk.f32.gmra.mxu1 %vm453_vm0, %v1028_v43 }
  0xc5   : > { %5274 = vmatmul.msk.f32.gmra.mxu2 %vm453_vm0, %v1028_v43  ;;  %5278 = vmatmul.msk.f32.gmra.mxu3 %vm453_vm0, %v1028_v43 }
  0xc6   : > { %1298 = vmatpush.msra.mxu0 %v1248_v44  ;;  %1327 = vmatpush.msra.mxu1 %v1249_v45 }
  0xc7   : > { %1356 = vmatpush.msra.mxu2 %v1250_v46  ;;  %1385 = vmatpush.msra.mxu3 %v1251_v47 }
  0xc8   : > { %1299 = vmatpush.msra.mxu0 %v1244_v48  ;;  %1328 = vmatpush.msra.mxu1 %v1245_v49 }
  0xc9   : > { %1357 = vmatpush.msra.mxu2 %v1246_v50  ;;  %1386 = vmatpush.msra.mxu3 %v1247_v51 }
  0xca   : > { %1300 = vmatpush.msra.mxu0 %v1240_v52  ;;  %1329 = vmatpush.msra.mxu1 %v1241_v53 }
  0xcb   : > { %1358 = vmatpush.msra.mxu2 %v1242_v54  ;;  %1387 = vmatpush.msra.mxu3 %v1243_v55 }
  0xcc   : > { %5267 = vmatmul.msk.f32.gmra.mxu0 %vm453_vm0, %v1029_v56  ;;  %5271 = vmatmul.msk.f32.gmra.mxu1 %vm453_vm0, %v1029_v56 }
  0xcd   : > { %5275 = vmatmul.msk.f32.gmra.mxu2 %vm453_vm0, %v1029_v56  ;;  %5279 = vmatmul.msk.f32.gmra.mxu3 %vm453_vm0, %v1029_v56 }
  0xce   : > { %1301 = vmatpush.msra.mxu0 %v1236_v57  ;;  %1330 = vmatpush.msra.mxu1 %v1237_v58 }
  0xcf   : > { %1359 = vmatpush.msra.mxu2 %v1238_v59  ;;  %1388 = vmatpush.msra.mxu3 %v1239_v60 }
  0xd0   : > { %1302 = vmatpush.msra.mxu0 %v1232_v61  ;;  %1331 = vmatpush.msra.mxu1 %v1233_v62 }
  0xd1   : > { %v6027_v5 = vpop.f32.mrf.mxu0  ;;  %v6029_v6 = vpop.f32.mrf.mxu1  ;;  %1360 = vmatpush.msra.mxu2 %v1234_v63  ;;  %1389 = vmatpush.msra.mxu3 %v1235_v0 }
  0xd2   : > { %1303 = vmatpush.msra.mxu0 %v1228_v1  ;;  %1332 = vmatpush.msra.mxu1 %v1229_v2 }
  0xd3   : > { %1361 = vmatpush.msra.mxu2 %v1230_v3  ;;  %1390 = vmatpush.msra.mxu3 %v1231_v4 }
  0xd4   : > { %5280 = vmatmul.msk.f32.vlgmr.msra.gmra.mxu0 %vm453_vm0, %v1223_v7  ;;  %5284 = vmatmul.msk.f32.vlgmr.msra.gmra.mxu1 %vm453_vm0, %v1223_v7 }
  0xd5   : > { %5288 = vmatmul.msk.f32.vlgmr.msra.gmra.mxu2 %vm453_vm0, %v1223_v7  ;;  %5292 = vmatmul.msk.f32.vlgmr.msra.gmra.mxu3 %vm453_vm0, %v1223_v7 }
  0xd8   : > { %v6035_v8 = vpop.f32.mrf.mxu2  ;;  %v6037_v9 = vpop.f32.mrf.mxu3 }
  0xd9   : > { %v6039_v10 = vpop.f32.mrf.mxu0  ;;  %v6041_v11 = vpop.f32.mrf.mxu1 }
  0xdc   : > { %5281 = vmatmul.msk.f32.gmra.mxu0 %vm453_vm0, %v1224_v12  ;;  %5285 = vmatmul.msk.f32.gmra.mxu1 %vm453_vm0, %v1224_v12 }
  0xdd   : > { %5289 = vmatmul.msk.f32.gmra.mxu2 %vm453_vm0, %v1224_v12  ;;  %5293 = vmatmul.msk.f32.gmra.mxu3 %vm453_vm0, %v1224_v12 }
  0xe0   : > { %v6047_v13 = vpop.f32.mrf.mxu2  ;;  %v6049_v14 = vpop.f32.mrf.mxu3 }
  0xe1   : > { %v6051_v15 = vpop.f32.mrf.mxu0  ;;  %v6053_v16 = vpop.f32.mrf.mxu1 }
  0xe4   : > { %5282 = vmatmul.msk.f32.gmra.mxu0 %vm453_vm0, %v1225_v17  ;;  %5286 = vmatmul.msk.f32.gmra.mxu1 %vm453_vm0, %v1225_v17 }
  0xe5   : > { %5290 = vmatmul.msk.f32.gmra.mxu2 %vm453_vm0, %v1225_v17  ;;  %5294 = vmatmul.msk.f32.gmra.mxu3 %vm453_vm0, %v1225_v17 }
  0xe8   : > { %v6059_v18 = vpop.f32.mrf.mxu2  ;;  %v6061_v19 = vpop.f32.mrf.mxu3 }
  0xe9   : > { %7446 = vst [vmem:[#allocation27_spill] sm:$0xff] %v6061_v19  ;;  %v6063_v20 = vpop.f32.mrf.mxu0  ;;  %v6065_v21 = vpop.f32.mrf.mxu1 }
  0xec   : > { %5283 = vmatmul.msk.f32.gmra.mxu0 %vm453_vm0, %v1226_v22  ;;  %5287 = vmatmul.msk.f32.gmra.mxu1 %vm453_vm0, %v1226_v22 }
  0xed   : > { %5291 = vmatmul.msk.f32.gmra.mxu2 %vm453_vm0, %v1226_v22  ;;  %5295 = vmatmul.msk.f32.gmra.mxu3 %vm453_vm0, %v1226_v22  ;;  %v1420_v22 = vld [vmem:[#allocation7] sm:$0xf]  ;;  %vm3424_vm0 = vcmask 1044480  }
  0xf0   : > { %v6071_v23 = vpop.f32.mrf.mxu2  ;;  %v6073_v24 = vpop.f32.mrf.mxu3 }
  0xf1   : > { %7447 = vst [vmem:[#allocation28_spill] sm:$0xff] %v6073_v24  ;;  %v730_v25 = vpop.f32.mrf.mxu0  ;;  %v759_v26 = vpop.f32.mrf.mxu1  ;;  %v6143_v24 = vperm.slane %v1420_v22, 1 }
  0xf2   : > { %v760_v17 = vadd.f32 %v759_v26, %v6029_v6 }
  0xf8   : > { %v788_v27 = vpop.f32.mrf.mxu2  ;;  %v817_v28 = vpop.f32.mrf.mxu3 }
  0xf9   : > { %v6075_v29 = vpop.f32.mrf.mxu0  ;;  %v762_v30 = vpop.f32.mrf.mxu1  ;;  %v789_v19 = vadd.f32 %v788_v27, %v6035_v8  ;;  %v818_v6 = vadd.f32 %v817_v28, %v6037_v9  ;;  %v6154_v27 = vperm.slane %v1420_v22, 2  ;;  %v6156_v9 = vperm.slane %v1420_v22, 3 }
 0x100   : > { %v6077_v31 = vpop.f32.mrf.mxu2  ;;  %v6079_v32 = vpop.f32.mrf.mxu3 }
 0x101   : > { %v6081_v33 = vpop.f32.mrf.mxu0  ;;  %v6083_v34 = vpop.f32.mrf.mxu1 }
 0x108   : > { %v6085_v35 = vpop.f32.mrf.mxu2  ;;  %v6087_v36 = vpop.f32.mrf.mxu3 }
 0x109   : > { %7448 = vst [vmem:[#allocation29_spill] sm:$0xff] %v6087_v36  ;;  %v6089_v37 = vpop.f32.mrf.mxu0  ;;  %v6091_v38 = vpop.f32.mrf.mxu1 }
 0x110   : > { %v6093_v39 = vpop.f32.mrf.mxu2  ;;  %v6095_v40 = vpop.f32.mrf.mxu3 }
 0x111   : > { %7449 = vst [vmem:[#allocation30_spill] sm:$0xff] %v6095_v40  ;;  %v911_v41 = vpop.f32.mrf.mxu0  ;;  %v940_v42 = vpop.f32.mrf.mxu1  ;;  %v1446_v40 = vld [vmem:[#allocation9] sm:$0xf] }
 0x118   : > { %v969_v43 = vpop.f32.mrf.mxu2  ;;  %v998_v44 = vpop.f32.mrf.mxu3 }
 0x119   : > { %v6097_v45 = vpop.f32.mrf.mxu0  ;;  %v943_v46 = vpop.f32.mrf.mxu1 }
 0x120   : > { %v6099_v47 = vpop.f32.mrf.mxu2  ;;  %v6101_v48 = vpop.f32.mrf.mxu3 }
 0x121   : > { %v6103_v49 = vpop.f32.mrf.mxu0  ;;  %v6105_v50 = vpop.f32.mrf.mxu1 }
 0x122   : > { %7450 = vst [vmem:[#allocation31_spill] sm:$0xff] %v6103_v49  ;;  %v1011_v49 = vadd.f32 %v940_v42, %v760_v17  ;;  %v6147_v42 = vperm.slane %v1446_v40, 1 }
 0x128   : > { %v6107_v51 = vpop.f32.mrf.mxu2  ;;  %v6109_v52 = vpop.f32.mrf.mxu3 }
 0x129   : > { %7451 = vst [vmem:[#allocation32_spill] sm:$0xff] %v6107_v51  ;;  %v6111_v53 = vpop.f32.mrf.mxu0  ;;  %v6113_v54 = vpop.f32.mrf.mxu1 }
 0x12a   : > { %7452 = vst [vmem:[#allocation33_spill] sm:$0xff] %v6109_v52 }
 0x130   : > { %v6115_v55 = vpop.f32.mrf.mxu2  ;;  %v6117_v56 = vpop.f32.mrf.mxu3 }
 0x131   : > { %7453 = vst [vmem:[#allocation34_spill] sm:$0xff] %v6115_v55  ;;  %v1108_v57 = vpop.f32.mrf.mxu0  ;;  %v1137_v58 = vpop.f32.mrf.mxu1 }
 0x132   : > { %7454 = vst [vmem:[#allocation35_spill] sm:$0xff] %v6117_v56  ;;  %v731_v56 = vadd.f32 %v730_v25, %v6027_v5  ;;  %v1208_v52 = vadd.f32 %v1137_v58, %v1011_v49  ;;  %v763_v5 = vadd.f32 %v762_v30, %v6041_v11  ;;  %v1012_v25 = vadd.f32 %v969_v43, %v789_v19 }
 0x133   : > { %v1013_v58 = vadd.f32 %v998_v44, %v818_v6  ;;  %v6160_v19 = vperm.slane %v1446_v40, 2 }
 0x138   : > { %v1166_v59 = vpop.f32.mrf.mxu2  ;;  %v1195_v60 = vpop.f32.mrf.mxu3 }
 0x139   : > { %v6119_v61 = vpop.f32.mrf.mxu0  ;;  %v1140_v62 = vpop.f32.mrf.mxu1 }
 0x140   : > { %v6121_v63 = vpop.f32.mrf.mxu2  ;;  %v6123_v0 = vpop.f32.mrf.mxu3 }
 0x141   : > { %v6125_v1 = vpop.f32.mrf.mxu0  ;;  %v6127_v2 = vpop.f32.mrf.mxu1 }
 0x142   : > { %7455 = vst [vmem:[#allocation36_spill] sm:$0xff] %v6125_v1 }
 0x148   : > { %v6129_v3 = vpop.f32.mrf.mxu2  ;;  %v6131_v4 = vpop.f32.mrf.mxu3 }
 0x149   : > { %7456 = vst [vmem:[#allocation37_spill] sm:$0xff] %v6129_v3  ;;  %v6133_v7 = vpop.f32.mrf.mxu0  ;;  %v6135_v12 = vpop.f32.mrf.mxu1  ;;  %v1010_v3 = vadd.f32 %v911_v41, %v731_v56  ;;  %v1015_v41 = vadd.f32 %v943_v46, %v763_v5  ;;  %v1209_v56 = vadd.f32 %v1166_v59, %v1012_v25  ;;  %v6163_v46 = vperm.slane %v1446_v40, 3  ;;  %v2487_v5 = vld [vmem:[#allocation10 + $0x5e0] sm:$0xff]  ;;  %v2488_v25 = vld [vmem:[#allocation10 + $0x5e8] sm:$0xff] }
 0x14a   : > { %7457 = vst [vmem:[#allocation38_spill] sm:$0xff] %v6131_v4  ;;  %v734_v59 = vadd.f32 %v6075_v29, %v6039_v10  ;;  %2576 = vmatpush.msrb.mxu0 %v2487_v5  ;;  %2622 = vmatpush.msrb.mxu2 %v2488_v25  ;;  %v2475_v25 = vld [vmem:[#allocation10 + $0x580] sm:$0xff] }
 0x14b   : > { %v1207_v26 = vadd.f32 %v1108_v57, %v1010_v3  ;;  %v1212_v28 = vadd.f32 %v1140_v62, %v1015_v41  ;;  %v821_v3 = vadd.f32 %v6079_v32, %v6049_v14  ;;  %v2552_v41 = vld [vmem:[#allocation10 + $0x7e8] sm:$0xff] }
 0x14c   : > { %2645 = vmatpush.msrb.mxu3 %v2552_v41 }
 0x14d   : > { %v1017_v29 = vadd.f32 %v6101_v48, %v821_v3 }
 0x150   : > { %v6139_v51 = vpop.f32.mrf.mxu2  ;;  %v6141_v1 = vpop.f32.mrf.mxu3 }
 0x151   : > { %7458 = vst [vmem:[#allocation39_spill] sm:$0xff] %v6139_v51  ;;  %v1305_v4 = vpop.f32.mrf.mxu0  ;;  %v1334_v36 = vpop.f32.mrf.mxu1  ;;  %v1210_v51 = vadd.f32 %v1195_v60, %v1013_v58  ;;  %v792_v60 = vadd.f32 %v6077_v31, %v6047_v13 }
 0x152   : > { %7459 = vst [vmem:[#allocation40_spill] sm:$0xff] %v6141_v1  ;;  %v1405_v55 = vadd.f32 %v1334_v36, %v1208_v52  ;;  %v1404_v17 = vadd.f32 %v1305_v4, %v1207_v26  ;;  %v6151_v1 = vperm.slane %v1420_v22, 0  ;;  %v6158_v36 = vperm.slane %v1446_v40, 0 }
 0x153   : > { %v6175_v40 = vadd.f32 %v6089_v37, %v6063_v20  ;;  %v1016_v10 = vadd.f32 %v6099_v47, %v792_v60  ;;  %v2551_v47 = vld [vmem:[#allocation10 + $0x7e0] sm:$0xff] }
 0x154   : > { %v1431_v49 = vmul.f32 %v6143_v24, %v1405_v55  ;;  %v1430_v43 = vmul.f32 %v6151_v1, %v1404_v17  ;;  %2599 = vmatpush.msrb.mxu1 %v2551_v47  ;;  %v2544_v47 = vld [vmem:[#allocation10 + $0x7a8] sm:$0xff] }
 0x155   : > { %v1213_v48 = vadd.f32 %v6121_v63, %v1016_v10  ;;  %v2483_v63 = vld [vmem:[#allocation10 + $0x5c0] sm:$0xff] }
 0x156   : > { %v1457_v8 = vadd.f32 %v6147_v42, %v1431_v49  ;;  %v1456_v13 = vadd.f32 %v6158_v36, %v1430_v43  ;;  %v1214_v49 = vadd.f32 %v6123_v0, %v1017_v29  ;;  %2577 = vmatpush.msrb.mxu0 %v2483_v63 }
 0x158   : > { %v1363_v11 = vpop.f32.mrf.mxu2  ;;  %v1392_v30 = vpop.f32.mrf.mxu3  ;;  %v1473_v4 = vmax.f32 %v1457_v8, 0.0 }
 0x159   : > { %v1406_v44 = vadd.f32 %v1363_v11, %v1209_v56  ;;  %v1407_v52 = vadd.f32 %v1392_v30, %v1210_v51  ;;  %v1308_v55 = vpop.f32.mrf.mxu0  ;;  %v1337_v57 = vpop.f32.mrf.mxu1  ;;  %v1014_v51 = vadd.f32 %v6097_v45, %v734_v59  ;;  %v1472_v56 = vmax.f32 %v1456_v13, 0.0  ;;  %v2547_v30 = vld [vmem:[#allocation10 + $0x7c0] sm:$0xff]  ;;  %v2548_v59 = vld [vmem:[#allocation10 + $0x7c8] sm:$0xff] }
 0x15a   : > { %v1409_v62 = vadd.f32 %v1337_v57, %v1212_v28  ;;  %v1504_v37 = vrot.slane %v1473_v4, 6  ;;  %v2484_v57 = vld [vmem:[#allocation10 + $0x5c8] sm:$0xff]  ;;  %2600 = vmatpush.msrb.mxu1 %v2547_v30  ;;  %v769_v13 = vadd.f32 %v6091_v38, %v6065_v21  ;;  %2646 = vmatpush.msrb.mxu3 %v2548_v59  ;;  %v1022_v21 = vadd.f32 %v6111_v53, %v6175_v40  ;;  %v2467_v59 = vld [vmem:[#allocation10 + $0x540] sm:$0xff] }
 0x15b   : > { %v1432_v22 = vmul.f32 %v6154_v27, %v1406_v44  ;;  %v1433_v6 = vmul.f32 %v6156_v9, %v1407_v52  ;;  %v1211_v20 = vadd.f32 %v6119_v61, %v1014_v51  ;;  %2623 = vmatpush.msrb.mxu2 %v2484_v57  ;;  %v2540_v40 = vld [vmem:[#allocation10 + $0x788] sm:$0xff] }
 0x15c   : > { %v1435_v32 = vmul.f32 %v6143_v24, %v1409_v62  ;;  %v1517_v60 = vsel %vm1516_vm2, %v1472_v56, %v1504_v37  ;;  %v1523_v62 = vsel %vm1522_vm4, %v1472_v56, %v1504_v37  ;;  %v1023_v38 = vadd.f32 %v6113_v54, %v769_v13  ;;  %2647 = vmatpush.msrb.mxu3 %v2544_v47 }
 0x15d   : > { %v1458_v31 = vadd.f32 %v6160_v19, %v1432_v22  ;;  %v1459_v14 = vadd.f32 %v6163_v46, %v1433_v6  ;;  %v1408_v0 = vadd.f32 %v1308_v55, %v1211_v20  ;;  %v2479_v22 = vld [vmem:[#allocation10 + $0x5a0] sm:$0xff]  ;;  %v1533_v20 = vsel %vm1524_vm5, %v1504_v37, %v1472_v56 }
 0x15e   : > { %v1461_v43 = vadd.f32 %v6147_v42, %v1435_v32  ;;  %v2543_v6 = vld [vmem:[#allocation10 + $0x7a0] sm:$0xff]  ;;  %2578 = vmatpush.msrb.mxu0 %v2479_v22  ;;  %v2480_v32 = vld [vmem:[#allocation10 + $0x5a8] sm:$0xff]  ;;  %2648 = vmatpush.msrb.mxu3 %v2540_v40  ;;  %v795_v47 = vadd.f32 %v6085_v35, %v6059_v18 }
 0x15f   : > { %v1474_v26 = vmax.f32 %v1458_v31, 0.0  ;;  %v1475_v45 = vmax.f32 %v1459_v14, 0.0  ;;  %v1529_v31 = vsel %vm1518_vm3, %v1472_v56, %v1504_v37  ;;  %2601 = vmatpush.msrb.mxu1 %v2543_v6  ;;  %v2539_v37 = vld [vmem:[#allocation10 + $0x780] sm:$0xff]  ;;  %v1434_v41 = vmul.f32 %v6151_v1, %v1408_v0  ;;  %2624 = vmatpush.msrb.mxu2 %v2480_v32  ;;  %v2472_v0 = vld [vmem:[#allocation10 + $0x568] sm:$0xff] }
 0x160   : > { %v1366_v58 = vpop.f32.mrf.mxu2  ;;  %v1395_v17 = vpop.f32.mrf.mxu3  ;;  %2579 = vmatpush.msrb.mxu0 %v2475_v25  ;;  %v2532_v6 = vld [vmem:[#allocation10 + $0x748] sm:$0xff] }
 0x161   : > { %v1505_v8 = vrot.slane %v1474_v26, 4  ;;  %v1506_v61 = vrot.slane %v1475_v45, 2  ;;  %v6187_v28 = vpop.f32.mrf.mxu0  ;;  %v6189_v11 = vpop.f32.mrf.mxu1  ;;  %v1410_v44 = vadd.f32 %v1366_v58, %v1213_v48  ;;  %v1411_v52 = vadd.f32 %v1395_v17, %v1214_v49  ;;  %v2476_v58 = vld [vmem:[#allocation10 + $0x588] sm:$0xff]  ;;  %2602 = vmatpush.msrb.mxu1 %v2539_v37 }
 0x162   : > { %v1477_v26 = vmax.f32 %v1461_v43, 0.0  ;;  %v766_v17 = vadd.f32 %v6083_v34, %v6053_v16  ;;  %v2471_v16 = vld [vmem:[#allocation10 + $0x560] sm:$0xff]  ;;  %2625 = vmatpush.msrb.mxu2 %v2476_v58  ;;  %v1460_v13 = vadd.f32 %v6158_v36, %v1434_v41  ;;  %v7461_v18 = vld [vmem:[#allocation27_spill] sm:$0xff] }
 0x163   : > { %v1519_v3 = vsel %vm1518_vm3, %v1505_v8, %v1506_v61  ;;  %v1525_v4 = vsel %vm1524_vm5, %v1506_v61, %v1505_v8  ;;  %v1530_v10 = vsel %vm1516_vm2, %v1505_v8, %v1506_v61  ;;  %v1534_v29 = vsel %vm1522_vm4, %v1505_v8, %v1506_v61  ;;  %v2535_v34 = vld [vmem:[#allocation10 + $0x760] sm:$0xff]  ;;  %2580 = vmatpush.msrb.mxu0 %v2471_v16 }
 0x164   : > { %v1521_v55 = vsel %vm1520_vm6, %v1517_v60, %v1519_v3  ;;  %v1527_v51 = vsel %vm1526_vm7, %v1523_v62, %v1525_v4  ;;  %v1436_v45 = vmul.f32 %v6154_v27, %v1410_v44  ;;  %v1437_v5 = vmul.f32 %v6156_v9, %v1411_v52  ;;  %2603 = vmatpush.msrb.mxu1 %v2535_v34  ;;  %v7460_v25 = vld [vmem:[#allocation34_spill] sm:$0xff] }
 0x165   : > { %v1528_v14 = vrot.slane %v1527_v51, 2  ;;  %1582 = vst [vmem:[#allocation1] ss:$4 sm:$0xff] %v1521_v55  ;;  %v6210_v48 = vsel %vm1520_vm6, %v1530_v10, %v1529_v31  ;;  %v6213_v49 = vsel %vm1526_vm7, %v1534_v29, %v1533_v20  ;;  %v1219_v8 = vadd.f32 %v6133_v7, %v1022_v21  ;;  %v2536_v7 = vld [vmem:[#allocation10 + $0x768] sm:$0xff]  ;;  %v2463_v55 = vld [vmem:[#allocation10 + $0x520] sm:$0xff]  ;;  %2626 = vmatpush.msrb.mxu2 %v2472_v0 }
 0x166   : > { %v6219_v56 = vadd.f32 %v6160_v19, %v1436_v45  ;;  %v6222_v53 = vadd.f32 %v6163_v46, %v1437_v5  ;;  %v1220_v61 = vadd.f32 %v6135_v12, %v1023_v38  ;;  %v1019_v43 = vadd.f32 %v6105_v50, %v766_v17  ;;  %v2531_v12 = vld [vmem:[#allocation10 + $0x740] sm:$0xff]  ;;  %v2468_v50 = vld [vmem:[#allocation10 + $0x548] sm:$0xff]  ;;  %2649 = vmatpush.msrb.mxu3 %v2536_v7 }
 0x167   : > { %1588 = vst [vmem:[#allocation1 + $0x20] ss:$4 sm:$0xff] %v1528_v14  ;;  %v1532_v44 = vrot.slane %v6210_v48, 4  ;;  %v1536_v52 = vrot.slane %v6213_v49, 6  ;;  %v6231_v57 = vrot.slane %v1477_v26, 6  ;;  %v798_v51 = vadd.f32 %v6093_v39, %v6071_v23  ;;  %v2527_v31 = vld [vmem:[#allocation10 + $0x720] sm:$0xff]  ;;  %2581 = vmatpush.msrb.mxu0 %v2467_v59  ;;  %2604 = vmatpush.msrb.mxu1 %v2531_v12 }
 0x168   : > { %v6224_v54 = vpop.f32.mrf.mxu2  ;;  %v1478_v60 = vmax.f32 %v6219_v56, 0.0  ;;  %v1479_v62 = vmax.f32 %v6222_v53, 0.0  ;;  %v6235_v3 = vpop.f32.mrf.mxu3  ;;  %v2464_v14 = vld [vmem:[#allocation10 + $0x528] sm:$0xff]  ;;  %v1216_v32 = vadd.f32 %v6127_v2, %v1019_v43  ;;  %v737_v5 = vadd.f32 %v6081_v33, %v6051_v15  ;;  %2627 = vmatpush.msrb.mxu2 %v2468_v50  ;;  %v7462_v33 = vld [vmem:[#allocation29_spill] sm:$0xff]  ;;  %2650 = vmatpush.msrb.mxu3 %v2532_v6 }
 0x169   : > { %v1314_v63 = vpop.f32.mrf.mxu0  ;;  %v1343_v30 = vpop.f32.mrf.mxu1  ;;  %v2528_v39 = vld [vmem:[#allocation10 + $0x728] sm:$0xff]  ;;  %v1024_v21 = vadd.f32 %v7460_v25, %v798_v51  ;;  %v824_v35 = vadd.f32 %v7462_v33, %v7461_v18  ;;  %v6269_v17 = vmax.f32 %v1460_v13, 0.0  ;;  %2582 = vmatpush.msrb.mxu0 %v2463_v55  ;;  %2605 = vmatpush.msrb.mxu1 %v2527_v31  ;;  %v2459_v34 = vld [vmem:[#allocation10 + $0x500] sm:$0xff] }
 0x16a   : > { %v1416_v4 = vadd.f32 %v1314_v63, %v1219_v8  ;;  %v1417_v22 = vadd.f32 %v1343_v30, %v1220_v61  ;;  %v1413_v37 = vadd.f32 %v6189_v11, %v1216_v32  ;;  %v6271_v41 = vrot.slane %v1478_v60, 4  ;;  %v7463_v11 = vld [vmem:[#allocation28_spill] sm:$0xff]  ;;  %v7464_v40 = vld [vmem:[#allocation30_spill] sm:$0xff]  ;;  %v7466_v30 = vld [vmem:[#allocation39_spill] sm:$0xff]  ;;  %2628 = vmatpush.msrb.mxu2 %v2464_v14  ;;  %2651 = vmatpush.msrb.mxu3 %v2528_v39 }
 0x16b   : > { %v6273_v56 = vrot.slane %v1479_v62, 2  ;;  %v827_v8 = vadd.f32 %v7464_v40, %v7463_v11  ;;  %v7465_v61 = vld [vmem:[#allocation32_spill] sm:$0xff]  ;;  %v1221_v16 = vadd.f32 %v7466_v30, %v1024_v21  ;;  %v7467_v0 = vld [vmem:[#allocation33_spill] sm:$0xff]  ;;  %v2460_v60 = vld [vmem:[#allocation10 + $0x508] sm:$0xff]  ;;  %2583 = vmatpush.msrb.mxu0 %v2459_v34 }
 0x16c   : > { %v6239_v10 = vld.sshfl [vmem:[#allocation1] sm:$0xff pattern:$0x73625140]  ;;  %v6241_v29 = vld.sshfl [vmem:[#allocation1 + $0x8] sm:$0xff pattern:$0x73625140]  ;;  %v1442_v45 = vmul.f32 %v6151_v1, %v1416_v4  ;;  %v1443_v23 = vmul.f32 %v6143_v24, %v1417_v22  ;;  %v1020_v63 = vadd.f32 %v7465_v61, %v795_v47  ;;  %v1021_v43 = vadd.f32 %v7467_v0, %v824_v35  ;;  %2629 = vmatpush.msrb.mxu2 %v2460_v60 }
 0x16d   : > { %v6245_v20 = vld.sshfl [vmem:[#allocation1 + $0x10] sm:$0xff pattern:$0x73625140]  ;;  %v6247_v26 = vld.sshfl [vmem:[#allocation1 + $0x18] sm:$0xff pattern:$0x73625140]  ;;  %v1541_v7 = vsel %vm1524_vm5, %v6273_v56, %v6271_v41  ;;  %v1439_v50 = vmul.f32 %v6143_v24, %v1413_v37  ;;  %v1538_v33 = vsel %vm1518_vm3, %v6271_v41, %v6273_v56 }
 0x16e   : > { %v6256_v38 = vld.sshfl [vmem:[#allocation1 + $0x20] sm:$0xff pattern:$0x73625140]  ;;  %v6258_v2 = vld.sshfl [vmem:[#allocation1 + $0x28] sm:$0xff pattern:$0x73625140]  ;;  %v1468_v58 = vadd.f32 %v6158_v36, %v1442_v45  ;;  %v1469_v15 = vadd.f32 %v6147_v42, %v1443_v23 }
 0x16f   : > { %v6260_v48 = vld.sshfl [vmem:[#allocation1 + $0x30] sm:$0xff pattern:$0x73625140]  ;;  %v6262_v49 = vld.sshfl [vmem:[#allocation1 + $0x38] sm:$0xff pattern:$0x73625140]  ;;  %v1465_v30 = vadd.f32 %v6147_v42, %v1439_v50 }
 0x170   : > { %1593 = vst [vmem:[#allocation1] ss:$4 sm:$0xff] %v1532_v44  ;;  %v1372_v53 = vpop.f32.mrf.mxu2  ;;  %v1540_v44 = vsel %vm1522_vm4, %v6269_v17, %v6231_v57  ;;  %v1485_v59 = vmax.f32 %v1469_v15, 0.0  ;;  %v2523_v12 = vld [vmem:[#allocation10 + $0x700] sm:$0xff]  ;;  %v2524_v62 = vld [vmem:[#allocation10 + $0x708] sm:$0xff]  ;;  %v7472_v21 = vld [vmem:[#allocation40_spill] sm:$0xff]  ;;  %v1401_v18 = vpop.f32.mrf.mxu3 }
 0x171   : > { %1598 = vst [vmem:[#allocation1 + $0x20] ss:$4 sm:$0xff] %v1536_v52  ;;  %v7468_v4 = vld [vmem:[#allocation35_spill] sm:$0xff]  ;;  %v6288_v22 = vsel %vm1526_vm7, %v1540_v44, %v1541_v7  ;;  %v1418_v6 = vadd.f32 %v1372_v53, %v1221_v16  ;;  %v2455_v55 = vld [vmem:[#allocation10 + $0x4e0] sm:$0xff]  ;;  %2606 = vmatpush.msrb.mxu1 %v2523_v12  ;;  %2652 = vmatpush.msrb.mxu3 %v2524_v62  ;;  %v1484_v35 = vmax.f32 %v1468_v58, 0.0  ;;  %v7474_v42 = vld [vmem:[#allocation36_spill] sm:$0xff] }
 0x172   : > { %v1025_v52 = vadd.f32 %v7468_v4, %v827_v8  ;;  %v2519_v51 = vld [vmem:[#allocation10 + $0x6e0] sm:$0xff]  ;;  %v2456_v13 = vld [vmem:[#allocation10 + $0x4e8] sm:$0xff]  ;;  %2584 = vmatpush.msrb.mxu0 %v2455_v55  ;;  %v1513_v53 = vrot.slane %v1485_v59, 6  ;;  %v1537_v7 = vsel %vm1516_vm2, %v6269_v17, %v6231_v57  ;;  %v1544_v4 = vsel %vm1518_vm3, %v6269_v17, %v6231_v57 }
 0x173   : > { %v7469_v31 = vld [vmem:[#allocation31_spill] sm:$0xff]  ;;  %v2451_v45 = vld [vmem:[#allocation10 + $0x4c0] sm:$0xff]  ;;  %2607 = vmatpush.msrb.mxu1 %v2519_v51  ;;  %2630 = vmatpush.msrb.mxu2 %v2456_v13  ;;  %v1444_v34 = vmul.f32 %v6154_v27, %v1418_v6 }
 0x174   : > { %v1018_v14 = vadd.f32 %v7469_v31, %v737_v5  ;;  %v2520_v32 = vld [vmem:[#allocation10 + $0x6e8] sm:$0xff]  ;;  %v7470_v23 = vld [vmem:[#allocation37_spill] sm:$0xff]  ;;  %v1222_v15 = vadd.f32 %v7472_v21, %v1025_v52  ;;  %v1543_v5 = vrot.slane %v6288_v22, 2  ;;  %2585 = vmatpush.msrb.mxu0 %v2451_v45  ;;  %v1539_v52 = vsel %vm1520_vm6, %v1537_v7, %v1538_v33 }
 0x175   : > { %v1217_v39 = vadd.f32 %v7470_v23, %v1020_v63  ;;  %v7471_v47 = vld [vmem:[#allocation38_spill] sm:$0xff]  ;;  %2653 = vmatpush.msrb.mxu3 %v2520_v32  ;;  %v1545_v22 = vsel %vm1516_vm2, %v6271_v41, %v6273_v56  ;;  %v6331_v6 = vsel %vm1516_vm2, %v1484_v35, %v1513_v53  ;;  %v6334_v55 = vsel %vm1522_vm4, %v1484_v35, %v1513_v53 }
 0x176   : > { %v1218_v25 = vadd.f32 %v7471_v47, %v1021_v43  ;;  %v2515_v24 = vld [vmem:[#allocation10 + $0x6c0] sm:$0xff]  ;;  %v2452_v37 = vld [vmem:[#allocation10 + $0x4c8] sm:$0xff]  ;;  %v1419_v12 = vadd.f32 %v1401_v18, %v1222_v15  ;;  %v6337_v51 = vsel %vm1518_vm3, %v1484_v35, %v1513_v53  ;;  %v6340_v13 = vsel %vm1524_vm5, %v1513_v53, %v1484_v35 }
 0x177   : > { %v2516_v11 = vld [vmem:[#allocation10 + $0x6c8] sm:$0xff]  ;;  %v2447_v40 = vld [vmem:[#allocation10 + $0x4a0] sm:$0xff]  ;;  %v6299_v61 = vld.sshfl [vmem:[#allocation1] sm:$0xff pattern:$0x73625140]  ;;  %v1414_v16 = vadd.f32 %v6224_v54, %v1217_v39  ;;  %2608 = vmatpush.msrb.mxu1 %v2515_v24  ;;  %v1215_v54 = vadd.f32 %v7474_v42, %v1018_v14  ;;  %2631 = vmatpush.msrb.mxu2 %v2452_v37  ;;  %v1481_v31 = vmax.f32 %v1465_v30, 0.0  ;;  %v1470_v32 = vadd.f32 %v6160_v19, %v1444_v34 }
 0x178   : > { %v2511_v8 = vld [vmem:[#allocation10 + $0x6a0] sm:$0xff]  ;;  %v2448_v0 = vld [vmem:[#allocation10 + $0x4a8] sm:$0xff]  ;;  %v6308_v44 = vld.sshfl [vmem:[#allocation1 + $0x18] sm:$0xff pattern:$0x73625140]  ;;  %v1415_v59 = vadd.f32 %v6235_v3, %v1218_v25  ;;  %2654 = vmatpush.msrb.mxu3 %v2516_v11  ;;  %2586 = vmatpush.msrb.mxu0 %v2447_v40  ;;  %v6345_v23 = vsel %vm1520_vm6, %v1545_v22, %v1544_v4  ;;  %v1445_v47 = vmul.f32 %v6156_v9, %v1419_v12  ;;  %v6359_v34 = vsel %vm1516_vm2, %v6239_v10, -inf }
 0x179   : > { %v6301_v63 = vld.sshfl [vmem:[#allocation1 + $0x8] sm:$0xff pattern:$0x73625140]  ;;  %v2512_v58 = vld [vmem:[#allocation10 + $0x6a8] sm:$0xff]  ;;  %7473 = vst [vmem:[#allocation34_spill] sm:$0xff] %v6308_v44  ;;  %v1440_v14 = vmul.f32 %v6154_v27, %v1414_v16  ;;  %2609 = vmatpush.msrb.mxu1 %v2511_v8  ;;  %2632 = vmatpush.msrb.mxu2 %v2448_v0  ;;  %v1412_v27 = vadd.f32 %v6187_v28, %v1215_v54  ;;  %v1486_v18 = vmax.f32 %v1470_v32, 0.0 }
 0x17a   : > { %v6306_v43 = vld.sshfl [vmem:[#allocation1 + $0x10] sm:$0xff pattern:$0x73625140]  ;;  %v6315_v60 = vld.sshfl [vmem:[#allocation1 + $0x20] sm:$0xff pattern:$0x73625140]  ;;  %v1441_v39 = vmul.f32 %v6156_v9, %v1415_v59  ;;  %2655 = vmatpush.msrb.mxu3 %v2512_v58  ;;  %v1471_v35 = vadd.f32 %v6163_v46, %v1445_v47 }
 0x17b   : > { %v6317_v62 = vld.sshfl [vmem:[#allocation1 + $0x28] sm:$0xff pattern:$0x73625140]  ;;  %v6326_v3 = vld.sshfl [vmem:[#allocation1 + $0x30] sm:$0xff pattern:$0x73625140]  ;;  %v6355_v8 = vadd.f32 %v6160_v19, %v1440_v14 }
 0x17c   : > { %7475 = vst [vmem:[#allocation27_spill] sm:$0xff] %v6317_v62  ;;  %v6328_v50 = vld.sshfl [vmem:[#allocation1 + $0x38] sm:$0xff pattern:$0x73625140]  ;;  %v2443_v45 = vld [vmem:[#allocation10 + $0x480] sm:$0xff]  ;;  %v2444_v21 = vld [vmem:[#allocation10 + $0x488] sm:$0xff]  ;;  %v6362_v0 = vadd.f32 %v6163_v46, %v1441_v39  ;;  %v1438_v46 = vmul.f32 %v6151_v1, %v1412_v27 }
 0x17d   : > { %7476 = vst [vmem:[#allocation29_spill] sm:$0xff] %v6328_v50  ;;  %v2507_v25 = vld [vmem:[#allocation10 + $0x680] sm:$0xff]  ;;  %v2508_v15 = vld [vmem:[#allocation10 + $0x688] sm:$0xff]  ;;  %2587 = vmatpush.msrb.mxu0 %v2443_v45  ;;  %2633 = vmatpush.msrb.mxu2 %v2444_v21  ;;  %v1547_v11 = vrot.slane %v6345_v23, 4  ;;  %v6352_v40 = vrot.slane %v1481_v31, 6  ;;  %v6366_v19 = vsel %vm1516_vm2, %v6245_v20, -inf }
 0x17e   : > { %1603 = vst [vmem:[#allocation1] ss:$4 sm:$0xff] %v1539_v52  ;;  %2610 = vmatpush.msrb.mxu1 %v2507_v25  ;;  %v2439_v24 = vld [vmem:[#allocation10 + $0x460] sm:$0xff]  ;;  %v2440_v33 = vld [vmem:[#allocation10 + $0x468] sm:$0xff]  ;;  %2656 = vmatpush.msrb.mxu3 %v2508_v15  ;;  %v6370_v12 = vsel %vm1516_vm2, %v6256_v38, -inf  ;;  %v6374_v10 = vsel %vm1516_vm2, %v6260_v48, -inf  ;;  %v1464_v23 = vadd.f32 %v6158_v36, %v1438_v46 }
 0x17f   : > { %1608 = vst [vmem:[#allocation1 + $0x20] ss:$4 sm:$0xff] %v1543_v5  ;;  %v2503_v37 = vld [vmem:[#allocation10 + $0x660] sm:$0xff]  ;;  %v2504_v5 = vld [vmem:[#allocation10 + $0x668] sm:$0xff]  ;;  %2588 = vmatpush.msrb.mxu0 %v2439_v24  ;;  %2634 = vmatpush.msrb.mxu2 %v2440_v33  ;;  %v1514_v42 = vrot.slane %v1486_v18, 4  ;;  %v1487_v54 = vmax.f32 %v1471_v35, 0.0 }
 0x180   : > { %v2435_v53 = vld [vmem:[#allocation10 + $0x440] sm:$0xff]  ;;  %2611 = vmatpush.msrb.mxu1 %v2503_v37  ;;  %v2436_v28 = vld [vmem:[#allocation10 + $0x448] sm:$0xff]  ;;  %2657 = vmatpush.msrb.mxu3 %v2504_v5  ;;  %v6379_v20 = vsel %vm1516_vm2, %v6299_v61, -inf  ;;  %v1482_v14 = vmax.f32 %v6355_v8, 0.0  ;;  %v1483_v32 = vmax.f32 %v6362_v0, 0.0  ;;  %v1728_v61 = vrot.slane %v6359_v34, 4 }
 0x181   : > { %v2499_v9 = vld [vmem:[#allocation10 + $0x640] sm:$0xff]  ;;  %v2500_v30 = vld [vmem:[#allocation10 + $0x648] sm:$0xff]  ;;  %2589 = vmatpush.msrb.mxu0 %v2435_v53  ;;  %2635 = vmatpush.msrb.mxu2 %v2436_v28  ;;  %v1742_v45 = vrot.slane %v6366_v19, 4  ;;  %v1515_v39 = vrot.slane %v1487_v54, 2  ;;  %v2489_v25 = vld [vmem:[#allocation10 + $0x5f0] sm:$0xff]  ;;  %v1756_v18 = vrot.slane %v6370_v12, 4 }
 0x182   : > { %v2431_v16 = vld [vmem:[#allocation10 + $0x420] sm:$0xff]  ;;  %v2432_v7 = vld [vmem:[#allocation10 + $0x428] sm:$0xff]  ;;  %2612 = vmatpush.msrb.mxu1 %v2499_v9  ;;  %2658 = vmatpush.msrb.mxu3 %v2500_v30  ;;  %v2553_v21 = vld [vmem:[#allocation10 + $0x7f0] sm:$0xff]  ;;  %v1770_v24 = vrot.slane %v6374_v10, 4  ;;  %v1784_v37 = vrot.slane %v6379_v20, 4  ;;  %v1797_v33 = vsel %vm1516_vm2, %v6306_v43, -inf }
 0x183   : > { %v2495_v58 = vld [vmem:[#allocation10 + $0x620] sm:$0xff]  ;;  %v2496_v59 = vld [vmem:[#allocation10 + $0x628] sm:$0xff]  ;;  %2590 = vmatpush.msrb.mxu0 %v2431_v16  ;;  %2636 = vmatpush.msrb.mxu2 %v2432_v7  ;;  %v2490_v15 = vld [vmem:[#allocation10 + $0x5f8] sm:$0xff]  ;;  %v1568_v36 = vsel %vm1518_vm3, %v1514_v42, %v1515_v39  ;;  %v1571_v35 = vsel %vm1524_vm5, %v1515_v39, %v1514_v42  ;;  %v1575_v5 = vsel %vm1516_vm2, %v1514_v42, %v1515_v39  ;;  %v6424_v7 = vrot.slane %v1483_v32, 2 }
 0x184   : > { %v2427_v4 = vld [vmem:[#allocation10 + $0x400] sm:$0xff]  ;;  %v2428_v22 = vld [vmem:[#allocation10 + $0x408] sm:$0xff]  ;;  %2613 = vmatpush.msrb.mxu1 %v2495_v58  ;;  %2659 = vmatpush.msrb.mxu3 %v2496_v59  ;;  %v2554_v27 = vld [vmem:[#allocation10 + $0x7f8] sm:$0xff]  ;;  %v1579_v53 = vsel %vm1522_vm4, %v1514_v42, %v1515_v39  ;;  %v6405_v8 = vsel %vm1520_vm6, %v6331_v6, %v1568_v36  ;;  %v6409_v28 = vsel %vm1526_vm7, %v6334_v55, %v1571_v35  ;;  %v6422_v58 = vrot.slane %v1482_v14, 4 }
 0x185   : > { %v2491_v52 = vld [vmem:[#allocation10 + $0x600] sm:$0xff]  ;;  %v6381_v31 = vld.sshfl [vmem:[#allocation1] sm:$0xff pattern:$0x73625140]  ;;  %2591 = vmatpush.msrb.mxu0 %v2427_v4  ;;  %v2492_v47 = vld [vmem:[#allocation10 + $0x608] sm:$0xff]  ;;  %2637 = vmatpush.msrb.mxu2 %v2428_v22  ;;  %v6413_v43 = vsel %vm1520_vm6, %v1575_v5, %v6337_v51  ;;  %v6417_v30 = vsel %vm1526_vm7, %v1579_v53, %v6340_v13  ;;  %v1549_v6 = vsel %vm1522_vm4, %v6271_v41, %v6273_v56  ;;  %v6430_v54 = vmax.f32 %v1464_v23, 0.0 }
 0x186   : > { %v6383_v38 = vld.sshfl [vmem:[#allocation1 + $0x8] sm:$0xff pattern:$0x73625140]  ;;  %v6385_v48 = vld.sshfl [vmem:[#allocation1 + $0x10] sm:$0xff pattern:$0x73625140]  ;;  %2614 = vmatpush.msrb.mxu1 %v2491_v52  ;;  %2660 = vmatpush.msrb.mxu3 %v2492_v47  ;;  %v1729_v59 = vmax.f32 %v6359_v34, %v1728_v61  ;;  %v1548_v13 = vsel %vm1524_vm5, %v6231_v57, %v6269_v17  ;;  %v1743_v4 = vmax.f32 %v6366_v19, %v1742_v45 }
 0x187   : > { %7477 = vst [vmem:[#allocation28_spill] sm:$0xff] %v6383_v38  ;;  %v6387_v1 = vld.sshfl [vmem:[#allocation1 + $0x18] sm:$0xff pattern:$0x73625140]  ;;  %2668 = vmatpush.msra.mxu0 %v2489_v25  ;;  %v2486_v16 = vld [vmem:[#allocation10 + $0x5d8] sm:$0xff]  ;;  %2714 = vmatpush.msra.mxu2 %v2490_v15  ;;  %v1757_v52 = vmax.f32 %v6370_v12, %v1756_v18  ;;  %v1798_v22 = vrot.slane %v1797_v33, 4  ;;  %v6435_v34 = vsel %vm1526_vm7, %v1549_v6, %v1548_v13 }
 0x188   : > { %7478 = vst [vmem:[#allocation30_spill] sm:$0xff] %v6387_v1  ;;  %v2485_v9 = vld [vmem:[#allocation10 + $0x5d0] sm:$0xff]  ;;  %2691 = vmatpush.msra.mxu1 %v2553_v21  ;;  %v2550_v0 = vld [vmem:[#allocation10 + $0x7d8] sm:$0xff]  ;;  %2737 = vmatpush.msra.mxu3 %v2554_v27  ;;  %v1771_v14 = vmax.f32 %v6374_v10, %v1770_v24  ;;  %v1785_v32 = vmax.f32 %v6379_v20, %v1784_v37  ;;  %v1730_v39 = vrot.slane %v1729_v59, 2  ;;  %v1811_v21 = vsel %vm1516_vm2, %v6315_v60, -inf }
 0x189   : > { %1613 = vst [vmem:[#allocation1] ss:$4 sm:$0xff] %v1547_v11  ;;  %v2549_v11 = vld [vmem:[#allocation10 + $0x7d0] sm:$0xff]  ;;  %2669 = vmatpush.msra.mxu0 %v2485_v9  ;;  %v2482_v46 = vld [vmem:[#allocation10 + $0x5b8] sm:$0xff]  ;;  %2715 = vmatpush.msra.mxu2 %v2486_v16  ;;  %v1555_v61 = vsel %vm1522_vm4, %v6430_v54, %v6352_v40  ;;  %v1556_v19 = vsel %vm1524_vm5, %v6424_v7, %v6422_v58  ;;  %v1825_v15 = vsel %vm1516_vm2, %v6326_v3, -inf  ;;  %v1758_v36 = vrot.slane %v1757_v52, 2 }
 0x18a   : > { %v2481_v55 = vld [vmem:[#allocation10 + $0x5b0] sm:$0xff]  ;;  %2692 = vmatpush.msra.mxu1 %v2549_v11  ;;  %v2546_v42 = vld [vmem:[#allocation10 + $0x7b8] sm:$0xff]  ;;  %2738 = vmatpush.msra.mxu3 %v2550_v0  ;;  %v1560_v12 = vsel %vm1516_vm2, %v6422_v58, %v6424_v7  ;;  %v1564_v10 = vsel %vm1522_vm4, %v6422_v58, %v6424_v7  ;;  %v6451_v25 = vmax.f32 %v1797_v33, %v1798_v22  ;;  %v1744_v33 = vrot.slane %v1743_v4, 2 }
 0x18b   : > { %v2545_v51 = vld [vmem:[#allocation10 + $0x7b0] sm:$0xff]  ;;  %2670 = vmatpush.msra.mxu0 %v2481_v55  ;;  %v2478_v57 = vld [vmem:[#allocation10 + $0x598] sm:$0xff]  ;;  %2716 = vmatpush.msra.mxu2 %v2482_v46  ;;  %v1559_v27 = vsel %vm1518_vm3, %v6430_v54, %v6352_v40  ;;  %v1563_v18 = vsel %vm1524_vm5, %v6352_v40, %v6430_v54  ;;  %v6464_v35 = vsel %vm1526_vm7, %v1555_v61, %v1556_v19  ;;  %v1772_v53 = vrot.slane %v1771_v14, 2  ;;  %v1611_v19 = vld.sshfl [vmem:[#allocation1 + $0x30] sm:$0xff pattern:$0x73625140] }
 0x18c   : > { %v2477_v41 = vld [vmem:[#allocation10 + $0x590] sm:$0xff]  ;;  %2693 = vmatpush.msra.mxu1 %v2545_v51  ;;  %v2542_v17 = vld [vmem:[#allocation10 + $0x798] sm:$0xff]  ;;  %2739 = vmatpush.msra.mxu3 %v2546_v42  ;;  %v6467_v60 = vsel %vm1520_vm6, %v1560_v12, %v1559_v27  ;;  %v1786_v9 = vrot.slane %v1785_v32, 2  ;;  %v6470_v11 = vsel %vm1526_vm7, %v1564_v10, %v1563_v18  ;;  %v6472_v6 = vmax.f32 %v1729_v59, %v1730_v39 }
 0x18d   : > { %v2541_v56 = vld [vmem:[#allocation10 + $0x790] sm:$0xff]  ;;  %2671 = vmatpush.msra.mxu0 %v2477_v41  ;;  %v2474_v20 = vld [vmem:[#allocation10 + $0x578] sm:$0xff]  ;;  %2717 = vmatpush.msra.mxu2 %v2478_v57  ;;  %v1812_v55 = vrot.slane %v1811_v21, 4  ;;  %v1826_v51 = vrot.slane %v1825_v15, 4  ;;  %v1800_v42 = vrot.slane %v6451_v25, 2  ;;  %v1551_v41 = vrot.slane %v6435_v34, 6 }
 0x18e   : > { %v2473_v45 = vld [vmem:[#allocation10 + $0x570] sm:$0xff]  ;;  %2694 = vmatpush.msra.mxu1 %v2541_v56  ;;  %v2538_v47 = vld [vmem:[#allocation10 + $0x778] sm:$0xff]  ;;  %2740 = vmatpush.msra.mxu3 %v2542_v17  ;;  %v6477_v17 = vmax.f32 %v1743_v4, %v1744_v33  ;;  %v6479_v59 = vmax.f32 %v1757_v52, %v1758_v36  ;;  %v6485_v39 = vmax.f32 %v1785_v32, %v1786_v9  ;;  %v1732_v4 = vrot.slane %v6472_v6, 1  ;;  %v6504_v9 = vld.sshfl [vmem:[#allocation1 + $0x28] sm:$0xff pattern:$0x73625140] }
 0x18f   : > { %v2537_v23 = vld [vmem:[#allocation10 + $0x770] sm:$0xff]  ;;  %2672 = vmatpush.msra.mxu0 %v2473_v45  ;;  %v2470_v3 = vld [vmem:[#allocation10 + $0x558] sm:$0xff]  ;;  %2718 = vmatpush.msra.mxu2 %v2474_v20  ;;  %v6488_v52 = vmax.f32 %v1811_v21, %v1812_v55  ;;  %v1839_v27 = vsel %vm1516_vm2, %v6381_v31, -inf  ;;  %v6497_v33 = vmax.f32 %v6451_v25, %v1800_v42  ;;  %v1853_v21 = vsel %vm1516_vm2, %v6385_v48, -inf  ;;  %7479 = vst [vmem:[#allocation32_spill] sm:$0xff] %v6504_v9 }
 0x190   : > { %v2469_v24 = vld [vmem:[#allocation10 + $0x550] sm:$0xff]  ;;  %2695 = vmatpush.msra.mxu1 %v2537_v23  ;;  %v2534_v5 = vld [vmem:[#allocation10 + $0x758] sm:$0xff]  ;;  %2741 = vmatpush.msra.mxu3 %v2538_v47  ;;  %v6483_v23 = vmax.f32 %v1771_v14, %v1772_v53  ;;  %v6490_v47 = vmax.f32 %v1825_v15, %v1826_v51  ;;  %v1760_v53 = vrot.slane %v6479_v59, 1  ;;  %v1553_v25 = vsel %vm1518_vm3, %v6422_v58, %v6424_v7 }
 0x191   : > { %v2533_v37 = vld [vmem:[#allocation10 + $0x750] sm:$0xff]  ;;  %2673 = vmatpush.msra.mxu0 %v2469_v24  ;;  %v2466_v13 = vld [vmem:[#allocation10 + $0x538] sm:$0xff]  ;;  %2719 = vmatpush.msra.mxu2 %v2470_v3  ;;  %v1854_v58 = vrot.slane %v1853_v21, 4  ;;  %v1552_v7 = vsel %vm1516_vm2, %v6430_v54, %v6352_v40  ;;  %v1615_v40 = vld.sshfl [vmem:[#allocation1 + $0x8] sm:$0xff pattern:$0x73625140] }
 0x192   : > { %v2465_v16 = vld [vmem:[#allocation10 + $0x530] sm:$0xff]  ;;  %2696 = vmatpush.msra.mxu1 %v2533_v37  ;;  %v2530_v46 = vld [vmem:[#allocation10 + $0x738] sm:$0xff]  ;;  %2742 = vmatpush.msra.mxu3 %v2534_v5  ;;  %v1746_v5 = vrot.slane %v6477_v17, 1  ;;  %v1774_v51 = vrot.slane %v6483_v23, 1 }
 0x193   : > { %v2529_v0 = vld [vmem:[#allocation10 + $0x730] sm:$0xff]  ;;  %2674 = vmatpush.msra.mxu0 %v2465_v16  ;;  %v2462_v12 = vld [vmem:[#allocation10 + $0x518] sm:$0xff]  ;;  %2720 = vmatpush.msra.mxu2 %v2466_v13  ;;  %v1788_v13 = vrot.slane %v6485_v39, 1  ;;  %v1616_v54 = vld.sshfl [vmem:[#allocation1 + $0x10] sm:$0xff pattern:$0x73625140] }
 0x194   : > { %v2461_v22 = vld [vmem:[#allocation10 + $0x510] sm:$0xff]  ;;  %2697 = vmatpush.msra.mxu1 %v2529_v0  ;;  %v2526_v45 = vld [vmem:[#allocation10 + $0x718] sm:$0xff]  ;;  %2743 = vmatpush.msra.mxu3 %v2530_v46  ;;  %v1840_v46 = vrot.slane %v1839_v27, 4 }
 0x195   : > { %v2525_v57 = vld [vmem:[#allocation10 + $0x710] sm:$0xff]  ;;  %2675 = vmatpush.msra.mxu0 %v2461_v22  ;;  %v2458_v32 = vld [vmem:[#allocation10 + $0x4f8] sm:$0xff]  ;;  %2721 = vmatpush.msra.mxu2 %v2462_v12  ;;  %v1814_v12 = vrot.slane %v6488_v52, 2 }
 0x196   : > { %v2457_v10 = vld [vmem:[#allocation10 + $0x4f0] sm:$0xff]  ;;  %2698 = vmatpush.msra.mxu1 %v2525_v57  ;;  %v2522_v24 = vld [vmem:[#allocation10 + $0x6f8] sm:$0xff]  ;;  %2744 = vmatpush.msra.mxu3 %v2526_v45 }
 0x197   : > { %v2521_v20 = vld [vmem:[#allocation10 + $0x6f0] sm:$0xff]  ;;  %v2454_v36 = vld [vmem:[#allocation10 + $0x4d8] sm:$0xff]  ;;  %2676 = vmatpush.msra.mxu0 %v2457_v10  ;;  %2722 = vmatpush.msra.mxu2 %v2458_v32  ;;  %v6526_v32 = vmax.f32 %v1839_v27, %v1840_v46  ;;  %v1902_v27 = vsel %vm1516_vm2, %v1615_v40, -inf }
 0x198   : > { %v2453_v37 = vld [vmem:[#allocation10 + $0x4d0] sm:$0xff]  ;;  %v2518_v3 = vld [vmem:[#allocation10 + $0x6d8] sm:$0xff]  ;;  %2699 = vmatpush.msra.mxu1 %v2521_v20  ;;  %2745 = vmatpush.msra.mxu3 %v2522_v24  ;;  %v1554_v24 = vsel %vm1520_vm6, %v1552_v7, %v1553_v25  ;;  %v6533_v25 = vmax.f32 %v1853_v21, %v1854_v58  ;;  %v1903_v21 = vrot.slane %v1902_v27, 4 }
 0x199   : > { %v2517_v31 = vld [vmem:[#allocation10 + $0x6d0] sm:$0xff]  ;;  %v2450_v55 = vld [vmem:[#allocation10 + $0x4b8] sm:$0xff]  ;;  %2677 = vmatpush.msra.mxu0 %v2453_v37  ;;  %2723 = vmatpush.msra.mxu2 %v2454_v36  ;;  %v6521_v37 = vmax.f32 %v6472_v6, %v1732_v4  ;;  %v1842_v46 = vrot.slane %v6526_v32, 2 }
 0x19a   : > { %v6506_v16 = vld.sshfl [vmem:[#allocation1 + $0x38] sm:$0xff pattern:$0x73625140]  ;;  %v2514_v42 = vld [vmem:[#allocation10 + $0x6b8] sm:$0xff]  ;;  %2700 = vmatpush.msra.mxu1 %v2517_v31  ;;  %2746 = vmatpush.msra.mxu3 %v2518_v3  ;;  %v6524_v31 = vmax.f32 %v6477_v17, %v1746_v5  ;;  %v6531_v3 = vmax.f32 %v6488_v52, %v1814_v12  ;;  %v1881_v17 = vsel %vm1516_vm2, %v1611_v19, -inf  ;;  %v1904_v7 = vmax.f32 %v1902_v27, %v1903_v21 }
 0x19b   : > { %7480 = vst [vmem:[#allocation39_spill] sm:$0xff] %v6506_v16  ;;  %v2449_v48 = vld [vmem:[#allocation10 + $0x4b0] sm:$0xff]  ;;  %v2446_v10 = vld [vmem:[#allocation10 + $0x498] sm:$0xff]  ;;  %2724 = vmatpush.msra.mxu2 %v2450_v55  ;;  %v1882_v52 = vrot.slane %v1881_v17, 4 }
 0x19c   : > { %v2513_v0 = vld [vmem:[#allocation10 + $0x6b0] sm:$0xff]  ;;  %v2510_v20 = vld [vmem:[#allocation10 + $0x698] sm:$0xff]  ;;  %2678 = vmatpush.msra.mxu0 %v2449_v48  ;;  %2747 = vmatpush.msra.mxu3 %v2514_v42  ;;  %v1816_v40 = vrot.slane %v6531_v3, 1  ;;  %v1905_v27 = vrot.slane %v1904_v7, 2 }
 0x19d   : > { %v2445_v22 = vld [vmem:[#allocation10 + $0x490] sm:$0xff]  ;;  %v1609_v15 = vld.sshfl [vmem:[#allocation1 + $0x20] sm:$0xff pattern:$0x73625140]  ;;  %2701 = vmatpush.msra.mxu1 %v2513_v0  ;;  %2725 = vmatpush.msra.mxu2 %v2446_v10  ;;  %v1909_v0 = vsel %vm1516_vm2, %v1616_v54, -inf  ;;  %v1883_v12 = vmax.f32 %v1881_v17, %v1882_v52 }
 0x19e   : > { %v2509_v57 = vld [vmem:[#allocation10 + $0x690] sm:$0xff]  ;;  %v1614_v61 = vld.sshfl [vmem:[#allocation1] sm:$0xff pattern:$0x73625140]  ;;  %1618 = vst [vmem:[#allocation1 + $0x20] ss:$4 sm:$0xff] %v1551_v41  ;;  %2679 = vmatpush.msra.mxu0 %v2445_v22  ;;  %2748 = vmatpush.msra.mxu3 %v2510_v20 }
 0x19f   : > { %v2441_v14 = vld [vmem:[#allocation10 + $0x470] sm:$0xff]  ;;  %v2442_v56 = vld [vmem:[#allocation10 + $0x478] sm:$0xff]  ;;  %v1867_v48 = vsel %vm1516_vm2, %v1609_v15, -inf  ;;  %2702 = vmatpush.msra.mxu1 %v2509_v57  ;;  %v1895_v4 = vsel %vm1516_vm2, %v1614_v61, -inf  ;;  %v1910_v42 = vrot.slane %v1909_v0, 4  ;;  %v1884_v17 = vrot.slane %v1883_v12, 2 }
 0x1a0   : > { %v2505_v18 = vld [vmem:[#allocation10 + $0x670] sm:$0xff]  ;;  %v2506_v45 = vld [vmem:[#allocation10 + $0x678] sm:$0xff]  ;;  %v1868_v6 = vrot.slane %v1867_v48, 4  ;;  %v1896_v5 = vrot.slane %v1895_v4, 4  ;;  %2680 = vmatpush.msra.mxu0 %v2441_v14  ;;  %2726 = vmatpush.msra.mxu2 %v2442_v56  ;;  %v1856_v56 = vrot.slane %v6533_v25, 2 }
 0x1a1   : > { %v1617_v36 = vld.sshfl [vmem:[#allocation1 + $0x18] sm:$0xff pattern:$0x73625140]  ;;  %2703 = vmatpush.msra.mxu1 %v2505_v18  ;;  %v2438_v15 = vld [vmem:[#allocation10 + $0x458] sm:$0xff]  ;;  %2749 = vmatpush.msra.mxu3 %v2506_v45  ;;  %v1911_v21 = vmax.f32 %v1909_v0, %v1910_v42 }
 0x1a2   : > { %1623 = vst [vmem:[#allocation1] ss:$4 sm:$0xff] %v1554_v24  ;;  %v2437_v34 = vld [vmem:[#allocation10 + $0x450] sm:$0xff]  ;;  %v2502_v55 = vld [vmem:[#allocation10 + $0x658] sm:$0xff]  ;;  %v1869_v19 = vmax.f32 %v1867_v48, %v1868_v6  ;;  %v1916_v61 = vsel %vm1516_vm2, %v1617_v36, -inf  ;;  %v1897_v58 = vmax.f32 %v1895_v4, %v1896_v5  ;;  %v6545_v24 = vmax.f32 %v6479_v59, %v1760_v53  ;;  %2727 = vmatpush.msra.mxu2 %v2438_v15 }
 0x1a3   : > { %v2501_v41 = vld [vmem:[#allocation10 + $0x650] sm:$0xff]  ;;  %v1917_v10 = vrot.slane %v1916_v61, 4  ;;  %2681 = vmatpush.msra.mxu0 %v2437_v34  ;;  %v2434_v14 = vld [vmem:[#allocation10 + $0x438] sm:$0xff]  ;;  %2750 = vmatpush.msra.mxu3 %v2502_v55  ;;  %v6552_v6 = vmax.f32 %v6483_v23, %v1774_v51  ;;  %v6557_v34 = vmax.f32 %v6485_v39, %v1788_v13  ;;  %v6563_v5 = vmax.f32 %v6526_v32, %v1842_v46 }
 0x1a4   : > { %v2433_v22 = vld [vmem:[#allocation10 + $0x430] sm:$0xff]  ;;  %2704 = vmatpush.msra.mxu1 %v2501_v41  ;;  %v2498_v18 = vld [vmem:[#allocation10 + $0x638] sm:$0xff]  ;;  %v1870_v45 = vrot.slane %v1869_v19, 2  ;;  %v1898_v4 = vrot.slane %v1897_v58, 2  ;;  %v7481_v41 = vrot.slane %v6490_v47, 2  ;;  %2728 = vmatpush.msra.mxu2 %v2434_v14  ;;  %v1857_v39 = vmax.f32 %v6533_v25, %v1856_v56 }
 0x1a5   : > { %v2497_v57 = vld [vmem:[#allocation10 + $0x630] sm:$0xff]  ;;  %v2430_v36 = vld [vmem:[#allocation10 + $0x418] sm:$0xff]  ;;  %2682 = vmatpush.msra.mxu0 %v2433_v22  ;;  %v1620_v53 = vld.sshfl [vmem:[#allocation1 + $0x28] sm:$0xff pattern:$0x73625140]  ;;  %2751 = vmatpush.msra.mxu3 %v2498_v18  ;;  %v1918_v15 = vmax.f32 %v1916_v61, %v1917_v10  ;;  %v7482_v18 = vrot.slane %v6497_v33, 1 }
 0x1a6   : > { %v2429_v20 = vld [vmem:[#allocation10 + $0x410] sm:$0xff]  ;;  %v2494_v48 = vld [vmem:[#allocation10 + $0x618] sm:$0xff]  ;;  %2705 = vmatpush.msra.mxu1 %v2497_v57  ;;  %v1829_v52 = vmax.f32 %v6490_v47, %v7481_v41  ;;  %v1621_v23 = vld.sshfl [vmem:[#allocation1 + $0x30] sm:$0xff pattern:$0x73625140]  ;;  %v1871_v13 = vmax.f32 %v1869_v19, %v1870_v45  ;;  %v1885_v57 = vmax.f32 %v1883_v12, %v1884_v17  ;;  %2729 = vmatpush.msra.mxu2 %v2430_v36  ;;  %v7483_v25 = vrot.slane %v6464_v35, 2 }
 0x1a7   : > { %v2493_v54 = vld [vmem:[#allocation10 + $0x610] sm:$0xff]  ;;  %v1619_v59 = vld.sshfl [vmem:[#allocation1 + $0x20] sm:$0xff pattern:$0x73625140]  ;;  %2683 = vmatpush.msra.mxu0 %v2429_v20  ;;  %2752 = vmatpush.msra.mxu3 %v2494_v48  ;;  %v6573_v32 = vmax.f32 %v6497_v33, %v7482_v18  ;;  %v6582_v19 = vmax.f32 %v6531_v3, %v1816_v40  ;;  %v1899_v61 = vmax.f32 %v1897_v58, %v1898_v4  ;;  %v7484_v10 = vrot.slane %v6467_v60, 4 }
 0x1a8   : > { %v1622_v51 = vld.sshfl [vmem:[#allocation1 + $0x38] sm:$0xff pattern:$0x73625140]  ;;  %2706 = vmatpush.msra.mxu1 %v2493_v54  ;;  %v1830_v42 = vrot.slane %v1829_v52, 1  ;;  %v1906_v12 = vmax.f32 %v1904_v7, %v1905_v27  ;;  %v1912_v33 = vrot.slane %v1911_v21, 2  ;;  %v1919_v20 = vrot.slane %v1918_v15, 2 }
 0x1a9   : > { %v1624_v55 = vld.sshfl [vmem:[#allocation1] sm:$0xff pattern:$0x73625140]  ;;  %v1625_v22 = vld.sshfl [vmem:[#allocation1 + $0x8] sm:$0xff pattern:$0x73625140] }
 0x1aa   : > { %v6566_v47 = vld.sshfl [vmem:[#allocation1 + $0x10] sm:$0xff pattern:$0x73625140]  ;;  %v6568_v14 = vld.sshfl [vmem:[#allocation1 + $0x18] sm:$0xff pattern:$0x73625140]  ;;  %v1913_v17 = vmax.f32 %v1911_v21, %v1912_v33  ;;  %v1920_v3 = vmax.f32 %v1918_v15, %v1919_v20  ;;  %v6597_v33 = vmax.f32 %v1829_v52, %v1830_v42 }
 0x1ab   : > { %1628 = vst [vmem:[#allocation1 + $0x20] ss:$4 sm:$0xff] %v7483_v25  ;;  %v1923_v56 = vsel %vm1516_vm2, %v1619_v59, -inf  ;;  %v1930_v45 = vsel %vm1516_vm2, %v1620_v53, -inf  ;;  %v1844_v54 = vrot.slane %v6563_v5, 1  ;;  %v1858_v36 = vrot.slane %v1857_v39, 1 }
 0x1ac   : > { %1633 = vst [vmem:[#allocation1] ss:$4 sm:$0xff] %v7484_v10  ;;  %v1872_v35 = vrot.slane %v1871_v13, 1  ;;  %v1886_v48 = vrot.slane %v1885_v57, 1  ;;  %v1924_v40 = vrot.slane %v1923_v56, 4  ;;  %v1931_v41 = vrot.slane %v1930_v45, 4 }
 0x1ad   : > { %v1937_v58 = vsel %vm1516_vm2, %v1621_v23, -inf  ;;  %v1944_v60 = vsel %vm1516_vm2, %v1622_v51, -inf  ;;  %v1951_v7 = vsel %vm1516_vm2, %v1624_v55, -inf  ;;  %v1958_v4 = vsel %vm1516_vm2, %v1625_v22, -inf }
 0x1ae   : > { %v1900_v27 = vrot.slane %v1899_v61, 1  ;;  %v1907_v59 = vrot.slane %v1906_v12, 1  ;;  %v1914_v53 = vrot.slane %v1913_v17, 1  ;;  %v1921_v18 = vrot.slane %v1920_v3, 1 }
 0x1af   : > { %v1938_v25 = vrot.slane %v1937_v58, 4  ;;  %v1945_v10 = vrot.slane %v1944_v60, 4  ;;  %v1952_v46 = vrot.slane %v1951_v7, 4  ;;  %v1959_v0 = vrot.slane %v1958_v4, 4 }
 0x1b0   : > { %v1925_v23 = vmax.f32 %v1923_v56, %v1924_v40  ;;  %v1932_v51 = vmax.f32 %v1930_v45, %v1931_v41  ;;  %v2179_v55 = vmax.f32 %v6557_v34, %v6573_v32  ;;  %v6610_v52 = vmax.f32 %v6563_v5, %v1844_v54 }
 0x1b1   : > { %v1939_v16 = vmax.f32 %v1937_v58, %v1938_v25  ;;  %v1946_v9 = vmax.f32 %v1944_v60, %v1945_v10  ;;  %v1953_v1 = vmax.f32 %v1951_v7, %v1952_v46  ;;  %v1960_v38 = vmax.f32 %v1958_v4, %v1959_v0 }
 0x1b2   : > { %v6593_v21 = vld.sshfl [vmem:[#allocation1 + $0x20] sm:$0xff pattern:$0x73625140]  ;;  %v6595_v15 = vld.sshfl [vmem:[#allocation1 + $0x28] sm:$0xff pattern:$0x73625140]  ;;  %v6612_v42 = vmax.f32 %v1857_v39, %v1858_v36  ;;  %v6614_v34 = vmax.f32 %v1871_v13, %v1872_v35  ;;  %v6616_v32 = vmax.f32 %v1885_v57, %v1886_v48  ;;  %v6622_v46 = vmax.f32 %v1899_v61, %v1900_v27 }
 0x1b3   : > { %v6601_v22 = vld.sshfl [vmem:[#allocation1 + $0x30] sm:$0xff pattern:$0x73625140]  ;;  %v6603_v20 = vld.sshfl [vmem:[#allocation1 + $0x38] sm:$0xff pattern:$0x73625140]  ;;  %v6624_v0 = vmax.f32 %v1906_v12, %v1907_v59  ;;  %v6626_v40 = vmax.f32 %v1913_v17, %v1914_v53  ;;  %v6628_v41 = vmax.f32 %v1920_v3, %v1921_v18 }
 0x1b4   : > { %v6605_v50 = vld.sshfl [vmem:[#allocation1] sm:$0xff pattern:$0x73625140]  ;;  %v6607_v62 = vld.sshfl [vmem:[#allocation1 + $0x8] sm:$0xff pattern:$0x73625140] }
 0x1b5   : > { %v6618_v56 = vld.sshfl [vmem:[#allocation1 + $0x10] sm:$0xff pattern:$0x73625140]  ;;  %v6620_v45 = vld.sshfl [vmem:[#allocation1 + $0x18] sm:$0xff pattern:$0x73625140] }
 0x1b6   : > { %v7485_v5 = vrot.slane %v6470_v11, 6  ;;  %v1926_v39 = vrot.slane %v1925_v23, 2  ;;  %v1933_v13 = vrot.slane %v1932_v51, 2  ;;  %v1940_v54 = vrot.slane %v1939_v16, 2  ;;  %1643 = vst [vmem:[#allocation1] ss:$4 sm:$0xff] %v6405_v8 }
 0x1b7   : > { %v1947_v57 = vrot.slane %v1946_v9, 2  ;;  %v1954_v36 = vrot.slane %v1953_v1, 2  ;;  %v1961_v35 = vrot.slane %v1960_v38, 2  ;;  %v1965_v61 = vsel %vm1516_vm2, %v6566_v47, -inf }
 0x1b8   : > { %1638 = vst [vmem:[#allocation1 + $0x20] ss:$4 sm:$0xff] %v7485_v5  ;;  %v1972_v12 = vsel %vm1516_vm2, %v6568_v14, -inf  ;;  %v1927_v48 = vmax.f32 %v1925_v23, %v1926_v39  ;;  %v1934_v17 = vmax.f32 %v1932_v51, %v1933_v13  ;;  %v1941_v3 = vmax.f32 %v1939_v16, %v1940_v54 }
 0x1b9   : > { %v1948_v58 = vmax.f32 %v1946_v9, %v1947_v57  ;;  %v1955_v11 = vmax.f32 %v1953_v1, %v1954_v36  ;;  %v1962_v60 = vmax.f32 %v1960_v38, %v1961_v35  ;;  %v1966_v7 = vrot.slane %v1965_v61, 4 }
 0x1ba   : > { %v1973_v4 = vrot.slane %v1972_v12, 4  ;;  %v1928_v27 = vrot.slane %v1927_v48, 1  ;;  %v1935_v59 = vrot.slane %v1934_v17, 1  ;;  %v1942_v53 = vrot.slane %v1941_v3, 1 }
 0x1bb   : > { %v1949_v8 = vrot.slane %v1948_v58, 1  ;;  %v1956_v18 = vrot.slane %v1955_v11, 1  ;;  %v1963_v25 = vrot.slane %v1962_v60, 1  ;;  %v1967_v10 = vmax.f32 %v1965_v61, %v1966_v7 }
 0x1bc   : > { %v1974_v5 = vmax.f32 %v1972_v12, %v1973_v4  ;;  %v6637_v47 = vmax.f32 %v1927_v48, %v1928_v27  ;;  %v6639_v44 = vmax.f32 %v1934_v17, %v1935_v59  ;;  %v6641_v14 = vmax.f32 %v1941_v3, %v1942_v53 }
 0x1bd   : > { %v6643_v16 = vmax.f32 %v1948_v58, %v1949_v8  ;;  %v7486_v51 = vmax.f32 %v6521_v37, %v6524_v31  ;;  %v7487_v39 = vmax.f32 %v6545_v24, %v6552_v6  ;;  %v6673_v31 = vmax.f32 %v1955_v11, %v1956_v18 }
 0x1be   : > { %v6675_v24 = vmax.f32 %v1962_v60, %v1963_v25  ;;  %v7488_v48 = vrot.slane %v6409_v28, 2  ;;  %v1968_v17 = vrot.slane %v1967_v10, 2  ;;  %v1975_v3 = vrot.slane %v1974_v5, 2 }
 0x1bf   : > { %v6645_v1 = vld.sshfl [vmem:[#allocation1 + $0x20] sm:$0xff pattern:$0x73625140]  ;;  %v6647_v38 = vld.sshfl [vmem:[#allocation1 + $0x28] sm:$0xff pattern:$0x73625140]  ;;  %v2246_v13 = vsel %vm2245_vm8, %v7487_v39, %v7486_v51 }
 0x1c0   : > { %v6660_v54 = vld.sshfl [vmem:[#allocation1 + $0x30] sm:$0xff pattern:$0x73625140]  ;;  %v6662_v57 = vld.sshfl [vmem:[#allocation1 + $0x38] sm:$0xff pattern:$0x73625140]  ;;  %v6671_v37 = vsel %vm2247_vm9, %v2179_v55, %v2246_v13  ;;  %v1969_v27 = vmax.f32 %v1967_v10, %v1968_v17  ;;  %v1976_v59 = vmax.f32 %v1974_v5, %v1975_v3 }
 0x1c1   : > { %1648 = vst [vmem:[#allocation1 + $0x20] ss:$4 sm:$0xff] %v7488_v48  ;;  %v1979_v58 = vsel %vm1516_vm2, %v6593_v21, -inf  ;;  %v1986_v55 = vsel %vm1516_vm2, %v6595_v15, -inf  ;;  %v1993_v7 = vsel %vm1516_vm2, %v6601_v22, -inf  ;;  %v2000_v4 = vsel %vm1516_vm2, %v6603_v20, -inf }
 0x1c2   : > { %v1980_v11 = vrot.slane %v1979_v58, 4  ;;  %v1987_v60 = vrot.slane %v1986_v55, 4  ;;  %v1994_v28 = vrot.slane %v1993_v7, 4  ;;  %v2001_v53 = vrot.slane %v2000_v4, 4 }
 0x1c3   : > { %v2007_v21 = vsel %vm1516_vm2, %v6605_v50, -inf  ;;  %v2014_v15 = vsel %vm1516_vm2, %v6607_v62, -inf  ;;  %v1970_v25 = vrot.slane %v1969_v27, 1  ;;  %v1977_v51 = vrot.slane %v1976_v59, 1 }
 0x1c4   : > { %v1981_v8 = vmax.f32 %v1979_v58, %v1980_v11  ;;  %v1988_v18 = vmax.f32 %v1986_v55, %v1987_v60  ;;  %v1995_v39 = vmax.f32 %v1993_v7, %v1994_v28  ;;  %v2002_v13 = vmax.f32 %v2000_v4, %v2001_v53 }
 0x1c5   : > { %v2008_v36 = vrot.slane %v2007_v21, 4  ;;  %v2015_v20 = vrot.slane %v2014_v15, 4  ;;  %v6695_v10 = vmax.f32 %v1969_v27, %v1970_v25  ;;  %v6697_v5 = vmax.f32 %v1976_v59, %v1977_v51 }
 0x1c6   : > { %v1982_v22 = vrot.slane %v1981_v8, 2  ;;  %v1989_v48 = vrot.slane %v1988_v18, 2  ;;  %v1996_v17 = vrot.slane %v1995_v39, 2  ;;  %v2003_v3 = vrot.slane %v2002_v13, 2 }
 0x1c7   : > { %v2009_v50 = vmax.f32 %v2007_v21, %v2008_v36  ;;  %v2016_v11 = vmax.f32 %v2014_v15, %v2015_v20  ;;  %v2021_v7 = vsel %vm1516_vm2, %v6618_v56, -inf  ;;  %v2028_v4 = vsel %vm1516_vm2, %v6620_v45, -inf  ;;  %v1644_v15 = vld.sshfl [vmem:[#allocation1] sm:$0xff pattern:$0x73625140] }
 0x1c8   : > { %v1983_v58 = vmax.f32 %v1981_v8, %v1982_v22  ;;  %v1990_v55 = vmax.f32 %v1988_v18, %v1989_v48  ;;  %v1997_v60 = vmax.f32 %v1995_v39, %v1996_v17  ;;  %v2004_v62 = vmax.f32 %v2002_v13, %v2003_v3  ;;  %v1646_v39 = vld.sshfl [vmem:[#allocation1 + $0x10] sm:$0xff pattern:$0x73625140] }
 0x1c9   : > { %v2010_v27 = vrot.slane %v2009_v50, 2  ;;  %v2017_v25 = vrot.slane %v2016_v11, 2  ;;  %v2022_v12 = vrot.slane %v2021_v7, 4  ;;  %v2029_v61 = vrot.slane %v2028_v4, 4 }
 0x1ca   : > { %v1984_v28 = vrot.slane %v1983_v58, 1  ;;  %v1991_v53 = vrot.slane %v1990_v55, 1  ;;  %v1998_v59 = vrot.slane %v1997_v60, 1  ;;  %v2005_v51 = vrot.slane %v2004_v62, 1 }
 0x1cb   : > { %v2011_v18 = vmax.f32 %v2009_v50, %v2010_v27  ;;  %v2018_v21 = vmax.f32 %v2016_v11, %v2017_v25  ;;  %v2023_v45 = vmax.f32 %v2021_v7, %v2022_v12  ;;  %v2030_v22 = vmax.f32 %v2028_v4, %v2029_v61  ;;  %v6725_v25 = vld.sshfl [vmem:[#allocation1 + $0x18] sm:$0xff pattern:$0x73625140] }
 0x1cc   : > { %v6703_v8 = vmax.f32 %v1983_v58, %v1984_v28  ;;  %v6705_v36 = vmax.f32 %v1990_v55, %v1991_v53  ;;  %v6707_v56 = vmax.f32 %v1997_v60, %v1998_v59  ;;  %v6709_v13 = vmax.f32 %v2004_v62, %v2005_v51  ;;  %v1649_v28 = vld.sshfl [vmem:[#allocation1 + $0x20] sm:$0xff pattern:$0x73625140]  ;;  %v1651_v53 = vld.sshfl [vmem:[#allocation1 + $0x30] sm:$0xff pattern:$0x73625140] }
 0x1cd   : > { %v2012_v48 = vrot.slane %v2011_v18, 1  ;;  %v2019_v20 = vrot.slane %v2018_v21, 1  ;;  %v2035_v17 = vsel %vm1516_vm2, %v6645_v1, -inf  ;;  %v2042_v3 = vsel %vm1516_vm2, %v6647_v38, -inf }
 0x1ce   : > { %v2024_v58 = vrot.slane %v2023_v45, 2  ;;  %v2031_v55 = vrot.slane %v2030_v22, 2  ;;  %v2036_v50 = vrot.slane %v2035_v17, 4  ;;  %v2043_v11 = vrot.slane %v2042_v3, 4 }
 0x1cf   : > { %v6715_v60 = vmax.f32 %v2011_v18, %v2012_v48  ;;  %v6717_v62 = vmax.f32 %v2018_v21, %v2019_v20  ;;  %v2049_v61 = vsel %vm1516_vm2, %v6660_v54, -inf  ;;  %v2056_v12 = vsel %vm1516_vm2, %v6662_v57, -inf  ;;  %v6723_v1 = vld.sshfl [vmem:[#allocation1 + $0x8] sm:$0xff pattern:$0x73625140] }
 0x1d0   : > { %v2025_v7 = vmax.f32 %v2023_v45, %v2024_v58  ;;  %v2032_v38 = vmax.f32 %v2030_v22, %v2031_v55  ;;  %v2037_v4 = vmax.f32 %v2035_v17, %v2036_v50  ;;  %v2044_v27 = vmax.f32 %v2042_v3, %v2043_v11  ;;  %v6727_v59 = vld.sshfl [vmem:[#allocation1 + $0x28] sm:$0xff pattern:$0x73625140]  ;;  %v6733_v55 = vld.sshfl [vmem:[#allocation1 + $0x38] sm:$0xff pattern:$0x73625140] }
 0x1d1   : > { %7489 = vst [vmem:[#allocation33_spill] sm:$0xff] %v6727_v59  ;;  %v2050_v51 = vrot.slane %v2049_v61, 4  ;;  %v2057_v18 = vrot.slane %v2056_v12, 4  ;;  %v2063_v21 = vsel %vm1516_vm2, %v1644_v15, -inf  ;;  %v2077_v48 = vsel %vm1516_vm2, %v1646_v39, -inf }
 0x1d2   : > { %v7490_v54 = vrot.slane %v6413_v43, 4  ;;  %v2026_v57 = vrot.slane %v2025_v7, 1  ;;  %v2033_v20 = vrot.slane %v2032_v38, 1  ;;  %v2038_v6 = vrot.slane %v2037_v4, 2  ;;  %7491 = vst [vmem:[#allocation35_spill] sm:$0xff] %v6733_v55 }
 0x1d3   : > { %v2045_v45 = vrot.slane %v2044_v27, 2  ;;  %v2051_v22 = vmax.f32 %v2049_v61, %v2050_v51  ;;  %v2058_v17 = vmax.f32 %v2056_v12, %v2057_v18  ;;  %v2064_v3 = vrot.slane %v2063_v21, 4 }
 0x1d4   : > { %1653 = vst [vmem:[#allocation1] ss:$4 sm:$0xff] %v7490_v54  ;;  %v2078_v58 = vrot.slane %v2077_v48, 4  ;;  %v6735_v50 = vmax.f32 %v2025_v7, %v2026_v57  ;;  %v6737_v11 = vmax.f32 %v2032_v38, %v2033_v20  ;;  %v2039_v15 = vmax.f32 %v2037_v4, %v2038_v6 }
 0x1d5   : > { %v2046_v35 = vmax.f32 %v2044_v27, %v2045_v45  ;;  %v7492_v39 = vrot.slane %v6417_v30, 6  ;;  %v2052_v43 = vrot.slane %v2051_v22, 2  ;;  %v2059_v54 = vrot.slane %v2058_v17, 2 }
 0x1d6   : > { %v2065_v23 = vmax.f32 %v2063_v21, %v2064_v3  ;;  %v2079_v9 = vmax.f32 %v2077_v48, %v2078_v58  ;;  %v2040_v59 = vrot.slane %v2039_v15, 1  ;;  %v2091_v12 = vsel %vm1516_vm2, %v1649_v28, -inf }
 0x1d7   : > { %1658 = vst [vmem:[#allocation1 + $0x20] ss:$4 sm:$0xff] %v7492_v39  ;;  %v2047_v61 = vrot.slane %v2046_v35, 1  ;;  %v2105_v51 = vsel %vm1516_vm2, %v1651_v53, -inf  ;;  %v2053_v18 = vmax.f32 %v2051_v22, %v2052_v43  ;;  %v2060_v7 = vmax.f32 %v2058_v17, %v2059_v54 }
 0x1d8   : > { %v2066_v57 = vrot.slane %v2065_v23, 2  ;;  %v2080_v38 = vrot.slane %v2079_v9, 2  ;;  %v2041_v20 = vmax.f32 %v2039_v15, %v2040_v59  ;;  %v2092_v4 = vrot.slane %v2091_v12, 4 }
 0x1d9   : > { %v2048_v6 = vmax.f32 %v2046_v35, %v2047_v61  ;;  %v2106_v27 = vrot.slane %v2105_v51, 4  ;;  %v2054_v30 = vrot.slane %v2053_v18, 1  ;;  %v2061_v45 = vrot.slane %v2060_v7, 1 }
 0x1da   : > { %v2067_v39 = vmax.f32 %v2065_v23, %v2066_v57  ;;  %v2081_v55 = vmax.f32 %v2079_v9, %v2080_v38  ;;  %v2093_v21 = vmax.f32 %v2091_v12, %v2092_v4  ;;  %v2191_v3 = vmax.f32 %v6673_v31, %v6695_v10 }
 0x1db   : > { %v2107_v48 = vmax.f32 %v2105_v51, %v2106_v27  ;;  %v2192_v28 = vmax.f32 %v6675_v24, %v6697_v5  ;;  %v2055_v53 = vmax.f32 %v2053_v18, %v2054_v30  ;;  %v2062_v22 = vmax.f32 %v2060_v7, %v2061_v45 }
 0x1dc   : > { %v2068_v17 = vrot.slane %v2067_v39, 1  ;;  %v2082_v58 = vrot.slane %v2081_v55, 1  ;;  %v2094_v59 = vrot.slane %v2093_v21, 2  ;;  %v2193_v15 = vmax.f32 %v6703_v8, %v6707_v56 }
 0x1dd   : > { %v2108_v35 = vrot.slane %v2107_v48, 2  ;;  %v2194_v9 = vmax.f32 %v6705_v36, %v6709_v13  ;;  %v2195_v31 = vmax.f32 %v6715_v60, %v6735_v50  ;;  %v2196_v24 = vmax.f32 %v6717_v62, %v6737_v11 }
 0x1de   : > { %v2069_v23 = vmax.f32 %v2067_v39, %v2068_v17  ;;  %v2083_v43 = vmax.f32 %v2081_v55, %v2082_v58  ;;  %v2095_v10 = vmax.f32 %v2093_v21, %v2094_v59  ;;  %v2197_v54 = vmax.f32 %v2041_v20, %v2055_v53 }
 0x1df   : > { %v2109_v5 = vmax.f32 %v2107_v48, %v2108_v35  ;;  %v2198_v61 = vmax.f32 %v2048_v6, %v2062_v22  ;;  %v7493_v36 = vmax.f32 %v6582_v19, %v6597_v33  ;;  %v7494_v60 = vmax.f32 %v6610_v52, %v6612_v42  ;;  %v7501_v22 = vld [vmem:[#allocation27_spill] sm:$0xff] }
 0x1e0   : > { %v2199_v12 = vmax.f32 %v2069_v23, %v2083_v43  ;;  %v2096_v8 = vrot.slane %v2095_v10, 1  ;;  %v7495_v55 = vmax.f32 %v6622_v46, %v6626_v40  ;;  %v7496_v50 = vmax.f32 %v6637_v47, %v6641_v14 }
 0x1e1   : > { %v2110_v56 = vrot.slane %v2109_v5, 1  ;;  %v2250_v13 = vsel %vm2249_vm10, %v7493_v36, %v6671_v37  ;;  %v7497_v19 = vmax.f32 %v6624_v0, %v6628_v41  ;;  %v7498_v33 = vmax.f32 %v6639_v44, %v6643_v16 }
 0x1e2   : > { %v2252_v62 = vsel %vm2251_vm11, %v7494_v60, %v2250_v13  ;;  %v2261_v11 = vsel %vm2260_vm13, %v7496_v50, %v7495_v55  ;;  %v2097_v52 = vmax.f32 %v2095_v10, %v2096_v8  ;;  %v7499_v51 = vmax.f32 %v6614_v34, %v6616_v32 }
 0x1e3   : > { %v2269_v37 = vsel %vm2260_vm13, %v7498_v33, %v7497_v19  ;;  %v2111_v42 = vmax.f32 %v2109_v5, %v2110_v56  ;;  %v2263_v40 = vsel %vm2262_vm14, %v2191_v3, %v2261_v11  ;;  %v1734_v44 = vsel %vm1516_vm2, %v6241_v29, -inf  ;;  %v7502_v11 = vld [vmem:[#allocation29_spill] sm:$0xff] }
 0x1e4   : > { %v2254_v46 = vsel %vm2253_vm12, %v7499_v51, %v2252_v62  ;;  %v2264_v47 = vsel %vm2245_vm8, %v2193_v15, %v2263_v40  ;;  %v2270_v14 = vsel %vm2262_vm14, %v2192_v28, %v2269_v37  ;;  %v1735_v18 = vrot.slane %v1734_v44, 4  ;;  %v7500_v28 = vld [vmem:[#allocation34_spill] sm:$0xff] }
 0x1e5   : > { %2284 = vst [vmem:[#allocation3 + $0x28] sm:$0xfc] %v2254_v46  ;;  %v2201_v0 = vmax.f32 %v2097_v52, %v2111_v42  ;;  %v2265_v41 = vsel %vm2247_vm9, %v2195_v31, %v2264_v47  ;;  %v2271_v16 = vsel %vm2245_vm8, %v2194_v9, %v2270_v14  ;;  %v1748_v7 = vsel %vm1516_vm2, %v6247_v26, -inf  ;;  %v7503_v47 = vld [vmem:[#allocation28_spill] sm:$0xff] }
 0x1e6   : > { %v2266_v34 = vsel %vm2249_vm10, %v2197_v54, %v2265_v41  ;;  %v2272_v32 = vsel %vm2247_vm9, %v2196_v24, %v2271_v16  ;;  %v1762_v57 = vsel %vm1516_vm2, %v6258_v2, -inf  ;;  %v1736_v20 = vmax.f32 %v1734_v44, %v1735_v18  ;;  %v2354_v18 = vld [vmem:[#allocation10 + $0x1e0] sm:$0xff] }
 0x1e7   : > { %v2267_v38 = vsel %vm2251_vm11, %v2199_v12, %v2266_v34  ;;  %v6797_v29 = vsel %vm2249_vm10, %v2198_v61, %v2272_v32  ;;  %v1749_v6 = vrot.slane %v1748_v7, 4  ;;  %v1763_v27 = vrot.slane %v1762_v57, 4 }
 0x1e8   : > { %v6800_v4 = vsel %vm2253_vm12, %v2201_v0, %v2267_v38  ;;  %v1776_v30 = vsel %vm1516_vm2, %v6262_v49, -inf  ;;  %v1790_v26 = vsel %vm1516_vm2, %v6301_v63, -inf  ;;  %v1737_v45 = vrot.slane %v1736_v20, 2  ;;  %v7505_v38 = vld [vmem:[#allocation32_spill] sm:$0xff] }
 0x1e9   : > { %2286 = vst [vmem:[#allocation3 + $0x8] sm:$0xff] %v6800_v4  ;;  %v2563_v2 = vrot.slane %v6800_v4, 1  ;;  %v1750_v39 = vmax.f32 %v1748_v7, %v1749_v6  ;;  %v1777_v21 = vrot.slane %v1776_v30, 4  ;;  %v1764_v48 = vmax.f32 %v1762_v57, %v1763_v27  ;;  %v7504_v7 = vld [vmem:[#allocation30_spill] sm:$0xff] }
 0x1ea   : > { %v1791_v3 = vrot.slane %v1790_v26, 4  ;;  %v1804_v53 = vsel %vm1516_vm2, %v7500_v28, -inf  ;;  %v1818_v17 = vsel %vm1516_vm2, %v7501_v22, -inf  ;;  %v1738_v49 = vmax.f32 %v1736_v20, %v1737_v45  ;;  %v2355_v6 = vld [vmem:[#allocation10 + $0x1e8] sm:$0xff]  ;;  %v2350_v27 = vld [vmem:[#allocation10 + $0x1c0] sm:$0xff] }
 0x1eb   : > { %v1751_v59 = vrot.slane %v1750_v39, 2  ;;  %v1778_v35 = vmax.f32 %v1776_v30, %v1777_v21  ;;  %v1805_v63 = vrot.slane %v1804_v53, 4  ;;  %v1765_v9 = vrot.slane %v1764_v48, 2  ;;  %v2351_v22 = vld [vmem:[#allocation10 + $0x1c8] sm:$0xff] }
 0x1ec   : > { %v2422_v58 = vld [vmem:[#allocation3 + $0x28] sm:$0xfe]  ;;  %v1792_v23 = vmax.f32 %v1790_v26, %v1791_v3  ;;  %v1819_v43 = vrot.slane %v1818_v17, 4  ;;  %v1739_v31 = vrot.slane %v1738_v49, 1  ;;  %v1832_v19 = vsel %vm1516_vm2, %v7502_v11, -inf }
 0x1ed   : > { %v2562_v15 = vrot.slane %v2422_v58, 1  ;;  %v1752_v24 = vmax.f32 %v1750_v39, %v1751_v59  ;;  %v1779_v10 = vrot.slane %v1778_v35, 2  ;;  %v1806_v5 = vmax.f32 %v1804_v53, %v1805_v63  ;;  %v7506_v3 = vld [vmem:[#allocation39_spill] sm:$0xff] }
 0x1ee   : > { %v1766_v61 = vmax.f32 %v1764_v48, %v1765_v9  ;;  %v1793_v12 = vrot.slane %v1792_v23, 2  ;;  %v1820_v8 = vmax.f32 %v1818_v17, %v1819_v43  ;;  %v6818_v56 = vmax.f32 %v1738_v49, %v1739_v31  ;;  %v2346_v17 = vld [vmem:[#allocation10 + $0x1a0] sm:$0xff]  ;;  %v2347_v31 = vld [vmem:[#allocation10 + $0x1a8] sm:$0xff] }
 0x1ef   : > { %v6815_v54 = vsel %vm2561_vm15, %v2562_v15, %v2563_v2  ;;  %v1753_v36 = vrot.slane %v1752_v24, 1  ;;  %v1780_v13 = vmax.f32 %v1778_v35, %v1779_v10  ;;  %v1807_v60 = vrot.slane %v1806_v5, 2 }
 0x1f0   : > { %2592 = vmatmul.f32.vlgmr.msrb.gmra.mxu0 %v6815_v54  ;;  %2638 = vmatmul.f32.vlgmr.msrb.gmra.mxu2 %v6815_v54  ;;  %v1767_v62 = vrot.slane %v1766_v61, 1  ;;  %v1794_v55 = vmax.f32 %v1792_v23, %v1793_v12  ;;  %v1821_v50 = vrot.slane %v1820_v8, 2  ;;  %v1833_v42 = vrot.slane %v1832_v19, 4  ;;  %v7507_v23 = vld [vmem:[#allocation33_spill] sm:$0xff] }
 0x1f1   : > { %v6823_v33 = vmax.f32 %v1752_v24, %v1753_v36  ;;  %v1781_v37 = vrot.slane %v1780_v13, 1  ;;  %v1808_v52 = vmax.f32 %v1806_v5, %v1807_v60  ;;  %v1846_v14 = vsel %vm1516_vm2, %v7503_v47, -inf  ;;  %2760 = vmatpush.msrb.mxu0 %v2354_v18  ;;  %2806 = vmatpush.msrb.mxu2 %v2355_v6  ;;  %v2342_v24 = vld [vmem:[#allocation10 + $0x180] sm:$0xff]  ;;  %v2343_v60 = vld [vmem:[#allocation10 + $0x188] sm:$0xff] }
 0x1f2   : > { %v6825_v51 = vmax.f32 %v1766_v61, %v1767_v62  ;;  %v1795_v46 = vrot.slane %v1794_v55, 1  ;;  %v1822_v40 = vmax.f32 %v1820_v8, %v1821_v50  ;;  %v1834_v41 = vmax.f32 %v1832_v19, %v1833_v42  ;;  %v7508_v47 = vld [vmem:[#allocation35_spill] sm:$0xff] }
 0x1f3   : > { %v6829_v44 = vmax.f32 %v1780_v13, %v1781_v37  ;;  %v1809_v0 = vrot.slane %v1808_v52, 1  ;;  %v1847_v16 = vrot.slane %v1846_v14, 4  ;;  %v1860_v57 = vsel %vm1516_vm2, %v7504_v7, -inf  ;;  %2761 = vmatpush.msrb.mxu0 %v2350_v27  ;;  %2807 = vmatpush.msrb.mxu2 %v2351_v22 }
 0x1f4   : > { %v6831_v34 = vmax.f32 %v1794_v55, %v1795_v46  ;;  %v1823_v32 = vrot.slane %v1822_v40, 1  ;;  %v1874_v20 = vsel %vm1516_vm2, %v7505_v38, -inf  ;;  %v1835_v26 = vrot.slane %v1834_v41, 2 }
 0x1f5   : > { %v6837_v30 = vmax.f32 %v1808_v52, %v1809_v0  ;;  %v1848_v45 = vmax.f32 %v1846_v14, %v1847_v16  ;;  %v1861_v39 = vrot.slane %v1860_v57, 4  ;;  %v1875_v48 = vrot.slane %v1874_v20, 4  ;;  %2762 = vmatpush.msrb.mxu0 %v2346_v17  ;;  %2808 = vmatpush.msrb.mxu2 %v2347_v31  ;;  %v1655_v31 = vld.sshfl [vmem:[#allocation1 + $0x8] sm:$0xff pattern:$0x73625140] }
 0x1f6   : > { %v6839_v21 = vmax.f32 %v1822_v40, %v1823_v32  ;;  %v1888_v28 = vsel %vm1516_vm2, %v7506_v3, -inf  ;;  %v2070_v53 = vsel %vm1516_vm2, %v6723_v1, -inf  ;;  %v1836_v58 = vmax.f32 %v1834_v41, %v1835_v26 }
 0x1f7   : > { %v1849_v49 = vrot.slane %v1848_v45, 2  ;;  %v1862_v59 = vmax.f32 %v1860_v57, %v1861_v39  ;;  %v1889_v35 = vrot.slane %v1888_v28, 4  ;;  %v1876_v63 = vmax.f32 %v1874_v20, %v1875_v48  ;;  %2763 = vmatpush.msrb.mxu0 %v2342_v24  ;;  %2809 = vmatpush.msrb.mxu2 %v2343_v60  ;;  %v1660_v60 = vld.sshfl [vmem:[#allocation1 + $0x28] sm:$0xff pattern:$0x73625140] }
 0x1f8   : > { %v2071_v15 = vrot.slane %v2070_v53, 4  ;;  %v2084_v9 = vsel %vm1516_vm2, %v6725_v25, -inf  ;;  %v2098_v43 = vsel %vm1516_vm2, %v7507_v23, -inf  ;;  %v1837_v1 = vrot.slane %v1836_v58, 1 }
 0x1f9   : > { %v1850_v10 = vmax.f32 %v1848_v45, %v1849_v49  ;;  %v1863_v5 = vrot.slane %v1862_v59, 2  ;;  %v1890_v61 = vmax.f32 %v1888_v28, %v1889_v35  ;;  %v1877_v12 = vrot.slane %v1876_v63, 2  ;;  %v1654_v28 = vld.sshfl [vmem:[#allocation1] sm:$0xff pattern:$0x73625140] }
 0x1fa   : > { %v2072_v8 = vmax.f32 %v2070_v53, %v2071_v15  ;;  %v2085_v36 = vrot.slane %v2084_v9, 4  ;;  %v2099_v13 = vrot.slane %v2098_v43, 4  ;;  %v1838_v62 = vmax.f32 %v1836_v58, %v1837_v1  ;;  %v1656_v49 = vld.sshfl [vmem:[#allocation1 + $0x10] sm:$0xff pattern:$0x73625140] }
 0x1fb   : > { %v1851_v55 = vrot.slane %v1850_v10, 1  ;;  %v1864_v25 = vmax.f32 %v1862_v59, %v1863_v5  ;;  %v1891_v50 = vrot.slane %v1890_v61, 2  ;;  %v1878_v11 = vmax.f32 %v1876_v63, %v1877_v12  ;;  %v1659_v63 = vld.sshfl [vmem:[#allocation1 + $0x20] sm:$0xff pattern:$0x73625140] }
 0x1fc   : > { %v2073_v19 = vrot.slane %v2072_v8, 2  ;;  %v2086_v37 = vmax.f32 %v2084_v9, %v2085_v36  ;;  %v2100_v52 = vmax.f32 %v2098_v43, %v2099_v13  ;;  %v2112_v14 = vsel %vm1516_vm2, %v7508_v47, -inf }
 0x1fd   : > { %v1852_v42 = vmax.f32 %v1850_v10, %v1851_v55  ;;  %v1865_v46 = vrot.slane %v1864_v25, 1  ;;  %v1892_v40 = vmax.f32 %v1890_v61, %v1891_v50  ;;  %v1879_v0 = vrot.slane %v1878_v11, 1  ;;  %v1657_v61 = vld.sshfl [vmem:[#allocation1 + $0x18] sm:$0xff pattern:$0x73625140] }
 0x1fe   : > { %v2074_v41 = vmax.f32 %v2072_v8, %v2073_v19  ;;  %v2087_v16 = vrot.slane %v2086_v37, 2  ;;  %v2101_v18 = vrot.slane %v2100_v52, 2  ;;  %v2113_v57 = vrot.slane %v2112_v14, 4 }
 0x1ff   : > { %v1866_v32 = vmax.f32 %v1864_v25, %v1865_v46  ;;  %v1893_v7 = vrot.slane %v1892_v40, 1  ;;  %v2176_v38 = vmax.f32 %v6818_v56, %v6823_v33  ;;  %v1880_v20 = vmax.f32 %v1878_v11, %v1879_v0 }
 0x200   : > { %v2075_v6 = vrot.slane %v2074_v41, 1  ;;  %v2088_v27 = vmax.f32 %v2086_v37, %v2087_v16  ;;  %v2102_v26 = vmax.f32 %v2100_v52, %v2101_v18  ;;  %v2114_v39 = vmax.f32 %v2112_v14, %v2113_v57  ;;  %v1662_v18 = vld.sshfl [vmem:[#allocation1 + $0x38] sm:$0xff pattern:$0x73625140] }
 0x201   : > { %v1894_v45 = vmax.f32 %v1892_v40, %v1893_v7  ;;  %v2178_v48 = vmax.f32 %v6825_v51, %v6829_v44  ;;  %v2180_v3 = vmax.f32 %v6831_v34, %v6837_v30  ;;  %v2182_v58 = vmax.f32 %v6839_v21, %v1838_v62  ;;  %v1661_v44 = vld.sshfl [vmem:[#allocation1 + $0x30] sm:$0xff pattern:$0x73625140] }
 0x202   : > { %v2076_v53 = vmax.f32 %v2074_v41, %v2075_v6  ;;  %v2089_v22 = vrot.slane %v2088_v27, 1  ;;  %v2103_v17 = vrot.slane %v2102_v26, 1  ;;  %v2115_v56 = vrot.slane %v2114_v39, 2 }
 0x203   : > { %v2184_v33 = vmax.f32 %v1852_v42, %v1866_v32  ;;  %v2186_v59 = vmax.f32 %v1880_v20, %v1894_v45  ;;  %v2255_v35 = vsel %vm2245_vm8, %v2178_v48, %v2176_v38  ;;  %v2119_v34 = vsel %vm1516_vm2, %v1654_v28, -inf  ;;  %v2339_v45 = vld [vmem:[#allocation10 + $0x168] sm:$0xff] }
 0x204   : > { %v2090_v15 = vmax.f32 %v2088_v27, %v2089_v22  ;;  %v2104_v9 = vmax.f32 %v2102_v26, %v2103_v17  ;;  %v2256_v51 = vsel %vm2247_vm9, %v2180_v3, %v2255_v35  ;;  %v2116_v30 = vmax.f32 %v2114_v39, %v2115_v56  ;;  %v2338_v26 = vld [vmem:[#allocation10 + $0x160] sm:$0xff]  ;;  %2810 = vmatpush.msrb.mxu2 %v2339_v45  ;;  %v2335_v56 = vld [vmem:[#allocation10 + $0x148] sm:$0xff] }
 0x205   : > { %v2257_v23 = vsel %vm2249_vm10, %v2182_v58, %v2256_v51  ;;  %v2120_v43 = vrot.slane %v2119_v34, 4  ;;  %v2133_v21 = vsel %vm1516_vm2, %v1656_v49, -inf  ;;  %v2147_v5 = vsel %vm1516_vm2, %v1659_v63, -inf  ;;  %2764 = vmatpush.msrb.mxu0 %v2338_v26  ;;  %v2419_v51 = vld [vmem:[#allocation10 + $0x3e8] sm:$0xff]  ;;  %v2398_v45 = vld [vmem:[#allocation10 + $0x340] sm:$0xff] }
 0x206   : > { %v2200_v24 = vmax.f32 %v2076_v53, %v2090_v15  ;;  %v2258_v1 = vsel %vm2251_vm11, %v2184_v33, %v2257_v23  ;;  %v2134_v10 = vrot.slane %v2133_v21, 4  ;;  %v2117_v12 = vrot.slane %v2116_v30, 1  ;;  %v2334_v53 = vld [vmem:[#allocation10 + $0x140] sm:$0xff]  ;;  %2811 = vmatpush.msrb.mxu2 %v2335_v56 }
 0x207   : > { %v2259_v8 = vsel %vm2253_vm12, %v2186_v59, %v2258_v1  ;;  %v2121_v36 = vmax.f32 %v2119_v34, %v2120_v43  ;;  %v2148_v13 = vrot.slane %v2147_v5, 4  ;;  %v2161_v25 = vsel %vm1516_vm2, %v1661_v44, -inf  ;;  %2765 = vmatpush.msrb.mxu0 %v2334_v53  ;;  %v2330_v15 = vld [vmem:[#allocation10 + $0x120] sm:$0xff]  ;;  %v2331_v43 = vld [vmem:[#allocation10 + $0x128] sm:$0xff] }
 0x208   : > { %v2274_v62 = vsel %vm2251_vm11, %v2200_v24, %v6797_v29  ;;  %2285 = vst [vmem:[#allocation3 + $0x10] sm:$0xfc] %v2259_v8  ;;  %v2135_v55 = vmax.f32 %v2133_v21, %v2134_v10  ;;  %v2126_v50 = vsel %vm1516_vm2, %v1655_v31, -inf  ;;  %v2118_v11 = vmax.f32 %v2116_v30, %v2117_v12  ;;  %2812 = vmatpush.msrb.mxu2 %v2331_v43  ;;  %v2326_v24 = vld [vmem:[#allocation10 + $0x100] sm:$0xff]  ;;  %v2327_v1 = vld [vmem:[#allocation10 + $0x108] sm:$0xff] }
 0x209   : > { %v2122_v19 = vrot.slane %v2121_v36, 2  ;;  %v2149_v37 = vmax.f32 %v2147_v5, %v2148_v13  ;;  %v2162_v52 = vrot.slane %v2161_v25, 4  ;;  %v2127_v46 = vrot.slane %v2126_v50, 4  ;;  %2766 = vmatpush.msrb.mxu0 %v2330_v15  ;;  %v2414_v10 = vld [vmem:[#allocation10 + $0x3c0] sm:$0xff]  ;;  %v2415_v5 = vld [vmem:[#allocation10 + $0x3c8] sm:$0xff] }
 0x20a   : > { %v2136_v42 = vrot.slane %v2135_v55, 2  ;;  %v2140_v40 = vsel %vm1516_vm2, %v1657_v61, -inf  ;;  %v2154_v47 = vsel %vm1516_vm2, %v1660_v60, -inf  ;;  %v2202_v14 = vmax.f32 %v2104_v9, %v2118_v11  ;;  %v2418_v9 = vld [vmem:[#allocation10 + $0x3e0] sm:$0xff]  ;;  %v2411_v60 = vld [vmem:[#allocation10 + $0x3a8] sm:$0xff]  ;;  %2813 = vmatpush.msrb.mxu2 %v2327_v1 }
 0x20b   : > { %v2123_v0 = vmax.f32 %v2121_v36, %v2122_v19  ;;  %v2150_v41 = vrot.slane %v2149_v37, 2  ;;  %v2163_v29 = vmax.f32 %v2161_v25, %v2162_v52  ;;  %v2128_v32 = vmax.f32 %v2126_v50, %v2127_v46  ;;  %v2410_v13 = vld [vmem:[#allocation10 + $0x3a0] sm:$0xff]  ;;  %2767 = vmatpush.msrb.mxu0 %v2326_v24  ;;  %v2323_v11 = vld [vmem:[#allocation10 + $0xe8] sm:$0xff] }
 0x20c   : > { %v2137_v16 = vmax.f32 %v2135_v55, %v2136_v42  ;;  %v2141_v7 = vrot.slane %v2140_v40, 4  ;;  %v2155_v57 = vrot.slane %v2154_v47, 4  ;;  %v6873_v38 = vsel %vm2253_vm12, %v2202_v14, %v2274_v62  ;;  %v2322_v50 = vld [vmem:[#allocation10 + $0xe0] sm:$0xff]  ;;  %v2407_v42 = vld [vmem:[#allocation10 + $0x388] sm:$0xff]  ;;  %2814 = vmatpush.msrb.mxu2 %v2323_v11 }
 0x20d   : > { %v2124_v20 = vrot.slane %v2123_v0, 1  ;;  %v2151_v6 = vmax.f32 %v2149_v37, %v2150_v41  ;;  %v2164_v27 = vrot.slane %v2163_v29, 2  ;;  %2287 = vst [vmem:[#allocation3] sm:$0xff] %v6873_v38  ;;  %v2566_v39 = vrot.slane %v6873_v38, 1  ;;  %v2318_v37 = vld [vmem:[#allocation10 + $0xc0] sm:$0xff]  ;;  %2768 = vmatpush.msrb.mxu0 %v2322_v50  ;;  %v2395_v53 = vld [vmem:[#allocation10 + $0x328] sm:$0xff] }
 0x20e   : > { %v2138_v48 = vrot.slane %v2137_v16, 1  ;;  %v2129_v3 = vrot.slane %v2128_v32, 2  ;;  %v2142_v28 = vmax.f32 %v2140_v40, %v2141_v7  ;;  %v2156_v49 = vmax.f32 %v2154_v47, %v2155_v57  ;;  %v2406_v52 = vld [vmem:[#allocation10 + $0x380] sm:$0xff]  ;;  %v2311_v57 = vld [vmem:[#allocation10 + $0x88] sm:$0xff]  ;;  %v2357_v50 = vld [vmem:[#allocation10 + $0x1f8] sm:$0xff] }
 0x20f   : > { %v2423_v22 = vld [vmem:[#allocation3 + $0x10] sm:$0xfe]  ;;  %v2152_v17 = vrot.slane %v2151_v6, 1  ;;  %v2165_v58 = vmax.f32 %v2163_v29, %v2164_v27  ;;  %v2125_v59 = vmax.f32 %v2123_v0, %v2124_v20  ;;  %v2168_v23 = vsel %vm1516_vm2, %v1662_v18, -inf  ;;  %v2319_v0 = vld [vmem:[#allocation10 + $0xc8] sm:$0xff]  ;;  %v2314_v41 = vld [vmem:[#allocation10 + $0xa0] sm:$0xff]  ;;  %2769 = vmatpush.msrb.mxu0 %v2318_v37 }
 0x210   : > { %v2565_v33 = vrot.slane %v2423_v22, 1  ;;  %v2139_v35 = vmax.f32 %v2137_v16, %v2138_v48  ;;  %v2143_v63 = vrot.slane %v2142_v28, 2  ;;  %v2157_v30 = vrot.slane %v2156_v49, 2  ;;  %v2315_v29 = vld [vmem:[#allocation10 + $0xa8] sm:$0xff]  ;;  %v2402_v18 = vld [vmem:[#allocation10 + $0x360] sm:$0xff]  ;;  %2815 = vmatpush.msrb.mxu2 %v2319_v0  ;;  %v2352_v37 = vld [vmem:[#allocation10 + $0x1d0] sm:$0xff] }
 0x211   : > { %v2153_v44 = vmax.f32 %v2151_v6, %v2152_v17  ;;  %v2166_v34 = vrot.slane %v2165_v58, 1  ;;  %v2130_v31 = vmax.f32 %v2128_v32, %v2129_v3  ;;  %v2169_v36 = vrot.slane %v2168_v23, 4  ;;  %v2403_v32 = vld [vmem:[#allocation10 + $0x368] sm:$0xff]  ;;  %v2310_v7 = vld [vmem:[#allocation10 + $0x80] sm:$0xff]  ;;  %2770 = vmatpush.msrb.mxu0 %v2314_v41  ;;  %v2345_v0 = vld [vmem:[#allocation10 + $0x198] sm:$0xff] }
 0x212   : > { %v6881_v21 = vsel %vm2561_vm15, %v2565_v33, %v2566_v39  ;;  %v2144_v12 = vmax.f32 %v2142_v28, %v2143_v63  ;;  %v2158_v8 = vmax.f32 %v2156_v49, %v2157_v30  ;;  %v2203_v62 = vmax.f32 %v2125_v59, %v2139_v35  ;;  %v2399_v48 = vld [vmem:[#allocation10 + $0x348] sm:$0xff]  ;;  %2816 = vmatpush.msrb.mxu2 %v2315_v29  ;;  %v2394_v3 = vld [vmem:[#allocation10 + $0x320] sm:$0xff]  ;;  %v2416_v41 = vld [vmem:[#allocation10 + $0x3d0] sm:$0xff] }
 0x213   : > { %2615 = vmatmul.f32.vlgmr.msrb.gmra.mxu1 %v6881_v21  ;;  %2661 = vmatmul.f32.vlgmr.msrb.gmra.mxu3 %v6881_v21  ;;  %v2167_v61 = vmax.f32 %v2165_v58, %v2166_v34  ;;  %v2170_v25 = vmax.f32 %v2168_v23, %v2169_v36  ;;  %v2131_v19 = vrot.slane %v2130_v31, 1  ;;  %v2306_v22 = vld [vmem:[#allocation10 + $0x60] sm:$0xff]  ;;  %v2307_v17 = vld [vmem:[#allocation10 + $0x68] sm:$0xff]  ;;  %v2417_v29 = vld [vmem:[#allocation10 + $0x3d8] sm:$0xff] }
 0x214   : > { %2783 = vmatpush.msrb.mxu1 %v2418_v9  ;;  %2829 = vmatpush.msrb.mxu3 %v2419_v51  ;;  %v2145_v40 = vrot.slane %v2144_v12, 1  ;;  %v2159_v47 = vrot.slane %v2158_v8, 1  ;;  %v2390_v58 = vld [vmem:[#allocation10 + $0x300] sm:$0xff]  ;;  %v2391_v35 = vld [vmem:[#allocation10 + $0x308] sm:$0xff] }
 0x215   : > { %v2205_v55 = vmax.f32 %v2153_v44, %v2167_v61  ;;  %v2171_v14 = vrot.slane %v2170_v25, 2  ;;  %v2132_v20 = vmax.f32 %v2130_v31, %v2131_v19  ;;  %2771 = vmatpush.msrb.mxu0 %v2310_v7  ;;  %2817 = vmatpush.msrb.mxu2 %v2311_v57  ;;  %v2302_v49 = vld [vmem:[#allocation10 + $0x40] sm:$0xff]  ;;  %v2303_v63 = vld [vmem:[#allocation10 + $0x48] sm:$0xff]  ;;  %v2413_v7 = vld [vmem:[#allocation10 + $0x3b8] sm:$0xff] }
 0x216   : > { %2784 = vmatpush.msrb.mxu1 %v2414_v10  ;;  %2830 = vmatpush.msrb.mxu3 %v2415_v5  ;;  %v2146_v6 = vmax.f32 %v2144_v12, %v2145_v40  ;;  %v2160_v27 = vmax.f32 %v2158_v8, %v2159_v47  ;;  %v2386_v51 = vld [vmem:[#allocation10 + $0x2e0] sm:$0xff]  ;;  %v2387_v44 = vld [vmem:[#allocation10 + $0x2e8] sm:$0xff]  ;;  %v2420_v40 = vld [vmem:[#allocation10 + $0x3f0] sm:$0xff] }
 0x217   : > { %v2276_v46 = vsel %vm2260_vm13, %v2205_v55, %v2203_v62  ;;  %v2172_v16 = vmax.f32 %v2170_v25, %v2171_v14  ;;  %2772 = vmatpush.msrb.mxu0 %v2306_v22  ;;  %2818 = vmatpush.msrb.mxu2 %v2307_v17  ;;  %v2298_v30 = vld [vmem:[#allocation10 + $0x20] sm:$0xff]  ;;  %v2299_v23 = vld [vmem:[#allocation10 + $0x28] sm:$0xff]  ;;  %v2356_v25 = vld [vmem:[#allocation10 + $0x1f0] sm:$0xff] }
 0x218   : > { %2785 = vmatpush.msrb.mxu1 %v2410_v13  ;;  %2831 = vmatpush.msrb.mxu3 %v2411_v60  ;;  %2288 = vst [vmem:[#allocation3 + $0x18] sm:$0x3] %v2276_v46  ;;  %v2204_v33 = vmax.f32 %v2132_v20, %v2146_v6  ;;  %v2382_v43 = vld [vmem:[#allocation10 + $0x2c0] sm:$0xff]  ;;  %v2383_v31 = vld [vmem:[#allocation10 + $0x2c8] sm:$0xff]  ;;  %v2349_v46 = vld [vmem:[#allocation10 + $0x1b8] sm:$0xff] }
 0x219   : > { %v2173_v26 = vrot.slane %v2172_v16, 1  ;;  %2773 = vmatpush.msrb.mxu0 %v2302_v49  ;;  %2819 = vmatpush.msrb.mxu2 %v2303_v63  ;;  %v2294_v24 = vld [vmem:[#allocation10] sm:$0xff]  ;;  %v2295_v1 = vld [vmem:[#allocation10 + $0x8] sm:$0xff]  ;;  %v2421_v47 = vld [vmem:[#allocation10 + $0x3f8] sm:$0xff] }
 0x21a   : > { %2786 = vmatpush.msrb.mxu1 %v2406_v52  ;;  %2832 = vmatpush.msrb.mxu3 %v2407_v42  ;;  %v2378_v10 = vld [vmem:[#allocation10 + $0x2a0] sm:$0xff]  ;;  %v2379_v5 = vld [vmem:[#allocation10 + $0x2a8] sm:$0xff]  ;;  %v2353_v52 = vld [vmem:[#allocation10 + $0x1d8] sm:$0xff] }
 0x21b   : > { %v2174_v28 = vmax.f32 %v2172_v16, %v2173_v26  ;;  %2774 = vmatpush.msrb.mxu0 %v2298_v30  ;;  %2820 = vmatpush.msrb.mxu2 %v2299_v23  ;;  %v2375_v61 = vld [vmem:[#allocation10 + $0x288] sm:$0xff]  ;;  %v2370_v8 = vld [vmem:[#allocation10 + $0x260] sm:$0xff]  ;;  %v2344_v14 = vld [vmem:[#allocation10 + $0x190] sm:$0xff] }
 0x21c   : > { %2787 = vmatpush.msrb.mxu1 %v2402_v18  ;;  %2833 = vmatpush.msrb.mxu3 %v2403_v32  ;;  %v2371_v36 = vld [vmem:[#allocation10 + $0x268] sm:$0xff]  ;;  %v2366_v60 = vld [vmem:[#allocation10 + $0x240] sm:$0xff]  ;;  %v2340_v16 = vld [vmem:[#allocation10 + $0x170] sm:$0xff] }
 0x21d   : > { %v2206_v59 = vmax.f32 %v2160_v27, %v2174_v28  ;;  %2775 = vmatpush.msrb.mxu0 %v2294_v24  ;;  %2821 = vmatpush.msrb.mxu2 %v2295_v1  ;;  %v2367_v62 = vld [vmem:[#allocation10 + $0x248] sm:$0xff]  ;;  %v2362_v11 = vld [vmem:[#allocation10 + $0x220] sm:$0xff]  ;;  %v2341_v18 = vld [vmem:[#allocation10 + $0x178] sm:$0xff] }
 0x21e   : > { %2788 = vmatpush.msrb.mxu1 %v2398_v45  ;;  %2834 = vmatpush.msrb.mxu3 %v2399_v48  ;;  %v2363_v19 = vld [vmem:[#allocation10 + $0x228] sm:$0xff]  ;;  %v2358_v42 = vld [vmem:[#allocation10 + $0x200] sm:$0xff]  ;;  %v2412_v32 = vld [vmem:[#allocation10 + $0x3b0] sm:$0xff] }
 0x21f   : > { %v2424_v56 = vld [vmem:[#allocation3 + $0x18] sm:$0x1]  ;;  %v2277_v9 = vsel %vm2260_vm13, %v2206_v59, %v2204_v33  ;;  %v2408_v57 = vld [vmem:[#allocation10 + $0x390] sm:$0xff]  ;;  %v2409_v20 = vld [vmem:[#allocation10 + $0x398] sm:$0xff] }
 0x220   : > { %v2568_v15 = vrot.slane %v2424_v56, 1  ;;  %2789 = vmatpush.msrb.mxu1 %v2394_v3  ;;  %2835 = vmatpush.msrb.mxu3 %v2395_v53  ;;  %2289 = vst [vmem:[#allocation3 + $0x20] sm:$0x3] %v2277_v9  ;;  %v6897_v6 = vld [vmem:[#allocation3 + $0x28] sm:$0xff]  ;;  %v2405_v27 = vld [vmem:[#allocation10 + $0x378] sm:$0xff] }
 0x221   : > { %v2336_v26 = vld [vmem:[#allocation10 + $0x150] sm:$0xff]  ;;  %v2337_v45 = vld [vmem:[#allocation10 + $0x158] sm:$0xff] }
 0x222   : > { %v2569_v34 = vsel %vm2561_vm15, %v2563_v2, %v2568_v15  ;;  %2790 = vmatpush.msrb.mxu1 %v2390_v58  ;;  %2836 = vmatpush.msrb.mxu3 %v2391_v35  ;;  %v2374_v2 = vld [vmem:[#allocation10 + $0x280] sm:$0xff]  ;;  %v2400_v48 = vld [vmem:[#allocation10 + $0x350] sm:$0xff]  ;;  %v2401_v3 = vld [vmem:[#allocation10 + $0x358] sm:$0xff] }
 0x223   : > { %2595 = vmatmul.f32.gmra.mxu0 %v2569_v34  ;;  %2641 = vmatmul.f32.gmra.mxu2 %v2569_v34  ;;  %v2332_v28 = vld [vmem:[#allocation10 + $0x130] sm:$0xff]  ;;  %v2333_v53 = vld [vmem:[#allocation10 + $0x138] sm:$0xff] }
 0x224   : > { %2791 = vmatpush.msrb.mxu1 %v2386_v51  ;;  %2837 = vmatpush.msrb.mxu3 %v2387_v44  ;;  %v2396_v22 = vld [vmem:[#allocation10 + $0x330] sm:$0xff]  ;;  %v2397_v17 = vld [vmem:[#allocation10 + $0x338] sm:$0xff] }
 0x225   : > { %v2328_v58 = vld [vmem:[#allocation10 + $0x110] sm:$0xff]  ;;  %v2329_v56 = vld [vmem:[#allocation10 + $0x118] sm:$0xff] }
 0x226   : > { %2792 = vmatpush.msrb.mxu1 %v2382_v43  ;;  %2838 = vmatpush.msrb.mxu3 %v2383_v31  ;;  %v2392_v49 = vld [vmem:[#allocation10 + $0x310] sm:$0xff]  ;;  %v2393_v33 = vld [vmem:[#allocation10 + $0x318] sm:$0xff] }
 0x227   : > { %v2425_v12 = vld [vmem:[#allocation3 + $0x20] sm:$0x1]  ;;  %v6903_v59 = vld [vmem:[#allocation3 + $0x10] sm:$0xff]  ;;  %v2324_v35 = vld [vmem:[#allocation10 + $0xf0] sm:$0xff] }
 0x228   : > { %2793 = vmatpush.msrb.mxu1 %v2378_v10  ;;  %2839 = vmatpush.msrb.mxu3 %v2379_v5  ;;  %v2570_v13 = vrot.slane %v2425_v12, 1  ;;  %v2388_v63 = vld [vmem:[#allocation10 + $0x2f0] sm:$0xff]  ;;  %v2325_v15 = vld [vmem:[#allocation10 + $0xf8] sm:$0xff] }
 0x229   : > { %v2389_v9 = vld [vmem:[#allocation10 + $0x2f8] sm:$0xff]  ;;  %v2320_v51 = vld [vmem:[#allocation10 + $0xd0] sm:$0xff] }
 0x22a   : > { %2794 = vmatpush.msrb.mxu1 %v2374_v2  ;;  %2840 = vmatpush.msrb.mxu3 %v2375_v61  ;;  %v2571_v55 = vsel %vm2561_vm15, %v2566_v39, %v2570_v13  ;;  %v2348_v39 = vld [vmem:[#allocation10 + $0x1b0] sm:$0xff]  ;;  %v2317_v43 = vld [vmem:[#allocation10 + $0xb8] sm:$0xff] }
 0x22b   : > { %2684 = vmatmul.f32.vlgmr.msra.gmra.mxu0 %v6815_v54  ;;  %2730 = vmatmul.f32.vlgmr.msra.gmra.mxu2 %v6815_v54  ;;  %v2359_v54 = vld [vmem:[#allocation10 + $0x208] sm:$0xff]  ;;  %v2384_v44 = vld [vmem:[#allocation10 + $0x2d0] sm:$0xff]  ;;  %v2381_v31 = vld [vmem:[#allocation10 + $0x2b8] sm:$0xff] }
 0x22c   : > { %2795 = vmatpush.msrb.mxu1 %v2370_v8  ;;  %2841 = vmatpush.msrb.mxu3 %v2371_v36  ;;  %v2316_v30 = vld [vmem:[#allocation10 + $0xb0] sm:$0xff]  ;;  %v2313_v10 = vld [vmem:[#allocation10 + $0x98] sm:$0xff] }
 0x22d   : > { %2618 = vmatmul.f32.gmra.mxu1 %v2571_v55  ;;  %2664 = vmatmul.f32.gmra.mxu3 %v2571_v55  ;;  %v2380_v23 = vld [vmem:[#allocation10 + $0x2b0] sm:$0xff]  ;;  %v2377_v5 = vld [vmem:[#allocation10 + $0x298] sm:$0xff] }
 0x22e   : > { %2796 = vmatpush.msrb.mxu1 %v2366_v60  ;;  %2842 = vmatpush.msrb.mxu3 %v2367_v62  ;;  %v2312_v24 = vld [vmem:[#allocation10 + $0x90] sm:$0xff]  ;;  %v2309_v12 = vld [vmem:[#allocation10 + $0x78] sm:$0xff] }
 0x22f   : > { %2852 = vmatpush.msra.mxu0 %v2356_v25  ;;  %2898 = vmatpush.msra.mxu2 %v2357_v50  ;;  %v2376_v1 = vld [vmem:[#allocation10 + $0x290] sm:$0xff]  ;;  %v2373_v8 = vld [vmem:[#allocation10 + $0x278] sm:$0xff] }
 0x230   : > { %2797 = vmatpush.msrb.mxu1 %v2362_v11  ;;  %2843 = vmatpush.msrb.mxu3 %v2363_v19  ;;  %v2308_v2 = vld [vmem:[#allocation10 + $0x70] sm:$0xff]  ;;  %v2305_v60 = vld [vmem:[#allocation10 + $0x58] sm:$0xff] }
 0x231   : > { %2853 = vmatpush.msra.mxu0 %v2352_v37  ;;  %2899 = vmatpush.msra.mxu2 %v2353_v52  ;;  %v2372_v61 = vld [vmem:[#allocation10 + $0x270] sm:$0xff]  ;;  %v2369_v62 = vld [vmem:[#allocation10 + $0x258] sm:$0xff] }
 0x232   : > { %2798 = vmatpush.msrb.mxu1 %v2358_v42  ;;  %2844 = vmatpush.msrb.mxu3 %v2359_v54  ;;  %v2304_v36 = vld [vmem:[#allocation10 + $0x50] sm:$0xff]  ;;  %v2301_v50 = vld [vmem:[#allocation10 + $0x38] sm:$0xff]  ;;  %v3009_v54 = vld [vmem:[#allocation10 + $0x9e0] sm:$0xff] }
 0x233   : > { %2687 = vmatmul.f32.gmra.mxu0 %v2569_v34  ;;  %2733 = vmatmul.f32.gmra.mxu2 %v2569_v34  ;;  %v2385_v34 = vld [vmem:[#allocation10 + $0x2d8] sm:$0xff]  ;;  %v2368_v13 = vld [vmem:[#allocation10 + $0x250] sm:$0xff] }
 0x234   : > { %2854 = vmatpush.msra.mxu0 %v2348_v39  ;;  %2900 = vmatpush.msra.mxu2 %v2349_v46  ;;  %v2364_v25 = vld [vmem:[#allocation10 + $0x230] sm:$0xff]  ;;  %v2365_v11 = vld [vmem:[#allocation10 + $0x238] sm:$0xff]  ;;  %v3073_v39 = vld [vmem:[#allocation10 + $0xbe0] sm:$0xff] }
 0x235   : > { %2707 = vmatmul.f32.vlgmr.msra.gmra.mxu1 %v6881_v21  ;;  %2753 = vmatmul.f32.vlgmr.msra.gmra.mxu3 %v6881_v21  ;;  %v2404_v21 = vld [vmem:[#allocation10 + $0x370] sm:$0xff]  ;;  %v2297_v52 = vld [vmem:[#allocation10 + $0x18] sm:$0xff]  ;;  %v3010_v46 = vld [vmem:[#allocation10 + $0x9e8] sm:$0xff] }
 0x236   : > { %2875 = vmatpush.msra.mxu1 %v2420_v40  ;;  %2921 = vmatpush.msra.mxu3 %v2421_v47  ;;  %v2296_v19 = vld [vmem:[#allocation10 + $0x10] sm:$0xff]  ;;  %v2361_v42 = vld [vmem:[#allocation10 + $0x218] sm:$0xff]  ;;  %v3074_v40 = vld [vmem:[#allocation10 + $0xbe8] sm:$0xff] }
 0x237   : > { %2855 = vmatpush.msra.mxu0 %v2344_v14  ;;  %2901 = vmatpush.msra.mxu2 %v2345_v0  ;;  %v2360_v37 = vld [vmem:[#allocation10 + $0x210] sm:$0xff]  ;;  %v3005_v47 = vld [vmem:[#allocation10 + $0x9c0] sm:$0xff]  ;;  %v3006_v0 = vld [vmem:[#allocation10 + $0x9c8] sm:$0xff] }
 0x238   : > { %2876 = vmatpush.msra.mxu1 %v2416_v41  ;;  %2922 = vmatpush.msra.mxu3 %v2417_v29  ;;  %v3069_v14 = vld [vmem:[#allocation10 + $0xbc0] sm:$0xff]  ;;  %v3070_v41 = vld [vmem:[#allocation10 + $0xbc8] sm:$0xff] }
 0x239   : > { %2856 = vmatpush.msra.mxu0 %v2340_v16  ;;  %2902 = vmatpush.msra.mxu2 %v2341_v18  ;;  %v3001_v29 = vld [vmem:[#allocation10 + $0x9a0] sm:$0xff]  ;;  %v3002_v18 = vld [vmem:[#allocation10 + $0x9a8] sm:$0xff] }
 0x23a   : > { %2877 = vmatpush.msra.mxu1 %v2412_v32  ;;  %2923 = vmatpush.msra.mxu3 %v2413_v7  ;;  %v3065_v16 = vld [vmem:[#allocation10 + $0xba0] sm:$0xff]  ;;  %v3066_v32 = vld [vmem:[#allocation10 + $0xba8] sm:$0xff] }
 0x23b   : > { %2776 = vmatmul.f32.vlgmr.msrb.gmra.mxu0 %v6897_v6  ;;  %2822 = vmatmul.f32.vlgmr.msrb.gmra.mxu2 %v6897_v6  ;;  %v2997_v7 = vld [vmem:[#allocation10 + $0x980] sm:$0xff] }
 0x23c   : > { %2878 = vmatpush.msra.mxu1 %v2408_v57  ;;  %2924 = vmatpush.msra.mxu3 %v2409_v20  ;;  %v3061_v57 = vld [vmem:[#allocation10 + $0xb80] sm:$0xff]  ;;  %v2998_v20 = vld [vmem:[#allocation10 + $0x988] sm:$0xff] }
 0x23d   : > { %2710 = vmatmul.f32.gmra.mxu1 %v2571_v55  ;;  %2756 = vmatmul.f32.gmra.mxu3 %v2571_v55  ;;  %v2300_v55 = vld [vmem:[#allocation10 + $0x30] sm:$0xff] }
 0x23e   : > { %2879 = vmatpush.msra.mxu1 %v2404_v21  ;;  %2925 = vmatpush.msra.mxu3 %v2405_v27  ;;  %v2993_v21 = vld [vmem:[#allocation10 + $0x960] sm:$0xff] }
 0x23f   : > { %2857 = vmatpush.msra.mxu0 %v2336_v26  ;;  %2903 = vmatpush.msra.mxu2 %v2337_v45  ;;  %v3057_v27 = vld [vmem:[#allocation10 + $0xb60] sm:$0xff]  ;;  %v6913_v26 = vld [vmem:[#allocation3 + $0x8] sm:$0xff]  ;;  %v2994_v45 = vld [vmem:[#allocation10 + $0x968] sm:$0xff] }
 0x240   : > { %2880 = vmatpush.msra.mxu1 %v2400_v48  ;;  %2926 = vmatpush.msra.mxu3 %v2401_v3  ;;  %v3058_v48 = vld [vmem:[#allocation10 + $0xb68] sm:$0xff]  ;;  %v2989_v3 = vld [vmem:[#allocation10 + $0x940] sm:$0xff] }
 0x241   : > { %2858 = vmatpush.msra.mxu0 %v2332_v28  ;;  %2904 = vmatpush.msra.mxu2 %v2333_v53  ;;  %v3053_v28 = vld [vmem:[#allocation10 + $0xb40] sm:$0xff]  ;;  %v2990_v53 = vld [vmem:[#allocation10 + $0x948] sm:$0xff] }
 0x242   : > { %2881 = vmatpush.msra.mxu1 %v2396_v22  ;;  %2927 = vmatpush.msra.mxu3 %v2397_v17  ;;  %v3054_v22 = vld [vmem:[#allocation10 + $0xb48] sm:$0xff]  ;;  %v2985_v17 = vld [vmem:[#allocation10 + $0x920] sm:$0xff] }
 0x243   : > { %2779 = vmatmul.f32.gmra.mxu0 %v6800_v4  ;;  %2825 = vmatmul.f32.gmra.mxu2 %v6800_v4  ;;  %v2321_v4 = vld [vmem:[#allocation10 + $0xd8] sm:$0xff] }
 0x244   : > { %2859 = vmatpush.msra.mxu0 %v2328_v58  ;;  %2882 = vmatpush.msra.mxu1 %v2392_v49  ;;  %v3049_v58 = vld [vmem:[#allocation10 + $0xb20] sm:$0xff]  ;;  %v2986_v49 = vld [vmem:[#allocation10 + $0x928] sm:$0xff] }
 0x245   : > { %2799 = vmatmul.f32.vlgmr.msrb.gmra.mxu1 %v6903_v59  ;;  %2845 = vmatmul.f32.vlgmr.msrb.gmra.mxu3 %v6903_v59 }
 0x246   : > { %2905 = vmatpush.msra.mxu2 %v2329_v56  ;;  %2928 = vmatpush.msra.mxu3 %v2393_v33  ;;  %v3050_v56 = vld [vmem:[#allocation10 + $0xb28] sm:$0xff]  ;;  %v2981_v33 = vld [vmem:[#allocation10 + $0x900] sm:$0xff] }
 0x247   : > { %2860 = vmatpush.msra.mxu0 %v2324_v35  ;;  %2883 = vmatpush.msra.mxu1 %v2388_v63  ;;  %v2982_v35 = vld [vmem:[#allocation10 + $0x908] sm:$0xff] }
 0x248   : > { %2906 = vmatpush.msra.mxu2 %v2325_v15  ;;  %2929 = vmatpush.msra.mxu3 %v2389_v9  ;;  %v3046_v63 = vld [vmem:[#allocation10 + $0xb08] sm:$0xff]  ;;  %v2977_v15 = vld [vmem:[#allocation10 + $0x8e0] sm:$0xff] }
 0x249   : > { %2861 = vmatpush.msra.mxu0 %v2320_v51  ;;  %2884 = vmatpush.msra.mxu1 %v2384_v44  ;;  %v3041_v9 = vld [vmem:[#allocation10 + $0xae0] sm:$0xff]  ;;  %v2978_v51 = vld [vmem:[#allocation10 + $0x8e8] sm:$0xff] }
 0x24a   : > { %2907 = vmatpush.msra.mxu2 %v2321_v4  ;;  %2930 = vmatpush.msra.mxu3 %v2385_v34  ;;  %v3042_v44 = vld [vmem:[#allocation10 + $0xae8] sm:$0xff]  ;;  %v2973_v4 = vld [vmem:[#allocation10 + $0x8c0] sm:$0xff] }
 0x24b   : > { %2862 = vmatpush.msra.mxu0 %v2316_v30  ;;  %2885 = vmatpush.msra.mxu1 %v2380_v23  ;;  %v3037_v34 = vld [vmem:[#allocation10 + $0xac0] sm:$0xff]  ;;  %v2974_v30 = vld [vmem:[#allocation10 + $0x8c8] sm:$0xff] }
 0x24c   : > { %2908 = vmatpush.msra.mxu2 %v2317_v43  ;;  %2931 = vmatpush.msra.mxu3 %v2381_v31  ;;  %v3038_v23 = vld [vmem:[#allocation10 + $0xac8] sm:$0xff]  ;;  %v2969_v43 = vld [vmem:[#allocation10 + $0x8a0] sm:$0xff] }
 0x24d   : > { %2802 = vmatmul.f32.gmra.mxu1 %v6873_v38  ;;  %2848 = vmatmul.f32.gmra.mxu3 %v6873_v38  ;;  %v3033_v31 = vld [vmem:[#allocation10 + $0xaa0] sm:$0xff] }
 0x24e   : > { %2863 = vmatpush.msra.mxu0 %v2312_v24  ;;  %2886 = vmatpush.msra.mxu1 %v2376_v1  ;;  %v2970_v24 = vld [vmem:[#allocation10 + $0x8a8] sm:$0xff] }
 0x24f   : > { %2909 = vmatpush.msra.mxu2 %v2313_v10  ;;  %2932 = vmatpush.msra.mxu3 %v2377_v5  ;;  %v3034_v1 = vld [vmem:[#allocation10 + $0xaa8] sm:$0xff]  ;;  %v2965_v10 = vld [vmem:[#allocation10 + $0x880] sm:$0xff] }
 0x250   : > { %2864 = vmatpush.msra.mxu0 %v2308_v2  ;;  %2887 = vmatpush.msra.mxu1 %v2372_v61  ;;  %v3029_v5 = vld [vmem:[#allocation10 + $0xa80] sm:$0xff]  ;;  %v2966_v2 = vld [vmem:[#allocation10 + $0x888] sm:$0xff] }
 0x251   : > { %2910 = vmatpush.msra.mxu2 %v2309_v12  ;;  %2933 = vmatpush.msra.mxu3 %v2373_v8  ;;  %v3030_v61 = vld [vmem:[#allocation10 + $0xa88] sm:$0xff]  ;;  %v2961_v12 = vld [vmem:[#allocation10 + $0x860] sm:$0xff] }
 0x252   : > { %2865 = vmatpush.msra.mxu0 %v2304_v36  ;;  %2888 = vmatpush.msra.mxu1 %v2368_v13  ;;  %v3025_v8 = vld [vmem:[#allocation10 + $0xa60] sm:$0xff]  ;;  %v2962_v36 = vld [vmem:[#allocation10 + $0x868] sm:$0xff] }
 0x253   : > { %2911 = vmatpush.msra.mxu2 %v2305_v60  ;;  %2934 = vmatpush.msra.mxu3 %v2369_v62  ;;  %v3026_v13 = vld [vmem:[#allocation10 + $0xa68] sm:$0xff]  ;;  %v2957_v60 = vld [vmem:[#allocation10 + $0x840] sm:$0xff] }
 0x254   : > { %2866 = vmatpush.msra.mxu0 %v2300_v55  ;;  %2889 = vmatpush.msra.mxu1 %v2364_v25  ;;  %v3021_v62 = vld [vmem:[#allocation10 + $0xa40] sm:$0xff]  ;;  %v2958_v55 = vld [vmem:[#allocation10 + $0x848] sm:$0xff] }
 0x255   : > { %2912 = vmatpush.msra.mxu2 %v2301_v50  ;;  %2935 = vmatpush.msra.mxu3 %v2365_v11  ;;  %v3022_v25 = vld [vmem:[#allocation10 + $0xa48] sm:$0xff]  ;;  %v2953_v50 = vld [vmem:[#allocation10 + $0x820] sm:$0xff] }
 0x256   : > { %2867 = vmatpush.msra.mxu0 %v2296_v19  ;;  %2890 = vmatpush.msra.mxu1 %v2360_v37  ;;  %v3017_v11 = vld [vmem:[#allocation10 + $0xa20] sm:$0xff]  ;;  %v2944_v19 = vld [vmem:[#allocation3 + $0x28] sm:$0xfc]  ;;  %v2954_v37 = vld [vmem:[#allocation10 + $0x828] sm:$0xff] }
 0x257   : > { %2913 = vmatpush.msra.mxu2 %v2297_v52  ;;  %2936 = vmatpush.msra.mxu3 %v2361_v42  ;;  %v3018_v52 = vld [vmem:[#allocation10 + $0xa28] sm:$0xff]  ;;  %v2945_v42 = vld [vmem:[#allocation3 + $0x10] sm:$0xfc] }
 0x258   : > { %2868 = vmatmul.f32.vlgmr.msra.gmra.mxu0 %v6897_v6  ;;  %2891 = vmatmul.f32.vlgmr.msra.gmra.mxu1 %v6903_v59 }
 0x259   : > { %2914 = vmatmul.f32.vlgmr.msra.gmra.mxu2 %v6897_v6  ;;  %2937 = vmatmul.f32.vlgmr.msra.gmra.mxu3 %v6903_v59  ;;  %v3062_v6 = vld [vmem:[#allocation10 + $0xb88] sm:$0xff]  ;;  %v3045_v59 = vld [vmem:[#allocation10 + $0xb00] sm:$0xff] }
 0x25a   : > { %3095 = vmatpush.msrb.mxu0 %v3009_v54  ;;  %3118 = vmatpush.msrb.mxu1 %v3073_v39  ;;  %v2949_v54 = vld [vmem:[#allocation10 + $0x800] sm:$0xff] }
 0x25b   : > { %3141 = vmatpush.msrb.mxu2 %v3010_v46  ;;  %3164 = vmatpush.msrb.mxu3 %v3074_v40  ;;  %v3013_v39 = vld [vmem:[#allocation10 + $0xa00] sm:$0xff]  ;;  %v3082_v46 = vrot.slane %v6913_v26, 2  ;;  %v3085_v40 = vrot.slane %v6873_v38, 2 }
 0x25c   : > { %3096 = vmatpush.msrb.mxu0 %v3005_v47  ;;  %3119 = vmatpush.msrb.mxu1 %v3069_v14  ;;  %v2950_v47 = vld [vmem:[#allocation10 + $0x808] sm:$0xff] }
 0x25d   : > { %3142 = vmatpush.msrb.mxu2 %v3006_v0  ;;  %3165 = vmatpush.msrb.mxu3 %v3070_v41  ;;  %v3014_v14 = vld [vmem:[#allocation10 + $0xa08] sm:$0xff]  ;;  %v3081_v0 = vrot.slane %v2944_v19, 2  ;;  %v3084_v41 = vrot.slane %v2945_v42, 2  ;;  %v3035_v19 = vld [vmem:[#allocation10 + $0xab0] sm:$0xff]  ;;  %v3036_v42 = vld [vmem:[#allocation10 + $0xab8] sm:$0xff] }
 0x25e   : > { %3097 = vmatpush.msrb.mxu0 %v3001_v29  ;;  %3120 = vmatpush.msrb.mxu1 %v3065_v16 }
 0x25f   : > { %3143 = vmatpush.msrb.mxu2 %v3002_v18  ;;  %3166 = vmatpush.msrb.mxu3 %v3066_v32  ;;  %v6922_v29 = vsel %vm1524_vm5, %v3081_v0, %v3082_v46  ;;  %v6925_v16 = vsel %vm1524_vm5, %v3084_v41, %v3085_v40  ;;  %v3011_v18 = vld [vmem:[#allocation10 + $0x9f0] sm:$0xff]  ;;  %v3012_v32 = vld [vmem:[#allocation10 + $0x9f8] sm:$0xff] }
 0x260   : > { %3098 = vmatpush.msrb.mxu0 %v2997_v7  ;;  %3121 = vmatpush.msrb.mxu1 %v3061_v57  ;;  %v3076_v7 = vld [vmem:[#allocation10 + $0xbf8] sm:$0xff]  ;;  %v3007_v57 = vld [vmem:[#allocation10 + $0x9d0] sm:$0xff] }
 0x261   : > { %3144 = vmatpush.msrb.mxu2 %v2998_v20  ;;  %3167 = vmatpush.msrb.mxu3 %v3062_v6  ;;  %v3071_v20 = vld [vmem:[#allocation10 + $0xbd0] sm:$0xff]  ;;  %v2946_v6 = vld [vmem:[#allocation3 + $0x18] sm:$0x3]  ;;  %v2964_v41 = vld [vmem:[#allocation10 + $0x878] sm:$0xff] }
 0x262   : > { %2871 = vmatmul.f32.gmra.mxu0 %v6913_v26  ;;  %2894 = vmatmul.f32.gmra.mxu1 %v6873_v38  ;;  %v3027_v0 = vld [vmem:[#allocation10 + $0xa70] sm:$0xff] }
 0x263   : > { %2917 = vmatmul.f32.gmra.mxu2 %v6913_v26  ;;  %2940 = vmatmul.f32.gmra.mxu3 %v6873_v38  ;;  %v3075_v38 = vld [vmem:[#allocation10 + $0xbf0] sm:$0xff] }
 0x264   : > { %3099 = vmatpush.msrb.mxu0 %v2993_v21  ;;  %3122 = vmatpush.msrb.mxu1 %v3057_v27  ;;  %v3008_v21 = vld [vmem:[#allocation10 + $0x9d8] sm:$0xff] }
 0x265   : > { %3145 = vmatpush.msrb.mxu2 %v2994_v45  ;;  %3168 = vmatpush.msrb.mxu3 %v3058_v48  ;;  %v3072_v27 = vld [vmem:[#allocation10 + $0xbd8] sm:$0xff]  ;;  %v2947_v45 = vld [vmem:[#allocation3 + $0x20] sm:$0x3]  ;;  %v3003_v48 = vld [vmem:[#allocation10 + $0x9b0] sm:$0xff] }
 0x266   : > { %3100 = vmatpush.msrb.mxu0 %v2989_v3  ;;  %3123 = vmatpush.msrb.mxu1 %v3053_v28  ;;  %v3067_v3 = vld [vmem:[#allocation10 + $0xbb0] sm:$0xff]  ;;  %v3004_v28 = vld [vmem:[#allocation10 + $0x9b8] sm:$0xff] }
 0x267   : > { %3146 = vmatpush.msrb.mxu2 %v2990_v53  ;;  %3169 = vmatpush.msrb.mxu3 %v3054_v22  ;;  %v3068_v53 = vld [vmem:[#allocation10 + $0xbb8] sm:$0xff]  ;;  %v2999_v22 = vld [vmem:[#allocation10 + $0x990] sm:$0xff] }
 0x268   : > { %3101 = vmatpush.msrb.mxu0 %v2985_v17  ;;  %3124 = vmatpush.msrb.mxu1 %v3049_v58  ;;  %v3063_v17 = vld [vmem:[#allocation10 + $0xb90] sm:$0xff]  ;;  %v3087_v58 = vrot.slane %v2946_v6, 2  ;;  %v3024_v6 = vld [vmem:[#allocation10 + $0xa58] sm:$0xff] }
 0x269   : > { %3147 = vmatpush.msrb.mxu2 %v2986_v49  ;;  %3170 = vmatpush.msrb.mxu3 %v3050_v56  ;;  %v3089_v49 = vrot.slane %v2947_v45, 2  ;;  %v3000_v56 = vld [vmem:[#allocation10 + $0x998] sm:$0xff] }
 0x26a   : > { %3102 = vmatpush.msrb.mxu0 %v2981_v33  ;;  %3125 = vmatpush.msrb.mxu1 %v3045_v59  ;;  %v3064_v33 = vld [vmem:[#allocation10 + $0xb98] sm:$0xff]  ;;  %v6932_v59 = vsel %vm1524_vm5, %v3082_v46, %v3087_v58  ;;  %v3416_v58 = vld [vmem:[#allocation10 + $0xfe0] sm:$0xff] }
 0x26b   : > { %3148 = vmatpush.msrb.mxu2 %v2982_v35  ;;  %3171 = vmatpush.msrb.mxu3 %v3046_v63  ;;  %v6935_v35 = vsel %vm1524_vm5, %v3085_v40, %v3089_v49  ;;  %v2995_v63 = vld [vmem:[#allocation10 + $0x970] sm:$0xff]  ;;  %v2968_v46 = vld [vmem:[#allocation10 + $0x898] sm:$0xff]  ;;  %v3353_v49 = vld [vmem:[#allocation10 + $0xde8] sm:$0xff] }
 0x26c   : > { %3103 = vmatpush.msrb.mxu0 %v2977_v15  ;;  %3126 = vmatpush.msrb.mxu1 %v3041_v9  ;;  %v3059_v15 = vld [vmem:[#allocation10 + $0xb70] sm:$0xff]  ;;  %v2996_v9 = vld [vmem:[#allocation10 + $0x978] sm:$0xff] }
 0x26d   : > { %3149 = vmatpush.msrb.mxu2 %v2978_v51  ;;  %3172 = vmatpush.msrb.mxu3 %v3042_v44  ;;  %v3060_v51 = vld [vmem:[#allocation10 + $0xb78] sm:$0xff]  ;;  %v2991_v44 = vld [vmem:[#allocation10 + $0x950] sm:$0xff] }
 0x26e   : > { %3104 = vmatpush.msrb.mxu0 %v2973_v4  ;;  %3127 = vmatpush.msrb.mxu1 %v3037_v34  ;;  %v3055_v4 = vld [vmem:[#allocation10 + $0xb50] sm:$0xff]  ;;  %v2992_v34 = vld [vmem:[#allocation10 + $0x958] sm:$0xff] }
 0x26f   : > { %3150 = vmatpush.msrb.mxu2 %v2974_v30  ;;  %3173 = vmatpush.msrb.mxu3 %v3038_v23  ;;  %v3056_v30 = vld [vmem:[#allocation10 + $0xb58] sm:$0xff]  ;;  %v2987_v23 = vld [vmem:[#allocation10 + $0x930] sm:$0xff] }
 0x270   : > { %3105 = vmatpush.msrb.mxu0 %v2969_v43  ;;  %3128 = vmatpush.msrb.mxu1 %v3033_v31  ;;  %v3051_v43 = vld [vmem:[#allocation10 + $0xb30] sm:$0xff]  ;;  %v2988_v31 = vld [vmem:[#allocation10 + $0x938] sm:$0xff] }
 0x271   : > { %3151 = vmatpush.msrb.mxu2 %v2970_v24  ;;  %3174 = vmatpush.msrb.mxu3 %v3034_v1  ;;  %v3052_v24 = vld [vmem:[#allocation10 + $0xb38] sm:$0xff]  ;;  %v2983_v1 = vld [vmem:[#allocation10 + $0x910] sm:$0xff] }
 0x272   : > { %3106 = vmatpush.msrb.mxu0 %v2965_v10  ;;  %3129 = vmatpush.msrb.mxu1 %v3029_v5  ;;  %v3047_v10 = vld [vmem:[#allocation10 + $0xb10] sm:$0xff]  ;;  %v2984_v5 = vld [vmem:[#allocation10 + $0x918] sm:$0xff] }
 0x273   : > { %3152 = vmatpush.msrb.mxu2 %v2966_v2  ;;  %3175 = vmatpush.msrb.mxu3 %v3030_v61  ;;  %v3048_v2 = vld [vmem:[#allocation10 + $0xb18] sm:$0xff]  ;;  %v2979_v61 = vld [vmem:[#allocation10 + $0x8f0] sm:$0xff] }
 0x274   : > { %3107 = vmatpush.msrb.mxu0 %v2961_v12  ;;  %3130 = vmatpush.msrb.mxu1 %v3025_v8  ;;  %v3043_v12 = vld [vmem:[#allocation10 + $0xaf0] sm:$0xff]  ;;  %v2980_v8 = vld [vmem:[#allocation10 + $0x8f8] sm:$0xff] }
 0x275   : > { %3153 = vmatpush.msrb.mxu2 %v2962_v36  ;;  %3176 = vmatpush.msrb.mxu3 %v3026_v13  ;;  %v3044_v36 = vld [vmem:[#allocation10 + $0xaf8] sm:$0xff]  ;;  %v2593_v13 = vpop.f32.mrf.mxu0 }
 0x276   : > { %3108 = vmatpush.msrb.mxu0 %v2957_v60  ;;  %3131 = vmatpush.msrb.mxu1 %v3021_v62  ;;  %v2975_v60 = vld [vmem:[#allocation10 + $0x8d0] sm:$0xff]  ;;  %v3032_v40 = vld [vmem:[#allocation10 + $0xa98] sm:$0xff] }
 0x277   : > { %3154 = vmatpush.msrb.mxu2 %v2958_v55  ;;  %3177 = vmatpush.msrb.mxu3 %v3022_v25  ;;  %v3039_v62 = vld [vmem:[#allocation10 + $0xad0] sm:$0xff]  ;;  %v2976_v55 = vld [vmem:[#allocation10 + $0x8d8] sm:$0xff] }
 0x278   : > { %3109 = vmatpush.msrb.mxu0 %v2953_v50  ;;  %3132 = vmatpush.msrb.mxu1 %v3017_v11  ;;  %v3040_v25 = vld [vmem:[#allocation10 + $0xad8] sm:$0xff]  ;;  %v2971_v11 = vld [vmem:[#allocation10 + $0x8b0] sm:$0xff] }
 0x279   : > { %3155 = vmatpush.msrb.mxu2 %v2954_v37  ;;  %3178 = vmatpush.msrb.mxu3 %v3018_v52  ;;  %v2972_v52 = vld [vmem:[#allocation10 + $0x8b8] sm:$0xff] }
 0x27a   : > { %3110 = vmatpush.msrb.mxu0 %v2949_v54  ;;  %3133 = vmatpush.msrb.mxu1 %v3013_v39  ;;  %v2967_v54 = vld [vmem:[#allocation10 + $0x890] sm:$0xff]  ;;  %v2956_v45 = vld [vmem:[#allocation10 + $0x838] sm:$0xff] }
 0x27b   : > { %3156 = vmatpush.msrb.mxu2 %v2950_v47  ;;  %3179 = vmatpush.msrb.mxu3 %v3014_v14  ;;  %v3031_v39 = vld [vmem:[#allocation10 + $0xa90] sm:$0xff]  ;;  %v2639_v47 = vpop.f32.mrf.mxu2 }
 0x27c   : > { %3111 = vmatmul.f32.vlgmr.msrb.gmra.mxu0 %v6922_v29  ;;  %3134 = vmatmul.f32.vlgmr.msrb.gmra.mxu1 %v6925_v16  ;;  %v2963_v14 = vld [vmem:[#allocation10 + $0x870] sm:$0xff] }
 0x27d   : > { %3157 = vmatmul.f32.vlgmr.msrb.gmra.mxu2 %v6922_v29  ;;  %3180 = vmatmul.f32.vlgmr.msrb.gmra.mxu3 %v6925_v16 }
 0x27e   : > { %3187 = vmatpush.msra.mxu0 %v3011_v18  ;;  %3210 = vmatpush.msra.mxu1 %v3075_v38  ;;  %v3028_v18 = vld [vmem:[#allocation10 + $0xa78] sm:$0xff] }
 0x27f   : > { %3233 = vmatpush.msra.mxu2 %v3012_v32  ;;  %3256 = vmatpush.msra.mxu3 %v3076_v7  ;;  %v2959_v32 = vld [vmem:[#allocation10 + $0x850] sm:$0xff] }
 0x280   : > { %3188 = vmatpush.msra.mxu0 %v3007_v57  ;;  %3211 = vmatpush.msra.mxu1 %v3071_v20  ;;  %v3023_v7 = vld [vmem:[#allocation10 + $0xa50] sm:$0xff]  ;;  %v2960_v20 = vld [vmem:[#allocation10 + $0x858] sm:$0xff] }
 0x281   : > { %3234 = vmatpush.msra.mxu2 %v3008_v21  ;;  %3257 = vmatpush.msra.mxu3 %v3072_v27  ;;  %v2955_v21 = vld [vmem:[#allocation10 + $0x830] sm:$0xff] }
 0x282   : > { %3189 = vmatpush.msra.mxu0 %v3003_v48  ;;  %3212 = vmatpush.msra.mxu1 %v3067_v3  ;;  %v3019_v27 = vld [vmem:[#allocation10 + $0xa30] sm:$0xff]  ;;  %v3020_v48 = vld [vmem:[#allocation10 + $0xa38] sm:$0xff] }
 0x283   : > { %3235 = vmatpush.msra.mxu2 %v3004_v28  ;;  %3258 = vmatpush.msra.mxu3 %v3068_v53  ;;  %v2951_v3 = vld [vmem:[#allocation10 + $0x810] sm:$0xff]  ;;  %v2952_v53 = vld [vmem:[#allocation10 + $0x818] sm:$0xff] }
 0x284   : > { %3190 = vmatpush.msra.mxu0 %v2999_v22  ;;  %3213 = vmatpush.msra.mxu1 %v3063_v17  ;;  %v3015_v28 = vld [vmem:[#allocation10 + $0xa10] sm:$0xff]  ;;  %v3016_v22 = vld [vmem:[#allocation10 + $0xa18] sm:$0xff]  ;;  %v3352_v17 = vld [vmem:[#allocation10 + $0xde0] sm:$0xff] }
 0x285   : > { %3236 = vmatpush.msra.mxu2 %v3000_v56  ;;  %3259 = vmatpush.msra.mxu3 %v3064_v33  ;;  %v3417_v56 = vld [vmem:[#allocation10 + $0xfe8] sm:$0xff] }
 0x286   : > { %3114 = vmatmul.f32.gmra.mxu0 %v6932_v59  ;;  %3137 = vmatmul.f32.gmra.mxu1 %v6935_v35 }
 0x287   : > { %3160 = vmatmul.f32.gmra.mxu2 %v6932_v59  ;;  %3183 = vmatmul.f32.gmra.mxu3 %v6935_v35 }
 0x288   : > { %3191 = vmatpush.msra.mxu0 %v2995_v63  ;;  %3214 = vmatpush.msra.mxu1 %v3059_v15  ;;  %v3348_v63 = vld [vmem:[#allocation10 + $0xdc0] sm:$0xff] }
 0x289   : > { %3237 = vmatpush.msra.mxu2 %v2996_v9  ;;  %3260 = vmatpush.msra.mxu3 %v3060_v51  ;;  %v3412_v15 = vld [vmem:[#allocation10 + $0xfc0] sm:$0xff]  ;;  %v3349_v9 = vld [vmem:[#allocation10 + $0xdc8] sm:$0xff] }
 0x28a   : > { %3192 = vmatpush.msra.mxu0 %v2991_v44  ;;  %3215 = vmatpush.msra.mxu1 %v3055_v4  ;;  %v3413_v51 = vld [vmem:[#allocation10 + $0xfc8] sm:$0xff]  ;;  %v3344_v44 = vld [vmem:[#allocation10 + $0xda0] sm:$0xff] }
 0x28b   : > { %3238 = vmatpush.msra.mxu2 %v2992_v34  ;;  %3261 = vmatpush.msra.mxu3 %v3056_v30  ;;  %v3408_v4 = vld [vmem:[#allocation10 + $0xfa0] sm:$0xff]  ;;  %v3345_v34 = vld [vmem:[#allocation10 + $0xda8] sm:$0xff] }
 0x28c   : > { %3193 = vmatpush.msra.mxu0 %v2987_v23  ;;  %3216 = vmatpush.msra.mxu1 %v3051_v43  ;;  %v3409_v30 = vld [vmem:[#allocation10 + $0xfa8] sm:$0xff]  ;;  %v3340_v23 = vld [vmem:[#allocation10 + $0xd80] sm:$0xff] }
 0x28d   : > { %3239 = vmatpush.msra.mxu2 %v2988_v31  ;;  %3262 = vmatpush.msra.mxu3 %v3052_v24  ;;  %v3405_v43 = vld [vmem:[#allocation10 + $0xf88] sm:$0xff] }
 0x28e   : > { %3194 = vmatpush.msra.mxu0 %v2983_v1  ;;  %3217 = vmatpush.msra.mxu1 %v3047_v10  ;;  %v3336_v1 = vld [vmem:[#allocation10 + $0xd60] sm:$0xff] }
 0x28f   : > { %3240 = vmatpush.msra.mxu2 %v2984_v5  ;;  %3263 = vmatpush.msra.mxu3 %v3048_v2  ;;  %v3400_v10 = vld [vmem:[#allocation10 + $0xf60] sm:$0xff]  ;;  %v3337_v5 = vld [vmem:[#allocation10 + $0xd68] sm:$0xff] }
 0x290   : > { %3195 = vmatpush.msra.mxu0 %v2979_v61  ;;  %3218 = vmatpush.msra.mxu1 %v3043_v12  ;;  %v2616_v50 = vpop.f32.mrf.mxu1  ;;  %v3401_v2 = vld [vmem:[#allocation10 + $0xf68] sm:$0xff] }
 0x291   : > { %3241 = vmatpush.msra.mxu2 %v2980_v8  ;;  %3264 = vmatpush.msra.mxu3 %v3044_v36  ;;  %v6941_v37 = vadd.f32 %v2616_v50, %v2593_v13  ;;  %v3332_v8 = vld [vmem:[#allocation10 + $0xd40] sm:$0xff]  ;;  %v3333_v13 = vld [vmem:[#allocation10 + $0xd48] sm:$0xff] }
 0x292   : > { %3196 = vmatpush.msra.mxu0 %v2975_v60  ;;  %3219 = vmatpush.msra.mxu1 %v3039_v62  ;;  %v3396_v36 = vld [vmem:[#allocation10 + $0xf40] sm:$0xff]  ;;  %v3397_v60 = vld [vmem:[#allocation10 + $0xf48] sm:$0xff] }
 0x293   : > { %3242 = vmatpush.msra.mxu2 %v2976_v55  ;;  %3265 = vmatpush.msra.mxu3 %v3040_v25  ;;  %v3328_v62 = vld [vmem:[#allocation10 + $0xd20] sm:$0xff]  ;;  %v3329_v25 = vld [vmem:[#allocation10 + $0xd28] sm:$0xff] }
 0x294   : > { %3197 = vmatpush.msra.mxu0 %v2971_v11  ;;  %3220 = vmatpush.msra.mxu1 %v3035_v19  ;;  %v3392_v55 = vld [vmem:[#allocation10 + $0xf20] sm:$0xff]  ;;  %v3393_v50 = vld [vmem:[#allocation10 + $0xf28] sm:$0xff] }
 0x295   : > { %3243 = vmatpush.msra.mxu2 %v2972_v52  ;;  %3266 = vmatpush.msra.mxu3 %v3036_v42  ;;  %v3325_v19 = vld [vmem:[#allocation10 + $0xd08] sm:$0xff] }
 0x296   : > { %3198 = vmatpush.msra.mxu0 %v2967_v54  ;;  %3221 = vmatpush.msra.mxu1 %v3031_v39  ;;  %v2662_v38 = vpop.f32.mrf.mxu3  ;;  %v3389_v52 = vld [vmem:[#allocation10 + $0xf08] sm:$0xff] }
 0x297   : > { %3244 = vmatpush.msra.mxu2 %v2968_v46  ;;  %3267 = vmatpush.msra.mxu3 %v3032_v40  ;;  %v6943_v57 = vadd.f32 %v2662_v38, %v2639_v47  ;;  %v3320_v46 = vld [vmem:[#allocation10 + $0xce0] sm:$0xff]  ;;  %v3321_v47 = vld [vmem:[#allocation10 + $0xce8] sm:$0xff] }
 0x298   : > { %3199 = vmatpush.msra.mxu0 %v2963_v14  ;;  %3222 = vmatpush.msra.mxu1 %v3027_v0  ;;  %v3384_v40 = vld [vmem:[#allocation10 + $0xee0] sm:$0xff]  ;;  %v3385_v14 = vld [vmem:[#allocation10 + $0xee8] sm:$0xff] }
 0x299   : > { %3245 = vmatpush.msra.mxu2 %v2964_v41  ;;  %3268 = vmatpush.msra.mxu3 %v3028_v18  ;;  %v3316_v18 = vld [vmem:[#allocation10 + $0xcc0] sm:$0xff] }
 0x29a   : > { %3200 = vmatpush.msra.mxu0 %v2959_v32  ;;  %3223 = vmatpush.msra.mxu1 %v3023_v7  ;;  %v3380_v38 = vld [vmem:[#allocation10 + $0xec0] sm:$0xff]  ;;  %v3317_v32 = vld [vmem:[#allocation10 + $0xcc8] sm:$0xff] }
 0x29b   : > { %3246 = vmatpush.msra.mxu2 %v2960_v20  ;;  %3269 = vmatpush.msra.mxu3 %v3024_v6  ;;  %v3381_v7 = vld [vmem:[#allocation10 + $0xec8] sm:$0xff]  ;;  %v3312_v20 = vld [vmem:[#allocation10 + $0xca0] sm:$0xff] }
 0x29c   : > { %3201 = vmatpush.msra.mxu0 %v2955_v21  ;;  %3224 = vmatpush.msra.mxu1 %v3019_v27  ;;  %v3376_v6 = vld [vmem:[#allocation10 + $0xea0] sm:$0xff]  ;;  %v3313_v21 = vld [vmem:[#allocation10 + $0xca8] sm:$0xff] }
 0x29d   : > { %3247 = vmatpush.msra.mxu2 %v2956_v45  ;;  %3270 = vmatpush.msra.mxu3 %v3020_v48  ;;  %v3377_v27 = vld [vmem:[#allocation10 + $0xea8] sm:$0xff]  ;;  %v3308_v48 = vld [vmem:[#allocation10 + $0xc80] sm:$0xff] }
 0x29e   : > { %3202 = vmatpush.msra.mxu0 %v2951_v3  ;;  %3225 = vmatpush.msra.mxu1 %v3015_v28  ;;  %v3372_v3 = vld [vmem:[#allocation10 + $0xe80] sm:$0xff]  ;;  %v3309_v28 = vld [vmem:[#allocation10 + $0xc88] sm:$0xff] }
 0x29f   : > { %3248 = vmatpush.msra.mxu2 %v2952_v53  ;;  %3271 = vmatpush.msra.mxu3 %v3016_v22  ;;  %v3373_v53 = vld [vmem:[#allocation10 + $0xe88] sm:$0xff] }
 0x2a0   : > { %3203 = vmatmul.f32.vlgmr.msra.gmra.mxu0 %v6922_v29  ;;  %3226 = vmatmul.f32.vlgmr.msra.gmra.mxu1 %v6925_v16  ;;  %v2596_v33 = vpop.f32.mrf.mxu0 }
 0x2a1   : > { %3249 = vmatmul.f32.vlgmr.msra.gmra.mxu2 %v6922_v29  ;;  %3272 = vmatmul.f32.vlgmr.msra.gmra.mxu3 %v6925_v16  ;;  %v3404_v29 = vld [vmem:[#allocation10 + $0xf80] sm:$0xff]  ;;  %v3341_v16 = vld [vmem:[#allocation10 + $0xd88] sm:$0xff] }
 0x2a2   : > { %3439 = vmatpush.msrb.mxu0 %v3352_v17  ;;  %3462 = vmatpush.msrb.mxu1 %v3416_v58 }
 0x2a3   : > { %3485 = vmatpush.msrb.mxu2 %v3353_v49  ;;  %3508 = vmatpush.msrb.mxu3 %v3417_v56  ;;  %v3304_v49 = vld [vmem:[#allocation10 + $0xc60] sm:$0xff] }
 0x2a4   : > { %3440 = vmatpush.msrb.mxu0 %v3348_v63  ;;  %3463 = vmatpush.msrb.mxu1 %v3412_v15  ;;  %v3368_v56 = vld [vmem:[#allocation10 + $0xe60] sm:$0xff]  ;;  %v3305_v63 = vld [vmem:[#allocation10 + $0xc68] sm:$0xff] }
 0x2a5   : > { %3486 = vmatpush.msrb.mxu2 %v3349_v9  ;;  %3509 = vmatpush.msrb.mxu3 %v3413_v51  ;;  %v3369_v15 = vld [vmem:[#allocation10 + $0xe68] sm:$0xff] }
 0x2a6   : > { %3441 = vmatpush.msrb.mxu0 %v3344_v44  ;;  %3464 = vmatpush.msrb.mxu1 %v3408_v4  ;;  %v2642_v31 = vpop.f32.mrf.mxu2  ;;  %v3300_v44 = vld [vmem:[#allocation10 + $0xc40] sm:$0xff] }
 0x2a7   : > { %3487 = vmatpush.msrb.mxu2 %v3345_v34  ;;  %3510 = vmatpush.msrb.mxu3 %v3409_v30  ;;  %v3364_v4 = vld [vmem:[#allocation10 + $0xe40] sm:$0xff]  ;;  %v3301_v34 = vld [vmem:[#allocation10 + $0xc48] sm:$0xff] }
 0x2a8   : > { %3442 = vmatpush.msrb.mxu0 %v3340_v23  ;;  %3465 = vmatpush.msrb.mxu1 %v3404_v29  ;;  %v2685_v24 = vpop.f32.mrf.mxu0  ;;  %v3365_v30 = vld [vmem:[#allocation10 + $0xe48] sm:$0xff]  ;;  %v3296_v23 = vld [vmem:[#allocation10 + $0xc20] sm:$0xff] }
 0x2a9   : > { %3488 = vmatpush.msrb.mxu2 %v3341_v16  ;;  %3511 = vmatpush.msrb.mxu3 %v3405_v43  ;;  %v3360_v29 = vld [vmem:[#allocation10 + $0xe20] sm:$0xff]  ;;  %v3297_v16 = vld [vmem:[#allocation10 + $0xc28] sm:$0xff] }
 0x2aa   : > { %3206 = vmatmul.f32.gmra.mxu0 %v6932_v59  ;;  %3229 = vmatmul.f32.gmra.mxu1 %v6935_v35  ;;  %v2619_v61 = vpop.f32.mrf.mxu1  ;;  %v3361_v43 = vld [vmem:[#allocation10 + $0xe28] sm:$0xff] }
 0x2ab   : > { %3252 = vmatmul.f32.gmra.mxu2 %v6932_v59  ;;  %3275 = vmatmul.f32.gmra.mxu3 %v6935_v35  ;;  %v6953_v12 = vadd.f32 %v2619_v61, %v2596_v33  ;;  %v3324_v59 = vld [vmem:[#allocation10 + $0xd00] sm:$0xff] }
 0x2ac   : > { %3443 = vmatpush.msrb.mxu0 %v3336_v1  ;;  %3466 = vmatpush.msrb.mxu1 %v3400_v10  ;;  %v3388_v35 = vld [vmem:[#allocation10 + $0xf00] sm:$0xff] }
 0x2ad   : > { %3489 = vmatpush.msrb.mxu2 %v3337_v5  ;;  %3512 = vmatpush.msrb.mxu3 %v3401_v2  ;;  %v3292_v1 = vld [vmem:[#allocation10 + $0xc00] sm:$0xff]  ;;  %v3426_v5 = vrot.slane %v6913_v26, 3  ;;  %v6965_v2 = vld [vmem:[#allocation3] sm:$0xff]  ;;  %v3334_v26 = vld [vmem:[#allocation10 + $0xd50] sm:$0xff] }
 0x2ae   : > { %3444 = vmatpush.msrb.mxu0 %v3332_v8  ;;  %3467 = vmatpush.msrb.mxu1 %v3396_v36  ;;  %v2731_v11 = vpop.f32.mrf.mxu2  ;;  %v3356_v10 = vld [vmem:[#allocation10 + $0xe00] sm:$0xff]  ;;  %v3429_v61 = vrot.slane %v6965_v2, 3  ;;  %v3293_v36 = vld [vmem:[#allocation10 + $0xc08] sm:$0xff] }
 0x2af   : > { %3490 = vmatpush.msrb.mxu2 %v3333_v13  ;;  %3513 = vmatpush.msrb.mxu3 %v3397_v60  ;;  %v3357_v13 = vld [vmem:[#allocation10 + $0xe08] sm:$0xff] }
 0x2b0   : > { %3445 = vmatpush.msrb.mxu0 %v3328_v62  ;;  %3468 = vmatpush.msrb.mxu1 %v3392_v55  ;;  %v2665_v42 = vpop.f32.mrf.mxu3  ;;  %v2688_v54 = vpop.f32.mrf.mxu0 }
 0x2b1   : > { %3491 = vmatpush.msrb.mxu2 %v3329_v25  ;;  %3514 = vmatpush.msrb.mxu3 %v3393_v50  ;;  %v6955_v39 = vadd.f32 %v2665_v42, %v2642_v31  ;;  %v3288_v31 = vld [vmem:[#allocation3 + $0x10] sm:$0xf8] }
 0x2b2   : > { %3446 = vmatpush.msrb.mxu0 %v3324_v59  ;;  %3469 = vmatpush.msrb.mxu1 %v3388_v35  ;;  %v2708_v0 = vpop.f32.mrf.mxu1  ;;  %v3428_v50 = vrot.slane %v3288_v31, 3  ;;  %v3395_v31 = vld [vmem:[#allocation10 + $0xf38] sm:$0xff] }
 0x2b3   : > { %3492 = vmatpush.msrb.mxu2 %v3325_v19  ;;  %3515 = vmatpush.msrb.mxu3 %v3389_v52  ;;  %v6957_v41 = vadd.f32 %v2708_v0, %v2685_v24  ;;  %v3354_v19 = vld [vmem:[#allocation10 + $0xdf0] sm:$0xff]  ;;  %v3415_v0 = vld [vmem:[#allocation10 + $0xfd8] sm:$0xff] }
 0x2b4   : > { %3447 = vmatpush.msrb.mxu0 %v3320_v46  ;;  %3470 = vmatpush.msrb.mxu1 %v3384_v40  ;;  %v6980_v35 = vsel %vm3424_vm0, %v3428_v50, %v3429_v61  ;;  %v3418_v52 = vld [vmem:[#allocation10 + $0xff0] sm:$0xff] }
 0x2b5   : > { %3493 = vmatpush.msrb.mxu2 %v3321_v47  ;;  %3516 = vmatpush.msrb.mxu3 %v3385_v14  ;;  %v3350_v46 = vld [vmem:[#allocation10 + $0xdd0] sm:$0xff]  ;;  %v3289_v47 = vld [vmem:[#allocation3 + $0x18] sm:$0x7]  ;;  %v3351_v14 = vld [vmem:[#allocation10 + $0xdd8] sm:$0xff] }
 0x2b6   : > { %3448 = vmatpush.msrb.mxu0 %v3316_v18  ;;  %3471 = vmatpush.msrb.mxu1 %v3380_v38  ;;  %v2734_v45 = vpop.f32.mrf.mxu2  ;;  %v3414_v40 = vld [vmem:[#allocation10 + $0xfd0] sm:$0xff]  ;;  %v3290_v18 = vld [vmem:[#allocation3 + $0x20] sm:$0x7] }
 0x2b7   : > { %3494 = vmatpush.msrb.mxu2 %v3317_v32  ;;  %3517 = vmatpush.msrb.mxu3 %v3381_v7  ;;  %v3346_v32 = vld [vmem:[#allocation10 + $0xdb0] sm:$0xff] }
 0x2b8   : > { %3449 = vmatpush.msrb.mxu0 %v3312_v20  ;;  %3472 = vmatpush.msrb.mxu1 %v3376_v6  ;;  %v2754_v22 = vpop.f32.mrf.mxu3  ;;  %v2777_v17 = vpop.f32.mrf.mxu0  ;;  %v3410_v7 = vld [vmem:[#allocation10 + $0xfb0] sm:$0xff]  ;;  %v3347_v6 = vld [vmem:[#allocation10 + $0xdb8] sm:$0xff] }
 0x2b9   : > { %3495 = vmatpush.msrb.mxu2 %v3313_v21  ;;  %3518 = vmatpush.msrb.mxu3 %v3377_v27  ;;  %v6959_v58 = vadd.f32 %v2754_v22, %v2731_v11  ;;  %v2778_v33 = vadd.f32 %v2777_v17, %v6941_v37  ;;  %v3287_v37 = vld [vmem:[#allocation3 + $0x28] sm:$0xf8]  ;;  %v3411_v21 = vld [vmem:[#allocation10 + $0xfb8] sm:$0xff] }
 0x2ba   : > { %3450 = vmatpush.msrb.mxu0 %v3308_v48  ;;  %3473 = vmatpush.msrb.mxu1 %v3372_v3  ;;  %v2711_v9 = vpop.f32.mrf.mxu1  ;;  %v3425_v25 = vrot.slane %v3287_v37, 3  ;;  %v3406_v48 = vld [vmem:[#allocation10 + $0xf90] sm:$0xff]  ;;  %v3343_v22 = vld [vmem:[#allocation10 + $0xd98] sm:$0xff] }
 0x2bb   : > { %3496 = vmatpush.msrb.mxu2 %v3309_v28  ;;  %3519 = vmatpush.msrb.mxu3 %v3373_v53  ;;  %v6962_v51 = vadd.f32 %v2711_v9, %v2688_v54  ;;  %v3419_v54 = vld [vmem:[#allocation10 + $0xff8] sm:$0xff]  ;;  %v3431_v28 = vrot.slane %v3289_v47, 3  ;;  %v3433_v53 = vrot.slane %v3290_v18, 3  ;;  %v3394_v37 = vld [vmem:[#allocation10 + $0xf30] sm:$0xff] }
 0x2bc   : > { %3451 = vmatpush.msrb.mxu0 %v3304_v49  ;;  %3474 = vmatpush.msrb.mxu1 %v3368_v56  ;;  %v3407_v17 = vld [vmem:[#allocation10 + $0xf98] sm:$0xff]  ;;  %v3382_v50 = vld [vmem:[#allocation10 + $0xed0] sm:$0xff] }
 0x2bd   : > { %3497 = vmatpush.msrb.mxu2 %v3305_v63  ;;  %3520 = vmatpush.msrb.mxu3 %v3369_v15  ;;  %v6996_v56 = vsel %vm3424_vm0, %v3426_v5, %v3431_v28  ;;  %v3338_v63 = vld [vmem:[#allocation10 + $0xd70] sm:$0xff]  ;;  %v3339_v9 = vld [vmem:[#allocation10 + $0xd78] sm:$0xff] }
 0x2be   : > { %3452 = vmatpush.msrb.mxu0 %v3300_v44  ;;  %3475 = vmatpush.msrb.mxu1 %v3364_v4  ;;  %v2823_v24 = vpop.f32.mrf.mxu2  ;;  %v3402_v15 = vld [vmem:[#allocation10 + $0xf70] sm:$0xff]  ;;  %v3403_v44 = vld [vmem:[#allocation10 + $0xf78] sm:$0xff] }
 0x2bf   : > { %3498 = vmatpush.msrb.mxu2 %v3301_v34  ;;  %3521 = vmatpush.msrb.mxu3 %v3365_v30  ;;  %v2824_v8 = vadd.f32 %v2823_v24, %v6943_v57  ;;  %v6975_v57 = vsel %vm3424_vm0, %v3425_v25, %v3426_v5  ;;  %v3398_v4 = vld [vmem:[#allocation10 + $0xf50] sm:$0xff]  ;;  %v3335_v34 = vld [vmem:[#allocation10 + $0xd58] sm:$0xff] }
 0x2c0   : > { %3453 = vmatpush.msrb.mxu0 %v3296_v23  ;;  %3476 = vmatpush.msrb.mxu1 %v3360_v29  ;;  %v2757_v60 = vpop.f32.mrf.mxu3  ;;  %v2780_v62 = vpop.f32.mrf.mxu0  ;;  %v3399_v30 = vld [vmem:[#allocation10 + $0xf58] sm:$0xff]  ;;  %v3330_v29 = vld [vmem:[#allocation10 + $0xd30] sm:$0xff] }
 0x2c1   : > { %3499 = vmatpush.msrb.mxu2 %v3297_v16  ;;  %3522 = vmatpush.msrb.mxu3 %v3361_v43  ;;  %v6969_v55 = vadd.f32 %v2757_v60, %v2734_v45  ;;  %v2781_v11 = vadd.f32 %v2780_v62, %v6953_v12  ;;  %v3355_v12 = vld [vmem:[#allocation10 + $0xdf8] sm:$0xff]  ;;  %v3342_v45 = vld [vmem:[#allocation10 + $0xd90] sm:$0xff] }
 0x2c2   : > { %3454 = vmatpush.msrb.mxu0 %v3292_v1  ;;  %3477 = vmatpush.msrb.mxu1 %v3356_v10  ;;  %v2800_v59 = vpop.f32.mrf.mxu1  ;;  %v3331_v43 = vld [vmem:[#allocation10 + $0xd38] sm:$0xff]  ;;  %v3326_v24 = vld [vmem:[#allocation10 + $0xd10] sm:$0xff] }
 0x2c3   : > { %3500 = vmatpush.msrb.mxu2 %v3293_v36  ;;  %3523 = vmatpush.msrb.mxu3 %v3357_v13  ;;  %v6982_v42 = vadd.f32 %v2800_v59, %v2778_v33  ;;  %v7001_v33 = vsel %vm3424_vm0, %v3429_v61, %v3433_v53  ;;  %v3390_v1 = vld [vmem:[#allocation10 + $0xf10] sm:$0xff]  ;;  %v3327_v10 = vld [vmem:[#allocation10 + $0xd18] sm:$0xff] }
 0x2c4   : > { %3455 = vmatmul.f32.vlgmr.msrb.gmra.mxu0 %v6975_v57  ;;  %3478 = vmatmul.f32.vlgmr.msrb.gmra.mxu1 %v6980_v35  ;;  %v3391_v5 = vld [vmem:[#allocation10 + $0xf18] sm:$0xff]  ;;  %v3322_v61 = vld [vmem:[#allocation10 + $0xcf0] sm:$0xff] }
 0x2c5   : > { %3501 = vmatmul.f32.vlgmr.msrb.gmra.mxu2 %v6975_v57  ;;  %3524 = vmatmul.f32.vlgmr.msrb.gmra.mxu3 %v6980_v35  ;;  %v3323_v13 = vld [vmem:[#allocation10 + $0xcf8] sm:$0xff]  ;;  %v3318_v25 = vld [vmem:[#allocation10 + $0xcd0] sm:$0xff] }
 0x2c6   : > { %3531 = vmatpush.msra.mxu0 %v3354_v19  ;;  %3554 = vmatpush.msra.mxu1 %v3418_v52  ;;  %v2826_v38 = vpop.f32.mrf.mxu2  ;;  %v3387_v60 = vld [vmem:[#allocation10 + $0xef8] sm:$0xff]  ;;  %v3374_v47 = vld [vmem:[#allocation10 + $0xe90] sm:$0xff] }
 0x2c7   : > { %3577 = vmatpush.msra.mxu2 %v3355_v12  ;;  %3600 = vmatpush.msra.mxu3 %v3419_v54  ;;  %v2827_v20 = vadd.f32 %v2826_v38, %v6955_v39  ;;  %v3319_v59 = vld [vmem:[#allocation10 + $0xcd8] sm:$0xff]  ;;  %v3314_v12 = vld [vmem:[#allocation10 + $0xcb0] sm:$0xff] }
 0x2c8   : > { %3532 = vmatpush.msra.mxu0 %v3350_v46  ;;  %3555 = vmatpush.msra.mxu1 %v3414_v40  ;;  %v2846_v27 = vpop.f32.mrf.mxu3  ;;  %v3383_v19 = vld [vmem:[#allocation10 + $0xed8] sm:$0xff]  ;;  %v3378_v54 = vld [vmem:[#allocation10 + $0xeb0] sm:$0xff] }
 0x2c9   : > { %3578 = vmatpush.msra.mxu2 %v3351_v14  ;;  %3601 = vmatpush.msra.mxu3 %v3415_v0  ;;  %v6989_v3 = vadd.f32 %v2846_v27, %v2824_v8  ;;  %v3386_v8 = vld [vmem:[#allocation10 + $0xef0] sm:$0xff]  ;;  %v3315_v46 = vld [vmem:[#allocation10 + $0xcb8] sm:$0xff] }
 0x2ca   : > { %3533 = vmatpush.msra.mxu0 %v3346_v32  ;;  %3556 = vmatpush.msra.mxu1 %v3410_v7  ;;  %v2803_v49 = vpop.f32.mrf.mxu1  ;;  %v3379_v40 = vld [vmem:[#allocation10 + $0xeb8] sm:$0xff]  ;;  %v3306_v38 = vld [vmem:[#allocation10 + $0xc70] sm:$0xff] }
 0x2cb   : > { %3579 = vmatpush.msra.mxu2 %v3347_v6  ;;  %3602 = vmatpush.msra.mxu3 %v3411_v21  ;;  %v6991_v39 = vadd.f32 %v2803_v49, %v2781_v11  ;;  %v3311_v14 = vld [vmem:[#allocation10 + $0xc98] sm:$0xff]  ;;  %v3370_v32 = vld [vmem:[#allocation10 + $0xe70] sm:$0xff] }
 0x2cc   : > { %3534 = vmatpush.msra.mxu0 %v3342_v45  ;;  %3557 = vmatpush.msra.mxu1 %v3406_v48  ;;  %v3375_v0 = vld [vmem:[#allocation10 + $0xe98] sm:$0xff]  ;;  %v3302_v27 = vld [vmem:[#allocation10 + $0xc50] sm:$0xff] }
 0x2cd   : > { %3580 = vmatpush.msra.mxu2 %v3343_v22  ;;  %3603 = vmatpush.msra.mxu3 %v3407_v17  ;;  %v3371_v6 = vld [vmem:[#allocation10 + $0xe78] sm:$0xff]  ;;  %v3366_v45 = vld [vmem:[#allocation10 + $0xe50] sm:$0xff] }
 0x2ce   : > { %3458 = vmatmul.f32.gmra.mxu0 %v6996_v56  ;;  %3481 = vmatmul.f32.gmra.mxu1 %v7001_v33  ;;  %v3303_v53 = vld [vmem:[#allocation10 + $0xc58] sm:$0xff]  ;;  %v3362_v49 = vld [vmem:[#allocation10 + $0xe30] sm:$0xff] }
 0x2cf   : > { %3504 = vmatmul.f32.gmra.mxu2 %v6996_v56  ;;  %3527 = vmatmul.f32.gmra.mxu3 %v7001_v33  ;;  %v3367_v22 = vld [vmem:[#allocation10 + $0xe58] sm:$0xff] }
 0x2d0   : > { %3535 = vmatpush.msra.mxu0 %v3338_v63  ;;  %3558 = vmatpush.msra.mxu1 %v3402_v15  ;;  %v2849_v23 = vpop.f32.mrf.mxu3  ;;  %v3299_v15 = vld [vmem:[#allocation10 + $0xc38] sm:$0xff] }
 0x2d1   : > { %3581 = vmatpush.msra.mxu2 %v3339_v9  ;;  %3604 = vmatpush.msra.mxu3 %v3403_v44  ;;  %v7007_v16 = vadd.f32 %v2849_v23, %v2827_v20  ;;  %v3307_v20 = vld [vmem:[#allocation10 + $0xc78] sm:$0xff]  ;;  %v3696_v23 = vld [vmem:[#allocation10 + $0x11e0] sm:$0xff] }
 0x2d2   : > { %3536 = vmatpush.msra.mxu0 %v3334_v26  ;;  %3559 = vmatpush.msra.mxu1 %v3398_v4  ;;  %v3363_v9 = vld [vmem:[#allocation10 + $0xe38] sm:$0xff]  ;;  %v3294_v26 = vld [vmem:[#allocation10 + $0xc10] sm:$0xff] }
 0x2d3   : > { %3582 = vmatpush.msra.mxu2 %v3335_v34  ;;  %3605 = vmatpush.msra.mxu3 %v3399_v30  ;;  %v3358_v4 = vld [vmem:[#allocation10 + $0xe10] sm:$0xff]  ;;  %v3295_v34 = vld [vmem:[#allocation10 + $0xc18] sm:$0xff] }
 0x2d4   : > { %3537 = vmatpush.msra.mxu0 %v3330_v29  ;;  %3560 = vmatpush.msra.mxu1 %v3394_v37  ;;  %v3359_v30 = vld [vmem:[#allocation10 + $0xe18] sm:$0xff]  ;;  %v3760_v29 = vld [vmem:[#allocation10 + $0x13e0] sm:$0xff] }
 0x2d5   : > { %3583 = vmatpush.msra.mxu2 %v3331_v43  ;;  %3606 = vmatpush.msra.mxu3 %v3395_v31  ;;  %v2869_v36 = vpop.f32.mrf.mxu0  ;;  %v2892_v11 = vpop.f32.mrf.mxu1  ;;  %v3697_v43 = vld [vmem:[#allocation10 + $0x11e8] sm:$0xff] }
 0x2d6   : > { %3538 = vmatpush.msra.mxu0 %v3326_v24  ;;  %3561 = vmatpush.msra.mxu1 %v3390_v1  ;;  %v2870_v62 = vadd.f32 %v2869_v36, %v6957_v41  ;;  %v3310_v41 = vld [vmem:[#allocation10 + $0xc90] sm:$0xff]  ;;  %v3761_v31 = vld [vmem:[#allocation10 + $0x13e8] sm:$0xff]  ;;  %v3692_v1 = vld [vmem:[#allocation10 + $0x11c0] sm:$0xff] }
 0x2d7   : > { %3584 = vmatpush.msra.mxu2 %v3327_v10  ;;  %3607 = vmatpush.msra.mxu3 %v3391_v5  ;;  %v3756_v10 = vld [vmem:[#allocation10 + $0x13c0] sm:$0xff] }
 0x2d8   : > { %3539 = vmatpush.msra.mxu0 %v3322_v61  ;;  %3562 = vmatpush.msra.mxu1 %v3386_v8  ;;  %v7010_v52 = vadd.f32 %v2892_v11, %v2870_v62  ;;  %v3693_v61 = vld [vmem:[#allocation10 + $0x11c8] sm:$0xff]  ;;  %v3752_v36 = vld [vmem:[#allocation10 + $0x13a0] sm:$0xff] }
 0x2d9   : > { %3585 = vmatpush.msra.mxu2 %v3323_v13  ;;  %3608 = vmatpush.msra.mxu3 %v3387_v60  ;;  %v3757_v8 = vld [vmem:[#allocation10 + $0x13c8] sm:$0xff]  ;;  %v3744_v11 = vld [vmem:[#allocation10 + $0x1360] sm:$0xff] }
 0x2da   : > { %3540 = vmatpush.msra.mxu0 %v3318_v25  ;;  %3563 = vmatpush.msra.mxu1 %v3382_v50  ;;  %v3689_v13 = vld [vmem:[#allocation10 + $0x11a8] sm:$0xff]  ;;  %v3680_v50 = vld [vmem:[#allocation10 + $0x1160] sm:$0xff] }
 0x2db   : > { %3586 = vmatpush.msra.mxu2 %v3319_v59  ;;  %3609 = vmatpush.msra.mxu3 %v3383_v19  ;;  %v3753_v60 = vld [vmem:[#allocation10 + $0x13a8] sm:$0xff] }
 0x2dc   : > { %3541 = vmatpush.msra.mxu0 %v3314_v12  ;;  %3564 = vmatpush.msra.mxu1 %v3378_v54  ;;  %v2915_v18 = vpop.f32.mrf.mxu2  ;;  %v2938_v21 = vpop.f32.mrf.mxu3  ;;  %v3685_v62 = vld [vmem:[#allocation10 + $0x1188] sm:$0xff]  ;;  %v3676_v12 = vld [vmem:[#allocation10 + $0x1140] sm:$0xff] }
 0x2dd   : > { %3587 = vmatpush.msra.mxu2 %v3315_v46  ;;  %3610 = vmatpush.msra.mxu3 %v3379_v40  ;;  %v2916_v7 = vadd.f32 %v2915_v18, %v6959_v58  ;;  %v3298_v58 = vld [vmem:[#allocation10 + $0xc30] sm:$0xff]  ;;  %v3749_v25 = vld [vmem:[#allocation10 + $0x1388] sm:$0xff]  ;;  %v3740_v54 = vld [vmem:[#allocation10 + $0x1340] sm:$0xff] }
 0x2de   : > { %3542 = vmatpush.msra.mxu0 %v3310_v41  ;;  %3565 = vmatpush.msra.mxu1 %v3374_v47  ;;  %v3681_v59 = vld [vmem:[#allocation10 + $0x1168] sm:$0xff]  ;;  %v3672_v41 = vld [vmem:[#allocation10 + $0x1120] sm:$0xff] }
 0x2df   : > { %3588 = vmatpush.msra.mxu2 %v3311_v14  ;;  %3611 = vmatpush.msra.mxu3 %v3375_v0  ;;  %v7013_v48 = vadd.f32 %v2938_v21, %v2916_v7  ;;  %v2872_v28 = vpop.f32.mrf.mxu0  ;;  %v2895_v63 = vpop.f32.mrf.mxu1  ;;  %v3745_v19 = vld [vmem:[#allocation10 + $0x1368] sm:$0xff]  ;;  %v3736_v47 = vld [vmem:[#allocation10 + $0x1320] sm:$0xff] }
 0x2e0   : > { %3543 = vmatpush.msra.mxu0 %v3306_v38  ;;  %3566 = vmatpush.msra.mxu1 %v3370_v32  ;;  %v2873_v17 = vadd.f32 %v2872_v28, %v6962_v51  ;;  %v3677_v46 = vld [vmem:[#allocation10 + $0x1148] sm:$0xff]  ;;  %v3668_v18 = vld [vmem:[#allocation10 + $0x1100] sm:$0xff] }
 0x2e1   : > { %3589 = vmatpush.msra.mxu2 %v3307_v20  ;;  %3612 = vmatpush.msra.mxu3 %v3371_v6  ;;  %v3741_v40 = vld [vmem:[#allocation10 + $0x1348] sm:$0xff]  ;;  %v3664_v32 = vld [vmem:[#allocation10 + $0x10e0] sm:$0xff] }
 0x2e2   : > { %3544 = vmatpush.msra.mxu0 %v3302_v27  ;;  %3567 = vmatpush.msra.mxu1 %v3366_v45  ;;  %v7016_v44 = vadd.f32 %v2895_v63, %v2873_v17  ;;  %v3673_v14 = vld [vmem:[#allocation10 + $0x1128] sm:$0xff]  ;;  %v3728_v7 = vld [vmem:[#allocation10 + $0x12e0] sm:$0xff] }
 0x2e3   : > { %3590 = vmatpush.msra.mxu2 %v3303_v53  ;;  %3613 = vmatpush.msra.mxu3 %v3367_v22  ;;  %v3737_v0 = vld [vmem:[#allocation10 + $0x1328] sm:$0xff]  ;;  %v3660_v28 = vld [vmem:[#allocation10 + $0x10c0] sm:$0xff] }
 0x2e4   : > { %3545 = vmatpush.msra.mxu0 %v3298_v58  ;;  %3568 = vmatpush.msra.mxu1 %v3362_v49  ;;  %v3733_v38 = vld [vmem:[#allocation10 + $0x1308] sm:$0xff]  ;;  %v3724_v53 = vld [vmem:[#allocation10 + $0x12c0] sm:$0xff] }
 0x2e5   : > { %3591 = vmatpush.msra.mxu2 %v3299_v15  ;;  %3614 = vmatpush.msra.mxu3 %v3363_v9  ;;  %v3665_v21 = vld [vmem:[#allocation10 + $0x10e8] sm:$0xff]  ;;  %v3656_v49 = vld [vmem:[#allocation10 + $0x10a0] sm:$0xff] }
 0x2e6   : > { %3546 = vmatpush.msra.mxu0 %v3294_v26  ;;  %3569 = vmatpush.msra.mxu1 %v3358_v4  ;;  %v2918_v51 = vpop.f32.mrf.mxu2  ;;  %v2941_v24 = vpop.f32.mrf.mxu3  ;;  %v3729_v27 = vld [vmem:[#allocation10 + $0x12e8] sm:$0xff]  ;;  %v3720_v63 = vld [vmem:[#allocation10 + $0x12a0] sm:$0xff] }
 0x2e7   : > { %3592 = vmatpush.msra.mxu2 %v3295_v34  ;;  %3615 = vmatpush.msra.mxu3 %v3359_v30  ;;  %v2919_v37 = vadd.f32 %v2918_v51, %v6969_v55  ;;  %v3688_v55 = vld [vmem:[#allocation10 + $0x11a0] sm:$0xff]  ;;  %v3661_v22 = vld [vmem:[#allocation10 + $0x10c8] sm:$0xff] }
 0x2e8   : > { %3547 = vmatmul.f32.vlgmr.msra.gmra.mxu0 %v6975_v57  ;;  %3570 = vmatmul.f32.vlgmr.msra.gmra.mxu1 %v6980_v35  ;;  %v3725_v17 = vld [vmem:[#allocation10 + $0x12c8] sm:$0xff]  ;;  %v3652_v26 = vld [vmem:[#allocation10 + $0x1080] sm:$0xff] }
 0x2e9   : > { %3593 = vmatmul.f32.vlgmr.msra.gmra.mxu2 %v6975_v57  ;;  %3616 = vmatmul.f32.vlgmr.msra.gmra.mxu3 %v6980_v35  ;;  %v7023_v5 = vadd.f32 %v2941_v24, %v2919_v37  ;;  %v3684_v57 = vld [vmem:[#allocation10 + $0x1180] sm:$0xff]  ;;  %v3657_v15 = vld [vmem:[#allocation10 + $0x10a8] sm:$0xff] }
 0x2ea   : > { %3782 = vmatpush.msrb.mxu0 %v3696_v23  ;;  %3805 = vmatpush.msrb.mxu1 %v3760_v29  ;;  %v3748_v35 = vld [vmem:[#allocation10 + $0x1380] sm:$0xff]  ;;  %v3721_v9 = vld [vmem:[#allocation10 + $0x12a8] sm:$0xff] }
 0x2eb   : > { %3828 = vmatpush.msrb.mxu2 %v3697_v43  ;;  %3851 = vmatpush.msrb.mxu3 %v3761_v31  ;;  %v3716_v4 = vld [vmem:[#allocation10 + $0x1280] sm:$0xff]  ;;  %v3653_v34 = vld [vmem:[#allocation10 + $0x1088] sm:$0xff] }
 0x2ec   : > { %3783 = vmatpush.msrb.mxu0 %v3692_v1  ;;  %3806 = vmatpush.msrb.mxu1 %v3756_v10  ;;  %v3717_v30 = vld [vmem:[#allocation10 + $0x1288] sm:$0xff]  ;;  %v3712_v29 = vld [vmem:[#allocation10 + $0x1260] sm:$0xff] }
 0x2ed   : > { %3829 = vmatpush.msrb.mxu2 %v3693_v61  ;;  %3852 = vmatpush.msrb.mxu3 %v3757_v8  ;;  %v3649_v43 = vld [vmem:[#allocation10 + $0x1068] sm:$0xff]  ;;  %v3644_v24 = vld [vmem:[#allocation10 + $0x1040] sm:$0xff] }
 0x2ee   : > { %3784 = vmatpush.msrb.mxu0 %v3688_v55  ;;  %3807 = vmatpush.msrb.mxu1 %v3752_v36  ;;  %v3713_v31 = vld [vmem:[#allocation10 + $0x1268] sm:$0xff]  ;;  %v3708_v1 = vld [vmem:[#allocation10 + $0x1240] sm:$0xff] }
 0x2ef   : > { %3830 = vmatpush.msrb.mxu2 %v3689_v13  ;;  %3853 = vmatpush.msrb.mxu3 %v3753_v60  ;;  %v3645_v55 = vld [vmem:[#allocation10 + $0x1048] sm:$0xff]  ;;  %v3640_v60 = vld [vmem:[#allocation10 + $0x1020] sm:$0xff] }
 0x2f0   : > { %3785 = vmatpush.msrb.mxu0 %v3684_v57  ;;  %3808 = vmatpush.msrb.mxu1 %v3748_v35  ;;  %v3709_v36 = vld [vmem:[#allocation10 + $0x1248] sm:$0xff]  ;;  %v3704_v57 = vld [vmem:[#allocation10 + $0x1220] sm:$0xff]  ;;  %v3631_v35 = vld [vmem:[#allocation3 + $0x28] sm:$0xf0] }
 0x2f1   : > { %3831 = vmatpush.msrb.mxu2 %v3685_v62  ;;  %3854 = vmatpush.msrb.mxu3 %v3749_v25  ;;  %v3641_v62 = vld [vmem:[#allocation10 + $0x1028] sm:$0xff] }
 0x2f2   : > { %3550 = vmatmul.f32.gmra.mxu0 %v6996_v56  ;;  %3573 = vmatmul.f32.gmra.mxu1 %v7001_v33  ;;  %v3705_v25 = vld [vmem:[#allocation10 + $0x1228] sm:$0xff] }
 0x2f3   : > { %3596 = vmatmul.f32.gmra.mxu2 %v6996_v56  ;;  %3619 = vmatmul.f32.gmra.mxu3 %v7001_v33  ;;  %v3732_v56 = vld [vmem:[#allocation10 + $0x1300] sm:$0xff]  ;;  %v3669_v33 = vld [vmem:[#allocation10 + $0x1108] sm:$0xff] }
 0x2f4   : > { %3786 = vmatpush.msrb.mxu0 %v3680_v50  ;;  %3809 = vmatpush.msrb.mxu1 %v3744_v11  ;;  %v3632_v50 = vld [vmem:[#allocation3 + $0x10] sm:$0xf0]  ;;  %v3636_v11 = vld [vmem:[#allocation10 + $0x1000] sm:$0xff] }
 0x2f5   : > { %3832 = vmatpush.msrb.mxu2 %v3681_v59  ;;  %3855 = vmatpush.msrb.mxu3 %v3745_v19  ;;  %v3700_v59 = vld [vmem:[#allocation10 + $0x1200] sm:$0xff]  ;;  %v7038_v19 = vld [vmem:[#allocation3 + $0x8] sm:$0xff] }
 0x2f6   : > { %3787 = vmatpush.msrb.mxu0 %v3676_v12  ;;  %3810 = vmatpush.msrb.mxu1 %v3740_v54  ;;  %v3769_v12 = vrot.slane %v7038_v19, 4  ;;  %v3772_v54 = vrot.slane %v6965_v2, 4  ;;  %v3698_v2 = vld [vmem:[#allocation10 + $0x11f0] sm:$0xff] }
 0x2f7   : > { %3833 = vmatpush.msrb.mxu2 %v3677_v46  ;;  %3856 = vmatpush.msrb.mxu3 %v3741_v40  ;;  %v3637_v46 = vld [vmem:[#allocation10 + $0x1008] sm:$0xff]  ;;  %v3662_v19 = vld [vmem:[#allocation10 + $0x10d0] sm:$0xff] }
 0x2f8   : > { %3788 = vmatpush.msrb.mxu0 %v3672_v41  ;;  %3811 = vmatpush.msrb.mxu1 %v3736_v47  ;;  %v3701_v40 = vld [vmem:[#allocation10 + $0x1208] sm:$0xff]  ;;  %v3768_v41 = vrot.slane %v3631_v35, 4  ;;  %v3771_v47 = vrot.slane %v3632_v50, 4  ;;  %v3666_v35 = vld [vmem:[#allocation10 + $0x10f0] sm:$0xff] }
 0x2f9   : > { %3834 = vmatpush.msrb.mxu2 %v3673_v14  ;;  %3857 = vmatpush.msrb.mxu3 %v3737_v0  ;;  %v3112_v20 = vpop.f32.mrf.mxu0  ;;  %v3135_v6 = vpop.f32.mrf.mxu1 }
 0x2fa   : > { %3789 = vmatpush.msrb.mxu0 %v3668_v18  ;;  %3812 = vmatpush.msrb.mxu1 %v3732_v56  ;;  %v3136_v45 = vadd.f32 %v3135_v6, %v3112_v20  ;;  %v7043_v0 = vsel %vm1520_vm6, %v3768_v41, %v3769_v12  ;;  %v7046_v18 = vsel %vm1520_vm6, %v3771_v47, %v3772_v54  ;;  %v3762_v56 = vld [vmem:[#allocation10 + $0x13f0] sm:$0xff]  ;;  %v3633_v6 = vld [vmem:[#allocation3 + $0x18] sm:$0xf]  ;;  %v3659_v47 = vld [vmem:[#allocation10 + $0x10b8] sm:$0xff] }
 0x2fb   : > { %3835 = vmatpush.msrb.mxu2 %v3669_v33  ;;  %3858 = vmatpush.msrb.mxu3 %v3733_v38  ;;  %v3699_v38 = vld [vmem:[#allocation10 + $0x11f8] sm:$0xff]  ;;  %v3758_v20 = vld [vmem:[#allocation10 + $0x13d0] sm:$0xff] }
 0x2fc   : > { %3790 = vmatpush.msrb.mxu0 %v3664_v32  ;;  %3813 = vmatpush.msrb.mxu1 %v3728_v7  ;;  %v7030_v58 = vadd.f32 %v3136_v45, %v6982_v42  ;;  %v3648_v42 = vld [vmem:[#allocation10 + $0x1060] sm:$0xff]  ;;  %v3763_v32 = vld [vmem:[#allocation10 + $0x13f8] sm:$0xff]  ;;  %v3694_v7 = vld [vmem:[#allocation10 + $0x11d0] sm:$0xff] }
 0x2fd   : > { %3836 = vmatpush.msrb.mxu2 %v3665_v21  ;;  %3859 = vmatpush.msrb.mxu3 %v3729_v27  ;;  %v3695_v27 = vld [vmem:[#allocation10 + $0x11d8] sm:$0xff]  ;;  %v3722_v41 = vld [vmem:[#allocation10 + $0x12b0] sm:$0xff] }
 0x2fe   : > { %3791 = vmatpush.msrb.mxu0 %v3660_v28  ;;  %3814 = vmatpush.msrb.mxu1 %v3724_v53  ;;  %v3759_v45 = vld [vmem:[#allocation10 + $0x13d8] sm:$0xff]  ;;  %v3634_v28 = vld [vmem:[#allocation3 + $0x20] sm:$0xf]  ;;  %v3690_v53 = vld [vmem:[#allocation10 + $0x11b0] sm:$0xff] }
 0x2ff   : > { %3837 = vmatpush.msrb.mxu2 %v3661_v22  ;;  %3860 = vmatpush.msrb.mxu3 %v3725_v17  ;;  %v3754_v22 = vld [vmem:[#allocation10 + $0x13b0] sm:$0xff]  ;;  %v3691_v17 = vld [vmem:[#allocation10 + $0x11b8] sm:$0xff] }
 0x300   : > { %3792 = vmatpush.msrb.mxu0 %v3656_v49  ;;  %3815 = vmatpush.msrb.mxu1 %v3720_v63  ;;  %v3158_v51 = vpop.f32.mrf.mxu2  ;;  %v3181_v23 = vpop.f32.mrf.mxu3  ;;  %v3755_v49 = vld [vmem:[#allocation10 + $0x13b8] sm:$0xff]  ;;  %v3686_v63 = vld [vmem:[#allocation10 + $0x1190] sm:$0xff] }
 0x301   : > { %3838 = vmatpush.msrb.mxu2 %v3657_v15  ;;  %3861 = vmatpush.msrb.mxu3 %v3721_v9  ;;  %v3182_v37 = vadd.f32 %v3181_v23, %v3158_v51  ;;  %v3750_v15 = vld [vmem:[#allocation10 + $0x1390] sm:$0xff]  ;;  %v3774_v9 = vrot.slane %v3633_v6, 4  ;;  %v3651_v6 = vld [vmem:[#allocation10 + $0x1078] sm:$0xff] }
 0x302   : > { %3793 = vmatpush.msrb.mxu0 %v3652_v26  ;;  %3816 = vmatpush.msrb.mxu1 %v3716_v4  ;;  %v3687_v26 = vld [vmem:[#allocation10 + $0x1198] sm:$0xff]  ;;  %v3682_v51 = vld [vmem:[#allocation10 + $0x1170] sm:$0xff] }
 0x303   : > { %3839 = vmatpush.msrb.mxu2 %v3653_v34  ;;  %3862 = vmatpush.msrb.mxu3 %v3717_v30  ;;  %v7033_v10 = vadd.f32 %v3182_v37, %v6989_v3  ;;  %v3115_v61 = vpop.f32.mrf.mxu0  ;;  %v3138_v8 = vpop.f32.mrf.mxu1  ;;  %v3751_v4 = vld [vmem:[#allocation10 + $0x1398] sm:$0xff]  ;;  %v7056_v34 = vsel %vm1520_vm6, %v3769_v12, %v3774_v9  ;;  %v3746_v23 = vld [vmem:[#allocation10 + $0x1370] sm:$0xff] }
 0x304   : > { %3794 = vmatpush.msrb.mxu0 %v3648_v42  ;;  %3817 = vmatpush.msrb.mxu1 %v3712_v29  ;;  %v3139_v13 = vadd.f32 %v3138_v8, %v3115_v61  ;;  %v3683_v42 = vld [vmem:[#allocation10 + $0x1178] sm:$0xff]  ;;  %v3678_v37 = vld [vmem:[#allocation10 + $0x1150] sm:$0xff] }
 0x305   : > { %3840 = vmatpush.msrb.mxu2 %v3649_v43  ;;  %3863 = vmatpush.msrb.mxu3 %v3713_v31  ;;  %v3747_v29 = vld [vmem:[#allocation10 + $0x1378] sm:$0xff]  ;;  %v3742_v43 = vld [vmem:[#allocation10 + $0x1350] sm:$0xff] }
 0x306   : > { %3795 = vmatpush.msrb.mxu0 %v3644_v24  ;;  %3818 = vmatpush.msrb.mxu1 %v3708_v1  ;;  %v7036_v3 = vadd.f32 %v3139_v13, %v6991_v39  ;;  %v3679_v31 = vld [vmem:[#allocation10 + $0x1158] sm:$0xff]  ;;  %v3674_v1 = vld [vmem:[#allocation10 + $0x1130] sm:$0xff] }
 0x307   : > { %3841 = vmatpush.msrb.mxu2 %v3645_v55  ;;  %3864 = vmatpush.msrb.mxu3 %v3709_v36  ;;  %v3743_v24 = vld [vmem:[#allocation10 + $0x1358] sm:$0xff]  ;;  %v3738_v61 = vld [vmem:[#allocation10 + $0x1330] sm:$0xff] }
 0x308   : > { %3796 = vmatpush.msrb.mxu0 %v3640_v60  ;;  %3819 = vmatpush.msrb.mxu1 %v3704_v57  ;;  %v3675_v8 = vld [vmem:[#allocation10 + $0x1138] sm:$0xff]  ;;  %v3670_v36 = vld [vmem:[#allocation10 + $0x1110] sm:$0xff] }
 0x309   : > { %3842 = vmatpush.msrb.mxu2 %v3641_v62  ;;  %3865 = vmatpush.msrb.mxu3 %v3705_v25  ;;  %v3739_v55 = vld [vmem:[#allocation10 + $0x1338] sm:$0xff]  ;;  %v3734_v13 = vld [vmem:[#allocation10 + $0x1310] sm:$0xff] }
 0x30a   : > { %3797 = vmatpush.msrb.mxu0 %v3636_v11  ;;  %3820 = vmatpush.msrb.mxu1 %v3700_v59  ;;  %v3161_v39 = vpop.f32.mrf.mxu2  ;;  %v3184_v14 = vpop.f32.mrf.mxu3  ;;  %v3671_v60 = vld [vmem:[#allocation10 + $0x1118] sm:$0xff]  ;;  %v3730_v62 = vld [vmem:[#allocation10 + $0x12f0] sm:$0xff] }
 0x30b   : > { %3843 = vmatpush.msrb.mxu2 %v3637_v46  ;;  %3866 = vmatpush.msrb.mxu3 %v3701_v40  ;;  %v3185_v33 = vadd.f32 %v3184_v14, %v3161_v39  ;;  %v3735_v57 = vld [vmem:[#allocation10 + $0x1318] sm:$0xff]  ;;  %v3726_v12 = vld [vmem:[#allocation10 + $0x12d0] sm:$0xff] }
 0x30c   : > { %3798 = vmatmul.f32.vlgmr.msrb.gmra.mxu0 %v7043_v0  ;;  %3821 = vmatmul.f32.vlgmr.msrb.gmra.mxu1 %v7046_v18  ;;  %v3667_v11 = vld [vmem:[#allocation10 + $0x10f8] sm:$0xff]  ;;  %v3658_v40 = vld [vmem:[#allocation10 + $0x10b0] sm:$0xff] }
 0x30d   : > { %3844 = vmatmul.f32.vlgmr.msrb.gmra.mxu2 %v7043_v0  ;;  %3867 = vmatmul.f32.vlgmr.msrb.gmra.mxu3 %v7046_v18  ;;  %v7053_v21 = vadd.f32 %v3185_v33, %v7007_v16  ;;  %v3776_v16 = vrot.slane %v3634_v28, 4  ;;  %v3731_v59 = vld [vmem:[#allocation10 + $0x12f8] sm:$0xff]  ;;  %v3654_v14 = vld [vmem:[#allocation10 + $0x1090] sm:$0xff] }
 0x30e   : > { %3874 = vmatpush.msra.mxu0 %v3698_v2  ;;  %3897 = vmatpush.msra.mxu1 %v3762_v56  ;;  %v3727_v46 = vld [vmem:[#allocation10 + $0x12d8] sm:$0xff]  ;;  %v3718_v2 = vld [vmem:[#allocation10 + $0x1290] sm:$0xff] }
 0x30f   : > { %3920 = vmatpush.msra.mxu2 %v3699_v38  ;;  %3943 = vmatpush.msra.mxu3 %v3763_v32  ;;  %v7059_v30 = vsel %vm1520_vm6, %v3772_v54, %v3776_v16  ;;  %v3663_v54 = vld [vmem:[#allocation10 + $0x10d8] sm:$0xff]  ;;  %v3710_v28 = vld [vmem:[#allocation10 + $0x1250] sm:$0xff] }
 0x310   : > { %3875 = vmatpush.msra.mxu0 %v3694_v7  ;;  %3898 = vmatpush.msra.mxu1 %v3758_v20  ;;  %v3723_v39 = vld [vmem:[#allocation10 + $0x12b8] sm:$0xff]  ;;  %v3650_v7 = vld [vmem:[#allocation10 + $0x1070] sm:$0xff] }
 0x311   : > { %3921 = vmatpush.msra.mxu2 %v3695_v27  ;;  %3944 = vmatpush.msra.mxu3 %v3759_v45  ;;  %v3655_v56 = vld [vmem:[#allocation10 + $0x1098] sm:$0xff]  ;;  %v3714_v20 = vld [vmem:[#allocation10 + $0x1270] sm:$0xff] }
 0x312   : > { %3876 = vmatpush.msra.mxu0 %v3690_v53  ;;  %3899 = vmatpush.msra.mxu1 %v3754_v22  ;;  %v3719_v33 = vld [vmem:[#allocation10 + $0x1298] sm:$0xff]  ;;  %v3646_v45 = vld [vmem:[#allocation10 + $0x1050] sm:$0xff] }
 0x313   : > { %3922 = vmatpush.msra.mxu2 %v3691_v17  ;;  %3945 = vmatpush.msra.mxu3 %v3755_v49  ;;  %v3715_v27 = vld [vmem:[#allocation10 + $0x1278] sm:$0xff]  ;;  %v3706_v9 = vld [vmem:[#allocation10 + $0x1230] sm:$0xff] }
 0x314   : > { %3877 = vmatpush.msra.mxu0 %v3686_v63  ;;  %3900 = vmatpush.msra.mxu1 %v3750_v15  ;;  %v3647_v17 = vld [vmem:[#allocation10 + $0x1058] sm:$0xff]  ;;  %v3642_v15 = vld [vmem:[#allocation10 + $0x1030] sm:$0xff] }
 0x315   : > { %3923 = vmatpush.msra.mxu2 %v3687_v26  ;;  %3946 = vmatpush.msra.mxu3 %v3751_v4  ;;  %v3711_v49 = vld [vmem:[#allocation10 + $0x1258] sm:$0xff] }
 0x316   : > { %3801 = vmatmul.f32.gmra.mxu0 %v7056_v34  ;;  %3824 = vmatmul.f32.gmra.mxu1 %v7059_v30  ;;  %v3643_v16 = vld [vmem:[#allocation10 + $0x1038] sm:$0xff] }
 0x317   : > { %3847 = vmatmul.f32.gmra.mxu2 %v7056_v34  ;;  %3870 = vmatmul.f32.gmra.mxu3 %v7059_v30  ;;  %v3707_v26 = vld [vmem:[#allocation10 + $0x1238] sm:$0xff] }
 0x318   : > { %3878 = vmatpush.msra.mxu0 %v3682_v51  ;;  %3901 = vmatpush.msra.mxu1 %v3746_v23  ;;  %v3638_v51 = vld [vmem:[#allocation10 + $0x1010] sm:$0xff] }
 0x319   : > { %3924 = vmatpush.msra.mxu2 %v3683_v42  ;;  %3947 = vmatpush.msra.mxu3 %v3747_v29  ;;  %v3702_v23 = vld [vmem:[#allocation10 + $0x1210] sm:$0xff]  ;;  %v3639_v42 = vld [vmem:[#allocation10 + $0x1018] sm:$0xff] }
 0x31a   : > { %3879 = vmatpush.msra.mxu0 %v3678_v37  ;;  %3902 = vmatpush.msra.mxu1 %v3742_v43  ;;  %v3703_v29 = vld [vmem:[#allocation10 + $0x1218] sm:$0xff] }
 0x31b   : > { %3925 = vmatpush.msra.mxu2 %v3679_v31  ;;  %3948 = vmatpush.msra.mxu3 %v3743_v24 }
 0x31c   : > { %3880 = vmatpush.msra.mxu0 %v3674_v1  ;;  %3903 = vmatpush.msra.mxu1 %v3738_v61 }
 0x31d   : > { %3926 = vmatpush.msra.mxu2 %v3675_v8  ;;  %3949 = vmatpush.msra.mxu3 %v3739_v55  ;;  %v7065_v25 = vpop.f32.mrf.mxu0  ;;  %v7067_v50 = vpop.f32.mrf.mxu1 }
 0x31e   : > { %3881 = vmatpush.msra.mxu0 %v3670_v36  ;;  %3904 = vmatpush.msra.mxu1 %v3734_v13 }
 0x31f   : > { %3927 = vmatpush.msra.mxu2 %v3671_v60  ;;  %3950 = vmatpush.msra.mxu3 %v3735_v57 }
 0x320   : > { %3882 = vmatpush.msra.mxu0 %v3666_v35  ;;  %3905 = vmatpush.msra.mxu1 %v3730_v62 }
 0x321   : > { %3928 = vmatpush.msra.mxu2 %v3667_v11  ;;  %3951 = vmatpush.msra.mxu3 %v3731_v59 }
 0x322   : > { %3883 = vmatpush.msra.mxu0 %v3662_v19  ;;  %3906 = vmatpush.msra.mxu1 %v3726_v12 }
 0x323   : > { %3929 = vmatpush.msra.mxu2 %v3663_v54  ;;  %3952 = vmatpush.msra.mxu3 %v3727_v46  ;;  %v7107_v54 = vld [vmem:[#allocation12] sm:$0xf] }
 0x324   : > { %3884 = vmatpush.msra.mxu0 %v3658_v40  ;;  %3907 = vmatpush.msra.mxu1 %v3722_v41  ;;  %v7069_v38 = vpop.f32.mrf.mxu2  ;;  %v7071_v32 = vpop.f32.mrf.mxu3 }
 0x325   : > { %3930 = vmatpush.msra.mxu2 %v3659_v47  ;;  %3953 = vmatpush.msra.mxu3 %v3723_v39  ;;  %v3976_v47 = vperm.slane %v7107_v54, 0  ;;  %v7111_v39 = vld [vmem:[#allocation13] sm:$0xf] }
 0x326   : > { %3885 = vmatpush.msra.mxu0 %v3654_v14  ;;  %3908 = vmatpush.msra.mxu1 %v3718_v2 }
 0x327   : > { %3931 = vmatpush.msra.mxu2 %v3655_v56  ;;  %3954 = vmatpush.msra.mxu3 %v3719_v33  ;;  %v3207_v53 = vpop.f32.mrf.mxu0  ;;  %v3230_v22 = vpop.f32.mrf.mxu1  ;;  %v4450_v56 = vld [vmem:[#allocation15 + $0x78] sm:$0xff] }
 0x328   : > { %3886 = vmatpush.msra.mxu0 %v3650_v7  ;;  %3909 = vmatpush.msra.mxu1 %v3714_v20  ;;  %v3231_v63 = vadd.f32 %v3230_v22, %v3207_v53  ;;  %v4466_v33 = vld [vmem:[#allocation15 + $0xf8] sm:$0xff]  ;;  %v4481_v53 = vld [vmem:[#allocation15 + $0x170] sm:$0xff] }
 0x329   : > { %3932 = vmatpush.msra.mxu2 %v3651_v6  ;;  %3955 = vmatpush.msra.mxu3 %v3715_v27  ;;  %v4482_v7 = vld [vmem:[#allocation15 + $0x178] sm:$0xff]  ;;  %v3977_v27 = vperm.slane %v7107_v54, 1 }
 0x32a   : > { %3887 = vmatpush.msra.mxu0 %v3646_v45  ;;  %3910 = vmatpush.msra.mxu1 %v3710_v28  ;;  %v7074_v4 = vadd.f32 %v3231_v63, %v7016_v44  ;;  %v4498_v45 = vld [vmem:[#allocation15 + $0x1f8] sm:$0xff]  ;;  %v4465_v28 = vld [vmem:[#allocation15 + $0xf0] sm:$0xff]  ;;  %v3995_v63 = vperm.slane %v7111_v39, 1 }
 0x32b   : > { %3933 = vmatpush.msra.mxu2 %v3647_v17  ;;  %3956 = vmatpush.msra.mxu3 %v3711_v49  ;;  %v3994_v17 = vperm.slane %v7111_v39, 0 }
 0x32c   : > { %3888 = vmatpush.msra.mxu0 %v3642_v15  ;;  %3911 = vmatpush.msra.mxu1 %v3706_v9  ;;  %v4497_v9 = vld [vmem:[#allocation15 + $0x1f0] sm:$0xff] }
 0x32d   : > { %3934 = vmatpush.msra.mxu2 %v3643_v16  ;;  %3957 = vmatpush.msra.mxu3 %v3707_v26  ;;  %v4448_v26 = vld [vmem:[#allocation15 + $0x68] sm:$0xff] }
 0x32e   : > { %3889 = vmatpush.msra.mxu0 %v3638_v51  ;;  %3912 = vmatpush.msra.mxu1 %v3702_v23  ;;  %v3253_v37 = vpop.f32.mrf.mxu2  ;;  %v3276_v43 = vpop.f32.mrf.mxu3  ;;  %v4464_v51 = vld [vmem:[#allocation15 + $0xe8] sm:$0xff] }
 0x32f   : > { %3935 = vmatpush.msra.mxu2 %v3639_v42  ;;  %3958 = vmatpush.msra.mxu3 %v3703_v29  ;;  %v3277_v31 = vadd.f32 %v3276_v43, %v3253_v37  ;;  %v4480_v23 = vld [vmem:[#allocation15 + $0x168] sm:$0xff]  ;;  %v4447_v43 = vld [vmem:[#allocation15 + $0x60] sm:$0xff] }
 0x330   : > { %3890 = vmatmul.f32.vlgmr.msra.gmra.mxu0 %v7043_v0  ;;  %3913 = vmatmul.f32.vlgmr.msra.gmra.mxu1 %v7046_v18  ;;  %v4496_v29 = vld [vmem:[#allocation15 + $0x1e8] sm:$0xff] }
 0x331   : > { %3936 = vmatmul.f32.vlgmr.msra.gmra.mxu2 %v7043_v0  ;;  %3959 = vmatmul.f32.vlgmr.msra.gmra.mxu3 %v7046_v18  ;;  %v7081_v44 = vadd.f32 %v3277_v31, %v7023_v5  ;;  %v4463_v31 = vld [vmem:[#allocation15 + $0xe0] sm:$0xff] }
 0x332   : > { %4726 = vmatpush.msrb.mxu0 %v4450_v56  ;;  %4746 = vmatpush.msrb.mxu1 %v4466_v33  ;;  %v4461_v56 = vld [vmem:[#allocation15 + $0xd0] sm:$0xff] }
 0x333   : > { %4766 = vmatpush.msrb.mxu2 %v4482_v7  ;;  %4786 = vmatpush.msrb.mxu3 %v4498_v45 }
 0x334   : > { %4747 = vmatpush.msrb.mxu1 %v4465_v28 }
 0x335   : > { %4767 = vmatpush.msrb.mxu2 %v4481_v53  ;;  %4787 = vmatpush.msrb.mxu3 %v4497_v9 }
 0x336   : > { %4748 = vmatpush.msrb.mxu1 %v4464_v51  ;;  %v4475_v51 = vld [vmem:[#allocation15 + $0x140] sm:$0xff] }
 0x337   : > { %4768 = vmatpush.msrb.mxu2 %v4480_v23  ;;  %4788 = vmatpush.msrb.mxu3 %v4496_v29  ;;  %v4491_v23 = vld [vmem:[#allocation15 + $0x1c0] sm:$0xff]  ;;  %v4442_v29 = vld [vmem:[#allocation15 + $0x38] sm:$0xff] }
 0x338   : > { %3893 = vmatmul.f32.gmra.mxu0 %v7056_v34  ;;  %3916 = vmatmul.f32.gmra.mxu1 %v7059_v30 }
 0x339   : > { %3939 = vmatmul.f32.gmra.mxu2 %v7056_v34  ;;  %3962 = vmatmul.f32.gmra.mxu3 %v7059_v30 }
 0x33a   : > { %4749 = vmatpush.msrb.mxu1 %v4463_v31 }
 0x341   : > { %v3456_v24 = vpop.f32.mrf.mxu0  ;;  %v3479_v1 = vpop.f32.mrf.mxu1 }
 0x342   : > { %v3480_v11 = vadd.f32 %v3479_v1, %v3456_v24  ;;  %v4479_v24 = vld [vmem:[#allocation15 + $0x160] sm:$0xff] }
 0x343   : > { %4769 = vmatpush.msrb.mxu2 %v4479_v24  ;;  %v4441_v24 = vld [vmem:[#allocation15 + $0x30] sm:$0xff] }
 0x344   : > { %v3623_v46 = vadd.f32 %v3480_v11, %v7030_v58  ;;  %v4449_v58 = vld [vmem:[#allocation15 + $0x70] sm:$0xff]  ;;  %v4446_v11 = vld [vmem:[#allocation15 + $0x58] sm:$0xff] }
 0x345   : > { %4727 = vmatpush.msrb.mxu0 %v4449_v58 }
 0x347   : > { %4728 = vmatpush.msrb.mxu0 %v4448_v26  ;;  %v4459_v26 = vld [vmem:[#allocation15 + $0xc0] sm:$0xff] }
 0x348   : > { %v3502_v61 = vpop.f32.mrf.mxu2  ;;  %v3525_v8 = vpop.f32.mrf.mxu3 }
 0x349   : > { %v3526_v40 = vadd.f32 %v3525_v8, %v3502_v61  ;;  %4729 = vmatpush.msrb.mxu0 %v4447_v43  ;;  %v4495_v8 = vld [vmem:[#allocation15 + $0x1e0] sm:$0xff]  ;;  %v4474_v43 = vld [vmem:[#allocation15 + $0x138] sm:$0xff] }
 0x34a   : > { %4789 = vmatpush.msrb.mxu3 %v4495_v8 }
 0x34b   : > { %v3459_v55 = vpop.f32.mrf.mxu0  ;;  %v3482_v36 = vpop.f32.mrf.mxu1  ;;  %v3624_v20 = vadd.f32 %v3526_v40, %v7033_v10  ;;  %4730 = vmatpush.msrb.mxu0 %v4446_v11  ;;  %v4472_v11 = vld [vmem:[#allocation15 + $0x128] sm:$0xff] }
 0x34c   : > { %v3483_v16 = vadd.f32 %v3482_v36, %v3459_v55 }
 0x34e   : > { %v3627_v55 = vadd.f32 %v3483_v16, %v7036_v3  ;;  %v4477_v3 = vld [vmem:[#allocation15 + $0x150] sm:$0xff]  ;;  %v4443_v16 = vld [vmem:[#allocation15 + $0x40] sm:$0xff] }
 0x352   : > { %v7087_v0 = vpop.f32.mrf.mxu2  ;;  %v7089_v18 = vpop.f32.mrf.mxu3 }
 0x353   : > { %v3529_v36 = vadd.f32 %v7089_v18, %v7087_v0  ;;  %v4493_v18 = vld [vmem:[#allocation15 + $0x1d0] sm:$0xff] }
 0x365   : > { %v7091_v5 = vpop.f32.mrf.mxu0  ;;  %v7093_v13 = vpop.f32.mrf.mxu1 }
 0x36c   : > { %v7095_v60 = vpop.f32.mrf.mxu2  ;;  %v7097_v57 = vpop.f32.mrf.mxu3 }
 0x36f   : > { %v7099_v34 = vpop.f32.mrf.mxu0  ;;  %v7101_v30 = vpop.f32.mrf.mxu1 }
 0x376   : > { %v7103_v35 = vpop.f32.mrf.mxu2  ;;  %v7105_v62 = vpop.f32.mrf.mxu3 }
 0x389   : > { %v3799_v59 = vpop.f32.mrf.mxu0  ;;  %v3822_v19 = vpop.f32.mrf.mxu1 }
 0x38a   : > { %v3823_v12 = vadd.f32 %v3822_v19, %v3799_v59  ;;  %v4462_v59 = vld [vmem:[#allocation15 + $0xd8] sm:$0xff] }
 0x38b   : > { %v4478_v19 = vld [vmem:[#allocation15 + $0x158] sm:$0xff]  ;;  %4750 = vmatpush.msrb.mxu1 %v4462_v59  ;;  %v3228_v59 = vadd.f32 %v7067_v50, %v7065_v25  ;;  %v4487_v25 = vld [vmem:[#allocation15 + $0x1a0] sm:$0xff]  ;;  %v3572_v50 = vadd.f32 %v7093_v13, %v7091_v5  ;;  %v4485_v5 = vld [vmem:[#allocation15 + $0x190] sm:$0xff] }
 0x38c   : > { %v3966_v41 = vadd.f32 %v3823_v12, %v3623_v46  ;;  %v4494_v46 = vld [vmem:[#allocation15 + $0x1d8] sm:$0xff]  ;;  %4770 = vmatpush.msrb.mxu2 %v4478_v19  ;;  %v4488_v19 = vld [vmem:[#allocation15 + $0x1a8] sm:$0xff] }
 0x38d   : > { %4790 = vmatpush.msrb.mxu3 %v4494_v46  ;;  %4751 = vmatpush.msrb.mxu1 %v4461_v56  ;;  %v4471_v56 = vld [vmem:[#allocation15 + $0x120] sm:$0xff]  ;;  %v4436_v13 = vld [vmem:[#allocation15 + $0x8] sm:$0xff] }
 0x38e   : > { %v3984_v22 = vmul.f32 %v3976_v47, %v3966_v41  ;;  %4771 = vmatpush.msrb.mxu2 %v4477_v3  ;;  %v4438_v3 = vld [vmem:[#allocation15 + $0x18] sm:$0xff] }
 0x38f   : > { %4791 = vmatpush.msrb.mxu3 %v4493_v18  ;;  %v3281_v18 = vadd.f32 %v3228_v59, %v7010_v52  ;;  %v3274_v52 = vadd.f32 %v7071_v32, %v7069_v38  ;;  %v3575_v38 = vadd.f32 %v7101_v30, %v7099_v34  ;;  %v4562_v32 = vld [vmem:[#allocation15 + $0x3f8] sm:$0xff]  ;;  %v4561_v34 = vld [vmem:[#allocation15 + $0x3f0] sm:$0xff]  ;;  %v4512_v30 = vld [vmem:[#allocation15 + $0x268] sm:$0xff]  ;;  %v3979_v59 = vperm.slane %v7107_v54, 3 }
 0x390   : > { %v3845_v14 = vpop.f32.mrf.mxu2  ;;  %v3868_v2 = vpop.f32.mrf.mxu3  ;;  %v4002_v1 = vadd.f32 %v3994_v17, %v3984_v22 }
 0x391   : > { %v3869_v6 = vadd.f32 %v3868_v2, %v3845_v14  ;;  %v4445_v2 = vld [vmem:[#allocation15 + $0x50] sm:$0xff] }
 0x392   : > { %v4010_v33 = vmax.f32 %v4002_v1, 0.0  ;;  %4731 = vmatpush.msrb.mxu0 %v4445_v2  ;;  %v4457_v1 = vld [vmem:[#allocation15 + $0xb0] sm:$0xff]  ;;  %v4455_v2 = vld [vmem:[#allocation15 + $0xa0] sm:$0xff] }
 0x393   : > { %v3967_v49 = vadd.f32 %v3869_v6, %v3624_v20  ;;  %v3802_v10 = vpop.f32.mrf.mxu0  ;;  %v3825_v15 = vpop.f32.mrf.mxu1  ;;  %v3628_v20 = vadd.f32 %v3529_v36, %v7053_v21  ;;  %v4460_v21 = vld [vmem:[#allocation15 + $0xc8] sm:$0xff] }
 0x394   : > { %v3826_v37 = vadd.f32 %v3825_v15, %v3802_v10  ;;  %v4476_v10 = vld [vmem:[#allocation15 + $0x148] sm:$0xff]  ;;  %4752 = vmatpush.msrb.mxu1 %v4460_v21 }
 0x395   : > { %v3985_v42 = vmul.f32 %v3977_v27, %v3967_v49  ;;  %v4444_v49 = vld [vmem:[#allocation15 + $0x48] sm:$0xff]  ;;  %4772 = vmatpush.msrb.mxu2 %v4476_v10 }
 0x396   : > { %v3970_v40 = vadd.f32 %v3826_v37, %v3627_v55  ;;  %4732 = vmatpush.msrb.mxu0 %v4444_v49  ;;  %v4492_v15 = vld [vmem:[#allocation15 + $0x1c8] sm:$0xff]  ;;  %4753 = vmatpush.msrb.mxu1 %v4459_v26  ;;  %v4458_v37 = vld [vmem:[#allocation15 + $0xb8] sm:$0xff] }
 0x397   : > { %v4003_v61 = vadd.f32 %v3995_v63, %v3985_v42  ;;  %4792 = vmatpush.msrb.mxu3 %v4492_v15  ;;  %4773 = vmatpush.msrb.mxu2 %v4475_v51  ;;  %v4456_v36 = vld [vmem:[#allocation15 + $0xa8] sm:$0xff]  ;;  %v3625_v15 = vadd.f32 %v3572_v50, %v3281_v18  ;;  %v4435_v51 = vld [vmem:[#allocation15] sm:$0xff] }
 0x398   : > { %v3988_v53 = vmul.f32 %v3976_v47, %v3970_v40  ;;  %4733 = vmatpush.msrb.mxu0 %v4443_v16  ;;  %4754 = vmatpush.msrb.mxu1 %v4458_v37  ;;  %v4452_v10 = vld [vmem:[#allocation15 + $0x88] sm:$0xff]  ;;  %v4483_v37 = vld [vmem:[#allocation15 + $0x180] sm:$0xff] }
 0x399   : > { %v4011_v12 = vmax.f32 %v4003_v61, 0.0  ;;  %4793 = vmatpush.msrb.mxu3 %v4491_v23  ;;  %4774 = vmatpush.msrb.mxu2 %v4474_v43  ;;  %v4473_v61 = vld [vmem:[#allocation15 + $0x130] sm:$0xff]  ;;  %v4468_v16 = vld [vmem:[#allocation15 + $0x108] sm:$0xff]  ;;  %v3978_v23 = vperm.slane %v7107_v54, 2  ;;  %v4514_v43 = vld [vmem:[#allocation15 + $0x278] sm:$0xff] }
 0x39a   : > { %v3848_v41 = vpop.f32.mrf.mxu2  ;;  %v3871_v14 = vpop.f32.mrf.mxu3  ;;  %v4006_v47 = vadd.f32 %v3994_v17, %v3988_v53  ;;  %4734 = vmatpush.msrb.mxu0 %v4442_v29  ;;  %4755 = vmatpush.msrb.mxu1 %v4457_v1  ;;  %v4489_v17 = vld [vmem:[#allocation15 + $0x1b0] sm:$0xff]  ;;  %v4484_v26 = vld [vmem:[#allocation15 + $0x188] sm:$0xff]  ;;  %v4527_v18 = vld [vmem:[#allocation15 + $0x2e0] sm:$0xff] }
 0x39b   : > { %v4026_v7 = vrot.slane %v4011_v12, 6  ;;  %v3872_v0 = vadd.f32 %v3871_v14, %v3848_v41  ;;  %4775 = vmatpush.msrb.mxu2 %v4473_v61  ;;  %v4439_v14 = vld [vmem:[#allocation15 + $0x20] sm:$0xff]  ;;  %v4453_v53 = vld [vmem:[#allocation15 + $0x90] sm:$0xff]  ;;  %v3282_v61 = vadd.f32 %v3274_v52, %v7013_v48  ;;  %v4560_v50 = vld [vmem:[#allocation15 + $0x3e8] sm:$0xff] }
 0x39c   : > { %4735 = vmatpush.msrb.mxu0 %v4441_v24  ;;  %v4014_v8 = vmax.f32 %v4006_v47, 0.0  ;;  %4756 = vmatpush.msrb.mxu1 %v4456_v36  ;;  %v4451_v47 = vld [vmem:[#allocation15 + $0x80] sm:$0xff]  ;;  %v4546_v24 = vld [vmem:[#allocation15 + $0x378] sm:$0xff]  ;;  %v4513_v1 = vld [vmem:[#allocation15 + $0x270] sm:$0xff] }
 0x39d   : > { %v7130_v6 = vsel %vm1516_vm2, %v4010_v33, %v4026_v7  ;;  %v7133_v45 = vsel %vm1522_vm4, %v4010_v33, %v4026_v7  ;;  %v7136_v58 = vsel %vm1518_vm3, %v4010_v33, %v4026_v7  ;;  %v7139_v28 = vsel %vm1524_vm5, %v4026_v7, %v4010_v33  ;;  %4776 = vmatpush.msrb.mxu2 %v4472_v11  ;;  %v4454_v33 = vld [vmem:[#allocation15 + $0x98] sm:$0xff]  ;;  %v4520_v54 = vld [vmem:[#allocation15 + $0x2a8] sm:$0xff] }
 0x39e   : > { %v3971_v22 = vadd.f32 %v3872_v0, %v3628_v20  ;;  %4757 = vmatpush.msrb.mxu1 %v4455_v2  ;;  %v4470_v7 = vld [vmem:[#allocation15 + $0x118] sm:$0xff]  ;;  %v4437_v20 = vld [vmem:[#allocation15 + $0x10] sm:$0xff]  ;;  %v4544_v2 = vld [vmem:[#allocation15 + $0x368] sm:$0xff] }
 0x39f   : > { %4777 = vmatpush.msrb.mxu2 %v4471_v56  ;;  %v4486_v0 = vld [vmem:[#allocation15 + $0x198] sm:$0xff]  ;;  %v3629_v56 = vadd.f32 %v3575_v38, %v7074_v4 }
 0x3a0   : > { %v3989_v9 = vmul.f32 %v3977_v27, %v3971_v22  ;;  %v4490_v27 = vld [vmem:[#allocation15 + $0x1b8] sm:$0xff]  ;;  %4758 = vmatpush.msrb.mxu1 %v4454_v33  ;;  %v4469_v22 = vld [vmem:[#allocation15 + $0x110] sm:$0xff] }
 0x3a1   : > { %4794 = vmatpush.msrb.mxu3 %v4490_v27  ;;  %4778 = vmatpush.msrb.mxu2 %v4470_v7  ;;  %v3618_v27 = vadd.f32 %v7097_v57, %v7095_v60  ;;  %v4529_v60 = vld [vmem:[#allocation15 + $0x2f0] sm:$0xff]  ;;  %v4510_v4 = vld [vmem:[#allocation15 + $0x258] sm:$0xff] }
 0x3a2   : > { %v4007_v42 = vadd.f32 %v3995_v63, %v3989_v9  ;;  %v4440_v63 = vld [vmem:[#allocation15 + $0x28] sm:$0xff]  ;;  %4759 = vmatpush.msrb.mxu1 %v4453_v53  ;;  %v4545_v57 = vld [vmem:[#allocation15 + $0x370] sm:$0xff] }
 0x3a3   : > { %4795 = vmatpush.msrb.mxu3 %v4489_v17  ;;  %4736 = vmatpush.msrb.mxu0 %v4440_v63  ;;  %v3626_v36 = vadd.f32 %v3618_v27, %v3282_v61  ;;  %v4524_v27 = vld [vmem:[#allocation15 + $0x2c8] sm:$0xff] }
 0x3a4   : > { %v4015_v31 = vmax.f32 %v4007_v42, 0.0  ;;  %4779 = vmatpush.msrb.mxu2 %v4469_v22  ;;  %v4467_v42 = vld [vmem:[#allocation15 + $0x100] sm:$0xff]  ;;  %4760 = vmatpush.msrb.mxu1 %v4452_v10  ;;  %v4558_v10 = vld [vmem:[#allocation15 + $0x3d8] sm:$0xff] }
 0x3a5   : > { %4796 = vmatpush.msrb.mxu3 %v4488_v19  ;;  %4737 = vmatpush.msrb.mxu0 %v4439_v14  ;;  %v4528_v14 = vld [vmem:[#allocation15 + $0x2e8] sm:$0xff]  ;;  %v4559_v22 = vld [vmem:[#allocation15 + $0x3e0] sm:$0xff] }
 0x3a6   : > { %v4029_v55 = vrot.slane %v4015_v31, 6  ;;  %4780 = vmatpush.msrb.mxu2 %v4468_v16  ;;  %v4530_v31 = vld [vmem:[#allocation15 + $0x2f8] sm:$0xff]  ;;  %4761 = vmatpush.msrb.mxu1 %v4451_v47  ;;  %v4557_v47 = vld [vmem:[#allocation15 + $0x3d0] sm:$0xff] }
 0x3a7   : > { %4797 = vmatpush.msrb.mxu3 %v4487_v25  ;;  %4738 = vmatpush.msrb.mxu0 %v4438_v3  ;;  %v4511_v3 = vld [vmem:[#allocation15 + $0x260] sm:$0xff] }
 0x3a8   : > { %v7152_v12 = vsel %vm1516_vm2, %v4014_v8, %v4029_v55  ;;  %v7155_v46 = vsel %vm1522_vm4, %v4014_v8, %v4029_v55  ;;  %v7158_v40 = vsel %vm1518_vm3, %v4014_v8, %v4029_v55  ;;  %v7161_v41 = vsel %vm1524_vm5, %v4029_v55, %v4014_v8  ;;  %4781 = vmatpush.msrb.mxu2 %v4467_v42  ;;  %v4508_v42 = vld [vmem:[#allocation15 + $0x248] sm:$0xff] }
 0x3a9   : > { %4798 = vmatpush.msrb.mxu3 %v4486_v0  ;;  %4739 = vmatpush.msrb.mxu0 %v4437_v20  ;;  %v3996_v8 = vperm.slane %v7111_v39, 2  ;;  %v3997_v0 = vperm.slane %v7111_v39, 3  ;;  %v4543_v20 = vld [vmem:[#allocation15 + $0x360] sm:$0xff] }
 0x3aa   : > { %4826 = vmatpush.msra.mxu1 %v4530_v31  ;;  %4846 = vmatpush.msra.mxu2 %v4546_v24  ;;  %v4540_v31 = vld [vmem:[#allocation15 + $0x348] sm:$0xff]  ;;  %v4551_v39 = vld [vmem:[#allocation15 + $0x3a0] sm:$0xff] }
 0x3ab   : > { %4799 = vmatpush.msrb.mxu3 %v4485_v5  ;;  %4740 = vmatpush.msrb.mxu0 %v4436_v13  ;;  %v4526_v5 = vld [vmem:[#allocation15 + $0x2d8] sm:$0xff]  ;;  %v4556_v24 = vld [vmem:[#allocation15 + $0x3c8] sm:$0xff] }
 0x3ac   : > { %4827 = vmatpush.msra.mxu1 %v4529_v60  ;;  %4847 = vmatpush.msra.mxu2 %v4545_v57  ;;  %v4542_v13 = vld [vmem:[#allocation15 + $0x358] sm:$0xff] }
 0x3ad   : > { %v3891_v49 = vpop.f32.mrf.mxu0  ;;  %v3914_v21 = vpop.f32.mrf.mxu1  ;;  %4800 = vmatpush.msrb.mxu3 %v4484_v26  ;;  %4741 = vmatpush.msrb.mxu0 %v4435_v51  ;;  %v4525_v26 = vld [vmem:[#allocation15 + $0x2d0] sm:$0xff] }
 0x3ae   : > { %v3915_v9 = vadd.f32 %v3914_v21, %v3891_v49  ;;  %4828 = vmatpush.msra.mxu1 %v4528_v14  ;;  %4848 = vmatpush.msra.mxu2 %v4544_v2  ;;  %v3621_v49 = vadd.f32 %v7105_v62, %v7103_v35  ;;  %v4541_v51 = vld [vmem:[#allocation15 + $0x350] sm:$0xff]  ;;  %v4538_v14 = vld [vmem:[#allocation15 + $0x338] sm:$0xff] }
 0x3af   : > { %4801 = vmatpush.msrb.mxu3 %v4483_v37  ;;  %4806 = vmatpush.msra.mxu0 %v4514_v43 }
 0x3b0   : > { %v3968_v29 = vadd.f32 %v3915_v9, %v3625_v15  ;;  %4829 = vmatpush.msra.mxu1 %v4527_v18  ;;  %4849 = vmatpush.msra.mxu2 %v4543_v20  ;;  %v4509_v15 = vld [vmem:[#allocation15 + $0x250] sm:$0xff]  ;;  %v4552_v18 = vld [vmem:[#allocation15 + $0x3a8] sm:$0xff]  ;;  %v4503_v20 = vld [vmem:[#allocation15 + $0x220] sm:$0xff] }
 0x3b1   : > { %4866 = vmatpush.msra.mxu3 %v4562_v32  ;;  %4807 = vmatpush.msra.mxu0 %v4513_v1  ;;  %v4507_v1 = vld [vmem:[#allocation15 + $0x240] sm:$0xff] }
 0x3b2   : > { %v3986_v17 = vmul.f32 %v3978_v23, %v3968_v29  ;;  %4830 = vmatpush.msra.mxu1 %v4526_v5  ;;  %4850 = vmatpush.msra.mxu2 %v4542_v13  ;;  %v3630_v29 = vadd.f32 %v3621_v49, %v7081_v44  ;;  %v4523_v44 = vld [vmem:[#allocation15 + $0x2c0] sm:$0xff]  ;;  %v4502_v5 = vld [vmem:[#allocation15 + $0x218] sm:$0xff] }
 0x3b3   : > { %4867 = vmatpush.msra.mxu3 %v4561_v34  ;;  %4808 = vmatpush.msra.mxu0 %v4512_v30  ;;  %v4555_v34 = vld [vmem:[#allocation15 + $0x3c0] sm:$0xff]  ;;  %v4506_v30 = vld [vmem:[#allocation15 + $0x238] sm:$0xff] }
 0x3b4   : > { %v3937_v55 = vpop.f32.mrf.mxu2  ;;  %v3960_v63 = vpop.f32.mrf.mxu3  ;;  %v4004_v33 = vadd.f32 %v3996_v8, %v3986_v17  ;;  %4831 = vmatpush.msra.mxu1 %v4525_v26  ;;  %4851 = vmatpush.msra.mxu2 %v4541_v51  ;;  %v4539_v17 = vld [vmem:[#allocation15 + $0x340] sm:$0xff]  ;;  %v4518_v13 = vld [vmem:[#allocation15 + $0x298] sm:$0xff] }
 0x3b5   : > { %v3961_v11 = vadd.f32 %v3960_v63, %v3937_v55  ;;  %v3894_v48 = vpop.f32.mrf.mxu0  ;;  %v3917_v19 = vpop.f32.mrf.mxu1  ;;  %4868 = vmatpush.msra.mxu3 %v4560_v50  ;;  %4809 = vmatpush.msra.mxu0 %v4511_v3  ;;  %v4537_v50 = vld [vmem:[#allocation15 + $0x330] sm:$0xff] }
 0x3b6   : > { %v3918_v25 = vadd.f32 %v3917_v19, %v3894_v48  ;;  %v4012_v9 = vmax.f32 %v4004_v33, 0.0  ;;  %4832 = vmatpush.msra.mxu1 %v4524_v27  ;;  %4852 = vmatpush.msra.mxu2 %v4540_v31  ;;  %v4522_v19 = vld [vmem:[#allocation15 + $0x2b8] sm:$0xff]  ;;  %v4553_v3 = vld [vmem:[#allocation15 + $0x3b0] sm:$0xff]  ;;  %v4504_v33 = vld [vmem:[#allocation15 + $0x228] sm:$0xff] }
 0x3b7   : > { %v3969_v7 = vadd.f32 %v3961_v11, %v3626_v36  ;;  %4869 = vmatpush.msra.mxu3 %v4559_v22  ;;  %4810 = vmatpush.msra.mxu0 %v4510_v4  ;;  %v4519_v22 = vld [vmem:[#allocation15 + $0x2a0] sm:$0xff] }
 0x3b8   : > { %v3972_v53 = vadd.f32 %v3918_v25, %v3629_v56  ;;  %v4027_v38 = vrot.slane %v4012_v9, 4  ;;  %4833 = vmatpush.msra.mxu1 %v4523_v44  ;;  %4853 = vmatpush.msra.mxu2 %v4539_v17  ;;  %v4535_v4 = vld [vmem:[#allocation15 + $0x320] sm:$0xff]  ;;  %v4501_v9 = vld [vmem:[#allocation15 + $0x210] sm:$0xff] }
 0x3b9   : > { %v3987_v21 = vmul.f32 %v3979_v59, %v3969_v7  ;;  %4870 = vmatpush.msra.mxu3 %v4558_v10  ;;  %4811 = vmatpush.msra.mxu0 %v4509_v15  ;;  %v4534_v10 = vld [vmem:[#allocation15 + $0x318] sm:$0xff] }
 0x3ba   : > { %v3990_v35 = vmul.f32 %v3978_v23, %v3972_v53  ;;  %4834 = vmatpush.msra.mxu1 %v4522_v19  ;;  %4854 = vmatpush.msra.mxu2 %v4538_v14  ;;  %v4550_v15 = vld [vmem:[#allocation15 + $0x398] sm:$0xff]  ;;  %v4531_v19 = vld [vmem:[#allocation15 + $0x300] sm:$0xff] }
 0x3bb   : > { %v4005_v16 = vadd.f32 %v3997_v0, %v3987_v21  ;;  %4871 = vmatpush.msra.mxu3 %v4557_v47  ;;  %4812 = vmatpush.msra.mxu0 %v4508_v42  ;;  %v4517_v47 = vld [vmem:[#allocation15 + $0x290] sm:$0xff] }
 0x3bc   : > { %v3940_v62 = vpop.f32.mrf.mxu2  ;;  %v3963_v52 = vpop.f32.mrf.mxu3  ;;  %v4008_v61 = vadd.f32 %v3996_v8, %v3990_v35  ;;  %4855 = vmatpush.msra.mxu2 %v4537_v50  ;;  %v4533_v42 = vld [vmem:[#allocation15 + $0x310] sm:$0xff] }
 0x3bd   : > { %v4013_v37 = vmax.f32 %v4005_v16, 0.0  ;;  %v3964_v43 = vadd.f32 %v3963_v52, %v3940_v62  ;;  %4872 = vmatpush.msra.mxu3 %v4556_v24  ;;  %4813 = vmatpush.msra.mxu0 %v4507_v1 }
 0x3be   : > { %v4016_v25 = vmax.f32 %v4008_v61, 0.0  ;;  %v4516_v61 = vld [vmem:[#allocation15 + $0x288] sm:$0xff] }
 0x3bf   : > { %v4028_v32 = vrot.slane %v4013_v37, 2  ;;  %v3973_v23 = vadd.f32 %v3964_v43, %v3630_v29  ;;  %4873 = vmatpush.msra.mxu3 %v4555_v34  ;;  %4814 = vmatpush.msra.mxu0 %v4506_v30  ;;  %v4499_v34 = vld [vmem:[#allocation15 + $0x200] sm:$0xff] }
 0x3c0   : > { %v4030_v53 = vrot.slane %v4016_v25, 4 }
 0x3c1   : > { %v4033_v60 = vsel %vm1518_vm3, %v4027_v38, %v4028_v32  ;;  %v4036_v57 = vsel %vm1524_vm5, %v4028_v32, %v4027_v38  ;;  %v4040_v55 = vsel %vm1516_vm2, %v4027_v38, %v4028_v32  ;;  %v4044_v63 = vsel %vm1522_vm4, %v4027_v38, %v4028_v32  ;;  %v4549_v38 = vld [vmem:[#allocation15 + $0x390] sm:$0xff]  ;;  %v4500_v32 = vld [vmem:[#allocation15 + $0x208] sm:$0xff] }
 0x3c2   : > { %v4034_v36 = vsel %vm1520_vm6, %v7130_v6, %v4033_v60  ;;  %v4037_v8 = vsel %vm1526_vm7, %v7133_v45, %v4036_v57  ;;  %v7203_v11 = vsel %vm1520_vm6, %v4040_v55, %v7136_v58  ;;  %v7207_v48 = vsel %vm1526_vm7, %v4044_v63, %v7139_v28  ;;  %v4554_v6 = vld [vmem:[#allocation15 + $0x3b8] sm:$0xff]  ;;  %v4505_v45 = vld [vmem:[#allocation15 + $0x230] sm:$0xff]  ;;  %v4548_v63 = vld [vmem:[#allocation15 + $0x388] sm:$0xff] }
 0x3c3   : > { %v4038_v2 = vrot.slane %v4037_v8, 2  ;;  %4062 = vst [vmem:[#allocation1] ss:$4 sm:$0xff] %v4034_v36  ;;  %v3991_v56 = vmul.f32 %v3979_v59, %v3973_v23  ;;  %v4521_v58 = vld [vmem:[#allocation15 + $0x2b0] sm:$0xff]  ;;  %4874 = vmatpush.msra.mxu3 %v4554_v6  ;;  %4815 = vmatpush.msra.mxu0 %v4505_v45  ;;  %v4536_v59 = vld [vmem:[#allocation15 + $0x328] sm:$0xff]  ;;  %v4046_v49 = vrot.slane %v7207_v48, 6 }
 0x3c4   : > { %4835 = vmatpush.msra.mxu1 %v4521_v58  ;;  %4856 = vmatpush.msra.mxu2 %v4536_v59  ;;  %v4515_v48 = vld [vmem:[#allocation15 + $0x280] sm:$0xff] }
 0x3c5   : > { %4068 = vst [vmem:[#allocation1 + $0x20] ss:$4 sm:$0xff] %v4038_v2  ;;  %v4009_v28 = vadd.f32 %v3997_v0, %v3991_v56  ;;  %4875 = vmatpush.msra.mxu3 %v4553_v3  ;;  %4816 = vmatpush.msra.mxu0 %v4504_v33  ;;  %v4042_v0 = vrot.slane %v7203_v11, 4  ;;  %v4547_v45 = vld [vmem:[#allocation15 + $0x380] sm:$0xff] }
 0x3c6   : > { %4836 = vmatpush.msra.mxu1 %v4520_v54  ;;  %4857 = vmatpush.msra.mxu2 %v4535_v4 }
 0x3c7   : > { %v4017_v7 = vmax.f32 %v4009_v28, 0.0  ;;  %4876 = vmatpush.msra.mxu3 %v4552_v18  ;;  %4817 = vmatpush.msra.mxu0 %v4503_v20 }
 0x3c8   : > { %4837 = vmatpush.msra.mxu1 %v4519_v22  ;;  %4858 = vmatpush.msra.mxu2 %v4534_v10 }
 0x3c9   : > { %v4031_v21 = vrot.slane %v4017_v7, 2  ;;  %4877 = vmatpush.msra.mxu3 %v4551_v39  ;;  %4818 = vmatpush.msra.mxu0 %v4502_v5 }
 0x3ca   : > { %v4063_v16 = vld.sshfl [vmem:[#allocation1] sm:$0xff pattern:$0x73625140]  ;;  %v4064_v26 = vld.sshfl [vmem:[#allocation1 + $0x8] sm:$0xff pattern:$0x73625140]  ;;  %4838 = vmatpush.msra.mxu1 %v4518_v13  ;;  %4859 = vmatpush.msra.mxu2 %v4533_v42 }
 0x3cb   : > { %v4048_v51 = vsel %vm1518_vm3, %v4030_v53, %v4031_v21  ;;  %v4051_v35 = vsel %vm1524_vm5, %v4031_v21, %v4030_v53  ;;  %v4055_v62 = vsel %vm1516_vm2, %v4030_v53, %v4031_v21  ;;  %v4059_v52 = vsel %vm1522_vm4, %v4030_v53, %v4031_v21  ;;  %v4065_v29 = vld.sshfl [vmem:[#allocation1 + $0x10] sm:$0xff pattern:$0x73625140]  ;;  %v4066_v37 = vld.sshfl [vmem:[#allocation1 + $0x18] sm:$0xff pattern:$0x73625140]  ;;  %4878 = vmatpush.msra.mxu3 %v4550_v15 }
 0x3cc   : > { %v7221_v43 = vsel %vm1520_vm6, %v7152_v12, %v4048_v51  ;;  %v7225_v27 = vsel %vm1526_vm7, %v7155_v46, %v4051_v35  ;;  %v7229_v31 = vsel %vm1520_vm6, %v4055_v62, %v7158_v40  ;;  %v7233_v24 = vsel %vm1526_vm7, %v4059_v52, %v7161_v41  ;;  %v4069_v23 = vld.sshfl [vmem:[#allocation1 + $0x20] sm:$0xff pattern:$0x73625140]  ;;  %v4070_v1 = vld.sshfl [vmem:[#allocation1 + $0x28] sm:$0xff pattern:$0x73625140]  ;;  %4819 = vmatpush.msra.mxu0 %v4501_v9 }
 0x3cd   : > { %v4053_v12 = vrot.slane %v7225_v27, 2  ;;  %v4532_v46 = vld [vmem:[#allocation15 + $0x308] sm:$0xff]  ;;  %v4071_v44 = vld.sshfl [vmem:[#allocation1 + $0x30] sm:$0xff pattern:$0x73625140]  ;;  %v4135_v17 = vsel %vm1516_vm2, %v4063_v16, -inf  ;;  %4839 = vmatpush.msra.mxu1 %v4517_v47  ;;  %4879 = vmatpush.msra.mxu3 %v4549_v38 }
 0x3ce   : > { %v4072_v40 = vld.sshfl [vmem:[#allocation1 + $0x38] sm:$0xff pattern:$0x73625140]  ;;  %4073 = vst [vmem:[#allocation1] ss:$4 sm:$0xff] %v4042_v0  ;;  %v4136_v41 = vrot.slane %v4135_v17, 4  ;;  %4820 = vmatpush.msra.mxu0 %v4500_v32  ;;  %4860 = vmatpush.msra.mxu2 %v4532_v46 }
 0x3cf   : > { %4078 = vst [vmem:[#allocation1 + $0x20] ss:$4 sm:$0xff] %v4046_v49  ;;  %v4142_v60 = vsel %vm1516_vm2, %v4064_v26, -inf  ;;  %v4149_v57 = vsel %vm1516_vm2, %v4065_v29, -inf  ;;  %v4156_v55 = vsel %vm1516_vm2, %v4066_v37, -inf  ;;  %v4163_v11 = vsel %vm1516_vm2, %v4069_v23, -inf  ;;  %4840 = vmatpush.msra.mxu1 %v4516_v61  ;;  %4880 = vmatpush.msra.mxu3 %v4548_v63 }
 0x3d0   : > { %v4143_v30 = vrot.slane %v4142_v60, 4  ;;  %v4150_v36 = vrot.slane %v4149_v57, 4  ;;  %v4157_v8 = vrot.slane %v4156_v55, 4  ;;  %v4137_v14 = vmax.f32 %v4135_v17, %v4136_v41  ;;  %4821 = vmatpush.msra.mxu0 %v4499_v34  ;;  %4861 = vmatpush.msra.mxu2 %v4531_v19 }
 0x3d1   : > { %v4164_v2 = vrot.slane %v4163_v11, 4  ;;  %v4170_v56 = vsel %vm1516_vm2, %v4070_v1, -inf  ;;  %v4177_v6 = vsel %vm1516_vm2, %v4071_v44, -inf  ;;  %v4057_v3 = vrot.slane %v7229_v31, 4  ;;  %4841 = vmatpush.msra.mxu1 %v4515_v48  ;;  %4881 = vmatpush.msra.mxu3 %v4547_v45 }
 0x3d2   : > { %v4144_v25 = vmax.f32 %v4142_v60, %v4143_v30  ;;  %v4151_v58 = vmax.f32 %v4149_v57, %v4150_v36  ;;  %v4158_v50 = vmax.f32 %v4156_v55, %v4157_v8  ;;  %v4171_v28 = vrot.slane %v4170_v56, 4 }
 0x3d3   : > { %v4061_v33 = vrot.slane %v7233_v24, 6  ;;  %v4138_v54 = vrot.slane %v4137_v14, 2  ;;  %v4178_v59 = vrot.slane %v4177_v6, 4  ;;  %v4184_v53 = vsel %vm1516_vm2, %v4072_v40, -inf }
 0x3d4   : > { %v4145_v7 = vrot.slane %v4144_v25, 2  ;;  %v4152_v18 = vrot.slane %v4151_v58, 2  ;;  %v4159_v20 = vrot.slane %v4158_v50, 2  ;;  %v4165_v0 = vmax.f32 %v4163_v11, %v4164_v2 }
 0x3d5   : > { %v4074_v22 = vld.sshfl [vmem:[#allocation1] sm:$0xff pattern:$0x73625140]  ;;  %v4075_v4 = vld.sshfl [vmem:[#allocation1 + $0x8] sm:$0xff pattern:$0x73625140]  ;;  %v4139_v39 = vmax.f32 %v4137_v14, %v4138_v54  ;;  %v4172_v49 = vmax.f32 %v4170_v56, %v4171_v28  ;;  %v4179_v9 = vmax.f32 %v4177_v6, %v4178_v59 }
 0x3d6   : > { %v4076_v21 = vld.sshfl [vmem:[#allocation1 + $0x10] sm:$0xff pattern:$0x73625140]  ;;  %v4077_v5 = vld.sshfl [vmem:[#allocation1 + $0x18] sm:$0xff pattern:$0x73625140]  ;;  %v4146_v13 = vmax.f32 %v4144_v25, %v4145_v7  ;;  %v4153_v10 = vmax.f32 %v4151_v58, %v4152_v18  ;;  %v4160_v15 = vmax.f32 %v4158_v50, %v4159_v20 }
 0x3d7   : > { %v4079_v16 = vld.sshfl [vmem:[#allocation1 + $0x20] sm:$0xff pattern:$0x73625140]  ;;  %v4080_v26 = vld.sshfl [vmem:[#allocation1 + $0x28] sm:$0xff pattern:$0x73625140] }
 0x3d8   : > { %v4081_v51 = vld.sshfl [vmem:[#allocation1 + $0x30] sm:$0xff pattern:$0x73625140]  ;;  %v4082_v35 = vld.sshfl [vmem:[#allocation1 + $0x38] sm:$0xff pattern:$0x73625140] }
 0x3d9   : > { %v4140_v62 = vrot.slane %v4139_v39, 1  ;;  %v4147_v52 = vrot.slane %v4146_v13, 1  ;;  %v4154_v47 = vrot.slane %v4153_v10, 1  ;;  %v4161_v42 = vrot.slane %v4160_v15, 1  ;;  %4083 = vst [vmem:[#allocation1] ss:$4 sm:$0xff] %v7221_v43 }
 0x3da   : > { %v4166_v29 = vrot.slane %v4165_v0, 2  ;;  %v4173_v37 = vrot.slane %v4172_v49, 2  ;;  %v4180_v38 = vrot.slane %v4179_v9, 2  ;;  %v4185_v32 = vrot.slane %v4184_v53, 4  ;;  %4088 = vst [vmem:[#allocation1 + $0x20] ss:$4 sm:$0xff] %v4053_v12 }
 0x3db   : > { %v7249_v23 = vmax.f32 %v4139_v39, %v4140_v62  ;;  %v7251_v1 = vmax.f32 %v4146_v13, %v4147_v52  ;;  %v7253_v61 = vmax.f32 %v4153_v10, %v4154_v47  ;;  %v7255_v46 = vmax.f32 %v4160_v15, %v4161_v42 }
 0x3dc   : > { %v4167_v44 = vmax.f32 %v4165_v0, %v4166_v29  ;;  %v4174_v40 = vmax.f32 %v4172_v49, %v4173_v37  ;;  %v4181_v17 = vmax.f32 %v4179_v9, %v4180_v38  ;;  %v4186_v41 = vmax.f32 %v4184_v53, %v4185_v32 }
 0x3dd   : > { %v4191_v43 = vsel %vm1516_vm2, %v4074_v22, -inf  ;;  %v4198_v60 = vsel %vm1516_vm2, %v4075_v4, -inf  ;;  %v4205_v57 = vsel %vm1516_vm2, %v4076_v21, -inf  ;;  %v4212_v27 = vsel %vm1516_vm2, %v4077_v5, -inf }
 0x3de   : > { %v4168_v12 = vrot.slane %v4167_v44, 1  ;;  %v4175_v55 = vrot.slane %v4174_v40, 1  ;;  %v4182_v63 = vrot.slane %v4181_v17, 1  ;;  %v4187_v34 = vrot.slane %v4186_v41, 2 }
 0x3df   : > { %v4192_v30 = vrot.slane %v4191_v43, 4  ;;  %v4199_v36 = vrot.slane %v4198_v60, 4  ;;  %v4206_v8 = vrot.slane %v4205_v57, 4  ;;  %v4213_v11 = vrot.slane %v4212_v27, 4 }
 0x3e0   : > { %v7261_v48 = vmax.f32 %v4167_v44, %v4168_v12  ;;  %v4176_v19 = vmax.f32 %v4174_v40, %v4175_v55  ;;  %v7263_v14 = vmax.f32 %v4181_v17, %v4182_v63  ;;  %v4188_v2 = vmax.f32 %v4186_v41, %v4187_v34  ;;  %v4084_v0 = vld.sshfl [vmem:[#allocation1] sm:$0xff pattern:$0x73625140]  ;;  %v4085_v10 = vld.sshfl [vmem:[#allocation1 + $0x8] sm:$0xff pattern:$0x73625140] }
 0x3e1   : > { %v4193_v56 = vmax.f32 %v4191_v43, %v4192_v30  ;;  %v4200_v6 = vmax.f32 %v4198_v60, %v4199_v36  ;;  %v4207_v45 = vmax.f32 %v4205_v57, %v4206_v8  ;;  %v4214_v25 = vmax.f32 %v4212_v27, %v4213_v11  ;;  %v4086_v15 = vld.sshfl [vmem:[#allocation1 + $0x10] sm:$0xff pattern:$0x73625140]  ;;  %v4087_v62 = vld.sshfl [vmem:[#allocation1 + $0x18] sm:$0xff pattern:$0x73625140] }
 0x3e2   : > { %v4189_v58 = vrot.slane %v4188_v2, 1  ;;  %v4219_v50 = vsel %vm1516_vm2, %v4079_v16, -inf  ;;  %v4226_v28 = vsel %vm1516_vm2, %v4080_v26, -inf  ;;  %v4233_v54 = vsel %vm1516_vm2, %v4081_v51, -inf  ;;  %4093 = vst [vmem:[#allocation1] ss:$4 sm:$0xff] %v4057_v3 }
 0x3e3   : > { %v4194_v59 = vrot.slane %v4193_v56, 2  ;;  %v4201_v7 = vrot.slane %v4200_v6, 2  ;;  %v4208_v18 = vrot.slane %v4207_v45, 2  ;;  %v4215_v20 = vrot.slane %v4214_v25, 2 }
 0x3e4   : > { %v4190_v53 = vmax.f32 %v4188_v2, %v4189_v58  ;;  %v4220_v22 = vrot.slane %v4219_v50, 4  ;;  %v4227_v4 = vrot.slane %v4226_v28, 4  ;;  %v4234_v39 = vrot.slane %v4233_v54, 4  ;;  %v4089_v12 = vld.sshfl [vmem:[#allocation1 + $0x20] sm:$0xff pattern:$0x73625140] }
 0x3e5   : > { %v4195_v49 = vmax.f32 %v4193_v56, %v4194_v59  ;;  %v4202_v21 = vmax.f32 %v4200_v6, %v4201_v7  ;;  %v4209_v5 = vmax.f32 %v4207_v45, %v4208_v18  ;;  %v4216_v13 = vmax.f32 %v4214_v25, %v4215_v20  ;;  %v4090_v34 = vld.sshfl [vmem:[#allocation1 + $0x28] sm:$0xff pattern:$0x73625140]  ;;  %v7273_v30 = vld.sshfl [vmem:[#allocation1 + $0x30] sm:$0xff pattern:$0x73625140] }
 0x3e6   : > { %v4221_v9 = vmax.f32 %v4219_v50, %v4220_v22  ;;  %v4228_v16 = vmax.f32 %v4226_v28, %v4227_v4  ;;  %v4235_v26 = vmax.f32 %v4233_v54, %v4234_v39  ;;  %v4240_v51 = vsel %vm1516_vm2, %v4082_v35, -inf  ;;  %v7277_v45 = vld.sshfl [vmem:[#allocation1 + $0x38] sm:$0xff pattern:$0x73625140] }
 0x3e7   : > { %v4196_v52 = vrot.slane %v4195_v49, 1  ;;  %v4203_v47 = vrot.slane %v4202_v21, 1  ;;  %v4210_v42 = vrot.slane %v4209_v5, 1  ;;  %v4217_v29 = vrot.slane %v4216_v13, 1  ;;  %4098 = vst [vmem:[#allocation1 + $0x20] ss:$4 sm:$0xff] %v4061_v33 }
 0x3e8   : > { %v4222_v37 = vrot.slane %v4221_v9, 2  ;;  %v4229_v38 = vrot.slane %v4228_v16, 2  ;;  %v4236_v32 = vrot.slane %v4235_v26, 2  ;;  %v4241_v44 = vrot.slane %v4240_v51, 4 }
 0x3e9   : > { %v4197_v40 = vmax.f32 %v4195_v49, %v4196_v52  ;;  %v4204_v17 = vmax.f32 %v4202_v21, %v4203_v47  ;;  %v4211_v41 = vmax.f32 %v4209_v5, %v4210_v42  ;;  %v4218_v43 = vmax.f32 %v4216_v13, %v4217_v29 }
 0x3ea   : > { %v4223_v60 = vmax.f32 %v4221_v9, %v4222_v37  ;;  %v4230_v57 = vmax.f32 %v4228_v16, %v4229_v38  ;;  %v4237_v27 = vmax.f32 %v4235_v26, %v4236_v32  ;;  %v4242_v35 = vmax.f32 %v4240_v51, %v4241_v44 }
 0x3eb   : > { %v4360_v55 = vmax.f32 %v7251_v1, %v7255_v46  ;;  %v4362_v63 = vmax.f32 %v4176_v19, %v4190_v53  ;;  %v4361_v31 = vmax.f32 %v7261_v48, %v7263_v14  ;;  %v4364_v3 = vmax.f32 %v4204_v17, %v4218_v43 }
 0x3ec   : > { %v4224_v36 = vrot.slane %v4223_v60, 1  ;;  %v4231_v8 = vrot.slane %v4230_v57, 1  ;;  %v4238_v11 = vrot.slane %v4237_v27, 1  ;;  %v4243_v2 = vrot.slane %v4242_v35, 2 }
 0x3ed   : > { %v4391_v56 = vrot.slane %v4360_v55, 4  ;;  %v4392_v6 = vrot.slane %v4362_v63, 4  ;;  %v4359_v1 = vmax.f32 %v7249_v23, %v7253_v61  ;;  %v4363_v46 = vmax.f32 %v4197_v40, %v4211_v41 }
 0x3ee   : > { %v4225_v25 = vmax.f32 %v4223_v60, %v4224_v36  ;;  %v4244_v58 = vmax.f32 %v4242_v35, %v4243_v2  ;;  %v4232_v19 = vmax.f32 %v4230_v57, %v4231_v8  ;;  %v4393_v50 = vrot.slane %v4364_v3, 4  ;;  %v4094_v3 = vld.sshfl [vmem:[#allocation1] sm:$0xff pattern:$0x73625140] }
 0x3ef   : > { %v4400_v28 = vsel %vm1520_vm6, %v4361_v31, %v4392_v6  ;;  %v4239_v54 = vmax.f32 %v4237_v27, %v4238_v11  ;;  %v4399_v14 = vsel %vm1520_vm6, %v4359_v1, %v4391_v56  ;;  %v4247_v18 = vsel %vm1516_vm2, %v4084_v0, -inf  ;;  %v4095_v56 = vld.sshfl [vmem:[#allocation1 + $0x8] sm:$0xff pattern:$0x73625140] }
 0x3f0   : > { %v4245_v48 = vrot.slane %v4244_v58, 1  ;;  %v4407_v59 = vrot.slane %v4400_v28, 7  ;;  %v4401_v7 = vsel %vm1520_vm6, %v4363_v46, %v4393_v50  ;;  %v4254_v20 = vsel %vm1516_vm2, %v4085_v10, -inf  ;;  %v4578_v50 = vld [vmem:[#allocation15 + $0x478] sm:$0xff] }
 0x3f1   : > { %v4261_v23 = vsel %vm1516_vm2, %v4086_v15, -inf  ;;  %v4410_v33 = vrot.slane %v4401_v7, 6  ;;  %v5765_v53 = vmov 1935823168   ;;  %v4248_v39 = vrot.slane %v4247_v18, 4  ;;  %v4594_v28 = vld [vmem:[#allocation15 + $0x4f8] sm:$0xff] }
 0x3f2   : > { %v4246_v61 = vmax.f32 %v4244_v58, %v4245_v48  ;;  %v4408_v24 = vsel %vm2260_vm13, %v4407_v59, %v4399_v14  ;;  %v7290_v22 = vunpack.c.l.s4 %v5765_v53  ;;  %v4255_v49 = vrot.slane %v4254_v20, 4  ;;  %v4610_v48 = vld [vmem:[#allocation15 + $0x578] sm:$0xff] }
 0x3f3   : > { %v4409_v4 = vsel %vm2249_vm10, %v4407_v59, %v4408_v24  ;;  %v4262_v21 = vrot.slane %v4261_v23, 4  ;;  %v4268_v0 = vsel %vm1516_vm2, %v4087_v62, -inf  ;;  %v4249_v10 = vmax.f32 %v4247_v18, %v4248_v39  ;;  %v4626_v14 = vld [vmem:[#allocation15 + $0x5f8] sm:$0xff]  ;;  %v4097_v59 = vld.sshfl [vmem:[#allocation1 + $0x18] sm:$0xff pattern:$0x73625140] }
 0x3f4   : > { %v4366_v5 = vmax.f32 %v4232_v19, %v4246_v61  ;;  %v4411_v13 = vsel %vm2262_vm14, %v4410_v33, %v4409_v4  ;;  %v4256_v9 = vmax.f32 %v4254_v20, %v4255_v49  ;;  %v4275_v16 = vsel %vm1516_vm2, %v4089_v12, -inf  ;;  %v4577_v39 = vld [vmem:[#allocation15 + $0x470] sm:$0xff] }
 0x3f5   : > { %v4263_v15 = vmax.f32 %v4261_v23, %v4262_v21  ;;  %v4365_v26 = vmax.f32 %v4225_v25, %v4239_v54  ;;  %v4429_v52 = vunpack.c.0.s8 %v7290_v22  ;;  %v4269_v47 = vrot.slane %v4268_v0, 4  ;;  %v4096_v54 = vld.sshfl [vmem:[#allocation1 + $0x10] sm:$0xff pattern:$0x73625140]  ;;  %v4593_v49 = vld [vmem:[#allocation15 + $0x4f0] sm:$0xff]  ;;  %v4640_v22 = vld [vmem:[#allocation15 + $0x668] sm:$0xff] }
 0x3f6   : > { %v4394_v51 = vrot.slane %v4366_v5, 4  ;;  %v4412_v42 = vsel %vm2251_vm11, %v4410_v33, %v4411_v13  ;;  %v4250_v29 = vrot.slane %v4249_v10, 2  ;;  %v4257_v37 = vrot.slane %v4256_v9, 2  ;;  %v4099_v33 = vld.sshfl [vmem:[#allocation1 + $0x20] sm:$0xff pattern:$0x73625140] }
 0x3f7   : > { %v4264_v38 = vrot.slane %v4263_v15, 2  ;;  %v4270_v44 = vmax.f32 %v4268_v0, %v4269_v47  ;;  %v4276_v40 = vrot.slane %v4275_v16, 4  ;;  %v4282_v62 = vsel %vm1516_vm2, %v4090_v34, -inf  ;;  %v4592_v47 = vld [vmem:[#allocation15 + $0x4e8] sm:$0xff] }
 0x3f8   : > { %v4402_v32 = vsel %vm1520_vm6, %v4365_v26, %v4394_v51  ;;  %v4251_v41 = vmax.f32 %v4249_v10, %v4250_v29  ;;  %v4258_v43 = vmax.f32 %v4256_v9, %v4257_v37  ;;  %v4283_v35 = vrot.slane %v4282_v62, 4  ;;  %v4609_v10 = vld [vmem:[#allocation15 + $0x570] sm:$0xff]  ;;  %v4576_v51 = vld [vmem:[#allocation15 + $0x468] sm:$0xff] }
 0x3f9   : > { %v4413_v17 = vrot.slane %v4402_v32, 5  ;;  %v4265_v60 = vmax.f32 %v4263_v15, %v4264_v38  ;;  %v4271_v57 = vrot.slane %v4270_v44, 2  ;;  %v4277_v27 = vmax.f32 %v4275_v16, %v4276_v40  ;;  %v4625_v9 = vld [vmem:[#allocation15 + $0x5f0] sm:$0xff]  ;;  %v4624_v32 = vld [vmem:[#allocation15 + $0x5e8] sm:$0xff] }
 0x3fa   : > { %v4252_v55 = vrot.slane %v4251_v41, 1  ;;  %v4259_v63 = vrot.slane %v4258_v43, 1  ;;  %v4284_v31 = vmax.f32 %v4282_v62, %v4283_v35  ;;  %v4289_v4 = vsel %vm1516_vm2, %v7273_v30, -inf }
 0x3fb   : > { %v4414_v12 = vsel %vm2245_vm8, %v4413_v17, %v4412_v42  ;;  %v4266_v36 = vrot.slane %v4265_v60, 1  ;;  %v7302_v11 = vmax.f32 %v4270_v44, %v4271_v57  ;;  %v4278_v2 = vrot.slane %v4277_v27, 2  ;;  %v4608_v42 = vld [vmem:[#allocation15 + $0x568] sm:$0xff]  ;;  %v4100_v44 = vld.sshfl [vmem:[#allocation1 + $0x28] sm:$0xff pattern:$0x73625140] }
 0x3fc   : > { %v4415_v8 = vsel %vm2253_vm12, %v4413_v17, %v4414_v12  ;;  %v4285_v25 = vrot.slane %v4284_v31, 2  ;;  %v7314_v7 = vmax.f32 %v4251_v41, %v4252_v55  ;;  %v7316_v18 = vmax.f32 %v4258_v43, %v4259_v63  ;;  %v4575_v43 = vld [vmem:[#allocation15 + $0x460] sm:$0xff] }
 0x3fd   : > { %v7306_v34 = vperm.slane %v4415_v8, %v4429_v52  ;;  %v7308_v6 = vmax.f32 %v4277_v27, %v4278_v2  ;;  %v7318_v20 = vmax.f32 %v4265_v60, %v4266_v36  ;;  %v4273_v23 = vrot.slane %v7302_v11, 1  ;;  %v4591_v60 = vld [vmem:[#allocation15 + $0x4e0] sm:$0xff] }
 0x3fe   : > { %v7323_v53 = vmax.f32 %v4284_v31, %v4285_v25  ;;  %v4290_v21 = vrot.slane %v4289_v4, 4  ;;  %v4296_v5 = vsel %vm1516_vm2, %v7277_v45, -inf  ;;  %v4303_v13 = vsel %vm1516_vm2, %v4094_v3, -inf  ;;  %v4607_v55 = vld [vmem:[#allocation15 + $0x560] sm:$0xff] }
 0x3ff   : > { %v4694_v58 = vperm.slane %v7306_v34, 0  ;;  %v4695_v1 = vperm.slane %v7306_v34, 1  ;;  %v4696_v46 = vperm.slane %v7306_v34, 2  ;;  %v4697_v19 = vperm.slane %v7306_v34, 3  ;;  %v4623_v63 = vld [vmem:[#allocation15 + $0x5e0] sm:$0xff] }
 0x400   : > { %v4698_v61 = vperm.slane %v7306_v34, 4  ;;  %v4699_v24 = vperm.slane %v7306_v34, 5  ;;  %v4310_v0 = vsel %vm1516_vm2, %v4095_v56, -inf  ;;  %v4700_v15 = vperm.slane %v7306_v34, 6 }
 0x401   : > { %4742 = vmatmul.f32.vlgmr.msrb.gmra.mxu0 %v4694_v58  ;;  %4762 = vmatmul.f32.vlgmr.msrb.gmra.mxu1 %v4695_v1  ;;  %v4280_v30 = vrot.slane %v7308_v6, 1  ;;  %v4297_v16 = vrot.slane %v4296_v5, 4  ;;  %v4304_v26 = vrot.slane %v4303_v13, 4  ;;  %v4291_v45 = vmax.f32 %v4289_v4, %v4290_v21  ;;  %v4574_v1 = vld [vmem:[#allocation15 + $0x458] sm:$0xff] }
 0x402   : > { %4782 = vmatmul.f32.vlgmr.msrb.gmra.mxu2 %v4696_v46  ;;  %4802 = vmatmul.f32.vlgmr.msrb.gmra.mxu3 %v4697_v19  ;;  %v4311_v29 = vrot.slane %v4310_v0, 4  ;;  %v4317_v37 = vsel %vm1516_vm2, %v4096_v54, -inf  ;;  %v4324_v38 = vsel %vm1516_vm2, %v4097_v59, -inf  ;;  %v4287_v40 = vrot.slane %v7323_v53, 1  ;;  %v4622_v59 = vld [vmem:[#allocation15 + $0x5d8] sm:$0xff] }
 0x403   : > { %4886 = vmatpush.msrb.mxu0 %v4578_v50  ;;  %4906 = vmatpush.msrb.mxu1 %v4594_v28  ;;  %v4298_v62 = vmax.f32 %v4296_v5, %v4297_v16  ;;  %v4305_v17 = vmax.f32 %v4303_v13, %v4304_v26  ;;  %v4318_v41 = vrot.slane %v4317_v37, 4  ;;  %v4292_v57 = vrot.slane %v4291_v45, 2  ;;  %v4101_v21 = vld.sshfl [vmem:[#allocation1 + $0x30] sm:$0xff pattern:$0x73625140] }
 0x404   : > { %4926 = vmatpush.msrb.mxu2 %v4610_v48  ;;  %4946 = vmatpush.msrb.mxu3 %v4626_v14  ;;  %v4312_v27 = vmax.f32 %v4310_v0, %v4311_v29  ;;  %v4325_v35 = vrot.slane %v4324_v38, 4  ;;  %v4331_v12 = vsel %vm1516_vm2, %v4099_v33, -inf  ;;  %v4338_v58 = vsel %vm1516_vm2, %v4100_v44, -inf  ;;  %v4590_v48 = vld [vmem:[#allocation15 + $0x4d8] sm:$0xff]  ;;  %v4588_v29 = vld [vmem:[#allocation15 + $0x4c8] sm:$0xff] }
 0x405   : > { %4887 = vmatpush.msrb.mxu0 %v4577_v39  ;;  %4907 = vmatpush.msrb.mxu1 %v4593_v49  ;;  %v4299_v36 = vrot.slane %v4298_v62, 2  ;;  %v4306_v8 = vrot.slane %v4305_v17, 2  ;;  %v4319_v2 = vmax.f32 %v4317_v37, %v4318_v41  ;;  %v4332_v31 = vrot.slane %v4331_v12, 4  ;;  %v4606_v14 = vld [vmem:[#allocation15 + $0x558] sm:$0xff]  ;;  %v4573_v49 = vld [vmem:[#allocation15 + $0x450] sm:$0xff] }
 0x406   : > { %4927 = vmatpush.msrb.mxu2 %v4609_v10  ;;  %4947 = vmatpush.msrb.mxu3 %v4625_v9  ;;  %v4293_v3 = vmax.f32 %v4291_v45, %v4292_v57  ;;  %v4313_v56 = vrot.slane %v4312_v27, 2  ;;  %v4326_v25 = vmax.f32 %v4324_v38, %v4325_v35  ;;  %v4701_v54 = vperm.slane %v7306_v34, 7  ;;  %v4589_v9 = vld [vmem:[#allocation15 + $0x4d0] sm:$0xff]  ;;  %v4102_v16 = vld.sshfl [vmem:[#allocation1 + $0x38] sm:$0xff pattern:$0x73625140] }
 0x407   : > { %4888 = vmatpush.msrb.mxu0 %v4576_v51  ;;  %4908 = vmatpush.msrb.mxu1 %v4592_v47  ;;  %v4300_v46 = vmax.f32 %v4298_v62, %v4299_v36  ;;  %v4307_v19 = vmax.f32 %v4305_v17, %v4306_v8  ;;  %v4320_v50 = vrot.slane %v4319_v2, 2  ;;  %v7338_v28 = vmax.f32 %v4331_v12, %v4332_v31  ;;  %v4605_v47 = vld [vmem:[#allocation15 + $0x550] sm:$0xff]  ;;  %v4572_v45 = vld [vmem:[#allocation15 + $0x448] sm:$0xff]  ;;  %v4603_v12 = vld [vmem:[#allocation15 + $0x540] sm:$0xff] }
 0x408   : > { %4928 = vmatpush.msrb.mxu2 %v4608_v42  ;;  %4948 = vmatpush.msrb.mxu3 %v4624_v32  ;;  %v4314_v33 = vmax.f32 %v4312_v27, %v4313_v56  ;;  %v4327_v4 = vrot.slane %v4326_v25, 2  ;;  %v4339_v39 = vrot.slane %v4338_v58, 4  ;;  %v7348_v5 = vmax.f32 %v7302_v11, %v4273_v23  ;;  %v4621_v42 = vld [vmem:[#allocation15 + $0x5d0] sm:$0xff]  ;;  %v4586_v31 = vld [vmem:[#allocation15 + $0x4b8] sm:$0xff] }
 0x409   : > { %4889 = vmatpush.msrb.mxu0 %v4575_v43  ;;  %4909 = vmatpush.msrb.mxu1 %v4591_v60  ;;  %v4294_v13 = vrot.slane %v4293_v3, 1  ;;  %v4301_v0 = vrot.slane %v4300_v46, 1  ;;  %v4321_v10 = vmax.f32 %v4319_v2, %v4320_v50  ;;  %v7355_v11 = vmax.f32 %v7308_v6, %v4280_v30  ;;  %v4604_v6 = vld [vmem:[#allocation15 + $0x548] sm:$0xff]  ;;  %v4587_v43 = vld [vmem:[#allocation15 + $0x4c0] sm:$0xff]  ;;  %v4570_v2 = vld [vmem:[#allocation15 + $0x438] sm:$0xff] }
 0x40a   : > { %4929 = vmatpush.msrb.mxu2 %v4607_v55  ;;  %4949 = vmatpush.msrb.mxu3 %v4623_v63  ;;  %v4315_v26 = vrot.slane %v4314_v33, 1  ;;  %v4328_v51 = vmax.f32 %v4326_v25, %v4327_v4  ;;  %v4288_v34 = vmax.f32 %v7323_v53, %v4287_v40  ;;  %v4345_v44 = vsel %vm1516_vm2, %v4101_v21, -inf  ;;  %v4620_v30 = vld [vmem:[#allocation15 + $0x5c8] sm:$0xff]  ;;  %v4571_v40 = vld [vmem:[#allocation15 + $0x440] sm:$0xff]  ;;  %v4617_v4 = vld [vmem:[#allocation15 + $0x5b0] sm:$0xff] }
 0x40b   : > { %4822 = vmatmul.f32.vlgmr.msra.gmra.mxu0 %v4698_v61  ;;  %4842 = vmatmul.f32.vlgmr.msra.gmra.mxu1 %v4699_v24  ;;  %v4308_v61 = vrot.slane %v4307_v19, 1  ;;  %v4340_v24 = vmax.f32 %v4338_v58, %v4339_v39  ;;  %v4322_v23 = vrot.slane %v4321_v10, 1  ;;  %v4302_v37 = vmax.f32 %v4300_v46, %v4301_v0  ;;  %v4619_v55 = vld [vmem:[#allocation15 + $0x5c0] sm:$0xff]  ;;  %v4602_v58 = vld [vmem:[#allocation15 + $0x538] sm:$0xff] }
 0x40c   : > { %4862 = vmatmul.f32.vlgmr.msra.gmra.mxu2 %v4700_v15  ;;  %4882 = vmatmul.f32.vlgmr.msra.gmra.mxu3 %v4701_v54  ;;  %v4334_v15 = vrot.slane %v7338_v28, 2  ;;  %v4329_v38 = vrot.slane %v4328_v51, 1  ;;  %v4295_v62 = vmax.f32 %v4293_v3, %v4294_v13  ;;  %v4316_v17 = vmax.f32 %v4314_v33, %v4315_v26  ;;  %v4569_v54 = vld [vmem:[#allocation15 + $0x430] sm:$0xff]  ;;  %v4584_v13 = vld [vmem:[#allocation15 + $0x4a8] sm:$0xff] }
 0x40d   : > { %4890 = vmatpush.msrb.mxu0 %v4574_v1  ;;  %4910 = vmatpush.msrb.mxu1 %v4590_v48  ;;  %v4341_v32 = vrot.slane %v4340_v24, 2  ;;  %v4346_v41 = vrot.slane %v4345_v44, 4  ;;  %v4352_v53 = vsel %vm1516_vm2, %v4102_v16, -inf  ;;  %v4309_v60 = vmax.f32 %v4307_v19, %v4308_v61  ;;  %v4618_v1 = vld [vmem:[#allocation15 + $0x5b8] sm:$0xff]  ;;  %v4585_v48 = vld [vmem:[#allocation15 + $0x4b0] sm:$0xff]  ;;  %v4600_v61 = vld [vmem:[#allocation15 + $0x528] sm:$0xff] }
 0x40e   : > { %4930 = vmatpush.msrb.mxu2 %v4606_v14  ;;  %4950 = vmatpush.msrb.mxu3 %v4622_v59  ;;  %v4330_v57 = vmax.f32 %v4328_v51, %v4329_v38  ;;  %v4353_v35 = vrot.slane %v4352_v53, 4  ;;  %v4323_v63 = vmax.f32 %v4321_v10, %v4322_v23  ;;  %v4368_v8 = vmax.f32 %v7316_v18, %v7348_v5  ;;  %v4568_v5 = vld [vmem:[#allocation15 + $0x428] sm:$0xff]  ;;  %v4582_v38 = vld [vmem:[#allocation15 + $0x498] sm:$0xff] }
 0x40f   : > { %4891 = vmatpush.msrb.mxu0 %v4573_v49  ;;  %4911 = vmatpush.msrb.mxu1 %v4589_v9  ;;  %v4342_v27 = vmax.f32 %v4340_v24, %v4341_v32  ;;  %v4347_v36 = vmax.f32 %v4345_v44, %v4346_v41  ;;  %v4335_v3 = vmax.f32 %v7338_v28, %v4334_v15  ;;  %v4601_v28 = vld [vmem:[#allocation15 + $0x530] sm:$0xff]  ;;  %v4616_v26 = vld [vmem:[#allocation15 + $0x5a8] sm:$0xff] }
 0x410   : > { %4931 = vmatpush.msrb.mxu2 %v4605_v47  ;;  %4951 = vmatpush.msrb.mxu3 %v4621_v42  ;;  %v4354_v56 = vmax.f32 %v4352_v53, %v4353_v35  ;;  %v4370_v25 = vmax.f32 %v4288_v34, %v4302_v37  ;;  %v4372_v50 = vmax.f32 %v4316_v17, %v4330_v57  ;;  %v4395_v59 = vrot.slane %v4368_v8, 4  ;;  %v4567_v42 = vld [vmem:[#allocation15 + $0x420] sm:$0xff]  ;;  %v4566_v37 = vld [vmem:[#allocation15 + $0x418] sm:$0xff]  ;;  %v4565_v17 = vld [vmem:[#allocation15 + $0x410] sm:$0xff] }
 0x411   : > { %4892 = vmatpush.msrb.mxu0 %v4572_v45  ;;  %4912 = vmatpush.msrb.mxu1 %v4588_v29  ;;  %v4343_v46 = vrot.slane %v4342_v27, 1  ;;  %v4348_v19 = vrot.slane %v4347_v36, 2  ;;  %v4369_v14 = vmax.f32 %v7355_v11, %v4295_v62  ;;  %v4371_v49 = vmax.f32 %v4309_v60, %v4323_v63  ;;  %v4583_v11 = vld [vmem:[#allocation15 + $0x4a0] sm:$0xff]  ;;  %v4614_v62 = vld [vmem:[#allocation15 + $0x598] sm:$0xff]  ;;  %v4581_v41 = vld [vmem:[#allocation15 + $0x490] sm:$0xff] }
 0x412   : > { %4932 = vmatpush.msrb.mxu2 %v4604_v6  ;;  %4952 = vmatpush.msrb.mxu3 %v4620_v30  ;;  %v4355_v18 = vrot.slane %v4354_v56, 2  ;;  %v4396_v33 = vrot.slane %v4370_v25, 4  ;;  %v4397_v21 = vrot.slane %v4372_v50, 4  ;;  %v4336_v0 = vrot.slane %v4335_v3, 1  ;;  %v4598_v30 = vld [vmem:[#allocation15 + $0x518] sm:$0xff]  ;;  %v4613_v60 = vld [vmem:[#allocation15 + $0x590] sm:$0xff] }
 0x413   : > { %4893 = vmatpush.msrb.mxu0 %v4571_v40  ;;  %4913 = vmatpush.msrb.mxu1 %v4587_v43  ;;  %v4349_v39 = vmax.f32 %v4347_v36, %v4348_v19  ;;  %v4367_v9 = vmax.f32 %v7314_v7, %v7318_v20  ;;  %v4344_v34 = vmax.f32 %v4342_v27, %v4343_v46  ;;  %v4599_v7 = vld [vmem:[#allocation15 + $0x520] sm:$0xff]  ;;  %v4597_v43 = vld [vmem:[#allocation15 + $0x510] sm:$0xff]  ;;  %v4564_v27 = vld [vmem:[#allocation15 + $0x408] sm:$0xff] }
 0x414   : > { %4933 = vmatpush.msrb.mxu2 %v4603_v12  ;;  %4953 = vmatpush.msrb.mxu3 %v4619_v55  ;;  %v4356_v10 = vmax.f32 %v4354_v56, %v4355_v18  ;;  %v4404_v16 = vsel %vm1520_vm6, %v4369_v14, %v4396_v33  ;;  %v4405_v24 = vsel %vm1520_vm6, %v4371_v49, %v4397_v21  ;;  %v4615_v20 = vld [vmem:[#allocation15 + $0x5a0] sm:$0xff]  ;;  %v4580_v35 = vld [vmem:[#allocation15 + $0x488] sm:$0xff]  ;;  %v4658_v46 = vld [vmem:[#allocation15 + $0x6f8] sm:$0xff] }
 0x415   : > { %4894 = vmatpush.msrb.mxu0 %v4570_v2  ;;  %4914 = vmatpush.msrb.mxu1 %v4586_v31  ;;  %v4350_v51 = vrot.slane %v4349_v39, 1  ;;  %v4416_v47 = vrot.slane %v4404_v16, 7  ;;  %v4403_v15 = vsel %vm1520_vm6, %v4367_v9, %v4395_v59  ;;  %v4419_v29 = vrot.slane %v4405_v24, 6  ;;  %v4596_v63 = vld [vmem:[#allocation15 + $0x508] sm:$0xff]  ;;  %v4563_v8 = vld [vmem:[#allocation15 + $0x400] sm:$0xff]  ;;  %v4674_v50 = vld [vmem:[#allocation15 + $0x778] sm:$0xff] }
 0x416   : > { %4934 = vmatpush.msrb.mxu2 %v4602_v58  ;;  %4954 = vmatpush.msrb.mxu3 %v4618_v1  ;;  %v4357_v23 = vrot.slane %v4356_v10, 1  ;;  %v4337_v32 = vmax.f32 %v4335_v3, %v4336_v0  ;;  %v4612_v36 = vld [vmem:[#allocation15 + $0x588] sm:$0xff]  ;;  %v4579_v2 = vld [vmem:[#allocation15 + $0x480] sm:$0xff]  ;;  %v4642_v1 = vld [vmem:[#allocation15 + $0x678] sm:$0xff] }
 0x417   : > { %4895 = vmatpush.msrb.mxu0 %v4569_v54  ;;  %4915 = vmatpush.msrb.mxu1 %v4585_v48  ;;  %v4417_v45 = vsel %vm2260_vm13, %v4416_v47, %v4403_v15  ;;  %v4351_v44 = vmax.f32 %v4349_v39, %v4350_v51  ;;  %v4595_v56 = vld [vmem:[#allocation15 + $0x500] sm:$0xff]  ;;  %v4690_v54 = vld [vmem:[#allocation15 + $0x7f8] sm:$0xff]  ;;  %v4641_v18 = vld [vmem:[#allocation15 + $0x670] sm:$0xff] }
 0x418   : > { %4935 = vmatpush.msrb.mxu2 %v4601_v28  ;;  %4955 = vmatpush.msrb.mxu3 %v4617_v4  ;;  %v4358_v6 = vmax.f32 %v4356_v10, %v4357_v23  ;;  %v4418_v40 = vsel %vm2249_vm10, %v4416_v47, %v4417_v45  ;;  %v4611_v25 = vld [vmem:[#allocation15 + $0x580] sm:$0xff]  ;;  %v4657_v14 = vld [vmem:[#allocation15 + $0x6f0] sm:$0xff]  ;;  %v4670_v51 = vld [vmem:[#allocation15 + $0x758] sm:$0xff] }
 0x419   : > { %4896 = vmatpush.msrb.mxu0 %v4568_v5  ;;  %4916 = vmatpush.msrb.mxu1 %v4584_v13  ;;  %v4420_v57 = vsel %vm2262_vm14, %v4419_v29, %v4418_v40  ;;  %v4373_v12 = vmax.f32 %v4337_v32, %v4351_v44  ;;  %v4673_v33 = vld [vmem:[#allocation15 + $0x770] sm:$0xff]  ;;  %v4672_v5 = vld [vmem:[#allocation15 + $0x768] sm:$0xff]  ;;  %v4639_v0 = vld [vmem:[#allocation15 + $0x660] sm:$0xff] }
 0x41a   : > { %4936 = vmatpush.msrb.mxu2 %v4600_v61  ;;  %4956 = vmatpush.msrb.mxu3 %v4616_v26  ;;  %v4374_v53 = vmax.f32 %v4344_v34, %v4358_v6  ;;  %v4421_v3 = vsel %vm2251_vm11, %v4419_v29, %v4420_v57  ;;  %v4689_v28 = vld [vmem:[#allocation15 + $0x7f0] sm:$0xff]  ;;  %v4688_v13 = vld [vmem:[#allocation15 + $0x7e8] sm:$0xff]  ;;  %v4655_v10 = vld [vmem:[#allocation15 + $0x6e0] sm:$0xff] }
 0x41b   : > { %4897 = vmatpush.msrb.mxu0 %v4567_v42  ;;  %4917 = vmatpush.msrb.mxu1 %v4583_v11  ;;  %v4671_v9 = vld [vmem:[#allocation15 + $0x760] sm:$0xff]  ;;  %v4638_v61 = vld [vmem:[#allocation15 + $0x658] sm:$0xff]  ;;  %v4637_v47 = vld [vmem:[#allocation15 + $0x650] sm:$0xff] }
 0x41c   : > { %4937 = vmatpush.msrb.mxu2 %v4599_v7  ;;  %4957 = vmatpush.msrb.mxu3 %v4615_v20  ;;  %v4398_v55 = vrot.slane %v4374_v53, 4  ;;  %v4687_v16 = vld [vmem:[#allocation15 + $0x7e0] sm:$0xff]  ;;  %v4654_v26 = vld [vmem:[#allocation15 + $0x6d8] sm:$0xff]  ;;  %v4653_v42 = vld [vmem:[#allocation15 + $0x6d0] sm:$0xff] }
 0x41d   : > { %4898 = vmatpush.msrb.mxu0 %v4566_v37  ;;  %4918 = vmatpush.msrb.mxu1 %v4582_v38  ;;  %v4686_v24 = vld [vmem:[#allocation15 + $0x7d8] sm:$0xff]  ;;  %v4669_v11 = vld [vmem:[#allocation15 + $0x750] sm:$0xff]  ;;  %v4636_v23 = vld [vmem:[#allocation15 + $0x648] sm:$0xff] }
 0x41e   : > { %4938 = vmatpush.msrb.mxu2 %v4598_v30  ;;  %4958 = vmatpush.msrb.mxu3 %v4614_v62  ;;  %v4406_v31 = vsel %vm1520_vm6, %v4373_v12, %v4398_v55  ;;  %v4685_v34 = vld [vmem:[#allocation15 + $0x7d0] sm:$0xff]  ;;  %v4652_v15 = vld [vmem:[#allocation15 + $0x6c8] sm:$0xff]  ;;  %v4635_v45 = vld [vmem:[#allocation15 + $0x640] sm:$0xff] }
 0x41f   : > { %4899 = vmatpush.msrb.mxu0 %v4565_v17  ;;  %4919 = vmatpush.msrb.mxu1 %v4581_v41  ;;  %v4422_v58 = vrot.slane %v4406_v31, 5  ;;  %v4668_v7 = vld [vmem:[#allocation15 + $0x748] sm:$0xff]  ;;  %v4651_v29 = vld [vmem:[#allocation15 + $0x6c0] sm:$0xff]  ;;  %v4634_v32 = vld [vmem:[#allocation15 + $0x638] sm:$0xff] }
 0x420   : > { %4939 = vmatpush.msrb.mxu2 %v4597_v43  ;;  %4959 = vmatpush.msrb.mxu3 %v4613_v60  ;;  %v4684_v20 = vld [vmem:[#allocation15 + $0x7c8] sm:$0xff]  ;;  %v4667_v37 = vld [vmem:[#allocation15 + $0x740] sm:$0xff]  ;;  %v4650_v44 = vld [vmem:[#allocation15 + $0x6b8] sm:$0xff] }
 0x421   : > { %4900 = vmatpush.msrb.mxu0 %v4564_v27  ;;  %4920 = vmatpush.msrb.mxu1 %v4580_v35  ;;  %v4423_v19 = vsel %vm2245_vm8, %v4422_v58, %v4421_v3  ;;  %v4683_v38 = vld [vmem:[#allocation15 + $0x7c0] sm:$0xff]  ;;  %v4666_v6 = vld [vmem:[#allocation15 + $0x738] sm:$0xff]  ;;  %v4633_v62 = vld [vmem:[#allocation15 + $0x630] sm:$0xff] }
 0x422   : > { %4940 = vmatpush.msrb.mxu2 %v4596_v63  ;;  %4960 = vmatpush.msrb.mxu3 %v4612_v36  ;;  %v4424_v48 = vsel %vm2253_vm12, %v4422_v58, %v4423_v19  ;;  %v4682_v30 = vld [vmem:[#allocation15 + $0x7b8] sm:$0xff]  ;;  %v4649_v17 = vld [vmem:[#allocation15 + $0x6b0] sm:$0xff]  ;;  %v4632_v40 = vld [vmem:[#allocation15 + $0x628] sm:$0xff] }
 0x423   : > { %4901 = vmatpush.msrb.mxu0 %v4563_v8  ;;  %4921 = vmatpush.msrb.mxu1 %v4579_v2  ;;  %v7381_v59 = vperm.slane %v4424_v48, %v4429_v52  ;;  %v4656_v52 = vld [vmem:[#allocation15 + $0x6e8] sm:$0xff]  ;;  %v4665_v41 = vld [vmem:[#allocation15 + $0x730] sm:$0xff]  ;;  %v4631_v27 = vld [vmem:[#allocation15 + $0x620] sm:$0xff] }
 0x424   : > { %4941 = vmatpush.msrb.mxu2 %v4595_v56  ;;  %4961 = vmatpush.msrb.mxu3 %v4611_v25  ;;  %v4681_v53 = vld [vmem:[#allocation15 + $0x7b0] sm:$0xff]  ;;  %v4648_v43 = vld [vmem:[#allocation15 + $0x6a8] sm:$0xff]  ;;  %v4647_v35 = vld [vmem:[#allocation15 + $0x6a0] sm:$0xff] }
 0x425   : > { %4966 = vmatpush.msra.mxu0 %v4642_v1  ;;  %4986 = vmatpush.msra.mxu1 %v4658_v46  ;;  %v4702_v4 = vperm.slane %v7381_v59, 0  ;;  %v4703_v39 = vperm.slane %v7381_v59, 1  ;;  %v4704_v49 = vperm.slane %v7381_v59, 2  ;;  %v4705_v21 = vperm.slane %v7381_v59, 3  ;;  %v4664_v60 = vld [vmem:[#allocation15 + $0x728] sm:$0xff]  ;;  %v4663_v12 = vld [vmem:[#allocation15 + $0x720] sm:$0xff] }
 0x426   : > { %5006 = vmatpush.msra.mxu2 %v4674_v50  ;;  %5026 = vmatpush.msra.mxu3 %v4690_v54  ;;  %v4680_v57 = vld [vmem:[#allocation15 + $0x7a8] sm:$0xff]  ;;  %v4679_v55 = vld [vmem:[#allocation15 + $0x7a0] sm:$0xff]  ;;  %v4630_v63 = vld [vmem:[#allocation15 + $0x618] sm:$0xff] }
 0x427   : > { %4967 = vmatpush.msra.mxu0 %v4641_v18  ;;  %4987 = vmatpush.msra.mxu1 %v4657_v14  ;;  %v4646_v36 = vld [vmem:[#allocation15 + $0x698] sm:$0xff]  ;;  %v4629_v31 = vld [vmem:[#allocation15 + $0x610] sm:$0xff]  ;;  %v4628_v58 = vld [vmem:[#allocation15 + $0x608] sm:$0xff]  ;;  %v4706_v14 = vperm.slane %v7381_v59, 4 }
 0x428   : > { %5007 = vmatpush.msra.mxu2 %v4673_v33  ;;  %5027 = vmatpush.msra.mxu3 %v4689_v28  ;;  %v4662_v8 = vld [vmem:[#allocation15 + $0x718] sm:$0xff]  ;;  %v4645_v3 = vld [vmem:[#allocation15 + $0x690] sm:$0xff]  ;;  %v4644_v1 = vld [vmem:[#allocation15 + $0x688] sm:$0xff]  ;;  %v4707_v33 = vperm.slane %v7381_v59, 5  ;;  %v4708_v28 = vperm.slane %v7381_v59, 6 }
 0x429   : > { %4902 = vmatmul.f32.vlgmr.msrb.gmra.mxu0 %v4702_v4  ;;  %4922 = vmatmul.f32.vlgmr.msrb.gmra.mxu1 %v4703_v39  ;;  %v4678_v2 = vld [vmem:[#allocation15 + $0x798] sm:$0xff]  ;;  %v4661_v56 = vld [vmem:[#allocation15 + $0x710] sm:$0xff]  ;;  %v4660_v46 = vld [vmem:[#allocation15 + $0x708] sm:$0xff]  ;;  %v4709_v4 = vperm.slane %v7381_v59, 7 }
 0x42a   : > { %4942 = vmatmul.f32.vlgmr.msrb.gmra.mxu2 %v4704_v49  ;;  %4962 = vmatmul.f32.vlgmr.msrb.gmra.mxu3 %v4705_v21  ;;  %v4677_v25 = vld [vmem:[#allocation15 + $0x790] sm:$0xff]  ;;  %v4676_v19 = vld [vmem:[#allocation15 + $0x788] sm:$0xff]  ;;  %v4627_v50 = vld [vmem:[#allocation15 + $0x600] sm:$0xff] }
 0x42b   : > { %4968 = vmatpush.msra.mxu0 %v4640_v22  ;;  %4988 = vmatpush.msra.mxu1 %v4656_v52  ;;  %v4643_v54 = vld [vmem:[#allocation15 + $0x680] sm:$0xff] }
 0x42c   : > { %5008 = vmatpush.msra.mxu2 %v4672_v5  ;;  %5028 = vmatpush.msra.mxu3 %v4688_v13  ;;  %v4659_v48 = vld [vmem:[#allocation15 + $0x700] sm:$0xff] }
 0x42d   : > { %4969 = vmatpush.msra.mxu0 %v4639_v0  ;;  %4989 = vmatpush.msra.mxu1 %v4655_v10  ;;  %v4675_v18 = vld [vmem:[#allocation15 + $0x780] sm:$0xff] }
 0x42e   : > { %5009 = vmatpush.msra.mxu2 %v4671_v9  ;;  %5029 = vmatpush.msra.mxu3 %v4687_v16  ;;  %v4691_v39 = vld [vmem:[#allocation16] sm:$0x1] }
 0x42f   : > { %4970 = vmatpush.msra.mxu0 %v4638_v61  ;;  %4990 = vmatpush.msra.mxu1 %v4654_v26 }
 0x430   : > { %5010 = vmatpush.msra.mxu2 %v4670_v51  ;;  %5030 = vmatpush.msra.mxu3 %v4686_v24 }
 0x431   : > { %4971 = vmatpush.msra.mxu0 %v4637_v47  ;;  %4991 = vmatpush.msra.mxu1 %v4653_v42 }
 0x432   : > { %5011 = vmatpush.msra.mxu2 %v4669_v11  ;;  %5031 = vmatpush.msra.mxu3 %v4685_v34 }
 0x433   : > { %4972 = vmatpush.msra.mxu0 %v4636_v23  ;;  %4992 = vmatpush.msra.mxu1 %v4652_v15 }
 0x434   : > { %5012 = vmatpush.msra.mxu2 %v4668_v7  ;;  %5032 = vmatpush.msra.mxu3 %v4684_v20 }
 0x435   : > { %4973 = vmatpush.msra.mxu0 %v4635_v45  ;;  %4993 = vmatpush.msra.mxu1 %v4651_v29 }
 0x436   : > { %5013 = vmatpush.msra.mxu2 %v4667_v37  ;;  %5033 = vmatpush.msra.mxu3 %v4683_v38 }
 0x437   : > { %4974 = vmatpush.msra.mxu0 %v4634_v32  ;;  %4994 = vmatpush.msra.mxu1 %v4650_v44 }
 0x438   : > { %5014 = vmatpush.msra.mxu2 %v4666_v6  ;;  %5034 = vmatpush.msra.mxu3 %v4682_v30 }
 0x439   : > { %4975 = vmatpush.msra.mxu0 %v4633_v62  ;;  %4995 = vmatpush.msra.mxu1 %v4649_v17 }
 0x43a   : > { %5015 = vmatpush.msra.mxu2 %v4665_v41  ;;  %5035 = vmatpush.msra.mxu3 %v4681_v53 }
 0x43b   : > { %4976 = vmatpush.msra.mxu0 %v4632_v40  ;;  %4996 = vmatpush.msra.mxu1 %v4648_v43 }
 0x43c   : > { %5016 = vmatpush.msra.mxu2 %v4664_v60  ;;  %5036 = vmatpush.msra.mxu3 %v4680_v57 }
 0x43d   : > { %4977 = vmatpush.msra.mxu0 %v4631_v27  ;;  %4997 = vmatpush.msra.mxu1 %v4647_v35 }
 0x43e   : > { %5017 = vmatpush.msra.mxu2 %v4663_v12  ;;  %5037 = vmatpush.msra.mxu3 %v4679_v55 }
 0x43f   : > { %4978 = vmatpush.msra.mxu0 %v4630_v63  ;;  %4998 = vmatpush.msra.mxu1 %v4646_v36 }
 0x440   : > { %5018 = vmatpush.msra.mxu2 %v4662_v8  ;;  %5038 = vmatpush.msra.mxu3 %v4678_v2 }
 0x441   : > { %4979 = vmatpush.msra.mxu0 %v4629_v31  ;;  %4999 = vmatpush.msra.mxu1 %v4645_v3 }
 0x442   : > { %5019 = vmatpush.msra.mxu2 %v4661_v56  ;;  %5039 = vmatpush.msra.mxu3 %v4677_v25 }
 0x443   : > { %4980 = vmatpush.msra.mxu0 %v4628_v58  ;;  %5000 = vmatpush.msra.mxu1 %v4644_v1 }
 0x444   : > { %5020 = vmatpush.msra.mxu2 %v4660_v46  ;;  %5040 = vmatpush.msra.mxu3 %v4676_v19 }
 0x445   : > { %4981 = vmatpush.msra.mxu0 %v4627_v50  ;;  %5001 = vmatpush.msra.mxu1 %v4643_v54 }
 0x446   : > { %5021 = vmatpush.msra.mxu2 %v4659_v48  ;;  %5041 = vmatpush.msra.mxu3 %v4675_v18 }
 0x447   : > { %4982 = vmatmul.f32.vlgmr.msra.gmra.mxu0 %v4706_v14  ;;  %5002 = vmatmul.f32.vlgmr.msra.gmra.mxu1 %v4707_v33 }
 0x448   : > { %5022 = vmatmul.f32.vlgmr.msra.gmra.mxu2 %v4708_v28  ;;  %5042 = vmatmul.f32.vlgmr.msra.gmra.mxu3 %v4709_v4 }
 0x47e   : > { %v4743_v49 = vpop.f32.mrf.mxu0  ;;  %v4763_v22 = vpop.f32.mrf.mxu1 }
 0x47f   : > { %v4744_v21 = vadd.f32 %v4743_v49, %v4691_v39 }
 0x481   : > { %v4764_v5 = vadd.f32 %v4763_v22, %v4744_v21 }
 0x485   : > { %v4783_v52 = vpop.f32.mrf.mxu2  ;;  %v4803_v0 = vpop.f32.mrf.mxu3 }
 0x486   : > { %v4784_v13 = vadd.f32 %v4783_v52, %v4764_v5 }
 0x488   : > { %v4804_v10 = vadd.f32 %v4803_v0, %v4784_v13  ;;  %v4823_v9 = vpop.f32.mrf.mxu0  ;;  %v4843_v61 = vpop.f32.mrf.mxu1 }
 0x48a   : > { %v4824_v16 = vadd.f32 %v4823_v9, %v4804_v10 }
 0x48c   : > { %v4844_v26 = vadd.f32 %v4843_v61, %v4824_v16 }
 0x48f   : > { %v4863_v59 = vpop.f32.mrf.mxu2  ;;  %v4883_v24 = vpop.f32.mrf.mxu3 }
 0x490   : > { %v4864_v51 = vadd.f32 %v4863_v59, %v4844_v26 }
 0x492   : > { %v4884_v42 = vadd.f32 %v4883_v24, %v4864_v51 }
 0x4a6   : > { %v4903_v47 = vpop.f32.mrf.mxu0  ;;  %v4923_v34 = vpop.f32.mrf.mxu1 }
 0x4a7   : > { %v4904_v11 = vadd.f32 %v4903_v47, %v4884_v42 }
 0x4a9   : > { %v4924_v15 = vadd.f32 %v4923_v34, %v4904_v11 }
 0x4ad   : > { %v4943_v23 = vpop.f32.mrf.mxu2  ;;  %v4963_v20 = vpop.f32.mrf.mxu3 }
 0x4ae   : > { %v4944_v7 = vadd.f32 %v4943_v23, %v4924_v15 }
 0x4b0   : > { %v4964_v45 = vadd.f32 %v4963_v20, %v4944_v7 }
 0x4c4   : > { %v4983_v29 = vpop.f32.mrf.mxu0  ;;  %v5003_v38 = vpop.f32.mrf.mxu1 }
 0x4c5   : > { %v4984_v37 = vadd.f32 %v4983_v29, %v4964_v45 }
 0x4c7   : > { %v5004_v32 = vadd.f32 %v5003_v38, %v4984_v37 }
 0x4cb   : > { %v5023_v44 = vpop.f32.mrf.mxu2  ;;  %v5043_v30 = vpop.f32.mrf.mxu3 }
 0x4cc   : > { %v5024_v6 = vadd.f32 %v5023_v44, %v5004_v32 }
 0x4ce   : > { %v5044_v62 = vadd.f32 %v5043_v30, %v5024_v6 }
 0x4d0   : > { %5046 = vst [vmem:[%s447_s4] sm:$0x1] %v5044_v62 }
 0x4d1   : > { %5695 = shalt.err (!%p5692_p8)
}
 0x4d2   : > { %5331 = dma.vmem_to_hbm [thread:$0]  (%p5854_p5), %s5059_s18, 16, %s5061_s16, %s5048_s14  }
 0x4d3 PF: > { %p5378_p9 = scmp.ge.s32.totalorder %s5750_s12, 2  ;;  %s5072_s28 = sand.u32 1, %s5738_s30  }
 0x4d4   : > { %s5073_s25 = scalar_lea.sflag [#allocation6], %s5072_s28 }
 0x4d5   : > { %p5359_p10 = pnand %p5378_p9, %p5858_p6 }
 0x4d7   : > { %p5360_p11 = pneg %p5359_p10 }
 0x4d9   : > { %5733 = dma.done.wait (%p5360_p11), %s5073_s25, 16  }
 0x4da   : > { %5735 = vsyncadd (%p5360_p11), %s5073_s25, 4294967280  ;;  %s7509_s24 = sld [smem:[#allocation25_spill]]  ;;  %p24_p12 = scmp.ge.s32.totalorder %s5841_s15, 4  }
 0x4db   : > { %s7510_s11 = sld [smem:[#allocation26_spill]]  ;;  %s7511_s30 = smov %s5742_s10 }
 0x4dc   : > { %s7513_s12 = smov %s5841_s15  ;;  %26 = sbr.rel (!%p24_p12) target bundleno = 12 (0xc), region = 134 }
 0x4e0   : > { %s7512_s10 = smov %s7509_s24 }
 0x4e1   :  { %5078 = vsyncpa [#allocation5], 1 }
 0x4e2   :  { %5080 = vsyncpa [#allocation5 + $0x1], 1 }
 0x4e3   :  { %5081 = vsyncpa [#allocation8], 1 }
 0x4e4   :  { %5082 = vsyncpa [#allocation11], 1 }
 0x4e5   :  { %5083 = vsyncpa [#allocation14], 1 }
 0x4e6   :  { %5084 = vsyncpa [#allocation17], 1 }
 0x4e7   :  { %5085 = vsyncpa [#allocation6], 1 }
 0x4e8   :  { %5087 = vsyncpa [#allocation6 + $0x1], 1 }

</bundles_post_ra>
